<compile_context>
chip_gen: v7x
topology: tpu7x:2x2x1
jax: 0.10.0
libtpu: 0.0.40
codegen_flags: <defaults>
</compile_context>

<pallas_src>
import jax
import jax.numpy as jnp
from jax import lax
from jax.experimental import pallas as pl
from jax.experimental.pallas import tpu as pltpu

# Problem shapes (fixed by the module: input_size=250, num_hiddens=100).
T = 8        # sequence length
B = 2        # batch
E = 250      # embedding dim == LSTM input_size
H = 100      # num_hiddens
VOCAB = 50   # vocab size of the pretrained embedding table

# Padded shapes used inside the kernel (lane/sublane alignment).
HP = 128           # hidden padded to one 128-lane vreg
GP = 4 * HP        # 512: 4 gates, each 128-aligned
EP = 256           # embedding dim padded to a lane multiple
BP = 8             # batch padded to a full sublane group


# ----------------------------------------------------------------------------- kernel
def rnn_lstm_kernel(x_ref,
                    w0f_ih, w0f_hh, b0f,
                    w0b_ih, w0b_hh, b0b,
                    w1f_ihf, w1f_ihb, w1f_hh, b1f,
                    w1b_ihf, w1b_ihb, w1b_hh, b1b,
                    wd_f0, wd_b0, wd_fT, wd_bT, bd,
                    out_ref,
                    gxf, gxb, l0f, l0b, l1f, l1b):
    seq, bp, ep = x_ref.shape
    hp = w0f_hh.shape[0]          # 128
    gp = w0f_hh.shape[1]          # 512
    f32 = jnp.float32

    # ---------------- bulk layer-0 input projections (off the recurrent chain) --------
    x_all = x_ref[...].reshape(seq * bp, ep)                         # (T*BP, EP)
    gxf[...] = jnp.dot(x_all, w0f_ih[...],
                       preferred_element_type=f32).reshape(seq, bp, gp)
    gxb[...] = jnp.dot(x_all, w0b_ih[...],
                       preferred_element_type=f32).reshape(seq, bp, gp)

    def lstm_cell(gates, c):
        # PyTorch gate order i, f, g, o; each slice is a full 128-lane aligned view.
        i = jax.nn.sigmoid(gates[:, 0 * hp:1 * hp])
        f = jax.nn.sigmoid(gates[:, 1 * hp:2 * hp])
        g = jnp.tanh(gates[:, 2 * hp:3 * hp])
        o = jax.nn.sigmoid(gates[:, 3 * hp:4 * hp])
        c = f * c + i * g
        h = o * jnp.tanh(c)
        return h, c

    def fused_bidir_layer(gx_f, gx_b, whh_f_ref, whh_b_ref, bf_ref, bb_ref, out_f, out_b):
        """Runs the fwd (t = s) and bwd (t = T-1-s) recurrences interleaved in one loop."""
        whh_f = whh_f_ref[...]                                       # (HP, GP)
        whh_b = whh_b_ref[...]
        bias_f = jnp.broadcast_to(bf_ref[...], (bp, gp))             # hoisted broadcast
        bias_b = jnp.broadcast_to(bb_ref[...], (bp, gp))

        def step(s, carry):
            hf, cf, hb, cb = carry
            tb = seq - 1 - s
            gates_f = (gx_f[s]
                       + jnp.dot(hf, whh_f, preferred_element_type=f32)
                       + bias_f)
            gates_b = (gx_b[tb]
                       + jnp.dot(hb, whh_b, preferred_element_type=f32)
                       + bias_b)
            hf, cf = lstm_cell(gates_f, cf)
            hb, cb = lstm_cell(gates_b, cb)
            out_f[s] = hf
            out_b[tb] = hb
            return hf, cf, hb, cb

        z = jnp.zeros((bp, hp), f32)
        lax.fori_loop(0, seq, step, (z, z, z, z), unroll=True)

    # ---------------- layer 0 ----------------
    fused_bidir_layer(gxf, gxb, w0f_hh, w0b_hh, b0f, b0b, l0f, l0b)

    # ---------------- bulk layer-1 input projections (reuse gxf/gxb scratch) ----------
    # concat([l0f, l0b]) @ W1_ih expressed as two matmuls against pre-split weight halves.
    l0f_all = l0f[...].reshape(seq * bp, hp)
    l0b_all = l0b[...].reshape(seq * bp, hp)
    gxf[...] = (jnp.dot(l0f_all, w1f_ihf[...], preferred_element_type=f32)
                + jnp.dot(l0b_all, w1f_ihb[...], preferred_element_type=f32)
                ).reshape(seq, bp, gp)
    gxb[...] = (jnp.dot(l0f_all, w1b_ihf[...], preferred_element_type=f32)
                + jnp.dot(l0b_all, w1b_ihb[...], preferred_element_type=f32)
                ).reshape(seq, bp, gp)

    # ---------------- layer 1 ----------------
    fused_bidir_layer(gxf, gxb, w1f_hh, w1b_hh, b1f, b1b, l1f, l1b)

    # ---------------- decoder: Linear(cat([states[0], states[-1]], dim=1)) ------------
    # encoding columns = [fwd(t=0), bwd(t=0), fwd(t=T-1), bwd(t=T-1)]
    out = (jnp.dot(l1f[0], wd_f0[...], preferred_element_type=f32)
           + jnp.dot(l1b[0], wd_b0[...], preferred_element_type=f32)
           + jnp.dot(l1f[seq - 1], wd_fT[...], preferred_element_type=f32)
           + jnp.dot(l1b[seq - 1], wd_bT[...], preferred_element_type=f32)
           + bd[...])
    out_ref[...] = out.astype(out_ref.dtype)


# ----------------------------------------------------------------------------- wrapper
def _full_spec(shape):
    nd = len(shape)
    return pl.BlockSpec(shape, lambda i, _nd=nd: (0,) * _nd)


def _pad_gate_cols(w):
    """w: (rows, 4H) with gate blocks [i,f,g,o] of width H -> (rows, 4*HP), each gate
    block placed at a 128-aligned column offset with zero padding."""
    rows = w.shape[0]
    w4 = w.reshape(rows, 4, H)
    w4 = jnp.pad(w4, ((0, 0), (0, 0), (0, HP - H)))
    return w4.reshape(rows, GP)


@jax.jit
def my_rnn_net_forward(inputs, params):
    # Embedding gather (glue) + permute([1, 0, 2]) -> (T, B, E), then pad to (T, BP, EP).
    emb = jnp.take(params["embedding"], inputs, axis=0)                # (B, T, E)
    x = jnp.transpose(emb, (1, 0, 2)).astype(jnp.float32)              # (T, B, E)
    x = jnp.pad(x, ((0, 0), (0, BP - B), (0, EP - E)))                 # (T, BP, EP)

    def prep_l0(p):
        w_ih, w_hh, b_ih, b_hh = p                                     # (4H,E),(4H,H),(4H,),(4H,)
        w_ih_t = jnp.pad(_pad_gate_cols(w_ih.T), ((0, EP - E), (0, 0)))     # (EP, GP)
        w_hh_t = jnp.pad(_pad_gate_cols(w_hh.T), ((0, HP - H), (0, 0)))     # (HP, GP)
        b = _pad_gate_cols((b_ih + b_hh).reshape(1, -1))                    # (1, GP)
        return w_ih_t, w_hh_t, b

    def prep_l1(p):
        w_ih, w_hh, b_ih, b_hh = p                                     # (4H,2H),(4H,H),...
        w_ih_t = _pad_gate_cols(w_ih.T)                                # (2H, GP)
        w_f = jnp.pad(w_ih_t[:H], ((0, HP - H), (0, 0)))               # (HP, GP) acts on l0 fwd
        w_b = jnp.pad(w_ih_t[H:], ((0, HP - H), (0, 0)))               # (HP, GP) acts on l0 bwd
        w_hh_t = jnp.pad(_pad_gate_cols(w_hh.T), ((0, HP - H), (0, 0)))
        b = _pad_gate_cols((b_ih + b_hh).reshape(1, -1))
        return w_f, w_b, w_hh_t, b

    w0f_ih, w0f_hh, b0f = prep_l0(params["l0_f"])
    w0b_ih, w0b_hh, b0b = prep_l0(params["l0_b"])
    w1f_ihf, w1f_ihb, w1f_hh, b1f = prep_l1(params["l1_f"])
    w1b_ihf, w1b_ihb, w1b_hh, b1b = prep_l1(params["l1_b"])

    # decoder Linear(4H, 2); split along the encoding-concat boundaries and pad rows to HP.
    wd, bdec = params["decoder"]                                       # (2, 4H), (2,)
    wd_t = wd.T                                                        # (4H, 2)
    wd_f0, wd_b0, wd_fT, wd_bT = (
        jnp.pad(wd_t[k * H:(k + 1) * H], ((0, HP - H), (0, 0))) for k in range(4))
    bdec = bdec.reshape(1, 2)

    args = (x,
            w0f_ih, w0f_hh, b0f,
            w0b_ih, w0b_hh, b0b,
            w1f_ihf, w1f_ihb, w1f_hh, b1f,
            w1b_ihf, w1b_ihb, w1b_hh, b1b,
            wd_f0, wd_b0, wd_fT, wd_bT, bdec)

    out_padded = pl.pallas_call(
        rnn_lstm_kernel,
        out_shape=jax.ShapeDtypeStruct((BP, 2), jnp.float32),
        grid=(1,),
        in_specs=[_full_spec(a.shape) for a in args],
        out_specs=_full_spec((BP, 2)),
        scratch_shapes=[
            pltpu.VMEM((T, BP, GP), jnp.float32),   # gxf: bulk input-projection, fwd
            pltpu.VMEM((T, BP, GP), jnp.float32),   # gxb: bulk input-projection, bwd
            pltpu.VMEM((T, BP, HP), jnp.float32),   # l0f
            pltpu.VMEM((T, BP, HP), jnp.float32),   # l0b
            pltpu.VMEM((T, BP, HP), jnp.float32),   # l1f
            pltpu.VMEM((T, BP, HP), jnp.float32),   # l1b
        ],
        compiler_params=pltpu.CompilerParams(dimension_semantics=("arbitrary",)),
    )(*args)
    return out_padded[:B]


# ----------------------------------------------------------------------------- params / reference
def init_params(key):
    k = float(1.0 / (H ** 0.5))
    keys = list(jax.random.split(key, 32))
    it = iter(keys)

    def u(shape):
        return jax.random.uniform(next(it), shape, jnp.float32, -k, k)

    def lstm_dir(in_size):
        # (weight_ih (4H,in), weight_hh (4H,H), bias_ih (4H,), bias_hh (4H,))
        return (u((4 * H, in_size)), u((4 * H, H)), u((4 * H,)), u((4 * H,)))

    return {
        "embedding": 0.1 * jax.random.normal(next(it), (VOCAB, E), jnp.float32),
        "l0_f": lstm_dir(E),
        "l0_b": lstm_dir(E),
        "l1_f": lstm_dir(2 * H),
        "l1_b": lstm_dir(2 * H),
        "decoder": (u((2, 4 * H)), u((2,))),
    }


def reference_forward(inputs, params):
    """Pure-JAX reference of the PyTorch forward (eval mode)."""
    emb = params["embedding"][inputs]                 # (B, T, E)
    x = jnp.transpose(emb, (1, 0, 2))                 # (T, B, E)

    def run_dir(x_seq, p, reverse):
        w_ih, w_hh, b_ih, b_hh = p

        def step(carry, x_t):
            h, c = carry
            gates = x_t @ w_ih.T + h @ w_hh.T + b_ih + b_hh
            i, f, g, o = jnp.split(gates, 4, axis=-1)
            i, f, o = jax.nn.sigmoid(i), jax.nn.sigmoid(f), jax.nn.sigmoid(o)
            g = jnp.tanh(g)
            c = f * c + i * g
            h = o * jnp.tanh(c)
            return (h, c), h

        h0 = jnp.zeros((x_seq.shape[1], H), jnp.float32)
        xs = x_seq[::-1] if reverse else x_seq
        _, hs = lax.scan(step, (h0, h0), xs)
        return hs[::-1] if reverse else hs

    l0 = jnp.concatenate([run_dir(x, params["l0_f"], False),
                          run_dir(x, params["l0_b"], True)], axis=-1)
    l1 = jnp.concatenate([run_dir(l0, params["l1_f"], False),
                          run_dir(l0, params["l1_b"], True)], axis=-1)
    encoding = jnp.concatenate([l1[0], l1[-1]], axis=1)
    wd, bd = params["decoder"]
    return encoding @ wd.T + bd


# ----------------------------------------------------------------------------- main
if __name__ == "__main__":
    key = jax.random.PRNGKey(0)
    pkey, ikey = jax.random.split(key)
    params = init_params(pkey)
    inputs = jax.random.randint(ikey, (B, T), 0, VOCAB, dtype=jnp.int32)  # token ids

    out = my_rnn_net_forward(inputs, params)
    out = jax.block_until_ready(out)

    ref = reference_forward(inputs, params)
    assert out.shape == (B, 2), out.shape
    if not jnp.allclose(out, ref, atol=1e-2, rtol=1e-2):
        raise AssertionError(f"mismatch:\nkernel={out}\nref={ref}")

    print("KERNEL_OK")
</pallas_src>

<mosaic_0001>
module attributes {stable_mosaic.version = 11 : i64} {
  func.func @rnn_lstm_kernel(%arg0: i32, %arg1: memref<8x8x256xf32, #tpu.memory_space<vmem>>, %arg2: memref<256x512xf32, #tpu.memory_space<vmem>>, %arg3: memref<128x512xf32, #tpu.memory_space<vmem>>, %arg4: memref<1x512xf32, #tpu.memory_space<vmem>>, %arg5: memref<256x512xf32, #tpu.memory_space<vmem>>, %arg6: memref<128x512xf32, #tpu.memory_space<vmem>>, %arg7: memref<1x512xf32, #tpu.memory_space<vmem>>, %arg8: memref<128x512xf32, #tpu.memory_space<vmem>>, %arg9: memref<128x512xf32, #tpu.memory_space<vmem>>, %arg10: memref<128x512xf32, #tpu.memory_space<vmem>>, %arg11: memref<1x512xf32, #tpu.memory_space<vmem>>, %arg12: memref<128x512xf32, #tpu.memory_space<vmem>>, %arg13: memref<128x512xf32, #tpu.memory_space<vmem>>, %arg14: memref<128x512xf32, #tpu.memory_space<vmem>>, %arg15: memref<1x512xf32, #tpu.memory_space<vmem>>, %arg16: memref<128x2xf32, #tpu.memory_space<vmem>>, %arg17: memref<128x2xf32, #tpu.memory_space<vmem>>, %arg18: memref<128x2xf32, #tpu.memory_space<vmem>>, %arg19: memref<128x2xf32, #tpu.memory_space<vmem>>, %arg20: memref<1x2xf32, #tpu.memory_space<vmem>>, %arg21: memref<8x2xf32, #tpu.memory_space<vmem>>, %arg22: memref<8x8x512xf32, #tpu.memory_space<vmem>>, %arg23: memref<8x8x512xf32, #tpu.memory_space<vmem>>, %arg24: memref<8x8x128xf32, #tpu.memory_space<vmem>>, %arg25: memref<8x8x128xf32, #tpu.memory_space<vmem>>, %arg26: memref<8x8x128xf32, #tpu.memory_space<vmem>>, %arg27: memref<8x8x128xf32, #tpu.memory_space<vmem>>) attributes {dimension_semantics = [#tpu.dimension_semantics<arbitrary>], iteration_bounds = array<i64: 1>, scalar_prefetch = 0 : i64, scratch_operands = 6 : i64, tpu.core_type = #tpu.core_type<tc>, window_params = [{pipeline_mode = #tpu.pipeline_mode<synchronous>, transform_indices = @transform_0, window_bounds = array<i64: 8, 8, 256>}, {pipeline_mode = #tpu.pipeline_mode<synchronous>, transform_indices = @transform_1, window_bounds = array<i64: 256, 512>}, {pipeline_mode = #tpu.pipeline_mode<synchronous>, transform_indices = @transform_2, window_bounds = array<i64: 128, 512>}, {pipeline_mode = #tpu.pipeline_mode<synchronous>, transform_indices = @transform_3, window_bounds = array<i64: 1, 512>}, {pipeline_mode = #tpu.pipeline_mode<synchronous>, transform_indices = @transform_4, window_bounds = array<i64: 256, 512>}, {pipeline_mode = #tpu.pipeline_mode<synchronous>, transform_indices = @transform_5, window_bounds = array<i64: 128, 512>}, {pipeline_mode = #tpu.pipeline_mode<synchronous>, transform_indices = @transform_6, window_bounds = array<i64: 1, 512>}, {pipeline_mode = #tpu.pipeline_mode<synchronous>, transform_indices = @transform_7, window_bounds = array<i64: 128, 512>}, {pipeline_mode = #tpu.pipeline_mode<synchronous>, transform_indices = @transform_8, window_bounds = array<i64: 128, 512>}, {pipeline_mode = #tpu.pipeline_mode<synchronous>, transform_indices = @transform_9, window_bounds = array<i64: 128, 512>}, {pipeline_mode = #tpu.pipeline_mode<synchronous>, transform_indices = @transform_10, window_bounds = array<i64: 1, 512>}, {pipeline_mode = #tpu.pipeline_mode<synchronous>, transform_indices = @transform_11, window_bounds = array<i64: 128, 512>}, {pipeline_mode = #tpu.pipeline_mode<synchronous>, transform_indices = @transform_12, window_bounds = array<i64: 128, 512>}, {pipeline_mode = #tpu.pipeline_mode<synchronous>, transform_indices = @transform_13, window_bounds = array<i64: 128, 512>}, {pipeline_mode = #tpu.pipeline_mode<synchronous>, transform_indices = @transform_14, window_bounds = array<i64: 1, 512>}, {pipeline_mode = #tpu.pipeline_mode<synchronous>, transform_indices = @transform_15, window_bounds = array<i64: 128, 2>}, {pipeline_mode = #tpu.pipeline_mode<synchronous>, transform_indices = @transform_16, window_bounds = array<i64: 128, 2>}, {pipeline_mode = #tpu.pipeline_mode<synchronous>, transform_indices = @transform_17, window_bounds = array<i64: 128, 2>}, {pipeline_mode = #tpu.pipeline_mode<synchronous>, transform_indices = @transform_18, window_bounds = array<i64: 128, 2>}, {pipeline_mode = #tpu.pipeline_mode<synchronous>, transform_indices = @transform_19, window_bounds = array<i64: 1, 2>}, {pipeline_mode = #tpu.pipeline_mode<synchronous>, transform_indices = @transform_20, window_bounds = array<i64: 8, 2>}]} {
    %c0 = arith.constant 0 : index
    %c0_0 = arith.constant 0 : index
    %c0_1 = arith.constant 0 : index
    %0 = vector.load %arg1[%c0, %c0_0, %c0_1] : memref<8x8x256xf32, #tpu.memory_space<vmem>>, vector<8x8x256xf32>
    %1 = vector.shape_cast %0 : vector<8x8x256xf32> to vector<64x256xf32>
    %c0_2 = arith.constant 0 : index
    %c0_3 = arith.constant 0 : index
    %2 = vector.load %arg2[%c0_2, %c0_3] : memref<256x512xf32, #tpu.memory_space<vmem>>, vector<256x512xf32>
    %cst = arith.constant dense<0.000000e+00> : vector<64x512xf32>
    %3 = tpu.matmul %1, %2, %cst {dimension_numbers = #tpu.dot_dimension_numbers<[1], [0], [0], [1], [0, 0, 1, 1], [], []>} : vector<64x256xf32>, vector<256x512xf32>, vector<64x512xf32> -> vector<64x512xf32>
    %4 = vector.shape_cast %3 : vector<64x512xf32> to vector<8x8x512xf32>
    %c0_4 = arith.constant 0 : index
    %c0_5 = arith.constant 0 : index
    %c0_6 = arith.constant 0 : index
    %5 = vector.load %arg22[%c0_4, %c0_5, %c0_6] : memref<8x8x512xf32, #tpu.memory_space<vmem>>, vector<8x8x512xf32>
    tpu.vector_store %arg22[%c0_4, %c0_5, %c0_6], %4 {strides = array<i32>} : memref<8x8x512xf32, #tpu.memory_space<vmem>>, vector<8x8x512xf32>,
    %c0_7 = arith.constant 0 : index
    %c0_8 = arith.constant 0 : index
    %6 = vector.load %arg5[%c0_7, %c0_8] : memref<256x512xf32, #tpu.memory_space<vmem>>, vector<256x512xf32>
    %cst_9 = arith.constant dense<0.000000e+00> : vector<64x512xf32>
    %7 = tpu.matmul %1, %6, %cst_9 {dimension_numbers = #tpu.dot_dimension_numbers<[1], [0], [0], [1], [0, 0, 1, 1], [], []>} : vector<64x256xf32>, vector<256x512xf32>, vector<64x512xf32> -> vector<64x512xf32>
    %8 = vector.shape_cast %7 : vector<64x512xf32> to vector<8x8x512xf32>
    %c0_10 = arith.constant 0 : index
    %c0_11 = arith.constant 0 : index
    %c0_12 = arith.constant 0 : index
    %9 = vector.load %arg23[%c0_10, %c0_11, %c0_12] : memref<8x8x512xf32, #tpu.memory_space<vmem>>, vector<8x8x512xf32>
    tpu.vector_store %arg23[%c0_10, %c0_11, %c0_12], %8 {strides = array<i32>} : memref<8x8x512xf32, #tpu.memory_space<vmem>>, vector<8x8x512xf32>,
    %c0_13 = arith.constant 0 : index
    %c0_14 = arith.constant 0 : index
    %10 = vector.load %arg3[%c0_13, %c0_14] : memref<128x512xf32, #tpu.memory_space<vmem>>, vector<128x512xf32>
    %c0_15 = arith.constant 0 : index
    %c0_16 = arith.constant 0 : index
    %11 = vector.load %arg6[%c0_15, %c0_16] : memref<128x512xf32, #tpu.memory_space<vmem>>, vector<128x512xf32>
    %c0_17 = arith.constant 0 : index
    %c0_18 = arith.constant 0 : index
    %12 = vector.load %arg4[%c0_17, %c0_18] : memref<1x512xf32, #tpu.memory_space<vmem>>, vector<1x512xf32>
    %13 = vector.shape_cast %12 : vector<1x512xf32> to vector<1x512xf32>
    %14 = vector.broadcast %13 : vector<1x512xf32> to vector<8x512xf32>
    %c0_19 = arith.constant 0 : index
    %c0_20 = arith.constant 0 : index
    %15 = vector.load %arg7[%c0_19, %c0_20] : memref<1x512xf32, #tpu.memory_space<vmem>>, vector<1x512xf32>
    %16 = vector.shape_cast %15 : vector<1x512xf32> to vector<1x512xf32>
    %17 = vector.broadcast %16 : vector<1x512xf32> to vector<8x512xf32>
    %cst_21 = arith.constant 0.000000e+00 : f32
    %18 = vector.broadcast %cst_21 : f32 to vector<8x128xf32>
    %c0_i32 = arith.constant 0 : i32
    %c7_i32 = arith.constant 7 : i32
    %19 = arith.subi %c7_i32, %c0_i32 : i32
    %20 = arith.index_cast %c0_i32 : i32 to index
    %c0_22 = arith.constant 0 : index
    %c0_23 = arith.constant 0 : index
    %21 = vector.load %arg22[%20, %c0_22, %c0_23] : memref<8x8x512xf32, #tpu.memory_space<vmem>>, vector<1x8x512xf32>
    %22 = vector.shape_cast %21 : vector<1x8x512xf32> to vector<8x512xf32>
    %cst_24 = arith.constant dense<0.000000e+00> : vector<8x512xf32>
    %23 = tpu.matmul %18, %10, %cst_24 {dimension_numbers = #tpu.dot_dimension_numbers<[1], [0], [0], [1], [0, 0, 1, 1], [], []>} : vector<8x128xf32>, vector<128x512xf32>, vector<8x512xf32> -> vector<8x512xf32>
    %24 = arith.addf %22, %23 : vector<8x512xf32>
    %25 = arith.addf %24, %14 : vector<8x512xf32>
    %26 = arith.index_cast %19 : i32 to index
    %c0_25 = arith.constant 0 : index
    %c0_26 = arith.constant 0 : index
    %27 = vector.load %arg23[%26, %c0_25, %c0_26] : memref<8x8x512xf32, #tpu.memory_space<vmem>>, vector<1x8x512xf32>
    %28 = vector.shape_cast %27 : vector<1x8x512xf32> to vector<8x512xf32>
    %cst_27 = arith.constant dense<0.000000e+00> : vector<8x512xf32>
    %29 = tpu.matmul %18, %11, %cst_27 {dimension_numbers = #tpu.dot_dimension_numbers<[1], [0], [0], [1], [0, 0, 1, 1], [], []>} : vector<8x128xf32>, vector<128x512xf32>, vector<8x512xf32> -> vector<8x512xf32>
    %30 = arith.addf %28, %29 : vector<8x512xf32>
    %31 = arith.addf %30, %17 : vector<8x512xf32>
    %32 = vector.extract_strided_slice %25 {offsets = [0, 0], sizes = [8, 128], strides = [1, 1]} : vector<8x512xf32> to vector<8x128xf32>
    %33 = arith.negf %32 : vector<8x128xf32>
    %34 = math.exp %33 : vector<8x128xf32>
    %cst_28 = arith.constant 1.000000e+00 : f32
    %35 = vector.broadcast %cst_28 : f32 to vector<8x128xf32>
    %36 = arith.addf %35, %34 : vector<8x128xf32>
    %37 = arith.divf %35, %36 : vector<8x128xf32>
    %38 = vector.extract_strided_slice %25 {offsets = [0, 128], sizes = [8, 128], strides = [1, 1]} : vector<8x512xf32> to vector<8x128xf32>
    %39 = arith.negf %38 : vector<8x128xf32>
    %40 = math.exp %39 : vector<8x128xf32>
    %cst_29 = arith.constant 1.000000e+00 : f32
    %41 = vector.broadcast %cst_29 : f32 to vector<8x128xf32>
    %42 = arith.addf %41, %40 : vector<8x128xf32>
    %43 = arith.divf %41, %42 : vector<8x128xf32>
    %44 = vector.extract_strided_slice %25 {offsets = [0, 256], sizes = [8, 128], strides = [1, 1]} : vector<8x512xf32> to vector<8x128xf32>
    %45 = math.tanh %44 : vector<8x128xf32>
    %46 = vector.extract_strided_slice %25 {offsets = [0, 384], sizes = [8, 128], strides = [1, 1]} : vector<8x512xf32> to vector<8x128xf32>
    %47 = arith.negf %46 : vector<8x128xf32>
    %48 = math.exp %47 : vector<8x128xf32>
    %cst_30 = arith.constant 1.000000e+00 : f32
    %49 = vector.broadcast %cst_30 : f32 to vector<8x128xf32>
    %50 = arith.addf %49, %48 : vector<8x128xf32>
    %51 = arith.divf %49, %50 : vector<8x128xf32>
    %52 = arith.mulf %43, %18 : vector<8x128xf32>
    %53 = arith.mulf %37, %45 : vector<8x128xf32>
    %54 = arith.addf %52, %53 : vector<8x128xf32>
    %55 = math.tanh %54 : vector<8x128xf32>
    %56 = arith.mulf %51, %55 : vector<8x128xf32>
    %57 = vector.extract_strided_slice %31 {offsets = [0, 0], sizes = [8, 128], strides = [1, 1]} : vector<8x512xf32> to vector<8x128xf32>
    %58 = arith.negf %57 : vector<8x128xf32>
    %59 = math.exp %58 : vector<8x128xf32>
    %cst_31 = arith.constant 1.000000e+00 : f32
    %60 = vector.broadcast %cst_31 : f32 to vector<8x128xf32>
    %61 = arith.addf %60, %59 : vector<8x128xf32>
    %62 = arith.divf %60, %61 : vector<8x128xf32>
    %63 = vector.extract_strided_slice %31 {offsets = [0, 128], sizes = [8, 128], strides = [1, 1]} : vector<8x512xf32> to vector<8x128xf32>
    %64 = arith.negf %63 : vector<8x128xf32>
    %65 = math.exp %64 : vector<8x128xf32>
    %cst_32 = arith.constant 1.000000e+00 : f32
    %66 = vector.broadcast %cst_32 : f32 to vector<8x128xf32>
    %67 = arith.addf %66, %65 : vector<8x128xf32>
    %68 = arith.divf %66, %67 : vector<8x128xf32>
    %69 = vector.extract_strided_slice %31 {offsets = [0, 256], sizes = [8, 128], strides = [1, 1]} : vector<8x512xf32> to vector<8x128xf32>
    %70 = math.tanh %69 : vector<8x128xf32>
    %71 = vector.extract_strided_slice %31 {offsets = [0, 384], sizes = [8, 128], strides = [1, 1]} : vector<8x512xf32> to vector<8x128xf32>
    %72 = arith.negf %71 : vector<8x128xf32>
    %73 = math.exp %72 : vector<8x128xf32>
    %cst_33 = arith.constant 1.000000e+00 : f32
    %74 = vector.broadcast %cst_33 : f32 to vector<8x128xf32>
    %75 = arith.addf %74, %73 : vector<8x128xf32>
    %76 = arith.divf %74, %75 : vector<8x128xf32>
    %77 = arith.mulf %68, %18 : vector<8x128xf32>
    %78 = arith.mulf %62, %70 : vector<8x128xf32>
    %79 = arith.addf %77, %78 : vector<8x128xf32>
    %80 = math.tanh %79 : vector<8x128xf32>
    %81 = arith.mulf %76, %80 : vector<8x128xf32>
    %82 = arith.index_cast %c0_i32 : i32 to index
    %c0_34 = arith.constant 0 : index
    %c0_35 = arith.constant 0 : index
    %83 = vector.load %arg24[%82, %c0_34, %c0_35] : memref<8x8x128xf32, #tpu.memory_space<vmem>>, vector<1x8x128xf32>
    %84 = vector.shape_cast %83 : vector<1x8x128xf32> to vector<8x128xf32>
    %85 = vector.shape_cast %56 : vector<8x128xf32> to vector<1x8x128xf32>
    tpu.vector_store %arg24[%82, %c0_34, %c0_35], %85 {strides = array<i32>} : memref<8x8x128xf32, #tpu.memory_space<vmem>>, vector<1x8x128xf32>,
    %86 = arith.index_cast %19 : i32 to index
    %c0_36 = arith.constant 0 : index
    %c0_37 = arith.constant 0 : index
    %87 = vector.load %arg25[%86, %c0_36, %c0_37] : memref<8x8x128xf32, #tpu.memory_space<vmem>>, vector<1x8x128xf32>
    %88 = vector.shape_cast %87 : vector<1x8x128xf32> to vector<8x128xf32>
    %89 = vector.shape_cast %81 : vector<8x128xf32> to vector<1x8x128xf32>
    tpu.vector_store %arg25[%86, %c0_36, %c0_37], %89 {strides = array<i32>} : memref<8x8x128xf32, #tpu.memory_space<vmem>>, vector<1x8x128xf32>,
    %c1_i32 = arith.constant 1 : i32
    %c7_i32_38 = arith.constant 7 : i32
    %90 = arith.subi %c7_i32_38, %c1_i32 : i32
    %91 = arith.index_cast %c1_i32 : i32 to index
    %c0_39 = arith.constant 0 : index
    %c0_40 = arith.constant 0 : index
    %92 = vector.load %arg22[%91, %c0_39, %c0_40] : memref<8x8x512xf32, #tpu.memory_space<vmem>>, vector<1x8x512xf32>
    %93 = vector.shape_cast %92 : vector<1x8x512xf32> to vector<8x512xf32>
    %cst_41 = arith.constant dense<0.000000e+00> : vector<8x512xf32>
    %94 = tpu.matmul %56, %10, %cst_41 {dimension_numbers = #tpu.dot_dimension_numbers<[1], [0], [0], [1], [0, 0, 1, 1], [], []>} : vector<8x128xf32>, vector<128x512xf32>, vector<8x512xf32> -> vector<8x512xf32>
    %95 = arith.addf %93, %94 : vector<8x512xf32>
    %96 = arith.addf %95, %14 : vector<8x512xf32>
    %97 = arith.index_cast %90 : i32 to index
    %c0_42 = arith.constant 0 : index
    %c0_43 = arith.constant 0 : index
    %98 = vector.load %arg23[%97, %c0_42, %c0_43] : memref<8x8x512xf32, #tpu.memory_space<vmem>>, vector<1x8x512xf32>
    %99 = vector.shape_cast %98 : vector<1x8x512xf32> to vector<8x512xf32>
    %cst_44 = arith.constant dense<0.000000e+00> : vector<8x512xf32>
    %100 = tpu.matmul %81, %11, %cst_44 {dimension_numbers = #tpu.dot_dimension_numbers<[1], [0], [0], [1], [0, 0, 1, 1], [], []>} : vector<8x128xf32>, vector<128x512xf32>, vector<8x512xf32> -> vector<8x512xf32>
    %101 = arith.addf %99, %100 : vector<8x512xf32>
    %102 = arith.addf %101, %17 : vector<8x512xf32>
    %103 = vector.extract_strided_slice %96 {offsets = [0, 0], sizes = [8, 128], strides = [1, 1]} : vector<8x512xf32> to vector<8x128xf32>
    %104 = arith.negf %103 : vector<8x128xf32>
    %105 = math.exp %104 : vector<8x128xf32>
    %cst_45 = arith.constant 1.000000e+00 : f32
    %106 = vector.broadcast %cst_45 : f32 to vector<8x128xf32>
    %107 = arith.addf %106, %105 : vector<8x128xf32>
    %108 = arith.divf %106, %107 : vector<8x128xf32>
    %109 = vector.extract_strided_slice %96 {offsets = [0, 128], sizes = [8, 128], strides = [1, 1]} : vector<8x512xf32> to vector<8x128xf32>
    %110 = arith.negf %109 : vector<8x128xf32>
    %111 = math.exp %110 : vector<8x128xf32>
    %cst_46 = arith.constant 1.000000e+00 : f32
    %112 = vector.broadcast %cst_46 : f32 to vector<8x128xf32>
    %113 = arith.addf %112, %111 : vector<8x128xf32>
    %114 = arith.divf %112, %113 : vector<8x128xf32>
    %115 = vector.extract_strided_slice %96 {offsets = [0, 256], sizes = [8, 128], strides = [1, 1]} : vector<8x512xf32> to vector<8x128xf32>
    %116 = math.tanh %115 : vector<8x128xf32>
    %117 = vector.extract_strided_slice %96 {offsets = [0, 384], sizes = [8, 128], strides = [1, 1]} : vector<8x512xf32> to vector<8x128xf32>
    %118 = arith.negf %117 : vector<8x128xf32>
    %119 = math.exp %118 : vector<8x128xf32>
    %cst_47 = arith.constant 1.000000e+00 : f32
    %120 = vector.broadcast %cst_47 : f32 to vector<8x128xf32>
    %121 = arith.addf %120, %119 : vector<8x128xf32>
    %122 = arith.divf %120, %121 : vector<8x128xf32>
    %123 = arith.mulf %114, %54 : vector<8x128xf32>
    %124 = arith.mulf %108, %116 : vector<8x128xf32>
    %125 = arith.addf %123, %124 : vector<8x128xf32>
    %126 = math.tanh %125 : vector<8x128xf32>
    %127 = arith.mulf %122, %126 : vector<8x128xf32>
    %128 = vector.extract_strided_slice %102 {offsets = [0, 0], sizes = [8, 128], strides = [1, 1]} : vector<8x512xf32> to vector<8x128xf32>
    %129 = arith.negf %128 : vector<8x128xf32>
    %130 = math.exp %129 : vector<8x128xf32>
    %cst_48 = arith.constant 1.000000e+00 : f32
    %131 = vector.broadcast %cst_48 : f32 to vector<8x128xf32>
    %132 = arith.addf %131, %130 : vector<8x128xf32>
    %133 = arith.divf %131, %132 : vector<8x128xf32>
    %134 = vector.extract_strided_slice %102 {offsets = [0, 128], sizes = [8, 128], strides = [1, 1]} : vector<8x512xf32> to vector<8x128xf32>
    %135 = arith.negf %134 : vector<8x128xf32>
    %136 = math.exp %135 : vector<8x128xf32>
    %cst_49 = arith.constant 1.000000e+00 : f32
    %137 = vector.broadcast %cst_49 : f32 to vector<8x128xf32>
    %138 = arith.addf %137, %136 : vector<8x128xf32>
    %139 = arith.divf %137, %138 : vector<8x128xf32>
    %140 = vector.extract_strided_slice %102 {offsets = [0, 256], sizes = [8, 128], strides = [1, 1]} : vector<8x512xf32> to vector<8x128xf32>
    %141 = math.tanh %140 : vector<8x128xf32>
    %142 = vector.extract_strided_slice %102 {offsets = [0, 384], sizes = [8, 128], strides = [1, 1]} : vector<8x512xf32> to vector<8x128xf32>
    %143 = arith.negf %142 : vector<8x128xf32>
    %144 = math.exp %143 : vector<8x128xf32>
    %cst_50 = arith.constant 1.000000e+00 : f32
    %145 = vector.broadcast %cst_50 : f32 to vector<8x128xf32>
    %146 = arith.addf %145, %144 : vector<8x128xf32>
    %147 = arith.divf %145, %146 : vector<8x128xf32>
    %148 = arith.mulf %139, %79 : vector<8x128xf32>
    %149 = arith.mulf %133, %141 : vector<8x128xf32>
    %150 = arith.addf %148, %149 : vector<8x128xf32>
    %151 = math.tanh %150 : vector<8x128xf32>
    %152 = arith.mulf %147, %151 : vector<8x128xf32>
    %153 = arith.index_cast %c1_i32 : i32 to index
    %c0_51 = arith.constant 0 : index
    %c0_52 = arith.constant 0 : index
    %154 = vector.load %arg24[%153, %c0_51, %c0_52] : memref<8x8x128xf32, #tpu.memory_space<vmem>>, vector<1x8x128xf32>
    %155 = vector.shape_cast %154 : vector<1x8x128xf32> to vector<8x128xf32>
    %156 = vector.shape_cast %127 : vector<8x128xf32> to vector<1x8x128xf32>
    tpu.vector_store %arg24[%153, %c0_51, %c0_52], %156 {strides = array<i32>} : memref<8x8x128xf32, #tpu.memory_space<vmem>>, vector<1x8x128xf32>,
    %157 = arith.index_cast %90 : i32 to index
    %c0_53 = arith.constant 0 : index
    %c0_54 = arith.constant 0 : index
    %158 = vector.load %arg25[%157, %c0_53, %c0_54] : memref<8x8x128xf32, #tpu.memory_space<vmem>>, vector<1x8x128xf32>
    %159 = vector.shape_cast %158 : vector<1x8x128xf32> to vector<8x128xf32>
    %160 = vector.shape_cast %152 : vector<8x128xf32> to vector<1x8x128xf32>
    tpu.vector_store %arg25[%157, %c0_53, %c0_54], %160 {strides = array<i32>} : memref<8x8x128xf32, #tpu.memory_space<vmem>>, vector<1x8x128xf32>,
    %c2_i32 = arith.constant 2 : i32
    %c7_i32_55 = arith.constant 7 : i32
    %161 = arith.subi %c7_i32_55, %c2_i32 : i32
    %162 = arith.index_cast %c2_i32 : i32 to index
    %c0_56 = arith.constant 0 : index
    %c0_57 = arith.constant 0 : index
    %163 = vector.load %arg22[%162, %c0_56, %c0_57] : memref<8x8x512xf32, #tpu.memory_space<vmem>>, vector<1x8x512xf32>
    %164 = vector.shape_cast %163 : vector<1x8x512xf32> to vector<8x512xf32>
    %cst_58 = arith.constant dense<0.000000e+00> : vector<8x512xf32>
    %165 = tpu.matmul %127, %10, %cst_58 {dimension_numbers = #tpu.dot_dimension_numbers<[1], [0], [0], [1], [0, 0, 1, 1], [], []>} : vector<8x128xf32>, vector<128x512xf32>, vector<8x512xf32> -> vector<8x512xf32>
    %166 = arith.addf %164, %165 : vector<8x512xf32>
    %167 = arith.addf %166, %14 : vector<8x512xf32>
    %168 = arith.index_cast %161 : i32 to index
    %c0_59 = arith.constant 0 : index
    %c0_60 = arith.constant 0 : index
    %169 = vector.load %arg23[%168, %c0_59, %c0_60] : memref<8x8x512xf32, #tpu.memory_space<vmem>>, vector<1x8x512xf32>
    %170 = vector.shape_cast %169 : vector<1x8x512xf32> to vector<8x512xf32>
    %cst_61 = arith.constant dense<0.000000e+00> : vector<8x512xf32>
    %171 = tpu.matmul %152, %11, %cst_61 {dimension_numbers = #tpu.dot_dimension_numbers<[1], [0], [0], [1], [0, 0, 1, 1], [], []>} : vector<8x128xf32>, vector<128x512xf32>, vector<8x512xf32> -> vector<8x512xf32>
    %172 = arith.addf %170, %171 : vector<8x512xf32>
    %173 = arith.addf %172, %17 : vector<8x512xf32>
    %174 = vector.extract_strided_slice %167 {offsets = [0, 0], sizes = [8, 128], strides = [1, 1]} : vector<8x512xf32> to vector<8x128xf32>
    %175 = arith.negf %174 : vector<8x128xf32>
    %176 = math.exp %175 : vector<8x128xf32>
    %cst_62 = arith.constant 1.000000e+00 : f32
    %177 = vector.broadcast %cst_62 : f32 to vector<8x128xf32>
    %178 = arith.addf %177, %176 : vector<8x128xf32>
    %179 = arith.divf %177, %178 : vector<8x128xf32>
    %180 = vector.extract_strided_slice %167 {offsets = [0, 128], sizes = [8, 128], strides = [1, 1]} : vector<8x512xf32> to vector<8x128xf32>
    %181 = arith.negf %180 : vector<8x128xf32>
    %182 = math.exp %181 : vector<8x128xf32>
    %cst_63 = arith.constant 1.000000e+00 : f32
    %183 = vector.broadcast %cst_63 : f32 to vector<8x128xf32>
    %184 = arith.addf %183, %182 : vector<8x128xf32>
    %185 = arith.divf %183, %184 : vector<8x128xf32>
    %186 = vector.extract_strided_slice %167 {offsets = [0, 256], sizes = [8, 128], strides = [1, 1]} : vector<8x512xf32> to vector<8x128xf32>
    %187 = math.tanh %186 : vector<8x128xf32>
    %188 = vector.extract_strided_slice %167 {offsets = [0, 384], sizes = [8, 128], strides = [1, 1]} : vector<8x512xf32> to vector<8x128xf32>
    %189 = arith.negf %188 : vector<8x128xf32>
    %190 = math.exp %189 : vector<8x128xf32>
    %cst_64 = arith.constant 1.000000e+00 : f32
    %191 = vector.broadcast %cst_64 : f32 to vector<8x128xf32>
    %192 = arith.addf %191, %190 : vector<8x128xf32>
    %193 = arith.divf %191, %192 : vector<8x128xf32>
    %194 = arith.mulf %185, %125 : vector<8x128xf32>
    %195 = arith.mulf %179, %187 : vector<8x128xf32>
    %196 = arith.addf %194, %195 : vector<8x128xf32>
    %197 = math.tanh %196 : vector<8x128xf32>
    %198 = arith.mulf %193, %197 : vector<8x128xf32>
    %199 = vector.extract_strided_slice %173 {offsets = [0, 0], sizes = [8, 128], strides = [1, 1]} : vector<8x512xf32> to vector<8x128xf32>
    %200 = arith.negf %199 : vector<8x128xf32>
    %201 = math.exp %200 : vector<8x128xf32>
    %cst_65 = arith.constant 1.000000e+00 : f32
    %202 = vector.broadcast %cst_65 : f32 to vector<8x128xf32>
    %203 = arith.addf %202, %201 : vector<8x128xf32>
    %204 = arith.divf %202, %203 : vector<8x128xf32>
    %205 = vector.extract_strided_slice %173 {offsets = [0, 128], sizes = [8, 128], strides = [1, 1]} : vector<8x512xf32> to vector<8x128xf32>
    %206 = arith.negf %205 : vector<8x128xf32>
    %207 = math.exp %206 : vector<8x128xf32>
    %cst_66 = arith.constant 1.000000e+00 : f32
    %208 = vector.broadcast %cst_66 : f32 to vector<8x128xf32>
    %209 = arith.addf %208, %207 : vector<8x128xf32>
    %210 = arith.divf %208, %209 : vector<8x128xf32>
    %211 = vector.extract_strided_slice %173 {offsets = [0, 256], sizes = [8, 128], strides = [1, 1]} : vector<8x512xf32> to vector<8x128xf32>
    %212 = math.tanh %211 : vector<8x128xf32>
    %213 = vector.extract_strided_slice %173 {offsets = [0, 384], sizes = [8, 128], strides = [1, 1]} : vector<8x512xf32> to vector<8x128xf32>
    %214 = arith.negf %213 : vector<8x128xf32>
    %215 = math.exp %214 : vector<8x128xf32>
    %cst_67 = arith.constant 1.000000e+00 : f32
    %216 = vector.broadcast %cst_67 : f32 to vector<8x128xf32>
    %217 = arith.addf %216, %215 : vector<8x128xf32>
    %218 = arith.divf %216, %217 : vector<8x128xf32>
    %219 = arith.mulf %210, %150 : vector<8x128xf32>
    %220 = arith.mulf %204, %212 : vector<8x128xf32>
    %221 = arith.addf %219, %220 : vector<8x128xf32>
    %222 = math.tanh %221 : vector<8x128xf32>
    %223 = arith.mulf %218, %222 : vector<8x128xf32>
    %224 = arith.index_cast %c2_i32 : i32 to index
    %c0_68 = arith.constant 0 : index
    %c0_69 = arith.constant 0 : index
    %225 = vector.load %arg24[%224, %c0_68, %c0_69] : memref<8x8x128xf32, #tpu.memory_space<vmem>>, vector<1x8x128xf32>
    %226 = vector.shape_cast %225 : vector<1x8x128xf32> to vector<8x128xf32>
    %227 = vector.shape_cast %198 : vector<8x128xf32> to vector<1x8x128xf32>
    tpu.vector_store %arg24[%224, %c0_68, %c0_69], %227 {strides = array<i32>} : memref<8x8x128xf32, #tpu.memory_space<vmem>>, vector<1x8x128xf32>,
    %228 = arith.index_cast %161 : i32 to index
    %c0_70 = arith.constant 0 : index
    %c0_71 = arith.constant 0 : index
    %229 = vector.load %arg25[%228, %c0_70, %c0_71] : memref<8x8x128xf32, #tpu.memory_space<vmem>>, vector<1x8x128xf32>
    %230 = vector.shape_cast %229 : vector<1x8x128xf32> to vector<8x128xf32>
    %231 = vector.shape_cast %223 : vector<8x128xf32> to vector<1x8x128xf32>
    tpu.vector_store %arg25[%228, %c0_70, %c0_71], %231 {strides = array<i32>} : memref<8x8x128xf32, #tpu.memory_space<vmem>>, vector<1x8x128xf32>,
    %c3_i32 = arith.constant 3 : i32
    %c7_i32_72 = arith.constant 7 : i32
    %232 = arith.subi %c7_i32_72, %c3_i32 : i32
    %233 = arith.index_cast %c3_i32 : i32 to index
    %c0_73 = arith.constant 0 : index
    %c0_74 = arith.constant 0 : index
    %234 = vector.load %arg22[%233, %c0_73, %c0_74] : memref<8x8x512xf32, #tpu.memory_space<vmem>>, vector<1x8x512xf32>
    %235 = vector.shape_cast %234 : vector<1x8x512xf32> to vector<8x512xf32>
    %cst_75 = arith.constant dense<0.000000e+00> : vector<8x512xf32>
    %236 = tpu.matmul %198, %10, %cst_75 {dimension_numbers = #tpu.dot_dimension_numbers<[1], [0], [0], [1], [0, 0, 1, 1], [], []>} : vector<8x128xf32>, vector<128x512xf32>, vector<8x512xf32> -> vector<8x512xf32>
    %237 = arith.addf %235, %236 : vector<8x512xf32>
    %238 = arith.addf %237, %14 : vector<8x512xf32>
    %239 = arith.index_cast %232 : i32 to index
    %c0_76 = arith.constant 0 : index
    %c0_77 = arith.constant 0 : index
    %240 = vector.load %arg23[%239, %c0_76, %c0_77] : memref<8x8x512xf32, #tpu.memory_space<vmem>>, vector<1x8x512xf32>
    %241 = vector.shape_cast %240 : vector<1x8x512xf32> to vector<8x512xf32>
    %cst_78 = arith.constant dense<0.000000e+00> : vector<8x512xf32>
    %242 = tpu.matmul %223, %11, %cst_78 {dimension_numbers = #tpu.dot_dimension_numbers<[1], [0], [0], [1], [0, 0, 1, 1], [], []>} : vector<8x128xf32>, vector<128x512xf32>, vector<8x512xf32> -> vector<8x512xf32>
    %243 = arith.addf %241, %242 : vector<8x512xf32>
    %244 = arith.addf %243, %17 : vector<8x512xf32>
    %245 = vector.extract_strided_slice %238 {offsets = [0, 0], sizes = [8, 128], strides = [1, 1]} : vector<8x512xf32> to vector<8x128xf32>
    %246 = arith.negf %245 : vector<8x128xf32>
    %247 = math.exp %246 : vector<8x128xf32>
    %cst_79 = arith.constant 1.000000e+00 : f32
    %248 = vector.broadcast %cst_79 : f32 to vector<8x128xf32>
    %249 = arith.addf %248, %247 : vector<8x128xf32>
    %250 = arith.divf %248, %249 : vector<8x128xf32>
    %251 = vector.extract_strided_slice %238 {offsets = [0, 128], sizes = [8, 128], strides = [1, 1]} : vector<8x512xf32> to vector<8x128xf32>
    %252 = arith.negf %251 : vector<8x128xf32>
    %253 = math.exp %252 : vector<8x128xf32>
    %cst_80 = arith.constant 1.000000e+00 : f32
    %254 = vector.broadcast %cst_80 : f32 to vector<8x128xf32>
    %255 = arith.addf %254, %253 : vector<8x128xf32>
    %256 = arith.divf %254, %255 : vector<8x128xf32>
    %257 = vector.extract_strided_slice %238 {offsets = [0, 256], sizes = [8, 128], strides = [1, 1]} : vector<8x512xf32> to vector<8x128xf32>
    %258 = math.tanh %257 : vector<8x128xf32>
    %259 = vector.extract_strided_slice %238 {offsets = [0, 384], sizes = [8, 128], strides = [1, 1]} : vector<8x512xf32> to vector<8x128xf32>
    %260 = arith.negf %259 : vector<8x128xf32>
    %261 = math.exp %260 : vector<8x128xf32>
    %cst_81 = arith.constant 1.000000e+00 : f32
    %262 = vector.broadcast %cst_81 : f32 to vector<8x128xf32>
    %263 = arith.addf %262, %261 : vector<8x128xf32>
    %264 = arith.divf %262, %263 : vector<8x128xf32>
    %265 = arith.mulf %256, %196 : vector<8x128xf32>
    %266 = arith.mulf %250, %258 : vector<8x128xf32>
    %267 = arith.addf %265, %266 : vector<8x128xf32>
    %268 = math.tanh %267 : vector<8x128xf32>
    %269 = arith.mulf %264, %268 : vector<8x128xf32>
    %270 = vector.extract_strided_slice %244 {offsets = [0, 0], sizes = [8, 128], strides = [1, 1]} : vector<8x512xf32> to vector<8x128xf32>
    %271 = arith.negf %270 : vector<8x128xf32>
    %272 = math.exp %271 : vector<8x128xf32>
    %cst_82 = arith.constant 1.000000e+00 : f32
    %273 = vector.broadcast %cst_82 : f32 to vector<8x128xf32>
    %274 = arith.addf %273, %272 : vector<8x128xf32>
    %275 = arith.divf %273, %274 : vector<8x128xf32>
    %276 = vector.extract_strided_slice %244 {offsets = [0, 128], sizes = [8, 128], strides = [1, 1]} : vector<8x512xf32> to vector<8x128xf32>
    %277 = arith.negf %276 : vector<8x128xf32>
    %278 = math.exp %277 : vector<8x128xf32>
    %cst_83 = arith.constant 1.000000e+00 : f32
    %279 = vector.broadcast %cst_83 : f32 to vector<8x128xf32>
    %280 = arith.addf %279, %278 : vector<8x128xf32>
    %281 = arith.divf %279, %280 : vector<8x128xf32>
    %282 = vector.extract_strided_slice %244 {offsets = [0, 256], sizes = [8, 128], strides = [1, 1]} : vector<8x512xf32> to vector<8x128xf32>
    %283 = math.tanh %282 : vector<8x128xf32>
    %284 = vector.extract_strided_slice %244 {offsets = [0, 384], sizes = [8, 128], strides = [1, 1]} : vector<8x512xf32> to vector<8x128xf32>
    %285 = arith.negf %284 : vector<8x128xf32>
    %286 = math.exp %285 : vector<8x128xf32>
    %cst_84 = arith.constant 1.000000e+00 : f32
    %287 = vector.broadcast %cst_84 : f32 to vector<8x128xf32>
    %288 = arith.addf %287, %286 : vector<8x128xf32>
    %289 = arith.divf %287, %288 : vector<8x128xf32>
    %290 = arith.mulf %281, %221 : vector<8x128xf32>
    %291 = arith.mulf %275, %283 : vector<8x128xf32>
    %292 = arith.addf %290, %291 : vector<8x128xf32>
    %293 = math.tanh %292 : vector<8x128xf32>
    %294 = arith.mulf %289, %293 : vector<8x128xf32>
    %295 = arith.index_cast %c3_i32 : i32 to index
    %c0_85 = arith.constant 0 : index
    %c0_86 = arith.constant 0 : index
    %296 = vector.load %arg24[%295, %c0_85, %c0_86] : memref<8x8x128xf32, #tpu.memory_space<vmem>>, vector<1x8x128xf32>
    %297 = vector.shape_cast %296 : vector<1x8x128xf32> to vector<8x128xf32>
    %298 = vector.shape_cast %269 : vector<8x128xf32> to vector<1x8x128xf32>
    tpu.vector_store %arg24[%295, %c0_85, %c0_86], %298 {strides = array<i32>} : memref<8x8x128xf32, #tpu.memory_space<vmem>>, vector<1x8x128xf32>,
    %299 = arith.index_cast %232 : i32 to index
    %c0_87 = arith.constant 0 : index
    %c0_88 = arith.constant 0 : index
    %300 = vector.load %arg25[%299, %c0_87, %c0_88] : memref<8x8x128xf32, #tpu.memory_space<vmem>>, vector<1x8x128xf32>
    %301 = vector.shape_cast %300 : vector<1x8x128xf32> to vector<8x128xf32>
    %302 = vector.shape_cast %294 : vector<8x128xf32> to vector<1x8x128xf32>
    tpu.vector_store %arg25[%299, %c0_87, %c0_88], %302 {strides = array<i32>} : memref<8x8x128xf32, #tpu.memory_space<vmem>>, vector<1x8x128xf32>,
    %c4_i32 = arith.constant 4 : i32
    %c7_i32_89 = arith.constant 7 : i32
    %303 = arith.subi %c7_i32_89, %c4_i32 : i32
    %304 = arith.index_cast %c4_i32 : i32 to index
    %c0_90 = arith.constant 0 : index
    %c0_91 = arith.constant 0 : index
    %305 = vector.load %arg22[%304, %c0_90, %c0_91] : memref<8x8x512xf32, #tpu.memory_space<vmem>>, vector<1x8x512xf32>
    %306 = vector.shape_cast %305 : vector<1x8x512xf32> to vector<8x512xf32>
    %cst_92 = arith.constant dense<0.000000e+00> : vector<8x512xf32>
    %307 = tpu.matmul %269, %10, %cst_92 {dimension_numbers = #tpu.dot_dimension_numbers<[1], [0], [0], [1], [0, 0, 1, 1], [], []>} : vector<8x128xf32>, vector<128x512xf32>, vector<8x512xf32> -> vector<8x512xf32>
    %308 = arith.addf %306, %307 : vector<8x512xf32>
    %309 = arith.addf %308, %14 : vector<8x512xf32>
    %310 = arith.index_cast %303 : i32 to index
    %c0_93 = arith.constant 0 : index
    %c0_94 = arith.constant 0 : index
    %311 = vector.load %arg23[%310, %c0_93, %c0_94] : memref<8x8x512xf32, #tpu.memory_space<vmem>>, vector<1x8x512xf32>
    %312 = vector.shape_cast %311 : vector<1x8x512xf32> to vector<8x512xf32>
    %cst_95 = arith.constant dense<0.000000e+00> : vector<8x512xf32>
    %313 = tpu.matmul %294, %11, %cst_95 {dimension_numbers = #tpu.dot_dimension_numbers<[1], [0], [0], [1], [0, 0, 1, 1], [], []>} : vector<8x128xf32>, vector<128x512xf32>, vector<8x512xf32> -> vector<8x512xf32>
    %314 = arith.addf %312, %313 : vector<8x512xf32>
    %315 = arith.addf %314, %17 : vector<8x512xf32>
    %316 = vector.extract_strided_slice %309 {offsets = [0, 0], sizes = [8, 128], strides = [1, 1]} : vector<8x512xf32> to vector<8x128xf32>
    %317 = arith.negf %316 : vector<8x128xf32>
    %318 = math.exp %317 : vector<8x128xf32>
    %cst_96 = arith.constant 1.000000e+00 : f32
    %319 = vector.broadcast %cst_96 : f32 to vector<8x128xf32>
    %320 = arith.addf %319, %318 : vector<8x128xf32>
    %321 = arith.divf %319, %320 : vector<8x128xf32>
    %322 = vector.extract_strided_slice %309 {offsets = [0, 128], sizes = [8, 128], strides = [1, 1]} : vector<8x512xf32> to vector<8x128xf32>
    %323 = arith.negf %322 : vector<8x128xf32>
    %324 = math.exp %323 : vector<8x128xf32>
    %cst_97 = arith.constant 1.000000e+00 : f32
    %325 = vector.broadcast %cst_97 : f32 to vector<8x128xf32>
    %326 = arith.addf %325, %324 : vector<8x128xf32>
    %327 = arith.divf %325, %326 : vector<8x128xf32>
    %328 = vector.extract_strided_slice %309 {offsets = [0, 256], sizes = [8, 128], strides = [1, 1]} : vector<8x512xf32> to vector<8x128xf32>
    %329 = math.tanh %328 : vector<8x128xf32>
    %330 = vector.extract_strided_slice %309 {offsets = [0, 384], sizes = [8, 128], strides = [1, 1]} : vector<8x512xf32> to vector<8x128xf32>
    %331 = arith.negf %330 : vector<8x128xf32>
    %332 = math.exp %331 : vector<8x128xf32>
    %cst_98 = arith.constant 1.000000e+00 : f32
    %333 = vector.broadcast %cst_98 : f32 to vector<8x128xf32>
    %334 = arith.addf %333, %332 : vector<8x128xf32>
    %335 = arith.divf %333, %334 : vector<8x128xf32>
    %336 = arith.mulf %327, %267 : vector<8x128xf32>
    %337 = arith.mulf %321, %329 : vector<8x128xf32>
    %338 = arith.addf %336, %337 : vector<8x128xf32>
    %339 = math.tanh %338 : vector<8x128xf32>
    %340 = arith.mulf %335, %339 : vector<8x128xf32>
    %341 = vector.extract_strided_slice %315 {offsets = [0, 0], sizes = [8, 128], strides = [1, 1]} : vector<8x512xf32> to vector<8x128xf32>
    %342 = arith.negf %341 : vector<8x128xf32>
    %343 = math.exp %342 : vector<8x128xf32>
    %cst_99 = arith.constant 1.000000e+00 : f32
    %344 = vector.broadcast %cst_99 : f32 to vector<8x128xf32>
    %345 = arith.addf %344, %343 : vector<8x128xf32>
    %346 = arith.divf %344, %345 : vector<8x128xf32>
    %347 = vector.extract_strided_slice %315 {offsets = [0, 128], sizes = [8, 128], strides = [1, 1]} : vector<8x512xf32> to vector<8x128xf32>
    %348 = arith.negf %347 : vector<8x128xf32>
    %349 = math.exp %348 : vector<8x128xf32>
    %cst_100 = arith.constant 1.000000e+00 : f32
    %350 = vector.broadcast %cst_100 : f32 to vector<8x128xf32>
    %351 = arith.addf %350, %349 : vector<8x128xf32>
    %352 = arith.divf %350, %351 : vector<8x128xf32>
    %353 = vector.extract_strided_slice %315 {offsets = [0, 256], sizes = [8, 128], strides = [1, 1]} : vector<8x512xf32> to vector<8x128xf32>
    %354 = math.tanh %353 : vector<8x128xf32>
    %355 = vector.extract_strided_slice %315 {offsets = [0, 384], sizes = [8, 128], strides = [1, 1]} : vector<8x512xf32> to vector<8x128xf32>
    %356 = arith.negf %355 : vector<8x128xf32>
    %357 = math.exp %356 : vector<8x128xf32>
    %cst_101 = arith.constant 1.000000e+00 : f32
    %358 = vector.broadcast %cst_101 : f32 to vector<8x128xf32>
    %359 = arith.addf %358, %357 : vector<8x128xf32>
    %360 = arith.divf %358, %359 : vector<8x128xf32>
    %361 = arith.mulf %352, %292 : vector<8x128xf32>
    %362 = arith.mulf %346, %354 : vector<8x128xf32>
    %363 = arith.addf %361, %362 : vector<8x128xf32>
    %364 = math.tanh %363 : vector<8x128xf32>
    %365 = arith.mulf %360, %364 : vector<8x128xf32>
    %366 = arith.index_cast %c4_i32 : i32 to index
    %c0_102 = arith.constant 0 : index
    %c0_103 = arith.constant 0 : index
    %367 = vector.load %arg24[%366, %c0_102, %c0_103] : memref<8x8x128xf32, #tpu.memory_space<vmem>>, vector<1x8x128xf32>
    %368 = vector.shape_cast %367 : vector<1x8x128xf32> to vector<8x128xf32>
    %369 = vector.shape_cast %340 : vector<8x128xf32> to vector<1x8x128xf32>
    tpu.vector_store %arg24[%366, %c0_102, %c0_103], %369 {strides = array<i32>} : memref<8x8x128xf32, #tpu.memory_space<vmem>>, vector<1x8x128xf32>,
    %370 = arith.index_cast %303 : i32 to index
    %c0_104 = arith.constant 0 : index
    %c0_105 = arith.constant 0 : index
    %371 = vector.load %arg25[%370, %c0_104, %c0_105] : memref<8x8x128xf32, #tpu.memory_space<vmem>>, vector<1x8x128xf32>
    %372 = vector.shape_cast %371 : vector<1x8x128xf32> to vector<8x128xf32>
    %373 = vector.shape_cast %365 : vector<8x128xf32> to vector<1x8x128xf32>
    tpu.vector_store %arg25[%370, %c0_104, %c0_105], %373 {strides = array<i32>} : memref<8x8x128xf32, #tpu.memory_space<vmem>>, vector<1x8x128xf32>,
    %c5_i32 = arith.constant 5 : i32
    %c7_i32_106 = arith.constant 7 : i32
    %374 = arith.subi %c7_i32_106, %c5_i32 : i32
    %375 = arith.index_cast %c5_i32 : i32 to index
    %c0_107 = arith.constant 0 : index
    %c0_108 = arith.constant 0 : index
    %376 = vector.load %arg22[%375, %c0_107, %c0_108] : memref<8x8x512xf32, #tpu.memory_space<vmem>>, vector<1x8x512xf32>
    %377 = vector.shape_cast %376 : vector<1x8x512xf32> to vector<8x512xf32>
    %cst_109 = arith.constant dense<0.000000e+00> : vector<8x512xf32>
    %378 = tpu.matmul %340, %10, %cst_109 {dimension_numbers = #tpu.dot_dimension_numbers<[1], [0], [0], [1], [0, 0, 1, 1], [], []>} : vector<8x128xf32>, vector<128x512xf32>, vector<8x512xf32> -> vector<8x512xf32>
    %379 = arith.addf %377, %378 : vector<8x512xf32>
    %380 = arith.addf %379, %14 : vector<8x512xf32>
    %381 = arith.index_cast %374 : i32 to index
    %c0_110 = arith.constant 0 : index
    %c0_111 = arith.constant 0 : index
    %382 = vector.load %arg23[%381, %c0_110, %c0_111] : memref<8x8x512xf32, #tpu.memory_space<vmem>>, vector<1x8x512xf32>
    %383 = vector.shape_cast %382 : vector<1x8x512xf32> to vector<8x512xf32>
    %cst_112 = arith.constant dense<0.000000e+00> : vector<8x512xf32>
    %384 = tpu.matmul %365, %11, %cst_112 {dimension_numbers = #tpu.dot_dimension_numbers<[1], [0], [0], [1], [0, 0, 1, 1], [], []>} : vector<8x128xf32>, vector<128x512xf32>, vector<8x512xf32> -> vector<8x512xf32>
    %385 = arith.addf %383, %384 : vector<8x512xf32>
    %386 = arith.addf %385, %17 : vector<8x512xf32>
    %387 = vector.extract_strided_slice %380 {offsets = [0, 0], sizes = [8, 128], strides = [1, 1]} : vector<8x512xf32> to vector<8x128xf32>
    %388 = arith.negf %387 : vector<8x128xf32>
    %389 = math.exp %388 : vector<8x128xf32>
    %cst_113 = arith.constant 1.000000e+00 : f32
    %390 = vector.broadcast %cst_113 : f32 to vector<8x128xf32>
    %391 = arith.addf %390, %389 : vector<8x128xf32>
    %392 = arith.divf %390, %391 : vector<8x128xf32>
    %393 = vector.extract_strided_slice %380 {offsets = [0, 128], sizes = [8, 128], strides = [1, 1]} : vector<8x512xf32> to vector<8x128xf32>
    %394 = arith.negf %393 : vector<8x128xf32>
    %395 = math.exp %394 : vector<8x128xf32>
    %cst_114 = arith.constant 1.000000e+00 : f32
    %396 = vector.broadcast %cst_114 : f32 to vector<8x128xf32>
    %397 = arith.addf %396, %395 : vector<8x128xf32>
    %398 = arith.divf %396, %397 : vector<8x128xf32>
    %399 = vector.extract_strided_slice %380 {offsets = [0, 256], sizes = [8, 128], strides = [1, 1]} : vector<8x512xf32> to vector<8x128xf32>
    %400 = math.tanh %399 : vector<8x128xf32>
    %401 = vector.extract_strided_slice %380 {offsets = [0, 384], sizes = [8, 128], strides = [1, 1]} : vector<8x512xf32> to vector<8x128xf32>
    %402 = arith.negf %401 : vector<8x128xf32>
    %403 = math.exp %402 : vector<8x128xf32>
    %cst_115 = arith.constant 1.000000e+00 : f32
    %404 = vector.broadcast %cst_115 : f32 to vector<8x128xf32>
    %405 = arith.addf %404, %403 : vector<8x128xf32>
    %406 = arith.divf %404, %405 : vector<8x128xf32>
    %407 = arith.mulf %398, %338 : vector<8x128xf32>
    %408 = arith.mulf %392, %400 : vector<8x128xf32>
    %409 = arith.addf %407, %408 : vector<8x128xf32>
    %410 = math.tanh %409 : vector<8x128xf32>
    %411 = arith.mulf %406, %410 : vector<8x128xf32>
    %412 = vector.extract_strided_slice %386 {offsets = [0, 0], sizes = [8, 128], strides = [1, 1]} : vector<8x512xf32> to vector<8x128xf32>
    %413 = arith.negf %412 : vector<8x128xf32>
    %414 = math.exp %413 : vector<8x128xf32>
    %cst_116 = arith.constant 1.000000e+00 : f32
    %415 = vector.broadcast %cst_116 : f32 to vector<8x128xf32>
    %416 = arith.addf %415, %414 : vector<8x128xf32>
    %417 = arith.divf %415, %416 : vector<8x128xf32>
    %418 = vector.extract_strided_slice %386 {offsets = [0, 128], sizes = [8, 128], strides = [1, 1]} : vector<8x512xf32> to vector<8x128xf32>
    %419 = arith.negf %418 : vector<8x128xf32>
    %420 = math.exp %419 : vector<8x128xf32>
    %cst_117 = arith.constant 1.000000e+00 : f32
    %421 = vector.broadcast %cst_117 : f32 to vector<8x128xf32>
    %422 = arith.addf %421, %420 : vector<8x128xf32>
    %423 = arith.divf %421, %422 : vector<8x128xf32>
    %424 = vector.extract_strided_slice %386 {offsets = [0, 256], sizes = [8, 128], strides = [1, 1]} : vector<8x512xf32> to vector<8x128xf32>
    %425 = math.tanh %424 : vector<8x128xf32>
    %426 = vector.extract_strided_slice %386 {offsets = [0, 384], sizes = [8, 128], strides = [1, 1]} : vector<8x512xf32> to vector<8x128xf32>
    %427 = arith.negf %426 : vector<8x128xf32>
    %428 = math.exp %427 : vector<8x128xf32>
    %cst_118 = arith.constant 1.000000e+00 : f32
    %429 = vector.broadcast %cst_118 : f32 to vector<8x128xf32>
    %430 = arith.addf %429, %428 : vector<8x128xf32>
    %431 = arith.divf %429, %430 : vector<8x128xf32>
    %432 = arith.mulf %423, %363 : vector<8x128xf32>
    %433 = arith.mulf %417, %425 : vector<8x128xf32>
    %434 = arith.addf %432, %433 : vector<8x128xf32>
    %435 = math.tanh %434 : vector<8x128xf32>
    %436 = arith.mulf %431, %435 : vector<8x128xf32>
    %437 = arith.index_cast %c5_i32 : i32 to index
    %c0_119 = arith.constant 0 : index
    %c0_120 = arith.constant 0 : index
    %438 = vector.load %arg24[%437, %c0_119, %c0_120] : memref<8x8x128xf32, #tpu.memory_space<vmem>>, vector<1x8x128xf32>
    %439 = vector.shape_cast %438 : vector<1x8x128xf32> to vector<8x128xf32>
    %440 = vector.shape_cast %411 : vector<8x128xf32> to vector<1x8x128xf32>
    tpu.vector_store %arg24[%437, %c0_119, %c0_120], %440 {strides = array<i32>} : memref<8x8x128xf32, #tpu.memory_space<vmem>>, vector<1x8x128xf32>,
    %441 = arith.index_cast %374 : i32 to index
    %c0_121 = arith.constant 0 : index
    %c0_122 = arith.constant 0 : index
    %442 = vector.load %arg25[%441, %c0_121, %c0_122] : memref<8x8x128xf32, #tpu.memory_space<vmem>>, vector<1x8x128xf32>
    %443 = vector.shape_cast %442 : vector<1x8x128xf32> to vector<8x128xf32>
    %444 = vector.shape_cast %436 : vector<8x128xf32> to vector<1x8x128xf32>
    tpu.vector_store %arg25[%441, %c0_121, %c0_122], %444 {strides = array<i32>} : memref<8x8x128xf32, #tpu.memory_space<vmem>>, vector<1x8x128xf32>,
    %c6_i32 = arith.constant 6 : i32
    %c7_i32_123 = arith.constant 7 : i32
    %445 = arith.subi %c7_i32_123, %c6_i32 : i32
    %446 = arith.index_cast %c6_i32 : i32 to index
    %c0_124 = arith.constant 0 : index
    %c0_125 = arith.constant 0 : index
    %447 = vector.load %arg22[%446, %c0_124, %c0_125] : memref<8x8x512xf32, #tpu.memory_space<vmem>>, vector<1x8x512xf32>
    %448 = vector.shape_cast %447 : vector<1x8x512xf32> to vector<8x512xf32>
    %cst_126 = arith.constant dense<0.000000e+00> : vector<8x512xf32>
    %449 = tpu.matmul %411, %10, %cst_126 {dimension_numbers = #tpu.dot_dimension_numbers<[1], [0], [0], [1], [0, 0, 1, 1], [], []>} : vector<8x128xf32>, vector<128x512xf32>, vector<8x512xf32> -> vector<8x512xf32>
    %450 = arith.addf %448, %449 : vector<8x512xf32>
    %451 = arith.addf %450, %14 : vector<8x512xf32>
    %452 = arith.index_cast %445 : i32 to index
    %c0_127 = arith.constant 0 : index
    %c0_128 = arith.constant 0 : index
    %453 = vector.load %arg23[%452, %c0_127, %c0_128] : memref<8x8x512xf32, #tpu.memory_space<vmem>>, vector<1x8x512xf32>
    %454 = vector.shape_cast %453 : vector<1x8x512xf32> to vector<8x512xf32>
    %cst_129 = arith.constant dense<0.000000e+00> : vector<8x512xf32>
    %455 = tpu.matmul %436, %11, %cst_129 {dimension_numbers = #tpu.dot_dimension_numbers<[1], [0], [0], [1], [0, 0, 1, 1], [], []>} : vector<8x128xf32>, vector<128x512xf32>, vector<8x512xf32> -> vector<8x512xf32>
    %456 = arith.addf %454, %455 : vector<8x512xf32>
    %457 = arith.addf %456, %17 : vector<8x512xf32>
    %458 = vector.extract_strided_slice %451 {offsets = [0, 0], sizes = [8, 128], strides = [1, 1]} : vector<8x512xf32> to vector<8x128xf32>
    %459 = arith.negf %458 : vector<8x128xf32>
    %460 = math.exp %459 : vector<8x128xf32>
    %cst_130 = arith.constant 1.000000e+00 : f32
    %461 = vector.broadcast %cst_130 : f32 to vector<8x128xf32>
    %462 = arith.addf %461, %460 : vector<8x128xf32>
    %463 = arith.divf %461, %462 : vector<8x128xf32>
    %464 = vector.extract_strided_slice %451 {offsets = [0, 128], sizes = [8, 128], strides = [1, 1]} : vector<8x512xf32> to vector<8x128xf32>
    %465 = arith.negf %464 : vector<8x128xf32>
    %466 = math.exp %465 : vector<8x128xf32>
    %cst_131 = arith.constant 1.000000e+00 : f32
    %467 = vector.broadcast %cst_131 : f32 to vector<8x128xf32>
    %468 = arith.addf %467, %466 : vector<8x128xf32>
    %469 = arith.divf %467, %468 : vector<8x128xf32>
    %470 = vector.extract_strided_slice %451 {offsets = [0, 256], sizes = [8, 128], strides = [1, 1]} : vector<8x512xf32> to vector<8x128xf32>
    %471 = math.tanh %470 : vector<8x128xf32>
    %472 = vector.extract_strided_slice %451 {offsets = [0, 384], sizes = [8, 128], strides = [1, 1]} : vector<8x512xf32> to vector<8x128xf32>
    %473 = arith.negf %472 : vector<8x128xf32>
    %474 = math.exp %473 : vector<8x128xf32>
    %cst_132 = arith.constant 1.000000e+00 : f32
    %475 = vector.broadcast %cst_132 : f32 to vector<8x128xf32>
    %476 = arith.addf %475, %474 : vector<8x128xf32>
    %477 = arith.divf %475, %476 : vector<8x128xf32>
    %478 = arith.mulf %469, %409 : vector<8x128xf32>
    %479 = arith.mulf %463, %471 : vector<8x128xf32>
    %480 = arith.addf %478, %479 : vector<8x128xf32>
    %481 = math.tanh %480 : vector<8x128xf32>
    %482 = arith.mulf %477, %481 : vector<8x128xf32>
    %483 = vector.extract_strided_slice %457 {offsets = [0, 0], sizes = [8, 128], strides = [1, 1]} : vector<8x512xf32> to vector<8x128xf32>
    %484 = arith.negf %483 : vector<8x128xf32>
    %485 = math.exp %484 : vector<8x128xf32>
    %cst_133 = arith.constant 1.000000e+00 : f32
    %486 = vector.broadcast %cst_133 : f32 to vector<8x128xf32>
    %487 = arith.addf %486, %485 : vector<8x128xf32>
    %488 = arith.divf %486, %487 : vector<8x128xf32>
    %489 = vector.extract_strided_slice %457 {offsets = [0, 128], sizes = [8, 128], strides = [1, 1]} : vector<8x512xf32> to vector<8x128xf32>
    %490 = arith.negf %489 : vector<8x128xf32>
    %491 = math.exp %490 : vector<8x128xf32>
    %cst_134 = arith.constant 1.000000e+00 : f32
    %492 = vector.broadcast %cst_134 : f32 to vector<8x128xf32>
    %493 = arith.addf %492, %491 : vector<8x128xf32>
    %494 = arith.divf %492, %493 : vector<8x128xf32>
    %495 = vector.extract_strided_slice %457 {offsets = [0, 256], sizes = [8, 128], strides = [1, 1]} : vector<8x512xf32> to vector<8x128xf32>
    %496 = math.tanh %495 : vector<8x128xf32>
    %497 = vector.extract_strided_slice %457 {offsets = [0, 384], sizes = [8, 128], strides = [1, 1]} : vector<8x512xf32> to vector<8x128xf32>
    %498 = arith.negf %497 : vector<8x128xf32>
    %499 = math.exp %498 : vector<8x128xf32>
    %cst_135 = arith.constant 1.000000e+00 : f32
    %500 = vector.broadcast %cst_135 : f32 to vector<8x128xf32>
    %501 = arith.addf %500, %499 : vector<8x128xf32>
    %502 = arith.divf %500, %501 : vector<8x128xf32>
    %503 = arith.mulf %494, %434 : vector<8x128xf32>
    %504 = arith.mulf %488, %496 : vector<8x128xf32>
    %505 = arith.addf %503, %504 : vector<8x128xf32>
    %506 = math.tanh %505 : vector<8x128xf32>
    %507 = arith.mulf %502, %506 : vector<8x128xf32>
    %508 = arith.index_cast %c6_i32 : i32 to index
    %c0_136 = arith.constant 0 : index
    %c0_137 = arith.constant 0 : index
    %509 = vector.load %arg24[%508, %c0_136, %c0_137] : memref<8x8x128xf32, #tpu.memory_space<vmem>>, vector<1x8x128xf32>
    %510 = vector.shape_cast %509 : vector<1x8x128xf32> to vector<8x128xf32>
    %511 = vector.shape_cast %482 : vector<8x128xf32> to vector<1x8x128xf32>
    tpu.vector_store %arg24[%508, %c0_136, %c0_137], %511 {strides = array<i32>} : memref<8x8x128xf32, #tpu.memory_space<vmem>>, vector<1x8x128xf32>,
    %512 = arith.index_cast %445 : i32 to index
    %c0_138 = arith.constant 0 : index
    %c0_139 = arith.constant 0 : index
    %513 = vector.load %arg25[%512, %c0_138, %c0_139] : memref<8x8x128xf32, #tpu.memory_space<vmem>>, vector<1x8x128xf32>
    %514 = vector.shape_cast %513 : vector<1x8x128xf32> to vector<8x128xf32>
    %515 = vector.shape_cast %507 : vector<8x128xf32> to vector<1x8x128xf32>
    tpu.vector_store %arg25[%512, %c0_138, %c0_139], %515 {strides = array<i32>} : memref<8x8x128xf32, #tpu.memory_space<vmem>>, vector<1x8x128xf32>,
    %c7_i32_140 = arith.constant 7 : i32
    %c7_i32_141 = arith.constant 7 : i32
    %516 = arith.subi %c7_i32_141, %c7_i32_140 : i32
    %517 = arith.index_cast %c7_i32_140 : i32 to index
    %c0_142 = arith.constant 0 : index
    %c0_143 = arith.constant 0 : index
    %518 = vector.load %arg22[%517, %c0_142, %c0_143] : memref<8x8x512xf32, #tpu.memory_space<vmem>>, vector<1x8x512xf32>
    %519 = vector.shape_cast %518 : vector<1x8x512xf32> to vector<8x512xf32>
    %cst_144 = arith.constant dense<0.000000e+00> : vector<8x512xf32>
    %520 = tpu.matmul %482, %10, %cst_144 {dimension_numbers = #tpu.dot_dimension_numbers<[1], [0], [0], [1], [0, 0, 1, 1], [], []>} : vector<8x128xf32>, vector<128x512xf32>, vector<8x512xf32> -> vector<8x512xf32>
    %521 = arith.addf %519, %520 : vector<8x512xf32>
    %522 = arith.addf %521, %14 : vector<8x512xf32>
    %523 = arith.index_cast %516 : i32 to index
    %c0_145 = arith.constant 0 : index
    %c0_146 = arith.constant 0 : index
    %524 = vector.load %arg23[%523, %c0_145, %c0_146] : memref<8x8x512xf32, #tpu.memory_space<vmem>>, vector<1x8x512xf32>
    %525 = vector.shape_cast %524 : vector<1x8x512xf32> to vector<8x512xf32>
    %cst_147 = arith.constant dense<0.000000e+00> : vector<8x512xf32>
    %526 = tpu.matmul %507, %11, %cst_147 {dimension_numbers = #tpu.dot_dimension_numbers<[1], [0], [0], [1], [0, 0, 1, 1], [], []>} : vector<8x128xf32>, vector<128x512xf32>, vector<8x512xf32> -> vector<8x512xf32>
    %527 = arith.addf %525, %526 : vector<8x512xf32>
    %528 = arith.addf %527, %17 : vector<8x512xf32>
    %529 = vector.extract_strided_slice %522 {offsets = [0, 0], sizes = [8, 128], strides = [1, 1]} : vector<8x512xf32> to vector<8x128xf32>
    %530 = arith.negf %529 : vector<8x128xf32>
    %531 = math.exp %530 : vector<8x128xf32>
    %cst_148 = arith.constant 1.000000e+00 : f32
    %532 = vector.broadcast %cst_148 : f32 to vector<8x128xf32>
    %533 = arith.addf %532, %531 : vector<8x128xf32>
    %534 = arith.divf %532, %533 : vector<8x128xf32>
    %535 = vector.extract_strided_slice %522 {offsets = [0, 128], sizes = [8, 128], strides = [1, 1]} : vector<8x512xf32> to vector<8x128xf32>
    %536 = arith.negf %535 : vector<8x128xf32>
    %537 = math.exp %536 : vector<8x128xf32>
    %cst_149 = arith.constant 1.000000e+00 : f32
    %538 = vector.broadcast %cst_149 : f32 to vector<8x128xf32>
    %539 = arith.addf %538, %537 : vector<8x128xf32>
    %540 = arith.divf %538, %539 : vector<8x128xf32>
    %541 = vector.extract_strided_slice %522 {offsets = [0, 256], sizes = [8, 128], strides = [1, 1]} : vector<8x512xf32> to vector<8x128xf32>
    %542 = math.tanh %541 : vector<8x128xf32>
    %543 = vector.extract_strided_slice %522 {offsets = [0, 384], sizes = [8, 128], strides = [1, 1]} : vector<8x512xf32> to vector<8x128xf32>
    %544 = arith.negf %543 : vector<8x128xf32>
    %545 = math.exp %544 : vector<8x128xf32>
    %cst_150 = arith.constant 1.000000e+00 : f32
    %546 = vector.broadcast %cst_150 : f32 to vector<8x128xf32>
    %547 = arith.addf %546, %545 : vector<8x128xf32>
    %548 = arith.divf %546, %547 : vector<8x128xf32>
    %549 = arith.mulf %540, %480 : vector<8x128xf32>
    %550 = arith.mulf %534, %542 : vector<8x128xf32>
    %551 = arith.addf %549, %550 : vector<8x128xf32>
    %552 = math.tanh %551 : vector<8x128xf32>
    %553 = arith.mulf %548, %552 : vector<8x128xf32>
    %554 = vector.extract_strided_slice %528 {offsets = [0, 0], sizes = [8, 128], strides = [1, 1]} : vector<8x512xf32> to vector<8x128xf32>
    %555 = arith.negf %554 : vector<8x128xf32>
    %556 = math.exp %555 : vector<8x128xf32>
    %cst_151 = arith.constant 1.000000e+00 : f32
    %557 = vector.broadcast %cst_151 : f32 to vector<8x128xf32>
    %558 = arith.addf %557, %556 : vector<8x128xf32>
    %559 = arith.divf %557, %558 : vector<8x128xf32>
    %560 = vector.extract_strided_slice %528 {offsets = [0, 128], sizes = [8, 128], strides = [1, 1]} : vector<8x512xf32> to vector<8x128xf32>
    %561 = arith.negf %560 : vector<8x128xf32>
    %562 = math.exp %561 : vector<8x128xf32>
    %cst_152 = arith.constant 1.000000e+00 : f32
    %563 = vector.broadcast %cst_152 : f32 to vector<8x128xf32>
    %564 = arith.addf %563, %562 : vector<8x128xf32>
    %565 = arith.divf %563, %564 : vector<8x128xf32>
    %566 = vector.extract_strided_slice %528 {offsets = [0, 256], sizes = [8, 128], strides = [1, 1]} : vector<8x512xf32> to vector<8x128xf32>
    %567 = math.tanh %566 : vector<8x128xf32>
    %568 = vector.extract_strided_slice %528 {offsets = [0, 384], sizes = [8, 128], strides = [1, 1]} : vector<8x512xf32> to vector<8x128xf32>
    %569 = arith.negf %568 : vector<8x128xf32>
    %570 = math.exp %569 : vector<8x128xf32>
    %cst_153 = arith.constant 1.000000e+00 : f32
    %571 = vector.broadcast %cst_153 : f32 to vector<8x128xf32>
    %572 = arith.addf %571, %570 : vector<8x128xf32>
    %573 = arith.divf %571, %572 : vector<8x128xf32>
    %574 = arith.mulf %565, %505 : vector<8x128xf32>
    %575 = arith.mulf %559, %567 : vector<8x128xf32>
    %576 = arith.addf %574, %575 : vector<8x128xf32>
    %577 = math.tanh %576 : vector<8x128xf32>
    %578 = arith.mulf %573, %577 : vector<8x128xf32>
    %579 = arith.index_cast %c7_i32_140 : i32 to index
    %c0_154 = arith.constant 0 : index
    %c0_155 = arith.constant 0 : index
    %580 = vector.load %arg24[%579, %c0_154, %c0_155] : memref<8x8x128xf32, #tpu.memory_space<vmem>>, vector<1x8x128xf32>
    %581 = vector.shape_cast %580 : vector<1x8x128xf32> to vector<8x128xf32>
    %582 = vector.shape_cast %553 : vector<8x128xf32> to vector<1x8x128xf32>
    tpu.vector_store %arg24[%579, %c0_154, %c0_155], %582 {strides = array<i32>} : memref<8x8x128xf32, #tpu.memory_space<vmem>>, vector<1x8x128xf32>,
    %583 = arith.index_cast %516 : i32 to index
    %c0_156 = arith.constant 0 : index
    %c0_157 = arith.constant 0 : index
    %584 = vector.load %arg25[%583, %c0_156, %c0_157] : memref<8x8x128xf32, #tpu.memory_space<vmem>>, vector<1x8x128xf32>
    %585 = vector.shape_cast %584 : vector<1x8x128xf32> to vector<8x128xf32>
    %586 = vector.shape_cast %578 : vector<8x128xf32> to vector<1x8x128xf32>
    tpu.vector_store %arg25[%583, %c0_156, %c0_157], %586 {strides = array<i32>} : memref<8x8x128xf32, #tpu.memory_space<vmem>>, vector<1x8x128xf32>,
    %c8_i32 = arith.constant 8 : i32
    %c0_158 = arith.constant 0 : index
    %c0_159 = arith.constant 0 : index
    %c0_160 = arith.constant 0 : index
    %587 = vector.load %arg24[%c0_158, %c0_159, %c0_160] : memref<8x8x128xf32, #tpu.memory_space<vmem>>, vector<8x8x128xf32>
    %588 = vector.shape_cast %587 : vector<8x8x128xf32> to vector<64x128xf32>
    %c0_161 = arith.constant 0 : index
    %c0_162 = arith.constant 0 : index
    %c0_163 = arith.constant 0 : index
    %589 = vector.load %arg25[%c0_161, %c0_162, %c0_163] : memref<8x8x128xf32, #tpu.memory_space<vmem>>, vector<8x8x128xf32>
    %590 = vector.shape_cast %589 : vector<8x8x128xf32> to vector<64x128xf32>
    %c0_164 = arith.constant 0 : index
    %c0_165 = arith.constant 0 : index
    %591 = vector.load %arg8[%c0_164, %c0_165] : memref<128x512xf32, #tpu.memory_space<vmem>>, vector<128x512xf32>
    %cst_166 = arith.constant dense<0.000000e+00> : vector<64x512xf32>
    %592 = tpu.matmul %588, %591, %cst_166 {dimension_numbers = #tpu.dot_dimension_numbers<[1], [0], [0], [1], [0, 0, 1, 1], [], []>} : vector<64x128xf32>, vector<128x512xf32>, vector<64x512xf32> -> vector<64x512xf32>
    %c0_167 = arith.constant 0 : index
    %c0_168 = arith.constant 0 : index
    %593 = vector.load %arg9[%c0_167, %c0_168] : memref<128x512xf32, #tpu.memory_space<vmem>>, vector<128x512xf32>
    %cst_169 = arith.constant dense<0.000000e+00> : vector<64x512xf32>
    %594 = tpu.matmul %590, %593, %cst_169 {dimension_numbers = #tpu.dot_dimension_numbers<[1], [0], [0], [1], [0, 0, 1, 1], [], []>} : vector<64x128xf32>, vector<128x512xf32>, vector<64x512xf32> -> vector<64x512xf32>
    %595 = arith.addf %592, %594 : vector<64x512xf32>
    %596 = vector.shape_cast %595 : vector<64x512xf32> to vector<8x8x512xf32>
    %c0_170 = arith.constant 0 : index
    %c0_171 = arith.constant 0 : index
    %c0_172 = arith.constant 0 : index
    %597 = vector.load %arg22[%c0_170, %c0_171, %c0_172] : memref<8x8x512xf32, #tpu.memory_space<vmem>>, vector<8x8x512xf32>
    tpu.vector_store %arg22[%c0_170, %c0_171, %c0_172], %596 {strides = array<i32>} : memref<8x8x512xf32, #tpu.memory_space<vmem>>, vector<8x8x512xf32>,
    %c0_173 = arith.constant 0 : index
    %c0_174 = arith.constant 0 : index
    %598 = vector.load %arg12[%c0_173, %c0_174] : memref<128x512xf32, #tpu.memory_space<vmem>>, vector<128x512xf32>
    %cst_175 = arith.constant dense<0.000000e+00> : vector<64x512xf32>
    %599 = tpu.matmul %588, %598, %cst_175 {dimension_numbers = #tpu.dot_dimension_numbers<[1], [0], [0], [1], [0, 0, 1, 1], [], []>} : vector<64x128xf32>, vector<128x512xf32>, vector<64x512xf32> -> vector<64x512xf32>
    %c0_176 = arith.constant 0 : index
    %c0_177 = arith.constant 0 : index
    %600 = vector.load %arg13[%c0_176, %c0_177] : memref<128x512xf32, #tpu.memory_space<vmem>>, vector<128x512xf32>
    %cst_178 = arith.constant dense<0.000000e+00> : vector<64x512xf32>
    %601 = tpu.matmul %590, %600, %cst_178 {dimension_numbers = #tpu.dot_dimension_numbers<[1], [0], [0], [1], [0, 0, 1, 1], [], []>} : vector<64x128xf32>, vector<128x512xf32>, vector<64x512xf32> -> vector<64x512xf32>
    %602 = arith.addf %599, %601 : vector<64x512xf32>
    %603 = vector.shape_cast %602 : vector<64x512xf32> to vector<8x8x512xf32>
    %c0_179 = arith.constant 0 : index
    %c0_180 = arith.constant 0 : index
    %c0_181 = arith.constant 0 : index
    %604 = vector.load %arg23[%c0_179, %c0_180, %c0_181] : memref<8x8x512xf32, #tpu.memory_space<vmem>>, vector<8x8x512xf32>
    tpu.vector_store %arg23[%c0_179, %c0_180, %c0_181], %603 {strides = array<i32>} : memref<8x8x512xf32, #tpu.memory_space<vmem>>, vector<8x8x512xf32>,
    %c0_182 = arith.constant 0 : index
    %c0_183 = arith.constant 0 : index
    %605 = vector.load %arg10[%c0_182, %c0_183] : memref<128x512xf32, #tpu.memory_space<vmem>>, vector<128x512xf32>
    %c0_184 = arith.constant 0 : index
    %c0_185 = arith.constant 0 : index
    %606 = vector.load %arg14[%c0_184, %c0_185] : memref<128x512xf32, #tpu.memory_space<vmem>>, vector<128x512xf32>
    %c0_186 = arith.constant 0 : index
    %c0_187 = arith.constant 0 : index
    %607 = vector.load %arg11[%c0_186, %c0_187] : memref<1x512xf32, #tpu.memory_space<vmem>>, vector<1x512xf32>
    %608 = vector.shape_cast %607 : vector<1x512xf32> to vector<1x512xf32>
    %609 = vector.broadcast %608 : vector<1x512xf32> to vector<8x512xf32>
    %c0_188 = arith.constant 0 : index
    %c0_189 = arith.constant 0 : index
    %610 = vector.load %arg15[%c0_188, %c0_189] : memref<1x512xf32, #tpu.memory_space<vmem>>, vector<1x512xf32>
    %611 = vector.shape_cast %610 : vector<1x512xf32> to vector<1x512xf32>
    %612 = vector.broadcast %611 : vector<1x512xf32> to vector<8x512xf32>
    %cst_190 = arith.constant 0.000000e+00 : f32
    %613 = vector.broadcast %cst_190 : f32 to vector<8x128xf32>
    %c0_i32_191 = arith.constant 0 : i32
    %c7_i32_192 = arith.constant 7 : i32
    %614 = arith.subi %c7_i32_192, %c0_i32_191 : i32
    %615 = arith.index_cast %c0_i32_191 : i32 to index
    %c0_193 = arith.constant 0 : index
    %c0_194 = arith.constant 0 : index
    %616 = vector.load %arg22[%615, %c0_193, %c0_194] : memref<8x8x512xf32, #tpu.memory_space<vmem>>, vector<1x8x512xf32>
    %617 = vector.shape_cast %616 : vector<1x8x512xf32> to vector<8x512xf32>
    %cst_195 = arith.constant dense<0.000000e+00> : vector<8x512xf32>
    %618 = tpu.matmul %613, %605, %cst_195 {dimension_numbers = #tpu.dot_dimension_numbers<[1], [0], [0], [1], [0, 0, 1, 1], [], []>} : vector<8x128xf32>, vector<128x512xf32>, vector<8x512xf32> -> vector<8x512xf32>
    %619 = arith.addf %617, %618 : vector<8x512xf32>
    %620 = arith.addf %619, %609 : vector<8x512xf32>
    %621 = arith.index_cast %614 : i32 to index
    %c0_196 = arith.constant 0 : index
    %c0_197 = arith.constant 0 : index
    %622 = vector.load %arg23[%621, %c0_196, %c0_197] : memref<8x8x512xf32, #tpu.memory_space<vmem>>, vector<1x8x512xf32>
    %623 = vector.shape_cast %622 : vector<1x8x512xf32> to vector<8x512xf32>
    %cst_198 = arith.constant dense<0.000000e+00> : vector<8x512xf32>
    %624 = tpu.matmul %613, %606, %cst_198 {dimension_numbers = #tpu.dot_dimension_numbers<[1], [0], [0], [1], [0, 0, 1, 1], [], []>} : vector<8x128xf32>, vector<128x512xf32>, vector<8x512xf32> -> vector<8x512xf32>
    %625 = arith.addf %623, %624 : vector<8x512xf32>
    %626 = arith.addf %625, %612 : vector<8x512xf32>
    %627 = vector.extract_strided_slice %620 {offsets = [0, 0], sizes = [8, 128], strides = [1, 1]} : vector<8x512xf32> to vector<8x128xf32>
    %628 = arith.negf %627 : vector<8x128xf32>
    %629 = math.exp %628 : vector<8x128xf32>
    %cst_199 = arith.constant 1.000000e+00 : f32
    %630 = vector.broadcast %cst_199 : f32 to vector<8x128xf32>
    %631 = arith.addf %630, %629 : vector<8x128xf32>
    %632 = arith.divf %630, %631 : vector<8x128xf32>
    %633 = vector.extract_strided_slice %620 {offsets = [0, 128], sizes = [8, 128], strides = [1, 1]} : vector<8x512xf32> to vector<8x128xf32>
    %634 = arith.negf %633 : vector<8x128xf32>
    %635 = math.exp %634 : vector<8x128xf32>
    %cst_200 = arith.constant 1.000000e+00 : f32
    %636 = vector.broadcast %cst_200 : f32 to vector<8x128xf32>
    %637 = arith.addf %636, %635 : vector<8x128xf32>
    %638 = arith.divf %636, %637 : vector<8x128xf32>
    %639 = vector.extract_strided_slice %620 {offsets = [0, 256], sizes = [8, 128], strides = [1, 1]} : vector<8x512xf32> to vector<8x128xf32>
    %640 = math.tanh %639 : vector<8x128xf32>
    %641 = vector.extract_strided_slice %620 {offsets = [0, 384], sizes = [8, 128], strides = [1, 1]} : vector<8x512xf32> to vector<8x128xf32>
    %642 = arith.negf %641 : vector<8x128xf32>
    %643 = math.exp %642 : vector<8x128xf32>
    %cst_201 = arith.constant 1.000000e+00 : f32
    %644 = vector.broadcast %cst_201 : f32 to vector<8x128xf32>
    %645 = arith.addf %644, %643 : vector<8x128xf32>
    %646 = arith.divf %644, %645 : vector<8x128xf32>
    %647 = arith.mulf %638, %613 : vector<8x128xf32>
    %648 = arith.mulf %632, %640 : vector<8x128xf32>
    %649 = arith.addf %647, %648 : vector<8x128xf32>
    %650 = math.tanh %649 : vector<8x128xf32>
    %651 = arith.mulf %646, %650 : vector<8x128xf32>
    %652 = vector.extract_strided_slice %626 {offsets = [0, 0], sizes = [8, 128], strides = [1, 1]} : vector<8x512xf32> to vector<8x128xf32>
    %653 = arith.negf %652 : vector<8x128xf32>
    %654 = math.exp %653 : vector<8x128xf32>
    %cst_202 = arith.constant 1.000000e+00 : f32
    %655 = vector.broadcast %cst_202 : f32 to vector<8x128xf32>
    %656 = arith.addf %655, %654 : vector<8x128xf32>
    %657 = arith.divf %655, %656 : vector<8x128xf32>
    %658 = vector.extract_strided_slice %626 {offsets = [0, 128], sizes = [8, 128], strides = [1, 1]} : vector<8x512xf32> to vector<8x128xf32>
    %659 = arith.negf %658 : vector<8x128xf32>
    %660 = math.exp %659 : vector<8x128xf32>
    %cst_203 = arith.constant 1.000000e+00 : f32
    %661 = vector.broadcast %cst_203 : f32 to vector<8x128xf32>
    %662 = arith.addf %661, %660 : vector<8x128xf32>
    %663 = arith.divf %661, %662 : vector<8x128xf32>
    %664 = vector.extract_strided_slice %626 {offsets = [0, 256], sizes = [8, 128], strides = [1, 1]} : vector<8x512xf32> to vector<8x128xf32>
    %665 = math.tanh %664 : vector<8x128xf32>
    %666 = vector.extract_strided_slice %626 {offsets = [0, 384], sizes = [8, 128], strides = [1, 1]} : vector<8x512xf32> to vector<8x128xf32>
    %667 = arith.negf %666 : vector<8x128xf32>
    %668 = math.exp %667 : vector<8x128xf32>
    %cst_204 = arith.constant 1.000000e+00 : f32
    %669 = vector.broadcast %cst_204 : f32 to vector<8x128xf32>
    %670 = arith.addf %669, %668 : vector<8x128xf32>
    %671 = arith.divf %669, %670 : vector<8x128xf32>
    %672 = arith.mulf %663, %613 : vector<8x128xf32>
    %673 = arith.mulf %657, %665 : vector<8x128xf32>
    %674 = arith.addf %672, %673 : vector<8x128xf32>
    %675 = math.tanh %674 : vector<8x128xf32>
    %676 = arith.mulf %671, %675 : vector<8x128xf32>
    %677 = arith.index_cast %c0_i32_191 : i32 to index
    %c0_205 = arith.constant 0 : index
    %c0_206 = arith.constant 0 : index
    %678 = vector.load %arg26[%677, %c0_205, %c0_206] : memref<8x8x128xf32, #tpu.memory_space<vmem>>, vector<1x8x128xf32>
    %679 = vector.shape_cast %678 : vector<1x8x128xf32> to vector<8x128xf32>
    %680 = vector.shape_cast %651 : vector<8x128xf32> to vector<1x8x128xf32>
    tpu.vector_store %arg26[%677, %c0_205, %c0_206], %680 {strides = array<i32>} : memref<8x8x128xf32, #tpu.memory_space<vmem>>, vector<1x8x128xf32>,
    %681 = arith.index_cast %614 : i32 to index
    %c0_207 = arith.constant 0 : index
    %c0_208 = arith.constant 0 : index
    %682 = vector.load %arg27[%681, %c0_207, %c0_208] : memref<8x8x128xf32, #tpu.memory_space<vmem>>, vector<1x8x128xf32>
    %683 = vector.shape_cast %682 : vector<1x8x128xf32> to vector<8x128xf32>
    %684 = vector.shape_cast %676 : vector<8x128xf32> to vector<1x8x128xf32>
    tpu.vector_store %arg27[%681, %c0_207, %c0_208], %684 {strides = array<i32>} : memref<8x8x128xf32, #tpu.memory_space<vmem>>, vector<1x8x128xf32>,
    %c1_i32_209 = arith.constant 1 : i32
    %c7_i32_210 = arith.constant 7 : i32
    %685 = arith.subi %c7_i32_210, %c1_i32_209 : i32
    %686 = arith.index_cast %c1_i32_209 : i32 to index
    %c0_211 = arith.constant 0 : index
    %c0_212 = arith.constant 0 : index
    %687 = vector.load %arg22[%686, %c0_211, %c0_212] : memref<8x8x512xf32, #tpu.memory_space<vmem>>, vector<1x8x512xf32>
    %688 = vector.shape_cast %687 : vector<1x8x512xf32> to vector<8x512xf32>
    %cst_213 = arith.constant dense<0.000000e+00> : vector<8x512xf32>
    %689 = tpu.matmul %651, %605, %cst_213 {dimension_numbers = #tpu.dot_dimension_numbers<[1], [0], [0], [1], [0, 0, 1, 1], [], []>} : vector<8x128xf32>, vector<128x512xf32>, vector<8x512xf32> -> vector<8x512xf32>
    %690 = arith.addf %688, %689 : vector<8x512xf32>
    %691 = arith.addf %690, %609 : vector<8x512xf32>
    %692 = arith.index_cast %685 : i32 to index
    %c0_214 = arith.constant 0 : index
    %c0_215 = arith.constant 0 : index
    %693 = vector.load %arg23[%692, %c0_214, %c0_215] : memref<8x8x512xf32, #tpu.memory_space<vmem>>, vector<1x8x512xf32>
    %694 = vector.shape_cast %693 : vector<1x8x512xf32> to vector<8x512xf32>
    %cst_216 = arith.constant dense<0.000000e+00> : vector<8x512xf32>
    %695 = tpu.matmul %676, %606, %cst_216 {dimension_numbers = #tpu.dot_dimension_numbers<[1], [0], [0], [1], [0, 0, 1, 1], [], []>} : vector<8x128xf32>, vector<128x512xf32>, vector<8x512xf32> -> vector<8x512xf32>
    %696 = arith.addf %694, %695 : vector<8x512xf32>
    %697 = arith.addf %696, %612 : vector<8x512xf32>
    %698 = vector.extract_strided_slice %691 {offsets = [0, 0], sizes = [8, 128], strides = [1, 1]} : vector<8x512xf32> to vector<8x128xf32>
    %699 = arith.negf %698 : vector<8x128xf32>
    %700 = math.exp %699 : vector<8x128xf32>
    %cst_217 = arith.constant 1.000000e+00 : f32
    %701 = vector.broadcast %cst_217 : f32 to vector<8x128xf32>
    %702 = arith.addf %701, %700 : vector<8x128xf32>
    %703 = arith.divf %701, %702 : vector<8x128xf32>
    %704 = vector.extract_strided_slice %691 {offsets = [0, 128], sizes = [8, 128], strides = [1, 1]} : vector<8x512xf32> to vector<8x128xf32>
    %705 = arith.negf %704 : vector<8x128xf32>
    %706 = math.exp %705 : vector<8x128xf32>
    %cst_218 = arith.constant 1.000000e+00 : f32
    %707 = vector.broadcast %cst_218 : f32 to vector<8x128xf32>
    %708 = arith.addf %707, %706 : vector<8x128xf32>
    %709 = arith.divf %707, %708 : vector<8x128xf32>
    %710 = vector.extract_strided_slice %691 {offsets = [0, 256], sizes = [8, 128], strides = [1, 1]} : vector<8x512xf32> to vector<8x128xf32>
    %711 = math.tanh %710 : vector<8x128xf32>
    %712 = vector.extract_strided_slice %691 {offsets = [0, 384], sizes = [8, 128], strides = [1, 1]} : vector<8x512xf32> to vector<8x128xf32>
    %713 = arith.negf %712 : vector<8x128xf32>
    %714 = math.exp %713 : vector<8x128xf32>
    %cst_219 = arith.constant 1.000000e+00 : f32
    %715 = vector.broadcast %cst_219 : f32 to vector<8x128xf32>
    %716 = arith.addf %715, %714 : vector<8x128xf32>
    %717 = arith.divf %715, %716 : vector<8x128xf32>
    %718 = arith.mulf %709, %649 : vector<8x128xf32>
    %719 = arith.mulf %703, %711 : vector<8x128xf32>
    %720 = arith.addf %718, %719 : vector<8x128xf32>
    %721 = math.tanh %720 : vector<8x128xf32>
    %722 = arith.mulf %717, %721 : vector<8x128xf32>
    %723 = vector.extract_strided_slice %697 {offsets = [0, 0], sizes = [8, 128], strides = [1, 1]} : vector<8x512xf32> to vector<8x128xf32>
    %724 = arith.negf %723 : vector<8x128xf32>
    %725 = math.exp %724 : vector<8x128xf32>
    %cst_220 = arith.constant 1.000000e+00 : f32
    %726 = vector.broadcast %cst_220 : f32 to vector<8x128xf32>
    %727 = arith.addf %726, %725 : vector<8x128xf32>
    %728 = arith.divf %726, %727 : vector<8x128xf32>
    %729 = vector.extract_strided_slice %697 {offsets = [0, 128], sizes = [8, 128], strides = [1, 1]} : vector<8x512xf32> to vector<8x128xf32>
    %730 = arith.negf %729 : vector<8x128xf32>
    %731 = math.exp %730 : vector<8x128xf32>
    %cst_221 = arith.constant 1.000000e+00 : f32
    %732 = vector.broadcast %cst_221 : f32 to vector<8x128xf32>
    %733 = arith.addf %732, %731 : vector<8x128xf32>
    %734 = arith.divf %732, %733 : vector<8x128xf32>
    %735 = vector.extract_strided_slice %697 {offsets = [0, 256], sizes = [8, 128], strides = [1, 1]} : vector<8x512xf32> to vector<8x128xf32>
    %736 = math.tanh %735 : vector<8x128xf32>
    %737 = vector.extract_strided_slice %697 {offsets = [0, 384], sizes = [8, 128], strides = [1, 1]} : vector<8x512xf32> to vector<8x128xf32>
    %738 = arith.negf %737 : vector<8x128xf32>
    %739 = math.exp %738 : vector<8x128xf32>
    %cst_222 = arith.constant 1.000000e+00 : f32
    %740 = vector.broadcast %cst_222 : f32 to vector<8x128xf32>
    %741 = arith.addf %740, %739 : vector<8x128xf32>
    %742 = arith.divf %740, %741 : vector<8x128xf32>
    %743 = arith.mulf %734, %674 : vector<8x128xf32>
    %744 = arith.mulf %728, %736 : vector<8x128xf32>
    %745 = arith.addf %743, %744 : vector<8x128xf32>
    %746 = math.tanh %745 : vector<8x128xf32>
    %747 = arith.mulf %742, %746 : vector<8x128xf32>
    %748 = arith.index_cast %c1_i32_209 : i32 to index
    %c0_223 = arith.constant 0 : index
    %c0_224 = arith.constant 0 : index
    %749 = vector.load %arg26[%748, %c0_223, %c0_224] : memref<8x8x128xf32, #tpu.memory_space<vmem>>, vector<1x8x128xf32>
    %750 = vector.shape_cast %749 : vector<1x8x128xf32> to vector<8x128xf32>
    %751 = vector.shape_cast %722 : vector<8x128xf32> to vector<1x8x128xf32>
    tpu.vector_store %arg26[%748, %c0_223, %c0_224], %751 {strides = array<i32>} : memref<8x8x128xf32, #tpu.memory_space<vmem>>, vector<1x8x128xf32>,
    %752 = arith.index_cast %685 : i32 to index
    %c0_225 = arith.constant 0 : index
    %c0_226 = arith.constant 0 : index
    %753 = vector.load %arg27[%752, %c0_225, %c0_226] : memref<8x8x128xf32, #tpu.memory_space<vmem>>, vector<1x8x128xf32>
    %754 = vector.shape_cast %753 : vector<1x8x128xf32> to vector<8x128xf32>
    %755 = vector.shape_cast %747 : vector<8x128xf32> to vector<1x8x128xf32>
    tpu.vector_store %arg27[%752, %c0_225, %c0_226], %755 {strides = array<i32>} : memref<8x8x128xf32, #tpu.memory_space<vmem>>, vector<1x8x128xf32>,
    %c2_i32_227 = arith.constant 2 : i32
    %c7_i32_228 = arith.constant 7 : i32
    %756 = arith.subi %c7_i32_228, %c2_i32_227 : i32
    %757 = arith.index_cast %c2_i32_227 : i32 to index
    %c0_229 = arith.constant 0 : index
    %c0_230 = arith.constant 0 : index
    %758 = vector.load %arg22[%757, %c0_229, %c0_230] : memref<8x8x512xf32, #tpu.memory_space<vmem>>, vector<1x8x512xf32>
    %759 = vector.shape_cast %758 : vector<1x8x512xf32> to vector<8x512xf32>
    %cst_231 = arith.constant dense<0.000000e+00> : vector<8x512xf32>
    %760 = tpu.matmul %722, %605, %cst_231 {dimension_numbers = #tpu.dot_dimension_numbers<[1], [0], [0], [1], [0, 0, 1, 1], [], []>} : vector<8x128xf32>, vector<128x512xf32>, vector<8x512xf32> -> vector<8x512xf32>
    %761 = arith.addf %759, %760 : vector<8x512xf32>
    %762 = arith.addf %761, %609 : vector<8x512xf32>
    %763 = arith.index_cast %756 : i32 to index
    %c0_232 = arith.constant 0 : index
    %c0_233 = arith.constant 0 : index
    %764 = vector.load %arg23[%763, %c0_232, %c0_233] : memref<8x8x512xf32, #tpu.memory_space<vmem>>, vector<1x8x512xf32>
    %765 = vector.shape_cast %764 : vector<1x8x512xf32> to vector<8x512xf32>
    %cst_234 = arith.constant dense<0.000000e+00> : vector<8x512xf32>
    %766 = tpu.matmul %747, %606, %cst_234 {dimension_numbers = #tpu.dot_dimension_numbers<[1], [0], [0], [1], [0, 0, 1, 1], [], []>} : vector<8x128xf32>, vector<128x512xf32>, vector<8x512xf32> -> vector<8x512xf32>
    %767 = arith.addf %765, %766 : vector<8x512xf32>
    %768 = arith.addf %767, %612 : vector<8x512xf32>
    %769 = vector.extract_strided_slice %762 {offsets = [0, 0], sizes = [8, 128], strides = [1, 1]} : vector<8x512xf32> to vector<8x128xf32>
    %770 = arith.negf %769 : vector<8x128xf32>
    %771 = math.exp %770 : vector<8x128xf32>
    %cst_235 = arith.constant 1.000000e+00 : f32
    %772 = vector.broadcast %cst_235 : f32 to vector<8x128xf32>
    %773 = arith.addf %772, %771 : vector<8x128xf32>
    %774 = arith.divf %772, %773 : vector<8x128xf32>
    %775 = vector.extract_strided_slice %762 {offsets = [0, 128], sizes = [8, 128], strides = [1, 1]} : vector<8x512xf32> to vector<8x128xf32>
    %776 = arith.negf %775 : vector<8x128xf32>
    %777 = math.exp %776 : vector<8x128xf32>
    %cst_236 = arith.constant 1.000000e+00 : f32
    %778 = vector.broadcast %cst_236 : f32 to vector<8x128xf32>
    %779 = arith.addf %778, %777 : vector<8x128xf32>
    %780 = arith.divf %778, %779 : vector<8x128xf32>
    %781 = vector.extract_strided_slice %762 {offsets = [0, 256], sizes = [8, 128], strides = [1, 1]} : vector<8x512xf32> to vector<8x128xf32>
    %782 = math.tanh %781 : vector<8x128xf32>
    %783 = vector.extract_strided_slice %762 {offsets = [0, 384], sizes = [8, 128], strides = [1, 1]} : vector<8x512xf32> to vector<8x128xf32>
    %784 = arith.negf %783 : vector<8x128xf32>
    %785 = math.exp %784 : vector<8x128xf32>
    %cst_237 = arith.constant 1.000000e+00 : f32
    %786 = vector.broadcast %cst_237 : f32 to vector<8x128xf32>
    %787 = arith.addf %786, %785 : vector<8x128xf32>
    %788 = arith.divf %786, %787 : vector<8x128xf32>
    %789 = arith.mulf %780, %720 : vector<8x128xf32>
    %790 = arith.mulf %774, %782 : vector<8x128xf32>
    %791 = arith.addf %789, %790 : vector<8x128xf32>
    %792 = math.tanh %791 : vector<8x128xf32>
    %793 = arith.mulf %788, %792 : vector<8x128xf32>
    %794 = vector.extract_strided_slice %768 {offsets = [0, 0], sizes = [8, 128], strides = [1, 1]} : vector<8x512xf32> to vector<8x128xf32>
    %795 = arith.negf %794 : vector<8x128xf32>
    %796 = math.exp %795 : vector<8x128xf32>
    %cst_238 = arith.constant 1.000000e+00 : f32
    %797 = vector.broadcast %cst_238 : f32 to vector<8x128xf32>
    %798 = arith.addf %797, %796 : vector<8x128xf32>
    %799 = arith.divf %797, %798 : vector<8x128xf32>
    %800 = vector.extract_strided_slice %768 {offsets = [0, 128], sizes = [8, 128], strides = [1, 1]} : vector<8x512xf32> to vector<8x128xf32>
    %801 = arith.negf %800 : vector<8x128xf32>
    %802 = math.exp %801 : vector<8x128xf32>
    %cst_239 = arith.constant 1.000000e+00 : f32
    %803 = vector.broadcast %cst_239 : f32 to vector<8x128xf32>
    %804 = arith.addf %803, %802 : vector<8x128xf32>
    %805 = arith.divf %803, %804 : vector<8x128xf32>
    %806 = vector.extract_strided_slice %768 {offsets = [0, 256], sizes = [8, 128], strides = [1, 1]} : vector<8x512xf32> to vector<8x128xf32>
    %807 = math.tanh %806 : vector<8x128xf32>
    %808 = vector.extract_strided_slice %768 {offsets = [0, 384], sizes = [8, 128], strides = [1, 1]} : vector<8x512xf32> to vector<8x128xf32>
    %809 = arith.negf %808 : vector<8x128xf32>
    %810 = math.exp %809 : vector<8x128xf32>
    %cst_240 = arith.constant 1.000000e+00 : f32
    %811 = vector.broadcast %cst_240 : f32 to vector<8x128xf32>
    %812 = arith.addf %811, %810 : vector<8x128xf32>
    %813 = arith.divf %811, %812 : vector<8x128xf32>
    %814 = arith.mulf %805, %745 : vector<8x128xf32>
    %815 = arith.mulf %799, %807 : vector<8x128xf32>
    %816 = arith.addf %814, %815 : vector<8x128xf32>
    %817 = math.tanh %816 : vector<8x128xf32>
    %818 = arith.mulf %813, %817 : vector<8x128xf32>
    %819 = arith.index_cast %c2_i32_227 : i32 to index
    %c0_241 = arith.constant 0 : index
    %c0_242 = arith.constant 0 : index
    %820 = vector.load %arg26[%819, %c0_241, %c0_242] : memref<8x8x128xf32, #tpu.memory_space<vmem>>, vector<1x8x128xf32>
    %821 = vector.shape_cast %820 : vector<1x8x128xf32> to vector<8x128xf32>
    %822 = vector.shape_cast %793 : vector<8x128xf32> to vector<1x8x128xf32>
    tpu.vector_store %arg26[%819, %c0_241, %c0_242], %822 {strides = array<i32>} : memref<8x8x128xf32, #tpu.memory_space<vmem>>, vector<1x8x128xf32>,
    %823 = arith.index_cast %756 : i32 to index
    %c0_243 = arith.constant 0 : index
    %c0_244 = arith.constant 0 : index
    %824 = vector.load %arg27[%823, %c0_243, %c0_244] : memref<8x8x128xf32, #tpu.memory_space<vmem>>, vector<1x8x128xf32>
    %825 = vector.shape_cast %824 : vector<1x8x128xf32> to vector<8x128xf32>
    %826 = vector.shape_cast %818 : vector<8x128xf32> to vector<1x8x128xf32>
    tpu.vector_store %arg27[%823, %c0_243, %c0_244], %826 {strides = array<i32>} : memref<8x8x128xf32, #tpu.memory_space<vmem>>, vector<1x8x128xf32>,
    %c3_i32_245 = arith.constant 3 : i32
    %c7_i32_246 = arith.constant 7 : i32
    %827 = arith.subi %c7_i32_246, %c3_i32_245 : i32
    %828 = arith.index_cast %c3_i32_245 : i32 to index
    %c0_247 = arith.constant 0 : index
    %c0_248 = arith.constant 0 : index
    %829 = vector.load %arg22[%828, %c0_247, %c0_248] : memref<8x8x512xf32, #tpu.memory_space<vmem>>, vector<1x8x512xf32>
    %830 = vector.shape_cast %829 : vector<1x8x512xf32> to vector<8x512xf32>
    %cst_249 = arith.constant dense<0.000000e+00> : vector<8x512xf32>
    %831 = tpu.matmul %793, %605, %cst_249 {dimension_numbers = #tpu.dot_dimension_numbers<[1], [0], [0], [1], [0, 0, 1, 1], [], []>} : vector<8x128xf32>, vector<128x512xf32>, vector<8x512xf32> -> vector<8x512xf32>
    %832 = arith.addf %830, %831 : vector<8x512xf32>
    %833 = arith.addf %832, %609 : vector<8x512xf32>
    %834 = arith.index_cast %827 : i32 to index
    %c0_250 = arith.constant 0 : index
    %c0_251 = arith.constant 0 : index
    %835 = vector.load %arg23[%834, %c0_250, %c0_251] : memref<8x8x512xf32, #tpu.memory_space<vmem>>, vector<1x8x512xf32>
    %836 = vector.shape_cast %835 : vector<1x8x512xf32> to vector<8x512xf32>
    %cst_252 = arith.constant dense<0.000000e+00> : vector<8x512xf32>
    %837 = tpu.matmul %818, %606, %cst_252 {dimension_numbers = #tpu.dot_dimension_numbers<[1], [0], [0], [1], [0, 0, 1, 1], [], []>} : vector<8x128xf32>, vector<128x512xf32>, vector<8x512xf32> -> vector<8x512xf32>
    %838 = arith.addf %836, %837 : vector<8x512xf32>
    %839 = arith.addf %838, %612 : vector<8x512xf32>
    %840 = vector.extract_strided_slice %833 {offsets = [0, 0], sizes = [8, 128], strides = [1, 1]} : vector<8x512xf32> to vector<8x128xf32>
    %841 = arith.negf %840 : vector<8x128xf32>
    %842 = math.exp %841 : vector<8x128xf32>
    %cst_253 = arith.constant 1.000000e+00 : f32
    %843 = vector.broadcast %cst_253 : f32 to vector<8x128xf32>
    %844 = arith.addf %843, %842 : vector<8x128xf32>
    %845 = arith.divf %843, %844 : vector<8x128xf32>
    %846 = vector.extract_strided_slice %833 {offsets = [0, 128], sizes = [8, 128], strides = [1, 1]} : vector<8x512xf32> to vector<8x128xf32>
    %847 = arith.negf %846 : vector<8x128xf32>
    %848 = math.exp %847 : vector<8x128xf32>
    %cst_254 = arith.constant 1.000000e+00 : f32
    %849 = vector.broadcast %cst_254 : f32 to vector<8x128xf32>
    %850 = arith.addf %849, %848 : vector<8x128xf32>
    %851 = arith.divf %849, %850 : vector<8x128xf32>
    %852 = vector.extract_strided_slice %833 {offsets = [0, 256], sizes = [8, 128], strides = [1, 1]} : vector<8x512xf32> to vector<8x128xf32>
    %853 = math.tanh %852 : vector<8x128xf32>
    %854 = vector.extract_strided_slice %833 {offsets = [0, 384], sizes = [8, 128], strides = [1, 1]} : vector<8x512xf32> to vector<8x128xf32>
    %855 = arith.negf %854 : vector<8x128xf32>
    %856 = math.exp %855 : vector<8x128xf32>
    %cst_255 = arith.constant 1.000000e+00 : f32
    %857 = vector.broadcast %cst_255 : f32 to vector<8x128xf32>
    %858 = arith.addf %857, %856 : vector<8x128xf32>
    %859 = arith.divf %857, %858 : vector<8x128xf32>
    %860 = arith.mulf %851, %791 : vector<8x128xf32>
    %861 = arith.mulf %845, %853 : vector<8x128xf32>
    %862 = arith.addf %860, %861 : vector<8x128xf32>
    %863 = math.tanh %862 : vector<8x128xf32>
    %864 = arith.mulf %859, %863 : vector<8x128xf32>
    %865 = vector.extract_strided_slice %839 {offsets = [0, 0], sizes = [8, 128], strides = [1, 1]} : vector<8x512xf32> to vector<8x128xf32>
    %866 = arith.negf %865 : vector<8x128xf32>
    %867 = math.exp %866 : vector<8x128xf32>
    %cst_256 = arith.constant 1.000000e+00 : f32
    %868 = vector.broadcast %cst_256 : f32 to vector<8x128xf32>
    %869 = arith.addf %868, %867 : vector<8x128xf32>
    %870 = arith.divf %868, %869 : vector<8x128xf32>
    %871 = vector.extract_strided_slice %839 {offsets = [0, 128], sizes = [8, 128], strides = [1, 1]} : vector<8x512xf32> to vector<8x128xf32>
    %872 = arith.negf %871 : vector<8x128xf32>
    %873 = math.exp %872 : vector<8x128xf32>
    %cst_257 = arith.constant 1.000000e+00 : f32
    %874 = vector.broadcast %cst_257 : f32 to vector<8x128xf32>
    %875 = arith.addf %874, %873 : vector<8x128xf32>
    %876 = arith.divf %874, %875 : vector<8x128xf32>
    %877 = vector.extract_strided_slice %839 {offsets = [0, 256], sizes = [8, 128], strides = [1, 1]} : vector<8x512xf32> to vector<8x128xf32>
    %878 = math.tanh %877 : vector<8x128xf32>
    %879 = vector.extract_strided_slice %839 {offsets = [0, 384], sizes = [8, 128], strides = [1, 1]} : vector<8x512xf32> to vector<8x128xf32>
    %880 = arith.negf %879 : vector<8x128xf32>
    %881 = math.exp %880 : vector<8x128xf32>
    %cst_258 = arith.constant 1.000000e+00 : f32
    %882 = vector.broadcast %cst_258 : f32 to vector<8x128xf32>
    %883 = arith.addf %882, %881 : vector<8x128xf32>
    %884 = arith.divf %882, %883 : vector<8x128xf32>
    %885 = arith.mulf %876, %816 : vector<8x128xf32>
    %886 = arith.mulf %870, %878 : vector<8x128xf32>
    %887 = arith.addf %885, %886 : vector<8x128xf32>
    %888 = math.tanh %887 : vector<8x128xf32>
    %889 = arith.mulf %884, %888 : vector<8x128xf32>
    %890 = arith.index_cast %c3_i32_245 : i32 to index
    %c0_259 = arith.constant 0 : index
    %c0_260 = arith.constant 0 : index
    %891 = vector.load %arg26[%890, %c0_259, %c0_260] : memref<8x8x128xf32, #tpu.memory_space<vmem>>, vector<1x8x128xf32>
    %892 = vector.shape_cast %891 : vector<1x8x128xf32> to vector<8x128xf32>
    %893 = vector.shape_cast %864 : vector<8x128xf32> to vector<1x8x128xf32>
    tpu.vector_store %arg26[%890, %c0_259, %c0_260], %893 {strides = array<i32>} : memref<8x8x128xf32, #tpu.memory_space<vmem>>, vector<1x8x128xf32>,
    %894 = arith.index_cast %827 : i32 to index
    %c0_261 = arith.constant 0 : index
    %c0_262 = arith.constant 0 : index
    %895 = vector.load %arg27[%894, %c0_261, %c0_262] : memref<8x8x128xf32, #tpu.memory_space<vmem>>, vector<1x8x128xf32>
    %896 = vector.shape_cast %895 : vector<1x8x128xf32> to vector<8x128xf32>
    %897 = vector.shape_cast %889 : vector<8x128xf32> to vector<1x8x128xf32>
    tpu.vector_store %arg27[%894, %c0_261, %c0_262], %897 {strides = array<i32>} : memref<8x8x128xf32, #tpu.memory_space<vmem>>, vector<1x8x128xf32>,
    %c4_i32_263 = arith.constant 4 : i32
    %c7_i32_264 = arith.constant 7 : i32
    %898 = arith.subi %c7_i32_264, %c4_i32_263 : i32
    %899 = arith.index_cast %c4_i32_263 : i32 to index
    %c0_265 = arith.constant 0 : index
    %c0_266 = arith.constant 0 : index
    %900 = vector.load %arg22[%899, %c0_265, %c0_266] : memref<8x8x512xf32, #tpu.memory_space<vmem>>, vector<1x8x512xf32>
    %901 = vector.shape_cast %900 : vector<1x8x512xf32> to vector<8x512xf32>
    %cst_267 = arith.constant dense<0.000000e+00> : vector<8x512xf32>
    %902 = tpu.matmul %864, %605, %cst_267 {dimension_numbers = #tpu.dot_dimension_numbers<[1], [0], [0], [1], [0, 0, 1, 1], [], []>} : vector<8x128xf32>, vector<128x512xf32>, vector<8x512xf32> -> vector<8x512xf32>
    %903 = arith.addf %901, %902 : vector<8x512xf32>
    %904 = arith.addf %903, %609 : vector<8x512xf32>
    %905 = arith.index_cast %898 : i32 to index
    %c0_268 = arith.constant 0 : index
    %c0_269 = arith.constant 0 : index
    %906 = vector.load %arg23[%905, %c0_268, %c0_269] : memref<8x8x512xf32, #tpu.memory_space<vmem>>, vector<1x8x512xf32>
    %907 = vector.shape_cast %906 : vector<1x8x512xf32> to vector<8x512xf32>
    %cst_270 = arith.constant dense<0.000000e+00> : vector<8x512xf32>
    %908 = tpu.matmul %889, %606, %cst_270 {dimension_numbers = #tpu.dot_dimension_numbers<[1], [0], [0], [1], [0, 0, 1, 1], [], []>} : vector<8x128xf32>, vector<128x512xf32>, vector<8x512xf32> -> vector<8x512xf32>
    %909 = arith.addf %907, %908 : vector<8x512xf32>
    %910 = arith.addf %909, %612 : vector<8x512xf32>
    %911 = vector.extract_strided_slice %904 {offsets = [0, 0], sizes = [8, 128], strides = [1, 1]} : vector<8x512xf32> to vector<8x128xf32>
    %912 = arith.negf %911 : vector<8x128xf32>
    %913 = math.exp %912 : vector<8x128xf32>
    %cst_271 = arith.constant 1.000000e+00 : f32
    %914 = vector.broadcast %cst_271 : f32 to vector<8x128xf32>
    %915 = arith.addf %914, %913 : vector<8x128xf32>
    %916 = arith.divf %914, %915 : vector<8x128xf32>
    %917 = vector.extract_strided_slice %904 {offsets = [0, 128], sizes = [8, 128], strides = [1, 1]} : vector<8x512xf32> to vector<8x128xf32>
    %918 = arith.negf %917 : vector<8x128xf32>
    %919 = math.exp %918 : vector<8x128xf32>
    %cst_272 = arith.constant 1.000000e+00 : f32
    %920 = vector.broadcast %cst_272 : f32 to vector<8x128xf32>
    %921 = arith.addf %920, %919 : vector<8x128xf32>
    %922 = arith.divf %920, %921 : vector<8x128xf32>
    %923 = vector.extract_strided_slice %904 {offsets = [0, 256], sizes = [8, 128], strides = [1, 1]} : vector<8x512xf32> to vector<8x128xf32>
    %924 = math.tanh %923 : vector<8x128xf32>
    %925 = vector.extract_strided_slice %904 {offsets = [0, 384], sizes = [8, 128], strides = [1, 1]} : vector<8x512xf32> to vector<8x128xf32>
    %926 = arith.negf %925 : vector<8x128xf32>
    %927 = math.exp %926 : vector<8x128xf32>
    %cst_273 = arith.constant 1.000000e+00 : f32
    %928 = vector.broadcast %cst_273 : f32 to vector<8x128xf32>
    %929 = arith.addf %928, %927 : vector<8x128xf32>
    %930 = arith.divf %928, %929 : vector<8x128xf32>
    %931 = arith.mulf %922, %862 : vector<8x128xf32>
    %932 = arith.mulf %916, %924 : vector<8x128xf32>
    %933 = arith.addf %931, %932 : vector<8x128xf32>
    %934 = math.tanh %933 : vector<8x128xf32>
    %935 = arith.mulf %930, %934 : vector<8x128xf32>
    %936 = vector.extract_strided_slice %910 {offsets = [0, 0], sizes = [8, 128], strides = [1, 1]} : vector<8x512xf32> to vector<8x128xf32>
    %937 = arith.negf %936 : vector<8x128xf32>
    %938 = math.exp %937 : vector<8x128xf32>
    %cst_274 = arith.constant 1.000000e+00 : f32
    %939 = vector.broadcast %cst_274 : f32 to vector<8x128xf32>
    %940 = arith.addf %939, %938 : vector<8x128xf32>
    %941 = arith.divf %939, %940 : vector<8x128xf32>
    %942 = vector.extract_strided_slice %910 {offsets = [0, 128], sizes = [8, 128], strides = [1, 1]} : vector<8x512xf32> to vector<8x128xf32>
    %943 = arith.negf %942 : vector<8x128xf32>
    %944 = math.exp %943 : vector<8x128xf32>
    %cst_275 = arith.constant 1.000000e+00 : f32
    %945 = vector.broadcast %cst_275 : f32 to vector<8x128xf32>
    %946 = arith.addf %945, %944 : vector<8x128xf32>
    %947 = arith.divf %945, %946 : vector<8x128xf32>
    %948 = vector.extract_strided_slice %910 {offsets = [0, 256], sizes = [8, 128], strides = [1, 1]} : vector<8x512xf32> to vector<8x128xf32>
    %949 = math.tanh %948 : vector<8x128xf32>
    %950 = vector.extract_strided_slice %910 {offsets = [0, 384], sizes = [8, 128], strides = [1, 1]} : vector<8x512xf32> to vector<8x128xf32>
    %951 = arith.negf %950 : vector<8x128xf32>
    %952 = math.exp %951 : vector<8x128xf32>
    %cst_276 = arith.constant 1.000000e+00 : f32
    %953 = vector.broadcast %cst_276 : f32 to vector<8x128xf32>
    %954 = arith.addf %953, %952 : vector<8x128xf32>
    %955 = arith.divf %953, %954 : vector<8x128xf32>
    %956 = arith.mulf %947, %887 : vector<8x128xf32>
    %957 = arith.mulf %941, %949 : vector<8x128xf32>
    %958 = arith.addf %956, %957 : vector<8x128xf32>
    %959 = math.tanh %958 : vector<8x128xf32>
    %960 = arith.mulf %955, %959 : vector<8x128xf32>
    %961 = arith.index_cast %c4_i32_263 : i32 to index
    %c0_277 = arith.constant 0 : index
    %c0_278 = arith.constant 0 : index
    %962 = vector.load %arg26[%961, %c0_277, %c0_278] : memref<8x8x128xf32, #tpu.memory_space<vmem>>, vector<1x8x128xf32>
    %963 = vector.shape_cast %962 : vector<1x8x128xf32> to vector<8x128xf32>
    %964 = vector.shape_cast %935 : vector<8x128xf32> to vector<1x8x128xf32>
    tpu.vector_store %arg26[%961, %c0_277, %c0_278], %964 {strides = array<i32>} : memref<8x8x128xf32, #tpu.memory_space<vmem>>, vector<1x8x128xf32>,
    %965 = arith.index_cast %898 : i32 to index
    %c0_279 = arith.constant 0 : index
    %c0_280 = arith.constant 0 : index
    %966 = vector.load %arg27[%965, %c0_279, %c0_280] : memref<8x8x128xf32, #tpu.memory_space<vmem>>, vector<1x8x128xf32>
    %967 = vector.shape_cast %966 : vector<1x8x128xf32> to vector<8x128xf32>
    %968 = vector.shape_cast %960 : vector<8x128xf32> to vector<1x8x128xf32>
    tpu.vector_store %arg27[%965, %c0_279, %c0_280], %968 {strides = array<i32>} : memref<8x8x128xf32, #tpu.memory_space<vmem>>, vector<1x8x128xf32>,
    %c5_i32_281 = arith.constant 5 : i32
    %c7_i32_282 = arith.constant 7 : i32
    %969 = arith.subi %c7_i32_282, %c5_i32_281 : i32
    %970 = arith.index_cast %c5_i32_281 : i32 to index
    %c0_283 = arith.constant 0 : index
    %c0_284 = arith.constant 0 : index
    %971 = vector.load %arg22[%970, %c0_283, %c0_284] : memref<8x8x512xf32, #tpu.memory_space<vmem>>, vector<1x8x512xf32>
    %972 = vector.shape_cast %971 : vector<1x8x512xf32> to vector<8x512xf32>
    %cst_285 = arith.constant dense<0.000000e+00> : vector<8x512xf32>
    %973 = tpu.matmul %935, %605, %cst_285 {dimension_numbers = #tpu.dot_dimension_numbers<[1], [0], [0], [1], [0, 0, 1, 1], [], []>} : vector<8x128xf32>, vector<128x512xf32>, vector<8x512xf32> -> vector<8x512xf32>
    %974 = arith.addf %972, %973 : vector<8x512xf32>
    %975 = arith.addf %974, %609 : vector<8x512xf32>
    %976 = arith.index_cast %969 : i32 to index
    %c0_286 = arith.constant 0 : index
    %c0_287 = arith.constant 0 : index
    %977 = vector.load %arg23[%976, %c0_286, %c0_287] : memref<8x8x512xf32, #tpu.memory_space<vmem>>, vector<1x8x512xf32>
    %978 = vector.shape_cast %977 : vector<1x8x512xf32> to vector<8x512xf32>
    %cst_288 = arith.constant dense<0.000000e+00> : vector<8x512xf32>
    %979 = tpu.matmul %960, %606, %cst_288 {dimension_numbers = #tpu.dot_dimension_numbers<[1], [0], [0], [1], [0, 0, 1, 1], [], []>} : vector<8x128xf32>, vector<128x512xf32>, vector<8x512xf32> -> vector<8x512xf32>
    %980 = arith.addf %978, %979 : vector<8x512xf32>
    %981 = arith.addf %980, %612 : vector<8x512xf32>
    %982 = vector.extract_strided_slice %975 {offsets = [0, 0], sizes = [8, 128], strides = [1, 1]} : vector<8x512xf32> to vector<8x128xf32>
    %983 = arith.negf %982 : vector<8x128xf32>
    %984 = math.exp %983 : vector<8x128xf32>
    %cst_289 = arith.constant 1.000000e+00 : f32
    %985 = vector.broadcast %cst_289 : f32 to vector<8x128xf32>
    %986 = arith.addf %985, %984 : vector<8x128xf32>
    %987 = arith.divf %985, %986 : vector<8x128xf32>
    %988 = vector.extract_strided_slice %975 {offsets = [0, 128], sizes = [8, 128], strides = [1, 1]} : vector<8x512xf32> to vector<8x128xf32>
    %989 = arith.negf %988 : vector<8x128xf32>
    %990 = math.exp %989 : vector<8x128xf32>
    %cst_290 = arith.constant 1.000000e+00 : f32
    %991 = vector.broadcast %cst_290 : f32 to vector<8x128xf32>
    %992 = arith.addf %991, %990 : vector<8x128xf32>
    %993 = arith.divf %991, %992 : vector<8x128xf32>
    %994 = vector.extract_strided_slice %975 {offsets = [0, 256], sizes = [8, 128], strides = [1, 1]} : vector<8x512xf32> to vector<8x128xf32>
    %995 = math.tanh %994 : vector<8x128xf32>
    %996 = vector.extract_strided_slice %975 {offsets = [0, 384], sizes = [8, 128], strides = [1, 1]} : vector<8x512xf32> to vector<8x128xf32>
    %997 = arith.negf %996 : vector<8x128xf32>
    %998 = math.exp %997 : vector<8x128xf32>
    %cst_291 = arith.constant 1.000000e+00 : f32
    %999 = vector.broadcast %cst_291 : f32 to vector<8x128xf32>
    %1000 = arith.addf %999, %998 : vector<8x128xf32>
    %1001 = arith.divf %999, %1000 : vector<8x128xf32>
    %1002 = arith.mulf %993, %933 : vector<8x128xf32>
    %1003 = arith.mulf %987, %995 : vector<8x128xf32>
    %1004 = arith.addf %1002, %1003 : vector<8x128xf32>
    %1005 = math.tanh %1004 : vector<8x128xf32>
    %1006 = arith.mulf %1001, %1005 : vector<8x128xf32>
    %1007 = vector.extract_strided_slice %981 {offsets = [0, 0], sizes = [8, 128], strides = [1, 1]} : vector<8x512xf32> to vector<8x128xf32>
    %1008 = arith.negf %1007 : vector<8x128xf32>
    %1009 = math.exp %1008 : vector<8x128xf32>
    %cst_292 = arith.constant 1.000000e+00 : f32
    %1010 = vector.broadcast %cst_292 : f32 to vector<8x128xf32>
    %1011 = arith.addf %1010, %1009 : vector<8x128xf32>
    %1012 = arith.divf %1010, %1011 : vector<8x128xf32>
    %1013 = vector.extract_strided_slice %981 {offsets = [0, 128], sizes = [8, 128], strides = [1, 1]} : vector<8x512xf32> to vector<8x128xf32>
    %1014 = arith.negf %1013 : vector<8x128xf32>
    %1015 = math.exp %1014 : vector<8x128xf32>
    %cst_293 = arith.constant 1.000000e+00 : f32
    %1016 = vector.broadcast %cst_293 : f32 to vector<8x128xf32>
    %1017 = arith.addf %1016, %1015 : vector<8x128xf32>
    %1018 = arith.divf %1016, %1017 : vector<8x128xf32>
    %1019 = vector.extract_strided_slice %981 {offsets = [0, 256], sizes = [8, 128], strides = [1, 1]} : vector<8x512xf32> to vector<8x128xf32>
    %1020 = math.tanh %1019 : vector<8x128xf32>
    %1021 = vector.extract_strided_slice %981 {offsets = [0, 384], sizes = [8, 128], strides = [1, 1]} : vector<8x512xf32> to vector<8x128xf32>
    %1022 = arith.negf %1021 : vector<8x128xf32>
    %1023 = math.exp %1022 : vector<8x128xf32>
    %cst_294 = arith.constant 1.000000e+00 : f32
    %1024 = vector.broadcast %cst_294 : f32 to vector<8x128xf32>
    %1025 = arith.addf %1024, %1023 : vector<8x128xf32>
    %1026 = arith.divf %1024, %1025 : vector<8x128xf32>
    %1027 = arith.mulf %1018, %958 : vector<8x128xf32>
    %1028 = arith.mulf %1012, %1020 : vector<8x128xf32>
    %1029 = arith.addf %1027, %1028 : vector<8x128xf32>
    %1030 = math.tanh %1029 : vector<8x128xf32>
    %1031 = arith.mulf %1026, %1030 : vector<8x128xf32>
    %1032 = arith.index_cast %c5_i32_281 : i32 to index
    %c0_295 = arith.constant 0 : index
    %c0_296 = arith.constant 0 : index
    %1033 = vector.load %arg26[%1032, %c0_295, %c0_296] : memref<8x8x128xf32, #tpu.memory_space<vmem>>, vector<1x8x128xf32>
    %1034 = vector.shape_cast %1033 : vector<1x8x128xf32> to vector<8x128xf32>
    %1035 = vector.shape_cast %1006 : vector<8x128xf32> to vector<1x8x128xf32>
    tpu.vector_store %arg26[%1032, %c0_295, %c0_296], %1035 {strides = array<i32>} : memref<8x8x128xf32, #tpu.memory_space<vmem>>, vector<1x8x128xf32>,
    %1036 = arith.index_cast %969 : i32 to index
    %c0_297 = arith.constant 0 : index
    %c0_298 = arith.constant 0 : index
    %1037 = vector.load %arg27[%1036, %c0_297, %c0_298] : memref<8x8x128xf32, #tpu.memory_space<vmem>>, vector<1x8x128xf32>
    %1038 = vector.shape_cast %1037 : vector<1x8x128xf32> to vector<8x128xf32>
    %1039 = vector.shape_cast %1031 : vector<8x128xf32> to vector<1x8x128xf32>
    tpu.vector_store %arg27[%1036, %c0_297, %c0_298], %1039 {strides = array<i32>} : memref<8x8x128xf32, #tpu.memory_space<vmem>>, vector<1x8x128xf32>,
    %c6_i32_299 = arith.constant 6 : i32
    %c7_i32_300 = arith.constant 7 : i32
    %1040 = arith.subi %c7_i32_300, %c6_i32_299 : i32
    %1041 = arith.index_cast %c6_i32_299 : i32 to index
    %c0_301 = arith.constant 0 : index
    %c0_302 = arith.constant 0 : index
    %1042 = vector.load %arg22[%1041, %c0_301, %c0_302] : memref<8x8x512xf32, #tpu.memory_space<vmem>>, vector<1x8x512xf32>
    %1043 = vector.shape_cast %1042 : vector<1x8x512xf32> to vector<8x512xf32>
    %cst_303 = arith.constant dense<0.000000e+00> : vector<8x512xf32>
    %1044 = tpu.matmul %1006, %605, %cst_303 {dimension_numbers = #tpu.dot_dimension_numbers<[1], [0], [0], [1], [0, 0, 1, 1], [], []>} : vector<8x128xf32>, vector<128x512xf32>, vector<8x512xf32> -> vector<8x512xf32>
    %1045 = arith.addf %1043, %1044 : vector<8x512xf32>
    %1046 = arith.addf %1045, %609 : vector<8x512xf32>
    %1047 = arith.index_cast %1040 : i32 to index
    %c0_304 = arith.constant 0 : index
    %c0_305 = arith.constant 0 : index
    %1048 = vector.load %arg23[%1047, %c0_304, %c0_305] : memref<8x8x512xf32, #tpu.memory_space<vmem>>, vector<1x8x512xf32>
    %1049 = vector.shape_cast %1048 : vector<1x8x512xf32> to vector<8x512xf32>
    %cst_306 = arith.constant dense<0.000000e+00> : vector<8x512xf32>
    %1050 = tpu.matmul %1031, %606, %cst_306 {dimension_numbers = #tpu.dot_dimension_numbers<[1], [0], [0], [1], [0, 0, 1, 1], [], []>} : vector<8x128xf32>, vector<128x512xf32>, vector<8x512xf32> -> vector<8x512xf32>
    %1051 = arith.addf %1049, %1050 : vector<8x512xf32>
    %1052 = arith.addf %1051, %612 : vector<8x512xf32>
    %1053 = vector.extract_strided_slice %1046 {offsets = [0, 0], sizes = [8, 128], strides = [1, 1]} : vector<8x512xf32> to vector<8x128xf32>
    %1054 = arith.negf %1053 : vector<8x128xf32>
    %1055 = math.exp %1054 : vector<8x128xf32>
    %cst_307 = arith.constant 1.000000e+00 : f32
    %1056 = vector.broadcast %cst_307 : f32 to vector<8x128xf32>
    %1057 = arith.addf %1056, %1055 : vector<8x128xf32>
    %1058 = arith.divf %1056, %1057 : vector<8x128xf32>
    %1059 = vector.extract_strided_slice %1046 {offsets = [0, 128], sizes = [8, 128], strides = [1, 1]} : vector<8x512xf32> to vector<8x128xf32>
    %1060 = arith.negf %1059 : vector<8x128xf32>
    %1061 = math.exp %1060 : vector<8x128xf32>
    %cst_308 = arith.constant 1.000000e+00 : f32
    %1062 = vector.broadcast %cst_308 : f32 to vector<8x128xf32>
    %1063 = arith.addf %1062, %1061 : vector<8x128xf32>
    %1064 = arith.divf %1062, %1063 : vector<8x128xf32>
    %1065 = vector.extract_strided_slice %1046 {offsets = [0, 256], sizes = [8, 128], strides = [1, 1]} : vector<8x512xf32> to vector<8x128xf32>
    %1066 = math.tanh %1065 : vector<8x128xf32>
    %1067 = vector.extract_strided_slice %1046 {offsets = [0, 384], sizes = [8, 128], strides = [1, 1]} : vector<8x512xf32> to vector<8x128xf32>
    %1068 = arith.negf %1067 : vector<8x128xf32>
    %1069 = math.exp %1068 : vector<8x128xf32>
    %cst_309 = arith.constant 1.000000e+00 : f32
    %1070 = vector.broadcast %cst_309 : f32 to vector<8x128xf32>
    %1071 = arith.addf %1070, %1069 : vector<8x128xf32>
    %1072 = arith.divf %1070, %1071 : vector<8x128xf32>
    %1073 = arith.mulf %1064, %1004 : vector<8x128xf32>
    %1074 = arith.mulf %1058, %1066 : vector<8x128xf32>
    %1075 = arith.addf %1073, %1074 : vector<8x128xf32>
    %1076 = math.tanh %1075 : vector<8x128xf32>
    %1077 = arith.mulf %1072, %1076 : vector<8x128xf32>
    %1078 = vector.extract_strided_slice %1052 {offsets = [0, 0], sizes = [8, 128], strides = [1, 1]} : vector<8x512xf32> to vector<8x128xf32>
    %1079 = arith.negf %1078 : vector<8x128xf32>
    %1080 = math.exp %1079 : vector<8x128xf32>
    %cst_310 = arith.constant 1.000000e+00 : f32
    %1081 = vector.broadcast %cst_310 : f32 to vector<8x128xf32>
    %1082 = arith.addf %1081, %1080 : vector<8x128xf32>
    %1083 = arith.divf %1081, %1082 : vector<8x128xf32>
    %1084 = vector.extract_strided_slice %1052 {offsets = [0, 128], sizes = [8, 128], strides = [1, 1]} : vector<8x512xf32> to vector<8x128xf32>
    %1085 = arith.negf %1084 : vector<8x128xf32>
    %1086 = math.exp %1085 : vector<8x128xf32>
    %cst_311 = arith.constant 1.000000e+00 : f32
    %1087 = vector.broadcast %cst_311 : f32 to vector<8x128xf32>
    %1088 = arith.addf %1087, %1086 : vector<8x128xf32>
    %1089 = arith.divf %1087, %1088 : vector<8x128xf32>
    %1090 = vector.extract_strided_slice %1052 {offsets = [0, 256], sizes = [8, 128], strides = [1, 1]} : vector<8x512xf32> to vector<8x128xf32>
    %1091 = math.tanh %1090 : vector<8x128xf32>
    %1092 = vector.extract_strided_slice %1052 {offsets = [0, 384], sizes = [8, 128], strides = [1, 1]} : vector<8x512xf32> to vector<8x128xf32>
    %1093 = arith.negf %1092 : vector<8x128xf32>
    %1094 = math.exp %1093 : vector<8x128xf32>
    %cst_312 = arith.constant 1.000000e+00 : f32
    %1095 = vector.broadcast %cst_312 : f32 to vector<8x128xf32>
    %1096 = arith.addf %1095, %1094 : vector<8x128xf32>
    %1097 = arith.divf %1095, %1096 : vector<8x128xf32>
    %1098 = arith.mulf %1089, %1029 : vector<8x128xf32>
    %1099 = arith.mulf %1083, %1091 : vector<8x128xf32>
    %1100 = arith.addf %1098, %1099 : vector<8x128xf32>
    %1101 = math.tanh %1100 : vector<8x128xf32>
    %1102 = arith.mulf %1097, %1101 : vector<8x128xf32>
    %1103 = arith.index_cast %c6_i32_299 : i32 to index
    %c0_313 = arith.constant 0 : index
    %c0_314 = arith.constant 0 : index
    %1104 = vector.load %arg26[%1103, %c0_313, %c0_314] : memref<8x8x128xf32, #tpu.memory_space<vmem>>, vector<1x8x128xf32>
    %1105 = vector.shape_cast %1104 : vector<1x8x128xf32> to vector<8x128xf32>
    %1106 = vector.shape_cast %1077 : vector<8x128xf32> to vector<1x8x128xf32>
    tpu.vector_store %arg26[%1103, %c0_313, %c0_314], %1106 {strides = array<i32>} : memref<8x8x128xf32, #tpu.memory_space<vmem>>, vector<1x8x128xf32>,
    %1107 = arith.index_cast %1040 : i32 to index
    %c0_315 = arith.constant 0 : index
    %c0_316 = arith.constant 0 : index
    %1108 = vector.load %arg27[%1107, %c0_315, %c0_316] : memref<8x8x128xf32, #tpu.memory_space<vmem>>, vector<1x8x128xf32>
    %1109 = vector.shape_cast %1108 : vector<1x8x128xf32> to vector<8x128xf32>
    %1110 = vector.shape_cast %1102 : vector<8x128xf32> to vector<1x8x128xf32>
    tpu.vector_store %arg27[%1107, %c0_315, %c0_316], %1110 {strides = array<i32>} : memref<8x8x128xf32, #tpu.memory_space<vmem>>, vector<1x8x128xf32>,
    %c7_i32_317 = arith.constant 7 : i32
    %c7_i32_318 = arith.constant 7 : i32
    %1111 = arith.subi %c7_i32_318, %c7_i32_317 : i32
    %1112 = arith.index_cast %c7_i32_317 : i32 to index
    %c0_319 = arith.constant 0 : index
    %c0_320 = arith.constant 0 : index
    %1113 = vector.load %arg22[%1112, %c0_319, %c0_320] : memref<8x8x512xf32, #tpu.memory_space<vmem>>, vector<1x8x512xf32>
    %1114 = vector.shape_cast %1113 : vector<1x8x512xf32> to vector<8x512xf32>
    %cst_321 = arith.constant dense<0.000000e+00> : vector<8x512xf32>
    %1115 = tpu.matmul %1077, %605, %cst_321 {dimension_numbers = #tpu.dot_dimension_numbers<[1], [0], [0], [1], [0, 0, 1, 1], [], []>} : vector<8x128xf32>, vector<128x512xf32>, vector<8x512xf32> -> vector<8x512xf32>
    %1116 = arith.addf %1114, %1115 : vector<8x512xf32>
    %1117 = arith.addf %1116, %609 : vector<8x512xf32>
    %1118 = arith.index_cast %1111 : i32 to index
    %c0_322 = arith.constant 0 : index
    %c0_323 = arith.constant 0 : index
    %1119 = vector.load %arg23[%1118, %c0_322, %c0_323] : memref<8x8x512xf32, #tpu.memory_space<vmem>>, vector<1x8x512xf32>
    %1120 = vector.shape_cast %1119 : vector<1x8x512xf32> to vector<8x512xf32>
    %cst_324 = arith.constant dense<0.000000e+00> : vector<8x512xf32>
    %1121 = tpu.matmul %1102, %606, %cst_324 {dimension_numbers = #tpu.dot_dimension_numbers<[1], [0], [0], [1], [0, 0, 1, 1], [], []>} : vector<8x128xf32>, vector<128x512xf32>, vector<8x512xf32> -> vector<8x512xf32>
    %1122 = arith.addf %1120, %1121 : vector<8x512xf32>
    %1123 = arith.addf %1122, %612 : vector<8x512xf32>
    %1124 = vector.extract_strided_slice %1117 {offsets = [0, 0], sizes = [8, 128], strides = [1, 1]} : vector<8x512xf32> to vector<8x128xf32>
    %1125 = arith.negf %1124 : vector<8x128xf32>
    %1126 = math.exp %1125 : vector<8x128xf32>
    %cst_325 = arith.constant 1.000000e+00 : f32
    %1127 = vector.broadcast %cst_325 : f32 to vector<8x128xf32>
    %1128 = arith.addf %1127, %1126 : vector<8x128xf32>
    %1129 = arith.divf %1127, %1128 : vector<8x128xf32>
    %1130 = vector.extract_strided_slice %1117 {offsets = [0, 128], sizes = [8, 128], strides = [1, 1]} : vector<8x512xf32> to vector<8x128xf32>
    %1131 = arith.negf %1130 : vector<8x128xf32>
    %1132 = math.exp %1131 : vector<8x128xf32>
    %cst_326 = arith.constant 1.000000e+00 : f32
    %1133 = vector.broadcast %cst_326 : f32 to vector<8x128xf32>
    %1134 = arith.addf %1133, %1132 : vector<8x128xf32>
    %1135 = arith.divf %1133, %1134 : vector<8x128xf32>
    %1136 = vector.extract_strided_slice %1117 {offsets = [0, 256], sizes = [8, 128], strides = [1, 1]} : vector<8x512xf32> to vector<8x128xf32>
    %1137 = math.tanh %1136 : vector<8x128xf32>
    %1138 = vector.extract_strided_slice %1117 {offsets = [0, 384], sizes = [8, 128], strides = [1, 1]} : vector<8x512xf32> to vector<8x128xf32>
    %1139 = arith.negf %1138 : vector<8x128xf32>
    %1140 = math.exp %1139 : vector<8x128xf32>
    %cst_327 = arith.constant 1.000000e+00 : f32
    %1141 = vector.broadcast %cst_327 : f32 to vector<8x128xf32>
    %1142 = arith.addf %1141, %1140 : vector<8x128xf32>
    %1143 = arith.divf %1141, %1142 : vector<8x128xf32>
    %1144 = arith.mulf %1135, %1075 : vector<8x128xf32>
    %1145 = arith.mulf %1129, %1137 : vector<8x128xf32>
    %1146 = arith.addf %1144, %1145 : vector<8x128xf32>
    %1147 = math.tanh %1146 : vector<8x128xf32>
    %1148 = arith.mulf %1143, %1147 : vector<8x128xf32>
    %1149 = vector.extract_strided_slice %1123 {offsets = [0, 0], sizes = [8, 128], strides = [1, 1]} : vector<8x512xf32> to vector<8x128xf32>
    %1150 = arith.negf %1149 : vector<8x128xf32>
    %1151 = math.exp %1150 : vector<8x128xf32>
    %cst_328 = arith.constant 1.000000e+00 : f32
    %1152 = vector.broadcast %cst_328 : f32 to vector<8x128xf32>
    %1153 = arith.addf %1152, %1151 : vector<8x128xf32>
    %1154 = arith.divf %1152, %1153 : vector<8x128xf32>
    %1155 = vector.extract_strided_slice %1123 {offsets = [0, 128], sizes = [8, 128], strides = [1, 1]} : vector<8x512xf32> to vector<8x128xf32>
    %1156 = arith.negf %1155 : vector<8x128xf32>
    %1157 = math.exp %1156 : vector<8x128xf32>
    %cst_329 = arith.constant 1.000000e+00 : f32
    %1158 = vector.broadcast %cst_329 : f32 to vector<8x128xf32>
    %1159 = arith.addf %1158, %1157 : vector<8x128xf32>
    %1160 = arith.divf %1158, %1159 : vector<8x128xf32>
    %1161 = vector.extract_strided_slice %1123 {offsets = [0, 256], sizes = [8, 128], strides = [1, 1]} : vector<8x512xf32> to vector<8x128xf32>
    %1162 = math.tanh %1161 : vector<8x128xf32>
    %1163 = vector.extract_strided_slice %1123 {offsets = [0, 384], sizes = [8, 128], strides = [1, 1]} : vector<8x512xf32> to vector<8x128xf32>
    %1164 = arith.negf %1163 : vector<8x128xf32>
    %1165 = math.exp %1164 : vector<8x128xf32>
    %cst_330 = arith.constant 1.000000e+00 : f32
    %1166 = vector.broadcast %cst_330 : f32 to vector<8x128xf32>
    %1167 = arith.addf %1166, %1165 : vector<8x128xf32>
    %1168 = arith.divf %1166, %1167 : vector<8x128xf32>
    %1169 = arith.mulf %1160, %1100 : vector<8x128xf32>
    %1170 = arith.mulf %1154, %1162 : vector<8x128xf32>
    %1171 = arith.addf %1169, %1170 : vector<8x128xf32>
    %1172 = math.tanh %1171 : vector<8x128xf32>
    %1173 = arith.mulf %1168, %1172 : vector<8x128xf32>
    %1174 = arith.index_cast %c7_i32_317 : i32 to index
    %c0_331 = arith.constant 0 : index
    %c0_332 = arith.constant 0 : index
    %1175 = vector.load %arg26[%1174, %c0_331, %c0_332] : memref<8x8x128xf32, #tpu.memory_space<vmem>>, vector<1x8x128xf32>
    %1176 = vector.shape_cast %1175 : vector<1x8x128xf32> to vector<8x128xf32>
    %1177 = vector.shape_cast %1148 : vector<8x128xf32> to vector<1x8x128xf32>
    tpu.vector_store %arg26[%1174, %c0_331, %c0_332], %1177 {strides = array<i32>} : memref<8x8x128xf32, #tpu.memory_space<vmem>>, vector<1x8x128xf32>,
    %1178 = arith.index_cast %1111 : i32 to index
    %c0_333 = arith.constant 0 : index
    %c0_334 = arith.constant 0 : index
    %1179 = vector.load %arg27[%1178, %c0_333, %c0_334] : memref<8x8x128xf32, #tpu.memory_space<vmem>>, vector<1x8x128xf32>
    %1180 = vector.shape_cast %1179 : vector<1x8x128xf32> to vector<8x128xf32>
    %1181 = vector.shape_cast %1173 : vector<8x128xf32> to vector<1x8x128xf32>
    tpu.vector_store %arg27[%1178, %c0_333, %c0_334], %1181 {strides = array<i32>} : memref<8x8x128xf32, #tpu.memory_space<vmem>>, vector<1x8x128xf32>,
    %c8_i32_335 = arith.constant 8 : i32
    %c0_336 = arith.constant 0 : index
    %c0_337 = arith.constant 0 : index
    %c0_338 = arith.constant 0 : index
    %1182 = vector.load %arg26[%c0_336, %c0_337, %c0_338] : memref<8x8x128xf32, #tpu.memory_space<vmem>>, vector<1x8x128xf32>
    %1183 = vector.shape_cast %1182 : vector<1x8x128xf32> to vector<8x128xf32>
    %c0_339 = arith.constant 0 : index
    %c0_340 = arith.constant 0 : index
    %1184 = vector.load %arg16[%c0_339, %c0_340] : memref<128x2xf32, #tpu.memory_space<vmem>>, vector<128x2xf32>
    %cst_341 = arith.constant dense<0.000000e+00> : vector<8x2xf32>
    %1185 = tpu.matmul %1183, %1184, %cst_341 {dimension_numbers = #tpu.dot_dimension_numbers<[1], [0], [0], [1], [0, 0, 1, 1], [], []>} : vector<8x128xf32>, vector<128x2xf32>, vector<8x2xf32> -> vector<8x2xf32>
    %c0_342 = arith.constant 0 : index
    %c0_343 = arith.constant 0 : index
    %c0_344 = arith.constant 0 : index
    %1186 = vector.load %arg27[%c0_342, %c0_343, %c0_344] : memref<8x8x128xf32, #tpu.memory_space<vmem>>, vector<1x8x128xf32>
    %1187 = vector.shape_cast %1186 : vector<1x8x128xf32> to vector<8x128xf32>
    %c0_345 = arith.constant 0 : index
    %c0_346 = arith.constant 0 : index
    %1188 = vector.load %arg17[%c0_345, %c0_346] : memref<128x2xf32, #tpu.memory_space<vmem>>, vector<128x2xf32>
    %cst_347 = arith.constant dense<0.000000e+00> : vector<8x2xf32>
    %1189 = tpu.matmul %1187, %1188, %cst_347 {dimension_numbers = #tpu.dot_dimension_numbers<[1], [0], [0], [1], [0, 0, 1, 1], [], []>} : vector<8x128xf32>, vector<128x2xf32>, vector<8x2xf32> -> vector<8x2xf32>
    %1190 = arith.addf %1185, %1189 : vector<8x2xf32>
    %c7 = arith.constant 7 : index
    %c0_348 = arith.constant 0 : index
    %c0_349 = arith.constant 0 : index
    %1191 = vector.load %arg26[%c7, %c0_348, %c0_349] : memref<8x8x128xf32, #tpu.memory_space<vmem>>, vector<1x8x128xf32>
    %1192 = vector.shape_cast %1191 : vector<1x8x128xf32> to vector<8x128xf32>
    %c0_350 = arith.constant 0 : index
    %c0_351 = arith.constant 0 : index
    %1193 = vector.load %arg18[%c0_350, %c0_351] : memref<128x2xf32, #tpu.memory_space<vmem>>, vector<128x2xf32>
    %cst_352 = arith.constant dense<0.000000e+00> : vector<8x2xf32>
    %1194 = tpu.matmul %1192, %1193, %cst_352 {dimension_numbers = #tpu.dot_dimension_numbers<[1], [0], [0], [1], [0, 0, 1, 1], [], []>} : vector<8x128xf32>, vector<128x2xf32>, vector<8x2xf32> -> vector<8x2xf32>
    %1195 = arith.addf %1190, %1194 : vector<8x2xf32>
    %c7_353 = arith.constant 7 : index
    %c0_354 = arith.constant 0 : index
    %c0_355 = arith.constant 0 : index
    %1196 = vector.load %arg27[%c7_353, %c0_354, %c0_355] : memref<8x8x128xf32, #tpu.memory_space<vmem>>, vector<1x8x128xf32>
    %1197 = vector.shape_cast %1196 : vector<1x8x128xf32> to vector<8x128xf32>
    %c0_356 = arith.constant 0 : index
    %c0_357 = arith.constant 0 : index
    %1198 = vector.load %arg19[%c0_356, %c0_357] : memref<128x2xf32, #tpu.memory_space<vmem>>, vector<128x2xf32>
    %cst_358 = arith.constant dense<0.000000e+00> : vector<8x2xf32>
    %1199 = tpu.matmul %1197, %1198, %cst_358 {dimension_numbers = #tpu.dot_dimension_numbers<[1], [0], [0], [1], [0, 0, 1, 1], [], []>} : vector<8x128xf32>, vector<128x2xf32>, vector<8x2xf32> -> vector<8x2xf32>
    %1200 = arith.addf %1195, %1199 : vector<8x2xf32>
    %c0_359 = arith.constant 0 : index
    %c0_360 = arith.constant 0 : index
    %1201 = vector.load %arg20[%c0_359, %c0_360] : memref<1x2xf32, #tpu.memory_space<vmem>>, vector<1x2xf32>
    %1202 = vector.broadcast %1201 : vector<1x2xf32> to vector<8x2xf32>
    %1203 = arith.addf %1200, %1202 : vector<8x2xf32>
    %c0_361 = arith.constant 0 : index
    %c0_362 = arith.constant 0 : index
    %1204 = vector.load %arg21[%c0_361, %c0_362] : memref<8x2xf32, #tpu.memory_space<vmem>>, vector<8x2xf32>
    tpu.vector_store %arg21[%c0_361, %c0_362], %1203 {strides = array<i32>} : memref<8x2xf32, #tpu.memory_space<vmem>>, vector<8x2xf32>,
    return
  }
  func.func @transform_0(%arg0: i32) -> (i32, i32, i32) {
    %c0_i32 = arith.constant 0 : i32
    %c0_i32_0 = arith.constant 0 : i32
    %c0_i32_1 = arith.constant 0 : i32
    %c0_i32_2 = arith.constant 0 : i32
    return %c0_i32, %c0_i32_0, %c0_i32_1 : i32, i32, i32
  }
  func.func @transform_1(%arg0: i32) -> (i32, i32) {
    %c0_i32 = arith.constant 0 : i32
    %c0_i32_0 = arith.constant 0 : i32
    %c0_i32_1 = arith.constant 0 : i32
    return %c0_i32, %c0_i32_0 : i32, i32
  }
  func.func @transform_2(%arg0: i32) -> (i32, i32) {
    %c0_i32 = arith.constant 0 : i32
    %c0_i32_0 = arith.constant 0 : i32
    %c0_i32_1 = arith.constant 0 : i32
    return %c0_i32, %c0_i32_0 : i32, i32
  }
  func.func @transform_3(%arg0: i32) -> (i32, i32) {
    %c0_i32 = arith.constant 0 : i32
    %c0_i32_0 = arith.constant 0 : i32
    %c0_i32_1 = arith.constant 0 : i32
    return %c0_i32, %c0_i32_0 : i32, i32
  }
  func.func @transform_4(%arg0: i32) -> (i32, i32) {
    %c0_i32 = arith.constant 0 : i32
    %c0_i32_0 = arith.constant 0 : i32
    %c0_i32_1 = arith.constant 0 : i32
    return %c0_i32, %c0_i32_0 : i32, i32
  }
  func.func @transform_5(%arg0: i32) -> (i32, i32) {
    %c0_i32 = arith.constant 0 : i32
    %c0_i32_0 = arith.constant 0 : i32
    %c0_i32_1 = arith.constant 0 : i32
    return %c0_i32, %c0_i32_0 : i32, i32
  }
  func.func @transform_6(%arg0: i32) -> (i32, i32) {
    %c0_i32 = arith.constant 0 : i32
    %c0_i32_0 = arith.constant 0 : i32
    %c0_i32_1 = arith.constant 0 : i32
    return %c0_i32, %c0_i32_0 : i32, i32
  }
  func.func @transform_7(%arg0: i32) -> (i32, i32) {
    %c0_i32 = arith.constant 0 : i32
    %c0_i32_0 = arith.constant 0 : i32
    %c0_i32_1 = arith.constant 0 : i32
    return %c0_i32, %c0_i32_0 : i32, i32
  }
  func.func @transform_8(%arg0: i32) -> (i32, i32) {
    %c0_i32 = arith.constant 0 : i32
    %c0_i32_0 = arith.constant 0 : i32
    %c0_i32_1 = arith.constant 0 : i32
    return %c0_i32, %c0_i32_0 : i32, i32
  }
  func.func @transform_9(%arg0: i32) -> (i32, i32) {
    %c0_i32 = arith.constant 0 : i32
    %c0_i32_0 = arith.constant 0 : i32
    %c0_i32_1 = arith.constant 0 : i32
    return %c0_i32, %c0_i32_0 : i32, i32
  }
  func.func @transform_10(%arg0: i32) -> (i32, i32) {
    %c0_i32 = arith.constant 0 : i32
    %c0_i32_0 = arith.constant 0 : i32
    %c0_i32_1 = arith.constant 0 : i32
    return %c0_i32, %c0_i32_0 : i32, i32
  }
  func.func @transform_11(%arg0: i32) -> (i32, i32) {
    %c0_i32 = arith.constant 0 : i32
    %c0_i32_0 = arith.constant 0 : i32
    %c0_i32_1 = arith.constant 0 : i32
    return %c0_i32, %c0_i32_0 : i32, i32
  }
  func.func @transform_12(%arg0: i32) -> (i32, i32) {
    %c0_i32 = arith.constant 0 : i32
    %c0_i32_0 = arith.constant 0 : i32
    %c0_i32_1 = arith.constant 0 : i32
    return %c0_i32, %c0_i32_0 : i32, i32
  }
  func.func @transform_13(%arg0: i32) -> (i32, i32) {
    %c0_i32 = arith.constant 0 : i32
    %c0_i32_0 = arith.constant 0 : i32
    %c0_i32_1 = arith.constant 0 : i32
    return %c0_i32, %c0_i32_0 : i32, i32
  }
  func.func @transform_14(%arg0: i32) -> (i32, i32) {
    %c0_i32 = arith.constant 0 : i32
    %c0_i32_0 = arith.constant 0 : i32
    %c0_i32_1 = arith.constant 0 : i32
    return %c0_i32, %c0_i32_0 : i32, i32
  }
  func.func @transform_15(%arg0: i32) -> (i32, i32) {
    %c0_i32 = arith.constant 0 : i32
    %c0_i32_0 = arith.constant 0 : i32
    %c0_i32_1 = arith.constant 0 : i32
    return %c0_i32, %c0_i32_0 : i32, i32
  }
  func.func @transform_16(%arg0: i32) -> (i32, i32) {
    %c0_i32 = arith.constant 0 : i32
    %c0_i32_0 = arith.constant 0 : i32
    %c0_i32_1 = arith.constant 0 : i32
    return %c0_i32, %c0_i32_0 : i32, i32
  }
  func.func @transform_17(%arg0: i32) -> (i32, i32) {
    %c0_i32 = arith.constant 0 : i32
    %c0_i32_0 = arith.constant 0 : i32
    %c0_i32_1 = arith.constant 0 : i32
    return %c0_i32, %c0_i32_0 : i32, i32
  }
  func.func @transform_18(%arg0: i32) -> (i32, i32) {
    %c0_i32 = arith.constant 0 : i32
    %c0_i32_0 = arith.constant 0 : i32
    %c0_i32_1 = arith.constant 0 : i32
    return %c0_i32, %c0_i32_0 : i32, i32
  }
  func.func @transform_19(%arg0: i32) -> (i32, i32) {
    %c0_i32 = arith.constant 0 : i32
    %c0_i32_0 = arith.constant 0 : i32
    %c0_i32_1 = arith.constant 0 : i32
    return %c0_i32, %c0_i32_0 : i32, i32
  }
  func.func @transform_20(%arg0: i32) -> (i32, i32) {
    %c0_i32 = arith.constant 0 : i32
    %c0_i32_0 = arith.constant 0 : i32
    %c0_i32_1 = arith.constant 0 : i32
    return %c0_i32, %c0_i32_0 : i32, i32
  }
}

</mosaic_0001>

<bundles_post_ra>
// kernel: my_rnn_net_forward.1
= control target key start
LH: loop header
LB: loop body
LE: loop exit
PB: predicated region body
PF: predicated region fallthrough
CT: control target
= control target key end

     0   :  { %vm12241_vm0 = vmmov 0   ;;  %vm8565_vm1 = vcmask 15360   ;;  %s16894_s1 = inlined_call_operand.vmem [shape: f32[256,512], index: 1, kind: input, shape index: {}]   ;;  %s16895_s0 = inlined_call_operand.vmem [shape: f32[8,8,256], index: 0, kind: input, shape index: {}]   ;;  %s16896_s4 = inlined_call_operand.vmem [shape: f32[256,512], index: 4, kind: input, shape index: {}]   ;;  %s16897_s2 = inlined_call_operand.vmem [shape: f32[128,512], index: 2, kind: input, shape index: {}]   ;;  %s16898_s5 = inlined_call_operand.vmem [shape: f32[128,512], index: 5, kind: input, shape index: {}]   ;;  %s16899_s3 = inlined_call_operand.vmem [shape: f32[1,512], index: 3, kind: input, shape index: {}]   ;;  %s16900_s6 = inlined_call_operand.vmem [shape: f32[1,512], index: 6, kind: input, shape index: {}]   ;;  %s16901_s8 = inlined_call_operand.vmem [shape: f32[128,512], index: 8, kind: input, shape index: {}]   ;;  %s16902_s7 = inlined_call_operand.vmem [shape: f32[128,512], index: 7, kind: input, shape index: {}]   ;;  %s16903_s12 = inlined_call_operand.vmem [shape: f32[128,512], index: 12, kind: input, shape index: {}]   ;;  %s16904_s11 = inlined_call_operand.vmem [shape: f32[128,512], index: 11, kind: input, shape index: {}]   ;;  %s16905_s9 = inlined_call_operand.vmem [shape: f32[128,512], index: 9, kind: input, shape index: {}]   ;;  %s16906_s13 = inlined_call_operand.vmem [shape: f32[128,512], index: 13, kind: input, shape index: {}]   ;;  %s16907_s10 = inlined_call_operand.vmem [shape: f32[1,512], index: 10, kind: input, shape index: {}]   ;;  %s16908_s14 = inlined_call_operand.vmem [shape: f32[1,512], index: 14, kind: input, shape index: {}]   ;;  %s16909_s15 = inlined_call_operand.vmem [shape: f32[128,2], index: 15, kind: input, shape index: {}]   ;;  %s16910_s18 = inlined_call_operand.vmem [shape: f32[128,2], index: 18, kind: input, shape index: {}]   ;;  %s16911_s16 = inlined_call_operand.vmem [shape: f32[128,2], index: 16, kind: input, shape index: {}]   ;;  %s16912_s17 = inlined_call_operand.vmem [shape: f32[128,2], index: 17, kind: input, shape index: {}]   ;;  %s16913_s19 = inlined_call_operand.vmem [shape: f32[1,2], index: 19, kind: input, shape index: {}]   ;;  %s16914_s20 = inlined_call_operand.vmem [shape: f32[8,2], index: 20, kind: output, shape index: {}]  }
   0x1   :  { %17108 = sst [smem:[#allocation52_spill]] %s16894_s1 }
   0x2   :  { %17109 = sst [smem:[#allocation53_spill]] %s16895_s0  ;;  %s17113_s23 = sld [smem:[#allocation52_spill]] }
   0x3   :  { %17110 = sst [smem:[#allocation54_spill]] %s16896_s4  ;;  %s17114_s24 = sld [smem:[#allocation53_spill]] }
   0x4   :  { %17111 = sst [smem:[#allocation55_spill]] %s16897_s2  ;;  %s17115_s21 = sld [smem:[#allocation54_spill]] }
   0x5   :  { %17112 = sst [smem:[#allocation56_spill]] %s16898_s5  ;;  %s17116_s2 = sld [smem:[#allocation55_spill]] }
   0x6   :  { %s17139_s27 = sld [smem:[#allocation56_spill]] }
   0x8   :  { %v82_v0 = vld [vmem:[%s17113_s23 + $0x8] sm:$0xff]  ;;  %v84_v2 = vld [vmem:[%s17113_s23 + $0x18] sm:$0xff]  ;;  %v81_v5 = vld [vmem:[%s17113_s23] sm:$0xff] }
   0x9   :  { %v86_v1 = vld [vmem:[%s17113_s23 + $0x28] sm:$0xff]  ;;  %v88_v4 = vld [vmem:[%s17113_s23 + $0x38] sm:$0xff]  ;;  %v85_v6 = vld [vmem:[%s17113_s23 + $0x20] sm:$0xff] }
   0xa   :  { %v8876_v3 = vpack.c.bf16 %v86_v1, %v82_v0  ;;  %v8940_v7 = vpack.c.bf16 %v88_v4, %v84_v2  ;;  %v8878_v8 = vpack.c.bf16 %v85_v6, %v81_v5  ;;  %v83_v9 = vld [vmem:[%s17113_s23 + $0x10] sm:$0xff]  ;;  %v90_v11 = vld [vmem:[%s17113_s23 + $0x48] sm:$0xff]  ;;  %v92_v14 = vld [vmem:[%s17113_s23 + $0x58] sm:$0xff] }
   0xb   :  { %v87_v10 = vld [vmem:[%s17113_s23 + $0x30] sm:$0xff]  ;;  %v94_v13 = vld [vmem:[%s17113_s23 + $0x68] sm:$0xff]  ;;  %v96_v15 = vld [vmem:[%s17113_s23 + $0x78] sm:$0xff] }
   0xc   :  { %8877 = vmatprep.subr.bf16.mxu0 %v8876_v3  ;;  %v8942_v12 = vpack.c.bf16 %v87_v10, %v83_v9  ;;  %8941 = vmatprep.subr.bf16.mxu1 %v8940_v7  ;;  %v8880_v16 = vpack.c.bf16 %v94_v13, %v90_v11  ;;  %v8944_v17 = vpack.c.bf16 %v96_v15, %v92_v14  ;;  %v89_v18 = vld [vmem:[%s17113_s23 + $0x40] sm:$0xff]  ;;  %v91_v20 = vld [vmem:[%s17113_s23 + $0x50] sm:$0xff]  ;;  %v98_v23 = vld [vmem:[%s17113_s23 + $0x88] sm:$0xff] }
   0xd   :  { %8879 = vmatpush1.bf16.msra.mxu0 %v8878_v8  ;;  %v93_v19 = vld [vmem:[%s17113_s23 + $0x60] sm:$0xff]  ;;  %v95_v22 = vld [vmem:[%s17113_s23 + $0x70] sm:$0xff]  ;;  %v102_v24 = vld [vmem:[%s17113_s23 + $0xa8] sm:$0xff] }
   0xe   :  { %8943 = vmatpush1.bf16.msra.mxu1 %v8942_v12  ;;  %v8882_v21 = vpack.c.bf16 %v93_v19, %v89_v18  ;;  %8881 = vmatprep.subr.bf16.mxu0 %v8880_v16  ;;  %v8946_v25 = vpack.c.bf16 %v95_v22, %v91_v20  ;;  %v8884_v26 = vpack.c.bf16 %v102_v24, %v98_v23  ;;  %v100_v27 = vld [vmem:[%s17113_s23 + $0x98] sm:$0xff]  ;;  %v97_v29 = vld [vmem:[%s17113_s23 + $0x80] sm:$0xff]  ;;  %v99_v32 = vld [vmem:[%s17113_s23 + $0x90] sm:$0xff] }
   0xf   :  { %8945 = vmatprep.subr.bf16.mxu1 %v8944_v17  ;;  %v104_v28 = vld [vmem:[%s17113_s23 + $0xb8] sm:$0xff]  ;;  %v101_v31 = vld [vmem:[%s17113_s23 + $0xa0] sm:$0xff]  ;;  %v103_v33 = vld [vmem:[%s17113_s23 + $0xb0] sm:$0xff] }
  0x10   :  { %v8948_v30 = vpack.c.bf16 %v104_v28, %v100_v27  ;;  %v8886_v34 = vpack.c.bf16 %v101_v31, %v97_v29  ;;  %v106_v35 = vld [vmem:[%s17113_s23 + $0xc8] sm:$0xff]  ;;  %v108_v37 = vld [vmem:[%s17113_s23 + $0xd8] sm:$0xff]  ;;  %v8950_v38 = vpack.c.bf16 %v103_v33, %v99_v32  ;;  %v105_v41 = vld [vmem:[%s17113_s23 + $0xc0] sm:$0xff] }
  0x11   :  { %8883 = vmatpush1.bf16.msra.mxu0 %v8882_v21  ;;  %v110_v36 = vld [vmem:[%s17113_s23 + $0xe8] sm:$0xff]  ;;  %v112_v40 = vld [vmem:[%s17113_s23 + $0xf8] sm:$0xff]  ;;  %v109_v42 = vld [vmem:[%s17113_s23 + $0xe0] sm:$0xff] }
  0x12   :  { %8947 = vmatpush1.bf16.msra.mxu1 %v8946_v25  ;;  %8885 = vmatprep.subr.bf16.mxu0 %v8884_v26  ;;  %v8888_v39 = vpack.c.bf16 %v110_v36, %v106_v35  ;;  %v8952_v43 = vpack.c.bf16 %v112_v40, %v108_v37  ;;  %v107_v44 = vld [vmem:[%s17113_s23 + $0xd0] sm:$0xff]  ;;  %v114_v46 = vld [vmem:[%s17113_s23 + $0x108] sm:$0xff]  ;;  %v116_v48 = vld [vmem:[%s17113_s23 + $0x118] sm:$0xff]  ;;  %v8890_v50 = vpack.c.bf16 %v109_v42, %v105_v41 }
  0x13   :  { %8949 = vmatprep.subr.bf16.mxu1 %v8948_v30  ;;  %v111_v45 = vld [vmem:[%s17113_s23 + $0xf0] sm:$0xff]  ;;  %v118_v47 = vld [vmem:[%s17113_s23 + $0x128] sm:$0xff]  ;;  %v120_v49 = vld [vmem:[%s17113_s23 + $0x138] sm:$0xff] }
  0x14   :  { %v8954_v51 = vpack.c.bf16 %v111_v45, %v107_v44  ;;  %v8892_v52 = vpack.c.bf16 %v118_v47, %v114_v46  ;;  %v113_v53 = vld [vmem:[%s17113_s23 + $0x100] sm:$0xff]  ;;  %v115_v55 = vld [vmem:[%s17113_s23 + $0x110] sm:$0xff]  ;;  %v8956_v56 = vpack.c.bf16 %v120_v49, %v116_v48  ;;  %v122_v58 = vld [vmem:[%s17113_s23 + $0x148] sm:$0xff] }
  0x15   :  { %8887 = vmatpush1.bf16.msra.mxu0 %v8886_v34  ;;  %v117_v54 = vld [vmem:[%s17113_s23 + $0x120] sm:$0xff]  ;;  %v119_v57 = vld [vmem:[%s17113_s23 + $0x130] sm:$0xff]  ;;  %v126_v59 = vld [vmem:[%s17113_s23 + $0x168] sm:$0xff] }
  0x16   :  { %8951 = vmatpush1.bf16.msra.mxu1 %v8950_v38  ;;  %8889 = vmatprep.subr.bf16.mxu0 %v8888_v39  ;;  %v124_v60 = vld [vmem:[%s17113_s23 + $0x158] sm:$0xff]  ;;  %v8894_v62 = vpack.c.bf16 %v117_v54, %v113_v53  ;;  %v8958_v63 = vpack.c.bf16 %v119_v57, %v115_v55  ;;  %v8896_v0 = vpack.c.bf16 %v126_v59, %v122_v58  ;;  %v121_v1 = vld [vmem:[%s17113_s23 + $0x140] sm:$0xff]  ;;  %v123_v3 = vld [vmem:[%s17113_s23 + $0x150] sm:$0xff] }
  0x17   :  { %8953 = vmatprep.subr.bf16.mxu1 %v8952_v43  ;;  %v128_v61 = vld [vmem:[%s17113_s23 + $0x178] sm:$0xff]  ;;  %v125_v2 = vld [vmem:[%s17113_s23 + $0x160] sm:$0xff]  ;;  %v127_v5 = vld [vmem:[%s17113_s23 + $0x170] sm:$0xff] }
  0x18   :  { %v8960_v4 = vpack.c.bf16 %v128_v61, %v124_v60  ;;  %v130_v6 = vld [vmem:[%s17113_s23 + $0x188] sm:$0xff]  ;;  %v132_v8 = vld [vmem:[%s17113_s23 + $0x198] sm:$0xff]  ;;  %v8898_v10 = vpack.c.bf16 %v125_v2, %v121_v1  ;;  %v8962_v11 = vpack.c.bf16 %v127_v5, %v123_v3  ;;  %v129_v13 = vld [vmem:[%s17113_s23 + $0x180] sm:$0xff] }
  0x19   :  { %8891 = vmatpush1.bf16.msra.mxu0 %v8890_v50  ;;  %v134_v7 = vld [vmem:[%s17113_s23 + $0x1a8] sm:$0xff]  ;;  %v136_v9 = vld [vmem:[%s17113_s23 + $0x1b8] sm:$0xff]  ;;  %v133_v14 = vld [vmem:[%s17113_s23 + $0x1a0] sm:$0xff] }
  0x1a   :  { %8955 = vmatpush1.bf16.msra.mxu1 %v8954_v51  ;;  %8893 = vmatprep.subr.bf16.mxu0 %v8892_v52  ;;  %v8900_v12 = vpack.c.bf16 %v134_v7, %v130_v6  ;;  %v131_v15 = vld [vmem:[%s17113_s23 + $0x190] sm:$0xff]  ;;  %v8964_v16 = vpack.c.bf16 %v136_v9, %v132_v8  ;;  %v138_v18 = vld [vmem:[%s17113_s23 + $0x1c8] sm:$0xff]  ;;  %v140_v20 = vld [vmem:[%s17113_s23 + $0x1d8] sm:$0xff]  ;;  %v8902_v22 = vpack.c.bf16 %v133_v14, %v129_v13 }
  0x1b   :  { %8957 = vmatprep.subr.bf16.mxu1 %v8956_v56  ;;  %v135_v17 = vld [vmem:[%s17113_s23 + $0x1b0] sm:$0xff]  ;;  %v142_v19 = vld [vmem:[%s17113_s23 + $0x1e8] sm:$0xff]  ;;  %v144_v21 = vld [vmem:[%s17113_s23 + $0x1f8] sm:$0xff] }
  0x1c   :  { %v8966_v23 = vpack.c.bf16 %v135_v17, %v131_v15  ;;  %v8904_v24 = vpack.c.bf16 %v142_v19, %v138_v18  ;;  %v137_v25 = vld [vmem:[%s17113_s23 + $0x1c0] sm:$0xff]  ;;  %v139_v27 = vld [vmem:[%s17113_s23 + $0x1d0] sm:$0xff]  ;;  %v8968_v28 = vpack.c.bf16 %v144_v21, %v140_v20  ;;  %v146_v30 = vld [vmem:[%s17113_s23 + $0x208] sm:$0xff] }
  0x1d   :  { %8895 = vmatpush1.bf16.msra.mxu0 %v8894_v62  ;;  %v141_v26 = vld [vmem:[%s17113_s23 + $0x1e0] sm:$0xff]  ;;  %v143_v29 = vld [vmem:[%s17113_s23 + $0x1f0] sm:$0xff]  ;;  %v150_v31 = vld [vmem:[%s17113_s23 + $0x228] sm:$0xff] }
  0x1e   :  { %8959 = vmatpush1.bf16.msra.mxu1 %v8958_v63  ;;  %8897 = vmatprep.subr.bf16.mxu0 %v8896_v0  ;;  %v148_v32 = vld [vmem:[%s17113_s23 + $0x218] sm:$0xff]  ;;  %v8906_v34 = vpack.c.bf16 %v141_v26, %v137_v25  ;;  %v8970_v35 = vpack.c.bf16 %v143_v29, %v139_v27  ;;  %v8908_v36 = vpack.c.bf16 %v150_v31, %v146_v30  ;;  %v145_v37 = vld [vmem:[%s17113_s23 + $0x200] sm:$0xff]  ;;  %v147_v39 = vld [vmem:[%s17113_s23 + $0x210] sm:$0xff] }
  0x1f   :  { %8961 = vmatprep.subr.bf16.mxu1 %v8960_v4  ;;  %v152_v33 = vld [vmem:[%s17113_s23 + $0x238] sm:$0xff]  ;;  %v149_v38 = vld [vmem:[%s17113_s23 + $0x220] sm:$0xff]  ;;  %v151_v41 = vld [vmem:[%s17113_s23 + $0x230] sm:$0xff] }
  0x20   :  { %v8972_v40 = vpack.c.bf16 %v152_v33, %v148_v32  ;;  %v154_v42 = vld [vmem:[%s17113_s23 + $0x248] sm:$0xff]  ;;  %v156_v44 = vld [vmem:[%s17113_s23 + $0x258] sm:$0xff]  ;;  %v8910_v46 = vpack.c.bf16 %v149_v38, %v145_v37  ;;  %v8974_v47 = vpack.c.bf16 %v151_v41, %v147_v39  ;;  %v153_v49 = vld [vmem:[%s17113_s23 + $0x240] sm:$0xff] }
  0x21   :  { %8899 = vmatpush1.bf16.msra.mxu0 %v8898_v10  ;;  %v158_v43 = vld [vmem:[%s17113_s23 + $0x268] sm:$0xff]  ;;  %v160_v45 = vld [vmem:[%s17113_s23 + $0x278] sm:$0xff]  ;;  %v157_v50 = vld [vmem:[%s17113_s23 + $0x260] sm:$0xff] }
  0x22   :  { %8963 = vmatpush1.bf16.msra.mxu1 %v8962_v11  ;;  %8901 = vmatprep.subr.bf16.mxu0 %v8900_v12  ;;  %v8912_v48 = vpack.c.bf16 %v158_v43, %v154_v42  ;;  %v155_v51 = vld [vmem:[%s17113_s23 + $0x250] sm:$0xff]  ;;  %v8976_v52 = vpack.c.bf16 %v160_v45, %v156_v44  ;;  %v162_v54 = vld [vmem:[%s17113_s23 + $0x288] sm:$0xff]  ;;  %v164_v56 = vld [vmem:[%s17113_s23 + $0x298] sm:$0xff]  ;;  %v8914_v58 = vpack.c.bf16 %v157_v50, %v153_v49 }
  0x23   :  { %8965 = vmatprep.subr.bf16.mxu1 %v8964_v16  ;;  %v159_v53 = vld [vmem:[%s17113_s23 + $0x270] sm:$0xff]  ;;  %v166_v55 = vld [vmem:[%s17113_s23 + $0x2a8] sm:$0xff]  ;;  %v168_v57 = vld [vmem:[%s17113_s23 + $0x2b8] sm:$0xff] }
  0x24   :  { %v8978_v59 = vpack.c.bf16 %v159_v53, %v155_v51  ;;  %v8916_v60 = vpack.c.bf16 %v166_v55, %v162_v54  ;;  %v161_v61 = vld [vmem:[%s17113_s23 + $0x280] sm:$0xff]  ;;  %v163_v63 = vld [vmem:[%s17113_s23 + $0x290] sm:$0xff]  ;;  %v8980_v0 = vpack.c.bf16 %v168_v57, %v164_v56  ;;  %v170_v2 = vld [vmem:[%s17113_s23 + $0x2c8] sm:$0xff] }
  0x25   :  { %8903 = vmatpush1.bf16.msra.mxu0 %v8902_v22  ;;  %v165_v62 = vld [vmem:[%s17113_s23 + $0x2a0] sm:$0xff]  ;;  %v167_v1 = vld [vmem:[%s17113_s23 + $0x2b0] sm:$0xff]  ;;  %v174_v3 = vld [vmem:[%s17113_s23 + $0x2e8] sm:$0xff] }
  0x26   :  { %8967 = vmatpush1.bf16.msra.mxu1 %v8966_v23  ;;  %8905 = vmatprep.subr.bf16.mxu0 %v8904_v24  ;;  %v172_v4 = vld [vmem:[%s17113_s23 + $0x2d8] sm:$0xff]  ;;  %v8918_v6 = vpack.c.bf16 %v165_v62, %v161_v61  ;;  %v169_v7 = vld [vmem:[%s17113_s23 + $0x2c0] sm:$0xff]  ;;  %v8982_v8 = vpack.c.bf16 %v167_v1, %v163_v63  ;;  %v8920_v9 = vpack.c.bf16 %v174_v3, %v170_v2  ;;  %v171_v11 = vld [vmem:[%s17113_s23 + $0x2d0] sm:$0xff] }
  0x27   :  { %8969 = vmatprep.subr.bf16.mxu1 %v8968_v28  ;;  %v176_v5 = vld [vmem:[%s17113_s23 + $0x2f8] sm:$0xff]  ;;  %v173_v10 = vld [vmem:[%s17113_s23 + $0x2e0] sm:$0xff]  ;;  %v175_v12 = vld [vmem:[%s17113_s23 + $0x2f0] sm:$0xff] }
  0x28   :  { %v8984_v13 = vpack.c.bf16 %v176_v5, %v172_v4  ;;  %v178_v14 = vld [vmem:[%s17113_s23 + $0x308] sm:$0xff]  ;;  %v180_v17 = vld [vmem:[%s17113_s23 + $0x318] sm:$0xff]  ;;  %v8922_v19 = vpack.c.bf16 %v173_v10, %v169_v7  ;;  %v8986_v20 = vpack.c.bf16 %v175_v12, %v171_v11  ;;  %v177_v22 = vld [vmem:[%s17113_s23 + $0x300] sm:$0xff] }
  0x29   :  { %8907 = vmatpush1.bf16.msra.mxu0 %v8906_v34  ;;  %v182_v15 = vld [vmem:[%s17113_s23 + $0x328] sm:$0xff]  ;;  %v184_v18 = vld [vmem:[%s17113_s23 + $0x338] sm:$0xff]  ;;  %v181_v23 = vld [vmem:[%s17113_s23 + $0x320] sm:$0xff] }
  0x2a   :  { %8971 = vmatpush1.bf16.msra.mxu1 %v8970_v35  ;;  %8909 = vmatprep.subr.bf16.mxu0 %v8908_v36  ;;  %v12644_v16 = vld [vmem:[%s17114_s24 + $0x8] sm:$0xff]  ;;  %v8924_v21 = vpack.c.bf16 %v182_v15, %v178_v14  ;;  %v179_v24 = vld [vmem:[%s17113_s23 + $0x310] sm:$0xff]  ;;  %v8988_v25 = vpack.c.bf16 %v184_v18, %v180_v17  ;;  %v188_v29 = vld [vmem:[%s17113_s23 + $0x358] sm:$0xff]  ;;  %v8926_v31 = vpack.c.bf16 %v181_v23, %v177_v22 }
  0x2b   :  { %8973 = vmatprep.subr.bf16.mxu1 %v8972_v40  ;;  %273 = vmatprep.mubr.f32.mxu0 %v12644_v16  ;;  %v183_v26 = vld [vmem:[%s17113_s23 + $0x330] sm:$0xff]  ;;  %v186_v27 = vld [vmem:[%s17113_s23 + $0x348] sm:$0xff]  ;;  %v192_v30 = vld [vmem:[%s17113_s23 + $0x378] sm:$0xff] }
  0x2c   :  { %386 = vmatprep.mubr.f32.mxu1 %v12644_v16  ;;  %v190_v28 = vld [vmem:[%s17113_s23 + $0x368] sm:$0xff]  ;;  %v8990_v32 = vpack.c.bf16 %v183_v26, %v179_v24  ;;  %v185_v34 = vld [vmem:[%s17113_s23 + $0x340] sm:$0xff]  ;;  %v187_v36 = vld [vmem:[%s17113_s23 + $0x350] sm:$0xff]  ;;  %v8992_v37 = vpack.c.bf16 %v192_v30, %v188_v29 }
  0x2d   :  { %8911 = vmatpush1.bf16.msra.mxu0 %v8910_v46  ;;  %v8928_v33 = vpack.c.bf16 %v190_v28, %v186_v27  ;;  %v189_v35 = vld [vmem:[%s17113_s23 + $0x360] sm:$0xff]  ;;  %v191_v38 = vld [vmem:[%s17113_s23 + $0x370] sm:$0xff]  ;;  %v194_v39 = vld [vmem:[%s17113_s23 + $0x388] sm:$0xff] }
  0x2e   :  { %8975 = vmatpush1.bf16.msra.mxu1 %v8974_v47  ;;  %8913 = vmatprep.subr.bf16.mxu0 %v8912_v48  ;;  %v198_v40 = vld [vmem:[%s17113_s23 + $0x3a8] sm:$0xff]  ;;  %v196_v41 = vld [vmem:[%s17113_s23 + $0x398] sm:$0xff]  ;;  %v8930_v43 = vpack.c.bf16 %v189_v35, %v185_v34  ;;  %v8994_v44 = vpack.c.bf16 %v191_v38, %v187_v36  ;;  %v193_v46 = vld [vmem:[%s17113_s23 + $0x380] sm:$0xff] }
  0x2f   :  { %8977 = vmatprep.subr.bf16.mxu1 %v8976_v52  ;;  %v200_v42 = vld [vmem:[%s17113_s23 + $0x3b8] sm:$0xff]  ;;  %v8932_v45 = vpack.c.bf16 %v198_v40, %v194_v39  ;;  %v197_v47 = vld [vmem:[%s17113_s23 + $0x3a0] sm:$0xff]  ;;  %v195_v48 = vld [vmem:[%s17113_s23 + $0x390] sm:$0xff] }
  0x30   :  { %v8996_v49 = vpack.c.bf16 %v200_v42, %v196_v41  ;;  %v199_v50 = vld [vmem:[%s17113_s23 + $0x3b0] sm:$0xff]  ;;  %v202_v51 = vld [vmem:[%s17113_s23 + $0x3c8] sm:$0xff]  ;;  %v204_v53 = vld [vmem:[%s17113_s23 + $0x3d8] sm:$0xff]  ;;  %v8934_v55 = vpack.c.bf16 %v197_v47, %v193_v46 }
  0x31   :  { %8915 = vmatpush1.bf16.msra.mxu0 %v8914_v58  ;;  %v206_v52 = vld [vmem:[%s17113_s23 + $0x3e8] sm:$0xff]  ;;  %v208_v54 = vld [vmem:[%s17113_s23 + $0x3f8] sm:$0xff]  ;;  %v8998_v56 = vpack.c.bf16 %v199_v50, %v195_v48  ;;  %v201_v58 = vld [vmem:[%s17113_s23 + $0x3c0] sm:$0xff] }
  0x32   :  { %8979 = vmatpush1.bf16.msra.mxu1 %v8978_v59  ;;  %8917 = vmatprep.subr.bf16.mxu0 %v8916_v60  ;;  %v8936_v57 = vpack.c.bf16 %v206_v52, %v202_v51  ;;  %v205_v59 = vld [vmem:[%s17113_s23 + $0x3e0] sm:$0xff]  ;;  %v203_v60 = vld [vmem:[%s17113_s23 + $0x3d0] sm:$0xff]  ;;  %v9000_v61 = vpack.c.bf16 %v208_v54, %v204_v53  ;;  %v468_v63 = vld [vmem:[%s17115_s21 + $0x8] sm:$0xff] }
  0x33   :  { %8981 = vmatprep.subr.bf16.mxu1 %v8980_v0  ;;  %v207_v62 = vld [vmem:[%s17113_s23 + $0x3f0] sm:$0xff]  ;;  %v472_v0 = vld [vmem:[%s17115_s21 + $0x28] sm:$0xff]  ;;  %v470_v1 = vld [vmem:[%s17115_s21 + $0x18] sm:$0xff]  ;;  %v8938_v3 = vpack.c.bf16 %v205_v59, %v201_v58 }
  0x34   :  { %v474_v2 = vld [vmem:[%s17115_s21 + $0x38] sm:$0xff]  ;;  %v9002_v4 = vpack.c.bf16 %v207_v62, %v203_v60  ;;  %v9004_v5 = vpack.c.bf16 %v472_v0, %v468_v63  ;;  %v471_v7 = vld [vmem:[%s17115_s21 + $0x20] sm:$0xff]  ;;  %v473_v10 = vld [vmem:[%s17115_s21 + $0x30] sm:$0xff] }
  0x35   :  { %8919 = vmatpush1.bf16.msra.mxu0 %v8918_v6  ;;  %v467_v6 = vld [vmem:[%s17115_s21] sm:$0xff]  ;;  %v476_v11 = vld [vmem:[%s17115_s21 + $0x48] sm:$0xff]  ;;  %v482_v14 = vld [vmem:[%s17115_s21 + $0x78] sm:$0xff] }
  0x36   :  { %8983 = vmatpush1.bf16.msra.mxu1 %v8982_v8  ;;  %8921 = vmatprep.subr.bf16.mxu0 %v8920_v9  ;;  %v469_v8 = vld [vmem:[%s17115_s21 + $0x10] sm:$0xff]  ;;  %v9068_v9 = vpack.c.bf16 %v474_v2, %v470_v1  ;;  %v480_v12 = vld [vmem:[%s17115_s21 + $0x68] sm:$0xff]  ;;  %v12777_v15 = vld [vmem:[%s17114_s24] sm:$0xff]  ;;  %v9006_v17 = vpack.c.bf16 %v471_v7, %v467_v6 }
  0x37   :  { %8985 = vmatprep.subr.bf16.mxu1 %v8984_v13  ;;  %v478_v13 = vld [vmem:[%s17115_s21 + $0x58] sm:$0xff]  ;;  %v9070_v18 = vpack.c.bf16 %v473_v10, %v469_v8  ;;  %v477_v22 = vld [vmem:[%s17115_s21 + $0x50] sm:$0xff]  ;;  %v488_v26 = vld [vmem:[%s17115_s21 + $0xa8] sm:$0xff] }
  0x38   :  { %v9072_v23 = vpack.c.bf16 %v482_v14, %v478_v13  ;;  %v481_v24 = vld [vmem:[%s17115_s21 + $0x70] sm:$0xff]  ;;  %v486_v27 = vld [vmem:[%s17115_s21 + $0x98] sm:$0xff]  ;;  %v483_v34 = vld [vmem:[%s17115_s21 + $0x80] sm:$0xff] }
  0x39   :  { %8923 = vmatpush1.bf16.msra.mxu0 %v8922_v19  ;;  %v9008_v19 = vpack.c.bf16 %v480_v12, %v476_v11  ;;  %v490_v28 = vld [vmem:[%s17115_s21 + $0xb8] sm:$0xff]  ;;  %v487_v35 = vld [vmem:[%s17115_s21 + $0xa0] sm:$0xff]  ;;  %v485_v36 = vld [vmem:[%s17115_s21 + $0x90] sm:$0xff] }
  0x3a   :  { %8987 = vmatpush1.bf16.msra.mxu1 %v8986_v20  ;;  %8925 = vmatprep.subr.bf16.mxu0 %v8924_v21  ;;  %v475_v20 = vld [vmem:[%s17115_s21 + $0x40] sm:$0xff]  ;;  %v12807_v29 = vld [vmem:[%s17114_s24 + $0x18] sm:$0xff]  ;;  %v489_v38 = vld [vmem:[%s17115_s21 + $0xb0] sm:$0xff] }
  0x3b   :  { %8989 = vmatprep.subr.bf16.mxu1 %v8988_v25  ;;  %v479_v21 = vld [vmem:[%s17115_s21 + $0x60] sm:$0xff]  ;;  %v484_v25 = vld [vmem:[%s17115_s21 + $0x88] sm:$0xff]  ;;  %v494_v41 = vld [vmem:[%s17115_s21 + $0xd8] sm:$0xff]  ;;  %v9078_v46 = vpack.c.bf16 %v489_v38, %v485_v36 }
  0x3c   :  { %v9010_v30 = vpack.c.bf16 %v479_v21, %v475_v20  ;;  %v492_v39 = vld [vmem:[%s17115_s21 + $0xc8] sm:$0xff]  ;;  %v498_v42 = vld [vmem:[%s17115_s21 + $0xf8] sm:$0xff]  ;;  %v491_v48 = vld [vmem:[%s17115_s21 + $0xc0] sm:$0xff] }
  0x3d   :  { %8927 = vmatpush1.bf16.msra.mxu0 %v8926_v31  ;;  %v12813_v31 = vld [vmem:[%s17114_s24 + $0x10] sm:$0xff]  ;;  %v496_v40 = vld [vmem:[%s17115_s21 + $0xe8] sm:$0xff]  ;;  %v9080_v51 = vpack.c.bf16 %v498_v42, %v494_v41  ;;  %v499_v62 = vld [vmem:[%s17115_s21 + $0x100] sm:$0xff] }
  0x3e   :  { %8991 = vmatpush1.bf16.msra.mxu1 %v8990_v32  ;;  %8929 = vmatprep.subr.bf16.mxu0 %v8928_v33  ;;  %v9074_v32 = vpack.c.bf16 %v481_v24, %v477_v22  ;;  %v9012_v33 = vpack.c.bf16 %v488_v26, %v484_v25  ;;  %v9016_v47 = vpack.c.bf16 %v496_v40, %v492_v39  ;;  %v493_v50 = vld [vmem:[%s17115_s21 + $0xd0] sm:$0xff]  ;;  %v500_v53 = vld [vmem:[%s17115_s21 + $0x108] sm:$0xff]  ;;  %v503_v63 = vld [vmem:[%s17115_s21 + $0x120] sm:$0xff] }
  0x3f   :  { %8993 = vmatprep.subr.bf16.mxu1 %v8992_v37  ;;  %v9076_v37 = vpack.c.bf16 %v490_v28, %v486_v27  ;;  %v497_v52 = vld [vmem:[%s17115_s21 + $0xf0] sm:$0xff]  ;;  %v504_v54 = vld [vmem:[%s17115_s21 + $0x128] sm:$0xff]  ;;  %v514_v6 = vld [vmem:[%s17115_s21 + $0x178] sm:$0xff]  ;;  %v9022_v8 = vpack.c.bf16 %v503_v63, %v499_v62 }
  0x40   :  { %v12889_v59 = vld [vmem:[%s17114_s24 + $0x30] sm:$0xff]  ;;  %v9082_v60 = vpack.c.bf16 %v497_v52, %v493_v50  ;;  %v12921_v7 = vld [vmem:[%s17114_s24 + $0x48] sm:$0xff]  ;;  %v507_v12 = vld [vmem:[%s17115_s21 + $0x140] sm:$0xff] }
  0x41   :  { %8931 = vmatpush1.bf16.msra.mxu0 %v8930_v43  ;;  %v12845_v43 = vld [vmem:[%s17114_s24 + $0x28] sm:$0xff]  ;;  %v501_v0 = vld [vmem:[%s17115_s21 + $0x110] sm:$0xff]  ;;  %v511_v13 = vld [vmem:[%s17115_s21 + $0x160] sm:$0xff] }
  0x42   :  { %8995 = vmatpush1.bf16.msra.mxu1 %v8994_v44  ;;  %8933 = vmatprep.subr.bf16.mxu0 %v8932_v45  ;;  %v9014_v44 = vpack.c.bf16 %v487_v35, %v483_v34  ;;  %v12851_v45 = vld [vmem:[%s17114_s24 + $0x20] sm:$0xff]  ;;  %v505_v2 = vld [vmem:[%s17115_s21 + $0x130] sm:$0xff]  ;;  %v520_v20 = vld [vmem:[%s17115_s21 + $0x1a8] sm:$0xff]  ;;  %v9026_v24 = vpack.c.bf16 %v511_v13, %v507_v12 }
  0x43   :  { %8997 = vmatprep.subr.bf16.mxu1 %v8996_v49  ;;  %v495_v49 = vld [vmem:[%s17115_s21 + $0xe0] sm:$0xff]  ;;  %v9086_v10 = vpack.c.bf16 %v505_v2, %v501_v0  ;;  %v509_v14 = vld [vmem:[%s17115_s21 + $0x150] sm:$0xff]  ;;  %v518_v21 = vld [vmem:[%s17115_s21 + $0x198] sm:$0xff] }
  0x44   :  { %v9018_v58 = vpack.c.bf16 %v495_v49, %v491_v48  ;;  %v522_v22 = vld [vmem:[%s17115_s21 + $0x1b8] sm:$0xff]  ;;  %v12965_v25 = vld [vmem:[%s17114_s24 + $0x50] sm:$0xff]  ;;  %v515_v28 = vld [vmem:[%s17115_s21 + $0x180] sm:$0xff] }
  0x45   :  { %8935 = vmatpush1.bf16.msra.mxu0 %v8934_v55  ;;  %v502_v55 = vld [vmem:[%s17115_s21 + $0x118] sm:$0xff]  ;;  %v521_v34 = vld [vmem:[%s17115_s21 + $0x1b0] sm:$0xff]  ;;  %v524_v35 = vld [vmem:[%s17115_s21 + $0x1c8] sm:$0xff] }
  0x46   :  { %8999 = vmatpush1.bf16.msra.mxu1 %v8998_v56  ;;  %8937 = vmatprep.subr.bf16.mxu0 %v8936_v57  ;;  %v506_v56 = vld [vmem:[%s17115_s21 + $0x138] sm:$0xff]  ;;  %v528_v36 = vld [vmem:[%s17115_s21 + $0x1e8] sm:$0xff]  ;;  %v13003_v41 = vld [vmem:[%s17114_s24 + $0x60] sm:$0xff] }
  0x47   :  { %9001 = vmatprep.subr.bf16.mxu1 %v9000_v61  ;;  %v12883_v57 = vld [vmem:[%s17114_s24 + $0x38] sm:$0xff]  ;;  %v9020_v61 = vpack.c.bf16 %v504_v54, %v500_v53  ;;  %v9084_v1 = vpack.c.bf16 %v506_v56, %v502_v55  ;;  %v12997_v39 = vld [vmem:[%s17114_s24 + $0x68] sm:$0xff]  ;;  %v525_v48 = vld [vmem:[%s17115_s21 + $0x1d0] sm:$0xff] }
  0x48   :  { %v530_v38 = vld [vmem:[%s17115_s21 + $0x1f8] sm:$0xff]  ;;  %v529_v50 = vld [vmem:[%s17115_s21 + $0x1f0] sm:$0xff]  ;;  %v536_v52 = vld [vmem:[%s17115_s21 + $0x228] sm:$0xff] }
  0x49   :  { %8939 = vmatpush1.bf16.msra.mxu0 %v8938_v3  ;;  %v508_v3 = vld [vmem:[%s17115_s21 + $0x148] sm:$0xff]  ;;  %v534_v53 = vld [vmem:[%s17115_s21 + $0x218] sm:$0xff]  ;;  %v531_v62 = vld [vmem:[%s17115_s21 + $0x200] sm:$0xff] }
  0x4a   :  { %9003 = vmatpush1.bf16.msra.mxu1 %v9002_v4  ;;  %9005 = vmatprep.subr.bf16.mxu0 %v9004_v5  ;;  %v512_v4 = vld [vmem:[%s17115_s21 + $0x168] sm:$0xff]  ;;  %v510_v5 = vld [vmem:[%s17115_s21 + $0x158] sm:$0xff]  ;;  %v535_v63 = vld [vmem:[%s17115_s21 + $0x220] sm:$0xff] }
  0x4b   :  { %9069 = vmatprep.subr.bf16.mxu1 %v9068_v9  ;;  %v12927_v9 = vld [vmem:[%s17114_s24 + $0x40] sm:$0xff]  ;;  %v9024_v11 = vpack.c.bf16 %v512_v4, %v508_v3  ;;  %v538_v54 = vld [vmem:[%s17115_s21 + $0x238] sm:$0xff]  ;;  %v533_v0 = vld [vmem:[%s17115_s21 + $0x210] sm:$0xff] }
  0x4c   :  { %274 = vmatmul.mubr.f32.vlgmr.msra.gmra.mrb[0].mxu0 %v12777_v15  ;;  %v13035_v55 = vld [vmem:[%s17114_s24 + $0x78] sm:$0xff]  ;;  %v537_v2 = vld [vmem:[%s17115_s21 + $0x230] sm:$0xff]  ;;  %v540_v3 = vld [vmem:[%s17115_s21 + $0x248] sm:$0xff] }
  0x4d   :  { %387 = vmatmul.mubr.f32.vlgmr.msra.gmra.mrb[0].mxu1 %v12777_v15  ;;  %9007 = vmatpush1.bf16.msra.mxu0 %v9006_v17  ;;  %v9088_v17 = vpack.c.bf16 %v514_v6, %v510_v5  ;;  %v544_v4 = vld [vmem:[%s17115_s21 + $0x268] sm:$0xff]  ;;  %v542_v5 = vld [vmem:[%s17115_s21 + $0x258] sm:$0xff]  ;;  %v539_v12 = vld [vmem:[%s17115_s21 + $0x240] sm:$0xff] }
  0x4e   :  { %9071 = vmatpush1.bf16.msra.mxu1 %v9070_v18  ;;  %9009 = vmatprep.subr.bf16.mxu0 %v9008_v19  ;;  %v513_v18 = vld [vmem:[%s17115_s21 + $0x170] sm:$0xff]  ;;  %v516_v19 = vld [vmem:[%s17115_s21 + $0x188] sm:$0xff]  ;;  %v546_v6 = vld [vmem:[%s17115_s21 + $0x278] sm:$0xff] }
  0x4f   :  { %9073 = vmatprep.subr.bf16.mxu1 %v9072_v23  ;;  %279 = vmatprep.mubr.f32.mxu0 %v12807_v29  ;;  %v12959_v23 = vld [vmem:[%s17114_s24 + $0x58] sm:$0xff]  ;;  %v9090_v26 = vpack.c.bf16 %v513_v18, %v509_v14  ;;  %v9028_v27 = vpack.c.bf16 %v520_v20, %v516_v19  ;;  %v543_v13 = vld [vmem:[%s17115_s21 + $0x260] sm:$0xff]  ;;  %v541_v14 = vld [vmem:[%s17115_s21 + $0x250] sm:$0xff] }
  0x50   :  { %392 = vmatprep.mubr.f32.mxu1 %v12807_v29  ;;  %280 = vmatmul.mubr.f32.gmra.mrb[2].mxu0 %v12813_v31  ;;  %v545_v18 = vld [vmem:[%s17115_s21 + $0x270] sm:$0xff]  ;;  %v548_v19 = vld [vmem:[%s17115_s21 + $0x288] sm:$0xff] }
  0x51   :  { %9011 = vmatpush1.bf16.msra.mxu0 %v9010_v30  ;;  %393 = vmatmul.mubr.f32.gmra.mrb[2].mxu1 %v12813_v31  ;;  %v519_v30 = vld [vmem:[%s17115_s21 + $0x1a0] sm:$0xff]  ;;  %v552_v20 = vld [vmem:[%s17115_s21 + $0x2a8] sm:$0xff] }
  0x52   :  { %9075 = vmatpush1.bf16.msra.mxu1 %v9074_v32  ;;  %9013 = vmatprep.subr.bf16.mxu0 %v9012_v33  ;;  %v517_v32 = vld [vmem:[%s17115_s21 + $0x190] sm:$0xff]  ;;  %v9092_v33 = vpack.c.bf16 %v522_v22, %v518_v21  ;;  %v9030_v40 = vpack.c.bf16 %v519_v30, %v515_v28  ;;  %v550_v21 = vld [vmem:[%s17115_s21 + $0x298] sm:$0xff]  ;;  %v547_v28 = vld [vmem:[%s17115_s21 + $0x280] sm:$0xff] }
  0x53   :  { %9077 = vmatprep.subr.bf16.mxu1 %v9076_v37  ;;  %285 = vmatprep.mubr.f32.mxu0 %v12845_v43  ;;  %v526_v37 = vld [vmem:[%s17115_s21 + $0x1d8] sm:$0xff]  ;;  %v9094_v42 = vpack.c.bf16 %v521_v34, %v517_v32  ;;  %v551_v30 = vld [vmem:[%s17115_s21 + $0x2a0] sm:$0xff]  ;;  %v549_v32 = vld [vmem:[%s17115_s21 + $0x290] sm:$0xff] }
  0x54   :  { %398 = vmatprep.mubr.f32.mxu1 %v12845_v43  ;;  %286 = vmatmul.mubr.f32.gmra.mrb[4].mxu0 %v12851_v45  ;;  %v9096_v49 = vpack.c.bf16 %v530_v38, %v526_v37  ;;  %v554_v22 = vld [vmem:[%s17115_s21 + $0x2b8] sm:$0xff]  ;;  %v556_v34 = vld [vmem:[%s17115_s21 + $0x2c8] sm:$0xff]  ;;  %v9046_v38 = vpack.c.bf16 %v551_v30, %v547_v28  ;;  %v583_v28 = vld [vmem:[%s17115_s21 + $0x3a0] sm:$0xff] }
  0x55   :  { %9015 = vmatpush1.bf16.msra.mxu0 %v9014_v44  ;;  %399 = vmatmul.mubr.f32.gmra.mrb[4].mxu1 %v12851_v45  ;;  %v9032_v44 = vpack.c.bf16 %v528_v36, %v524_v35  ;;  %v560_v35 = vld [vmem:[%s17115_s21 + $0x2e8] sm:$0xff]  ;;  %v558_v36 = vld [vmem:[%s17115_s21 + $0x2d8] sm:$0xff]  ;;  %v581_v30 = vld [vmem:[%s17115_s21 + $0x390] sm:$0xff] }
  0x56   :  { %9079 = vmatpush1.bf16.msra.mxu1 %v9078_v46  ;;  %9017 = vmatprep.subr.bf16.mxu0 %v9016_v47  ;;  %v523_v46 = vld [vmem:[%s17115_s21 + $0x1c0] sm:$0xff]  ;;  %v562_v37 = vld [vmem:[%s17115_s21 + $0x2f8] sm:$0xff] }
  0x57   :  { %9081 = vmatprep.subr.bf16.mxu1 %v9080_v51  ;;  %291 = vmatprep.mubr.f32.mxu0 %v12883_v57  ;;  %v527_v47 = vld [vmem:[%s17115_s21 + $0x1e0] sm:$0xff]  ;;  %v532_v51 = vld [vmem:[%s17115_s21 + $0x208] sm:$0xff] }
  0x58   :  { %404 = vmatprep.mubr.f32.mxu1 %v12883_v57  ;;  %292 = vmatmul.mubr.f32.gmra.mrb[6].mxu0 %v12889_v59  ;;  %v9034_v56 = vpack.c.bf16 %v527_v47, %v523_v46  ;;  %v559_v46 = vld [vmem:[%s17115_s21 + $0x2e0] sm:$0xff]  ;;  %v557_v47 = vld [vmem:[%s17115_s21 + $0x2d0] sm:$0xff] }
  0x59   :  { %9019 = vmatpush1.bf16.msra.mxu0 %v9018_v58  ;;  %405 = vmatmul.mubr.f32.gmra.mrb[6].mxu1 %v12889_v59  ;;  %v13041_v58 = vld [vmem:[%s17114_s24 + $0x70] sm:$0xff] }
  0x5a   :  { %9083 = vmatpush1.bf16.msra.mxu1 %v9082_v60  ;;  %9021 = vmatprep.subr.bf16.mxu0 %v9020_v61  ;;  %v9098_v60 = vpack.c.bf16 %v529_v50, %v525_v48  ;;  %v9036_v61 = vpack.c.bf16 %v536_v52, %v532_v51  ;;  %v9112_v48 = vpack.c.bf16 %v562_v37, %v558_v36  ;;  %v564_v50 = vld [vmem:[%s17115_s21 + $0x308] sm:$0xff]  ;;  %v566_v52 = vld [vmem:[%s17115_s21 + $0x318] sm:$0xff] }
  0x5b   :  { %9085 = vmatprep.subr.bf16.mxu1 %v9084_v1  ;;  %297 = vmatprep.mubr.f32.mxu0 %v12921_v7  ;;  %v9100_v1 = vpack.c.bf16 %v538_v54, %v534_v53  ;;  %v568_v51 = vld [vmem:[%s17115_s21 + $0x328] sm:$0xff]  ;;  %v570_v53 = vld [vmem:[%s17115_s21 + $0x338] sm:$0xff] }
  0x5c   :  { %410 = vmatprep.mubr.f32.mxu1 %v12921_v7  ;;  %298 = vmatmul.mubr.f32.gmra.mrb[8].mxu0 %v12927_v9  ;;  %v594_v36 = vld [vmem:[%s17115_s21 + $0x3f8] sm:$0xff] }
  0x5d   :  { %9023 = vmatpush1.bf16.msra.mxu0 %v9022_v8  ;;  %411 = vmatmul.mubr.f32.gmra.mrb[8].mxu1 %v12927_v9  ;;  %v9038_v8 = vpack.c.bf16 %v535_v63, %v531_v62  ;;  %v567_v62 = vld [vmem:[%s17115_s21 + $0x320] sm:$0xff]  ;;  %v565_v63 = vld [vmem:[%s17115_s21 + $0x310] sm:$0xff] }
  0x5e   :  { %9087 = vmatpush1.bf16.msra.mxu1 %v9086_v10  ;;  %9025 = vmatprep.subr.bf16.mxu0 %v9024_v11  ;;  %v9102_v10 = vpack.c.bf16 %v537_v2, %v533_v0  ;;  %v9040_v11 = vpack.c.bf16 %v544_v4, %v540_v3  ;;  %v9116_v0 = vpack.c.bf16 %v570_v53, %v566_v52  ;;  %v572_v2 = vld [vmem:[%s17115_s21 + $0x348] sm:$0xff]  ;;  %v574_v4 = vld [vmem:[%s17115_s21 + $0x358] sm:$0xff] }
  0x5f   :  { %9089 = vmatprep.subr.bf16.mxu1 %v9088_v17  ;;  %303 = vmatprep.mubr.f32.mxu0 %v12959_v23  ;;  %v9104_v17 = vpack.c.bf16 %v546_v6, %v542_v5  ;;  %v576_v3 = vld [vmem:[%s17115_s21 + $0x368] sm:$0xff]  ;;  %v578_v5 = vld [vmem:[%s17115_s21 + $0x378] sm:$0xff] }
  0x60   :  { %416 = vmatprep.mubr.f32.mxu1 %v12959_v23  ;;  %304 = vmatmul.mubr.f32.gmra.mrb[10].mxu0 %v12965_v25  ;;  %v860_v52 = vld [vmem:[%s17116_s2 + $0x38] sm:$0xff] }
  0x61   :  { %9027 = vmatpush1.bf16.msra.mxu0 %v9026_v24  ;;  %417 = vmatmul.mubr.f32.gmra.mrb[10].mxu1 %v12965_v25  ;;  %v9042_v24 = vpack.c.bf16 %v543_v13, %v539_v12  ;;  %v575_v12 = vld [vmem:[%s17115_s21 + $0x360] sm:$0xff]  ;;  %v573_v13 = vld [vmem:[%s17115_s21 + $0x350] sm:$0xff] }
  0x62   :  { %9091 = vmatpush1.bf16.msra.mxu1 %v9090_v26  ;;  %9029 = vmatprep.subr.bf16.mxu0 %v9028_v27  ;;  %v9106_v26 = vpack.c.bf16 %v545_v18, %v541_v14  ;;  %v9044_v27 = vpack.c.bf16 %v552_v20, %v548_v19  ;;  %v9120_v14 = vpack.c.bf16 %v578_v5, %v574_v4  ;;  %v580_v18 = vld [vmem:[%s17115_s21 + $0x388] sm:$0xff]  ;;  %v582_v20 = vld [vmem:[%s17115_s21 + $0x398] sm:$0xff] }
  0x63   :  { %9093 = vmatprep.subr.bf16.mxu1 %v9092_v33  ;;  %309 = vmatprep.mubr.f32.mxu0 %v12997_v39  ;;  %v553_v33 = vld [vmem:[%s17115_s21 + $0x2b0] sm:$0xff]  ;;  %v584_v19 = vld [vmem:[%s17115_s21 + $0x3a8] sm:$0xff]  ;;  %v864_v4 = vld [vmem:[%s17116_s2 + $0x58] sm:$0xff] }
  0x64   :  { %422 = vmatprep.mubr.f32.mxu1 %v12997_v39  ;;  %310 = vmatmul.mubr.f32.gmra.mrb[12].mxu0 %v13003_v41  ;;  %v868_v5 = vld [vmem:[%s17116_s2 + $0x78] sm:$0xff] }
  0x65   :  { %9031 = vmatpush1.bf16.msra.mxu0 %v9030_v40  ;;  %423 = vmatmul.mubr.f32.gmra.mrb[12].mxu1 %v13003_v41  ;;  %v9110_v40 = vpack.c.bf16 %v553_v33, %v549_v32  ;;  %v588_v33 = vld [vmem:[%s17115_s21 + $0x3c8] sm:$0xff] }
  0x66   :  { %9095 = vmatpush1.bf16.msra.mxu1 %v9094_v42  ;;  %9033 = vmatprep.subr.bf16.mxu0 %v9032_v44  ;;  %v9048_v42 = vpack.c.bf16 %v560_v35, %v556_v34  ;;  %v555_v44 = vld [vmem:[%s17115_s21 + $0x2c0] sm:$0xff]  ;;  %v592_v34 = vld [vmem:[%s17115_s21 + $0x3e8] sm:$0xff]  ;;  %v590_v35 = vld [vmem:[%s17115_s21 + $0x3d8] sm:$0xff] }
  0x67   :  { %9097 = vmatprep.subr.bf16.mxu1 %v9096_v49  ;;  %315 = vmatprep.mubr.f32.mxu0 %v13035_v55  ;;  %v561_v49 = vld [vmem:[%s17115_s21 + $0x2f0] sm:$0xff]  ;;  %v9050_v54 = vpack.c.bf16 %v559_v46, %v555_v44  ;;  %v591_v44 = vld [vmem:[%s17115_s21 + $0x3e0] sm:$0xff] }
  0x68   :  { %428 = vmatprep.mubr.f32.mxu1 %v13035_v55  ;;  %316 = vmatmul.mubr.f32.gmra.mrb[14].mxu0 %v13041_v58  ;;  %v589_v46 = vld [vmem:[%s17115_s21 + $0x3d0] sm:$0xff] }
  0x69   :  { %9035 = vmatpush1.bf16.msra.mxu0 %v9034_v56  ;;  %429 = vmatmul.mubr.f32.gmra.mrb[14].mxu1 %v13041_v58  ;;  %v9114_v56 = vpack.c.bf16 %v561_v49, %v557_v47  ;;  %v9128_v47 = vpack.c.bf16 %v594_v36, %v590_v35  ;;  %v854_v49 = vld [vmem:[%s17116_s2 + $0x8] sm:$0xff]  ;;  %v881_v36 = vld [vmem:[%s17116_s2 + $0xe0] sm:$0xff] }
  0x6a   :  { %9099 = vmatpush1.bf16.msra.mxu1 %v9098_v60  ;;  %9037 = vmatprep.subr.bf16.mxu0 %v9036_v61  ;;  %v9052_v60 = vpack.c.bf16 %v568_v51, %v564_v50  ;;  %v563_v61 = vld [vmem:[%s17115_s21 + $0x300] sm:$0xff]  ;;  %v858_v50 = vld [vmem:[%s17116_s2 + $0x28] sm:$0xff]  ;;  %v856_v51 = vld [vmem:[%s17116_s2 + $0x18] sm:$0xff] }
  0x6b   :  { %9101 = vmatprep.subr.bf16.mxu1 %v9100_v1  ;;  %659 = vmatprep.mubr.f32.mxu0 %v12644_v16  ;;  %v569_v1 = vld [vmem:[%s17115_s21 + $0x330] sm:$0xff]  ;;  %v9054_v6 = vpack.c.bf16 %v567_v62, %v563_v61  ;;  %v857_v61 = vld [vmem:[%s17116_s2 + $0x20] sm:$0xff]  ;;  %v13249_v62 = vpack.c.bf16 %v860_v52, %v856_v51 }
  0x6c   :  { %772 = vmatprep.mubr.f32.mxu1 %v12644_v16  ;;  %v9108_v16 = vpack.c.bf16 %v554_v22, %v550_v21  ;;  %v586_v21 = vld [vmem:[%s17115_s21 + $0x3b8] sm:$0xff]  ;;  %v887_v52 = vld [vmem:[%s17116_s2 + $0x110] sm:$0xff] }
  0x6d   :  { %9039 = vmatpush1.bf16.msra.mxu0 %v9038_v8  ;;  %v9118_v8 = vpack.c.bf16 %v569_v1, %v565_v63  ;;  %v9124_v32 = vpack.c.bf16 %v586_v21, %v582_v20  ;;  %v855_v63 = vld [vmem:[%s17116_s2 + $0x10] sm:$0xff]  ;;  %v862_v1 = vld [vmem:[%s17116_s2 + $0x48] sm:$0xff]  ;;  %v872_v20 = vld [vmem:[%s17116_s2 + $0x98] sm:$0xff] }
  0x6e   :  { %9103 = vmatpush1.bf16.msra.mxu1 %v9102_v10  ;;  %9041 = vmatprep.subr.bf16.mxu0 %v9040_v11  ;;  %v9056_v10 = vpack.c.bf16 %v576_v3, %v572_v2  ;;  %v571_v11 = vld [vmem:[%s17115_s21 + $0x340] sm:$0xff]  ;;  %v866_v2 = vld [vmem:[%s17116_s2 + $0x68] sm:$0xff]  ;;  %v876_v21 = vld [vmem:[%s17116_s2 + $0xb8] sm:$0xff] }
  0x6f   :  { %9105 = vmatprep.subr.bf16.mxu1 %v9104_v17  ;;  %v577_v17 = vld [vmem:[%s17115_s21 + $0x370] sm:$0xff]  ;;  %v9058_v22 = vpack.c.bf16 %v575_v12, %v571_v11  ;;  %v13281_v11 = vpack.c.bf16 %v866_v2, %v862_v1  ;;  %v897_v2 = vld [vmem:[%s17116_s2 + $0x160] sm:$0xff] }
  0x70   :  { %v863_v12 = vld [vmem:[%s17116_s2 + $0x50] sm:$0xff] }
  0x71   :  { %9043 = vmatpush1.bf16.msra.mxu0 %v9042_v24  ;;  %v9122_v24 = vpack.c.bf16 %v577_v17, %v573_v13  ;;  %v867_v13 = vld [vmem:[%s17116_s2 + $0x70] sm:$0xff]  ;;  %v870_v17 = vld [vmem:[%s17116_s2 + $0x88] sm:$0xff] }
  0x72   :  { %9107 = vmatpush1.bf16.msra.mxu1 %v9106_v26  ;;  %9045 = vmatprep.subr.bf16.mxu0 %v9044_v27  ;;  %v9060_v26 = vpack.c.bf16 %v584_v19, %v580_v18  ;;  %v579_v27 = vld [vmem:[%s17115_s21 + $0x380] sm:$0xff]  ;;  %v874_v18 = vld [vmem:[%s17116_s2 + $0xa8] sm:$0xff] }
  0x73   :  { %9109 = vmatprep.subr.bf16.mxu1 %v9108_v16  ;;  %v585_v16 = vld [vmem:[%s17115_s21 + $0x3b0] sm:$0xff]  ;;  %v9062_v37 = vpack.c.bf16 %v583_v28, %v579_v27 }
  0x74   :  { %v871_v27 = vld [vmem:[%s17116_s2 + $0x90] sm:$0xff] }
  0x75   :  { %9047 = vmatpush1.bf16.msra.mxu0 %v9046_v38  ;;  %v9126_v38 = vpack.c.bf16 %v585_v16, %v581_v30  ;;  %v875_v28 = vld [vmem:[%s17116_s2 + $0xb0] sm:$0xff]  ;;  %v13330_v30 = vpack.c.bf16 %v876_v21, %v872_v20  ;;  %v905_v21 = vld [vmem:[%s17116_s2 + $0x1a0] sm:$0xff] }
  0x76   :  { %9111 = vmatpush1.bf16.msra.mxu1 %v9110_v40  ;;  %9049 = vmatprep.subr.bf16.mxu0 %v9048_v42  ;;  %v9064_v40 = vpack.c.bf16 %v592_v34, %v588_v33  ;;  %v587_v42 = vld [vmem:[%s17115_s21 + $0x3c0] sm:$0xff]  ;;  %v880_v33 = vld [vmem:[%s17116_s2 + $0xd8] sm:$0xff]  ;;  %v13350_v35 = vpack.c.bf16 %v875_v28, %v871_v27  ;;  %v907_v27 = vld [vmem:[%s17116_s2 + $0x1b0] sm:$0xff] }
  0x77   :  { %9113 = vmatprep.subr.bf16.mxu1 %v9112_v48  ;;  %v593_v48 = vld [vmem:[%s17115_s21 + $0x3f0] sm:$0xff]  ;;  %v9066_v53 = vpack.c.bf16 %v591_v44, %v587_v42  ;;  %17118 = vst [vmem:[#allocation9_spill] sm:$0xff] %v13330_v30  ;;  %v884_v34 = vld [vmem:[%s17116_s2 + $0xf8] sm:$0xff]  ;;  %v890_v44 = vld [vmem:[%s17116_s2 + $0x128] sm:$0xff] }
  0x78   :  { %17120 = vst [vmem:[#allocation11_spill] sm:$0xff] %v13350_v35  ;;  %v13370_v42 = vpack.c.bf16 %v884_v34, %v880_v33  ;;  %v912_v33 = vld [vmem:[%s17116_s2 + $0x1d8] sm:$0xff] }
  0x79   :  { %9051 = vmatpush1.bf16.msra.mxu0 %v9050_v54  ;;  %v9130_v54 = vpack.c.bf16 %v593_v48, %v589_v46  ;;  %v892_v48 = vld [vmem:[%s17116_s2 + $0x138] sm:$0xff] }
  0x7a   :  { %9115 = vmatpush1.bf16.msra.mxu1 %v9114_v56  ;;  %9053 = vmatprep.subr.bf16.mxu0 %v9052_v60  ;;  %v13241_v56 = vpack.c.bf16 %v858_v50, %v854_v49  ;;  %v853_v60 = vld [vmem:[%s17116_s2] sm:$0xff]  ;;  %17122 = vst [vmem:[#allocation13_spill] sm:$0xff] %v13370_v42  ;;  %v916_v34 = vld [vmem:[%s17116_s2 + $0x1f8] sm:$0xff] }
  0x7b   :  { %9117 = vmatprep.subr.bf16.mxu1 %v9116_v0  ;;  %v859_v0 = vld [vmem:[%s17116_s2 + $0x30] sm:$0xff]  ;;  %v13263_v3 = vpack.c.bf16 %v857_v61, %v853_v60  ;;  %v889_v50 = vld [vmem:[%s17116_s2 + $0x120] sm:$0xff]  ;;  %v898_v60 = vld [vmem:[%s17116_s2 + $0x168] sm:$0xff] }
  0x7d   :  { %9055 = vmatpush1.bf16.msra.mxu0 %v9054_v6  ;;  %v13272_v6 = vpack.c.bf16 %v859_v0, %v855_v63  ;;  %v896_v63 = vld [vmem:[%s17116_s2 + $0x158] sm:$0xff] }
  0x7e   :  { %9119 = vmatpush1.bf16.msra.mxu1 %v9118_v8  ;;  %9057 = vmatprep.subr.bf16.mxu0 %v9056_v10  ;;  %v861_v8 = vld [vmem:[%s17116_s2 + $0x40] sm:$0xff]  ;;  %v900_v0 = vld [vmem:[%s17116_s2 + $0x178] sm:$0xff] }
  0x7f   :  { %9121 = vmatprep.subr.bf16.mxu1 %v9120_v14  ;;  %v865_v10 = vld [vmem:[%s17116_s2 + $0x60] sm:$0xff]  ;;  %v13290_v14 = vpack.c.bf16 %v868_v5, %v864_v4  ;;  %v895_v5 = vld [vmem:[%s17116_s2 + $0x150] sm:$0xff] }
  0x80   :  { %v13300_v19 = vpack.c.bf16 %v865_v10, %v861_v8  ;;  %v899_v8 = vld [vmem:[%s17116_s2 + $0x170] sm:$0xff]  ;;  %v13450_v10 = vpack.c.bf16 %v900_v0, %v896_v63  ;;  %v926_v0 = vld [vmem:[%s17139_s27 + $0x48] sm:$0xff] }
  0x81   :  { %9059 = vmatpush1.bf16.msra.mxu0 %v9058_v22  ;;  %v13310_v22 = vpack.c.bf16 %v867_v13, %v863_v12  ;;  %v906_v12 = vld [vmem:[%s17116_s2 + $0x1a8] sm:$0xff]  ;;  %v13470_v20 = vpack.c.bf16 %v899_v8, %v895_v5  ;;  %v923_v63 = vld [vmem:[%s17139_s27 + $0x30] sm:$0xff]  ;;  %v932_v5 = vld [vmem:[%s17139_s27 + $0x78] sm:$0xff] }
  0x82   :  { %9123 = vmatpush1.bf16.msra.mxu1 %v9122_v24  ;;  %9061 = vmatprep.subr.bf16.mxu0 %v9060_v26  ;;  %v873_v24 = vld [vmem:[%s17116_s2 + $0xa0] sm:$0xff]  ;;  %v13320_v26 = vpack.c.bf16 %v874_v18, %v870_v17  ;;  %17130 = vst [vmem:[#allocation21_spill] sm:$0xff] %v13450_v10  ;;  %v904_v17 = vld [vmem:[%s17116_s2 + $0x198] sm:$0xff] }
  0x83   :  { %9125 = vmatprep.subr.bf16.mxu1 %v9124_v32  ;;  %v882_v32 = vld [vmem:[%s17116_s2 + $0xe8] sm:$0xff]  ;;  %v908_v18 = vld [vmem:[%s17116_s2 + $0x1b8] sm:$0xff]  ;;  %17132 = vst [vmem:[#allocation23_spill] sm:$0xff] %v13470_v20 }
  0x84   :  { %17117 = vst [vmem:[#allocation8_spill] sm:$0xff] %v13320_v26  ;;  %v13490_v28 = vpack.c.bf16 %v908_v18, %v904_v17  ;;  %v925_v18 = vld [vmem:[%s17139_s27 + $0x40] sm:$0xff] }
  0x85   :  { %9063 = vmatpush1.bf16.msra.mxu0 %v9062_v37 }
  0x86   :  { %9127 = vmatpush1.bf16.msra.mxu1 %v9126_v38  ;;  %9065 = vmatprep.subr.bf16.mxu0 %v9064_v40  ;;  %v879_v38 = vld [vmem:[%s17116_s2 + $0xd0] sm:$0xff]  ;;  %17134 = vst [vmem:[#allocation25_spill] sm:$0xff] %v13490_v28 }
  0x87   :  { %9129 = vmatprep.subr.bf16.mxu1 %v9128_v47  ;;  %v883_v40 = vld [vmem:[%s17116_s2 + $0xf0] sm:$0xff]  ;;  %v888_v47 = vld [vmem:[%s17116_s2 + $0x118] sm:$0xff] }
  0x88   :  { %v13390_v49 = vpack.c.bf16 %v883_v40, %v879_v38  ;;  %v911_v40 = vld [vmem:[%s17116_s2 + $0x1d0] sm:$0xff] }
  0x89   :  { %9067 = vmatpush1.bf16.msra.mxu0 %v9066_v53  ;;  %v891_v53 = vld [vmem:[%s17116_s2 + $0x130] sm:$0xff] }
  0x8a   :  { %9131 = vmatpush1.bf16.msra.mxu1 %v9130_v54  ;;  %9133 = vmatprep.subr.bf16.mxu0 %v13241_v56  ;;  %17124 = vst [vmem:[#allocation15_spill] sm:$0xff] %v13390_v49  ;;  %v13410_v54 = vpack.c.bf16 %v892_v48, %v888_v47  ;;  %v13430_v1 = vpack.c.bf16 %v891_v53, %v887_v52  ;;  %v922_v47 = vld [vmem:[%s17139_s27 + $0x28] sm:$0xff]  ;;  %v921_v53 = vld [vmem:[%s17139_s27 + $0x20] sm:$0xff] }
  0x8b   :  { %9165 = vmatprep.subr.bf16.mxu1 %v13249_v62 }
  0x8c   :  { %660 = vmatmul.mubr.f32.vlgmr.msra.gmra.mrb[16].mxu0 %v12777_v15  ;;  %17126 = vst [vmem:[#allocation17_spill] sm:$0xff] %v13410_v54  ;;  %17128 = vst [vmem:[#allocation19_spill] sm:$0xff] %v13430_v1 }
  0x8d   :  { %773 = vmatmul.mubr.f32.vlgmr.msra.gmra.mrb[16].mxu1 %v12777_v15  ;;  %9135 = vmatpush1.bf16.msra.mxu0 %v13263_v3  ;;  %v869_v15 = vld [vmem:[%s17116_s2 + $0x80] sm:$0xff] }
  0x8e   :  { %9167 = vmatpush1.bf16.msra.mxu1 %v13272_v6  ;;  %665 = vmatprep.mubr.f32.mxu0 %v12807_v29  ;;  %v13340_v16 = vpack.c.bf16 %v873_v24, %v869_v15  ;;  %v903_v24 = vld [vmem:[%s17116_s2 + $0x190] sm:$0xff] }
  0x8f   :  { %778 = vmatprep.mubr.f32.mxu1 %v12807_v29  ;;  %9137 = vmatprep.subr.bf16.mxu0 %v13281_v11  ;;  %v878_v29 = vld [vmem:[%s17116_s2 + $0xc8] sm:$0xff] }
  0x90   :  { %666 = vmatmul.mubr.f32.gmra.mrb[18].mxu0 %v12813_v31  ;;  %9169 = vmatprep.subr.bf16.mxu1 %v13290_v14  ;;  %17119 = vst [vmem:[#allocation10_spill] sm:$0xff] %v13340_v16  ;;  %v13360_v37 = vpack.c.bf16 %v882_v32, %v878_v29  ;;  %v914_v29 = vld [vmem:[%s17116_s2 + $0x1e8] sm:$0xff] }
  0x91   :  { %779 = vmatmul.mubr.f32.gmra.mrb[18].mxu1 %v12813_v31  ;;  %9139 = vmatpush1.bf16.msra.mxu0 %v13300_v19  ;;  %v877_v31 = vld [vmem:[%s17116_s2 + $0xc0] sm:$0xff] }
  0x92   :  { %9171 = vmatpush1.bf16.msra.mxu1 %v13310_v22  ;;  %671 = vmatprep.mubr.f32.mxu0 %v12845_v43  ;;  %17121 = vst [vmem:[#allocation12_spill] sm:$0xff] %v13360_v37  ;;  %v13380_v46 = vpack.c.bf16 %v881_v36, %v877_v31  ;;  %v13510_v31 = vpack.c.bf16 %v907_v27, %v903_v24  ;;  %v913_v36 = vld [vmem:[%s17116_s2 + $0x1e0] sm:$0xff]  ;;  %v931_v24 = vld [vmem:[%s17139_s27 + $0x70] sm:$0xff]  ;;  %v934_v27 = vld [vmem:[%s17139_s27 + $0x88] sm:$0xff] }
  0x93   :  { %784 = vmatprep.mubr.f32.mxu1 %v12845_v43  ;;  %9141 = vmatprep.subr.bf16.mxu0 %v13320_v26  ;;  %v886_v43 = vld [vmem:[%s17116_s2 + $0x108] sm:$0xff] }
  0x94   :  { %672 = vmatmul.mubr.f32.gmra.mrb[20].mxu0 %v12851_v45  ;;  %9173 = vmatprep.subr.bf16.mxu1 %v13330_v30  ;;  %17123 = vst [vmem:[#allocation14_spill] sm:$0xff] %v13380_v46  ;;  %v13400_v51 = vpack.c.bf16 %v890_v44, %v886_v43  ;;  %17136 = vst [vmem:[#allocation27_spill] sm:$0xff] %v13510_v31  ;;  %v915_v43 = vld [vmem:[%s17116_s2 + $0x1f0] sm:$0xff]  ;;  %v13530_v44 = vpack.c.bf16 %v916_v34, %v912_v33  ;;  %v940_v33 = vld [vmem:[%s17139_s27 + $0xb8] sm:$0xff] }
  0x95   :  { %785 = vmatmul.mubr.f32.gmra.mrb[20].mxu1 %v12851_v45  ;;  %9143 = vmatpush1.bf16.msra.mxu0 %v13340_v16  ;;  %v885_v45 = vld [vmem:[%s17116_s2 + $0x100] sm:$0xff]  ;;  %v13550_v52 = vpack.c.bf16 %v915_v43, %v911_v40 }
  0x96   :  { %9175 = vmatpush1.bf16.msra.mxu1 %v13350_v35  ;;  %677 = vmatprep.mubr.f32.mxu0 %v12883_v57  ;;  %17125 = vst [vmem:[#allocation16_spill] sm:$0xff] %v13400_v51  ;;  %v13420_v61 = vpack.c.bf16 %v889_v50, %v885_v45  ;;  %17138 = vst [vmem:[#allocation29_spill] sm:$0xff] %v13530_v44  ;;  %v920_v45 = vld [vmem:[%s17139_s27 + $0x18] sm:$0xff]  ;;  %v933_v40 = vld [vmem:[%s17139_s27 + $0x80] sm:$0xff] }
  0x97   :  { %790 = vmatprep.mubr.f32.mxu1 %v12883_v57  ;;  %9145 = vmatprep.subr.bf16.mxu0 %v13360_v37  ;;  %v894_v57 = vld [vmem:[%s17116_s2 + $0x148] sm:$0xff]  ;;  %v924_v50 = vld [vmem:[%s17139_s27 + $0x38] sm:$0xff]  ;;  %17141 = vst [vmem:[#allocation31_spill] sm:$0xff] %v13550_v52  ;;  %v937_v43 = vld [vmem:[%s17139_s27 + $0xa0] sm:$0xff] }
  0x98   :  { %678 = vmatmul.mubr.f32.gmra.mrb[22].mxu0 %v12889_v59  ;;  %9177 = vmatprep.subr.bf16.mxu1 %v13370_v42  ;;  %17127 = vst [vmem:[#allocation18_spill] sm:$0xff] %v13420_v61  ;;  %v13440_v4 = vpack.c.bf16 %v898_v60, %v894_v57  ;;  %v919_v57 = vld [vmem:[%s17139_s27 + $0x10] sm:$0xff] }
  0x99   :  { %791 = vmatmul.mubr.f32.gmra.mrb[22].mxu1 %v12889_v59  ;;  %9147 = vmatpush1.bf16.msra.mxu0 %v13380_v46  ;;  %v893_v59 = vld [vmem:[%s17116_s2 + $0x140] sm:$0xff] }
  0x9a   :  { %9179 = vmatpush1.bf16.msra.mxu1 %v13390_v49  ;;  %683 = vmatprep.mubr.f32.mxu0 %v12921_v7  ;;  %17129 = vst [vmem:[#allocation20_spill] sm:$0xff] %v13440_v4  ;;  %v13460_v13 = vpack.c.bf16 %v897_v2, %v893_v59  ;;  %v930_v59 = vld [vmem:[%s17139_s27 + $0x68] sm:$0xff]  ;;  %v928_v2 = vld [vmem:[%s17139_s27 + $0x58] sm:$0xff] }
  0x9b   :  { %796 = vmatprep.mubr.f32.mxu1 %v12921_v7  ;;  %9149 = vmatprep.subr.bf16.mxu0 %v13400_v51  ;;  %v902_v7 = vld [vmem:[%s17116_s2 + $0x188] sm:$0xff]  ;;  %v13592_v17 = vpack.c.bf16 %v930_v59, %v926_v0 }
  0x9c   :  { %684 = vmatmul.mubr.f32.gmra.mrb[24].mxu0 %v12927_v9  ;;  %9181 = vmatprep.subr.bf16.mxu1 %v13410_v54  ;;  %17131 = vst [vmem:[#allocation22_spill] sm:$0xff] %v13460_v13  ;;  %v13480_v15 = vpack.c.bf16 %v906_v12, %v902_v7  ;;  %v16920_v7 = vmov 0.0   ;;  %v13590_v12 = vpack.c.bf16 %v923_v63, %v919_v57  ;;  %v948_v57 = vld [vmem:[%s17139_s27 + $0xf8] sm:$0xff] }
  0x9d   :  { %797 = vmatmul.mubr.f32.gmra.mrb[24].mxu1 %v12927_v9  ;;  %9151 = vmatpush1.bf16.msra.mxu0 %v13420_v61  ;;  %v901_v9 = vld [vmem:[%s17116_s2 + $0x180] sm:$0xff]  ;;  %v13664_v63 = vpack.c.bf16 %v937_v43, %v933_v40 }
  0x9e   :  { %9183 = vmatpush1.bf16.msra.mxu1 %v13430_v1  ;;  %689 = vmatprep.mubr.f32.mxu0 %v12959_v23  ;;  %17133 = vst [vmem:[#allocation24_spill] sm:$0xff] %v13480_v15  ;;  %v13500_v32 = vpack.c.bf16 %v905_v21, %v901_v9  ;;  %v927_v9 = vld [vmem:[%s17139_s27 + $0x50] sm:$0xff]  ;;  %v13605_v21 = vpack.c.bf16 %v932_v5, %v928_v2  ;;  %v941_v2 = vld [vmem:[%s17139_s27 + $0xc0] sm:$0xff] }
  0x9f   :  { %802 = vmatprep.mubr.f32.mxu1 %v12959_v23  ;;  %9153 = vmatprep.subr.bf16.mxu0 %v13440_v4  ;;  %v910_v23 = vld [vmem:[%s17116_s2 + $0x1c8] sm:$0xff]  ;;  %v945_v5 = vld [vmem:[%s17139_s27 + $0xe0] sm:$0xff] }
  0xa0   :  { %690 = vmatmul.mubr.f32.gmra.mrb[26].mxu0 %v12965_v25  ;;  %9185 = vmatprep.subr.bf16.mxu1 %v13450_v10  ;;  %17135 = vst [vmem:[#allocation26_spill] sm:$0xff] %v13500_v32  ;;  %v13520_v38 = vpack.c.bf16 %v914_v29, %v910_v23  ;;  %v938_v23 = vld [vmem:[%s17139_s27 + $0xa8] sm:$0xff]  ;;  %v936_v29 = vld [vmem:[%s17139_s27 + $0x98] sm:$0xff] }
  0xa1   :  { %803 = vmatmul.mubr.f32.gmra.mrb[26].mxu1 %v12965_v25  ;;  %9155 = vmatpush1.bf16.msra.mxu0 %v13460_v13  ;;  %v909_v25 = vld [vmem:[%s17116_s2 + $0x1c0] sm:$0xff] }
  0xa2   :  { %9187 = vmatpush1.bf16.msra.mxu1 %v13470_v20  ;;  %695 = vmatprep.mubr.f32.mxu0 %v12997_v39  ;;  %17137 = vst [vmem:[#allocation28_spill] sm:$0xff] %v13520_v38  ;;  %v13540_v48 = vpack.c.bf16 %v913_v36, %v909_v25  ;;  %v13630_v25 = vpack.c.bf16 %v931_v24, %v927_v9  ;;  %v947_v9 = vld [vmem:[%s17139_s27 + $0xf0] sm:$0xff]  ;;  %v950_v24 = vld [vmem:[%s17139_s27 + $0x108] sm:$0xff] }
  0xa3   :  { %808 = vmatprep.mubr.f32.mxu1 %v12997_v39  ;;  %9157 = vmatprep.subr.bf16.mxu0 %v13480_v15  ;;  %v918_v39 = vld [vmem:[%s17139_s27 + $0x8] sm:$0xff]  ;;  %v13632_v36 = vpack.c.bf16 %v938_v23, %v934_v27  ;;  %v952_v23 = vld [vmem:[%s17139_s27 + $0x118] sm:$0xff] }
  0xa4   :  { %696 = vmatmul.mubr.f32.gmra.mrb[28].mxu0 %v13003_v41  ;;  %9189 = vmatprep.subr.bf16.mxu1 %v13490_v28  ;;  %17140 = vst [vmem:[#allocation30_spill] sm:$0xff] %v13540_v48  ;;  %v13563_v60 = vpack.c.bf16 %v922_v47, %v918_v39  ;;  %v935_v39 = vld [vmem:[%s17139_s27 + $0x90] sm:$0xff]  ;;  %v13644_v47 = vpack.c.bf16 %v940_v33, %v936_v29  ;;  %v954_v27 = vld [vmem:[%s17139_s27 + $0x128] sm:$0xff]  ;;  %v956_v29 = vld [vmem:[%s17139_s27 + $0x138] sm:$0xff] }
  0xa5   :  { %809 = vmatmul.mubr.f32.gmra.mrb[28].mxu1 %v13003_v41  ;;  %9159 = vmatpush1.bf16.msra.mxu0 %v13500_v32  ;;  %v917_v41 = vld [vmem:[%s17139_s27] sm:$0xff]  ;;  %v13700_v33 = vpack.c.bf16 %v945_v5, %v941_v2  ;;  %v13706_v43 = vpack.c.bf16 %v954_v27, %v950_v24  ;;  %v962_v2 = vld [vmem:[%s17139_s27 + $0x168] sm:$0xff]  ;;  %v960_v5 = vld [vmem:[%s17139_s27 + $0x158] sm:$0xff] }
  0xa6   :  { %9191 = vmatpush1.bf16.msra.mxu1 %v13510_v31  ;;  %701 = vmatprep.mubr.f32.mxu0 %v13035_v55  ;;  %17142 = vst [vmem:[#allocation32_spill] sm:$0xff] %v13563_v60  ;;  %v13586_v8 = vpack.c.bf16 %v921_v53, %v917_v41  ;;  %v946_v41 = vld [vmem:[%s17139_s27 + $0xe8] sm:$0xff]  ;;  %v944_v53 = vld [vmem:[%s17139_s27 + $0xd8] sm:$0xff] }
  0xa7   :  { %814 = vmatprep.mubr.f32.mxu1 %v13035_v55  ;;  %9161 = vmatprep.subr.bf16.mxu0 %v13520_v38  ;;  %v13576_v55 = vpack.c.bf16 %v924_v50, %v920_v45  ;;  %v939_v45 = vld [vmem:[%s17139_s27 + $0xb0] sm:$0xff]  ;;  %v942_v50 = vld [vmem:[%s17139_s27 + $0xc8] sm:$0xff]  ;;  %17145 = vst [vmem:[#allocation35_spill] sm:$0xff] %v13706_v43 }
  0xa8   :  { %702 = vmatmul.mubr.f32.gmra.mrb[30].mxu0 %v13041_v58  ;;  %9193 = vmatprep.subr.bf16.mxu1 %v13530_v44  ;;  %v13668_v0 = vpack.c.bf16 %v939_v45, %v935_v39  ;;  %v13670_v59 = vpack.c.bf16 %v946_v41, %v942_v50  ;;  %v949_v39 = vld [vmem:[%s17139_s27 + $0x100] sm:$0xff]  ;;  %v951_v50 = vld [vmem:[%s17139_s27 + $0x110] sm:$0xff]  ;;  %v13718_v41 = vpack.c.bf16 %v956_v29, %v952_v23 }
  0xa9   :  { %17143 = vst [vmem:[#allocation33_spill] sm:$0xff] %v13576_v55  ;;  %815 = vmatmul.mubr.f32.gmra.mrb[30].mxu1 %v13041_v58  ;;  %9163 = vmatpush1.bf16.msra.mxu0 %v13540_v48  ;;  %v929_v58 = vld [vmem:[%s17139_s27 + $0x60] sm:$0xff] }
  0xaa   :  { %9195 = vmatpush1.bf16.msra.mxu1 %v13550_v52  ;;  %1093 = vmatprep.mubr.f32.mxu0 %v16920_v7  ;;  %v13626_v34 = vpack.c.bf16 %v929_v58, %v925_v18  ;;  %v943_v18 = vld [vmem:[%s17139_s27 + $0xd0] sm:$0xff]  ;;  %v13682_v58 = vpack.c.bf16 %v948_v57, %v944_v53  ;;  %v953_v45 = vld [vmem:[%s17139_s27 + $0x120] sm:$0xff]  ;;  %17146 = vst [vmem:[#allocation36_spill] sm:$0xff] %v13718_v41  ;;  %v958_v57 = vld [vmem:[%s17139_s27 + $0x148] sm:$0xff] }
  0xab   :  { %1164 = vmatprep.mubr.f32.mxu1 %v16920_v7  ;;  %9197 = vmatprep.subr.bf16.mxu0 %v13563_v60  ;;  %v13704_v40 = vpack.c.bf16 %v947_v9, %v943_v18  ;;  %v955_v53 = vld [vmem:[%s17139_s27 + $0x130] sm:$0xff]  ;;  %v964_v18 = vld [vmem:[%s17139_s27 + $0x178] sm:$0xff]  ;;  %v13736_v9 = vpack.c.bf16 %v953_v45, %v949_v39  ;;  %v13742_v27 = vpack.c.bf16 %v962_v2, %v958_v57  ;;  %v957_v23 = vld [vmem:[%s17139_s27 + $0x140] sm:$0xff] }
  0xac   :  { %1094 = vmatmul.mubr.f32.vlgmr.msra.gmra.mrb[0].mxu0 %v16920_v7  ;;  %9229 = vmatprep.subr.bf16.mxu1 %v13576_v55  ;;  %v13740_v24 = vpack.c.bf16 %v955_v53, %v951_v50  ;;  %v961_v29 = vld [vmem:[%s17139_s27 + $0x160] sm:$0xff]  ;;  %v959_v39 = vld [vmem:[%s17139_s27 + $0x150] sm:$0xff]  ;;  %v13754_v45 = vpack.c.bf16 %v964_v18, %v960_v5  ;;  %v966_v53 = vld [vmem:[%s17139_s27 + $0x188] sm:$0xff] }
  0xad   :  { %1165 = vmatmul.mubr.f32.vlgmr.msra.gmra.mrb[0].mxu1 %v16920_v7  ;;  %9199 = vmatpush1.bf16.msra.mxu0 %v13586_v8  ;;  %17144 = vst [vmem:[#allocation34_spill] sm:$0xff] %v13704_v40  ;;  %17147 = vst [vmem:[#allocation37_spill] sm:$0xff] %v13736_v9  ;;  %v963_v50 = vld [vmem:[%s17139_s27 + $0x170] sm:$0xff]  ;;  %v970_v57 = vld [vmem:[%s17139_s27 + $0x1a8] sm:$0xff]  ;;  %v13772_v18 = vpack.c.bf16 %v961_v29, %v957_v23 }
  0xae   :  { %9231 = vmatpush1.bf16.msra.mxu1 %v13590_v12  ;;  %9201 = vmatprep.subr.bf16.mxu0 %v13592_v17  ;;  %17148 = vst [vmem:[#allocation38_spill] sm:$0xff] %v13740_v24  ;;  %17149 = vst [vmem:[#allocation39_spill] sm:$0xff] %v13742_v27  ;;  %v968_v2 = vld [vmem:[%s17139_s27 + $0x198] sm:$0xff]  ;;  %v967_v23 = vld [vmem:[%s17139_s27 + $0x190] sm:$0xff] }
  0xaf   :  { %9233 = vmatprep.subr.bf16.mxu1 %v13605_v21  ;;  %1248 = vmatprep.mubr.f32.mxu0 %v16920_v7  ;;  %17150 = vst [vmem:[#allocation40_spill] sm:$0xff] %v13754_v45  ;;  %v972_v5 = vld [vmem:[%s17139_s27 + $0x1b8] sm:$0xff] }
  0xb0   :  { %1319 = vmatprep.mubr.f32.mxu1 %v16920_v7  ;;  %v13776_v7 = vpack.c.bf16 %v963_v50, %v959_v39  ;;  %v13790_v29 = vpack.c.bf16 %v972_v5, %v968_v2  ;;  %v971_v39 = vld [vmem:[%s17139_s27 + $0x1b0] sm:$0xff]  ;;  %v974_v50 = vld [vmem:[%s17139_s27 + $0x1c8] sm:$0xff]  ;;  %v980_v2 = vld [vmem:[%s17139_s27 + $0x1f8] sm:$0xff] }
  0xb1   :  { %9203 = vmatpush1.bf16.msra.mxu0 %v13626_v34 }
  0xb2   :  { %9235 = vmatpush1.bf16.msra.mxu1 %v13630_v25  ;;  %9205 = vmatprep.subr.bf16.mxu0 %v13632_v36 }
  0xb3   :  { %9237 = vmatprep.subr.bf16.mxu1 %v13644_v47 }
  0xb5   :  { %9207 = vmatpush1.bf16.msra.mxu0 %v13664_v63 }
  0xb6   :  { %9239 = vmatpush1.bf16.msra.mxu1 %v13668_v0  ;;  %9209 = vmatprep.subr.bf16.mxu0 %v13670_v59 }
  0xb7   :  { %9241 = vmatprep.subr.bf16.mxu1 %v13682_v58 }
  0xb9   :  { %9211 = vmatpush1.bf16.msra.mxu0 %v13700_v33 }
  0xba   :  { %9243 = vmatpush1.bf16.msra.mxu1 %v13704_v40  ;;  %9213 = vmatprep.subr.bf16.mxu0 %v13706_v43  ;;  %v965_v43 = vld [vmem:[%s17139_s27 + $0x180] sm:$0xff] }
  0xbb   :  { %9245 = vmatprep.subr.bf16.mxu1 %v13718_v41  ;;  %v13778_v41 = vpack.c.bf16 %v970_v57, %v966_v53  ;;  %v969_v40 = vld [vmem:[%s17139_s27 + $0x1a0] sm:$0xff]  ;;  %v978_v53 = vld [vmem:[%s17139_s27 + $0x1e8] sm:$0xff]  ;;  %v976_v57 = vld [vmem:[%s17139_s27 + $0x1d8] sm:$0xff] }
  0xbc   :  { %v13808_v5 = vpack.c.bf16 %v969_v40, %v965_v43  ;;  %v13823_v40 = vpack.c.bf16 %v980_v2, %v976_v57  ;;  %v975_v43 = vld [vmem:[%s17139_s27 + $0x1d0] sm:$0xff]  ;;  %v981_v2 = vld [vmem:[%s16899_s3] sm:$0xf] }
  0xbd   :  { %9215 = vmatpush1.bf16.msra.mxu0 %v13736_v9  ;;  %v977_v9 = vld [vmem:[%s17139_s27 + $0x1e0] sm:$0xff] }
  0xbe   :  { %9247 = vmatpush1.bf16.msra.mxu1 %v13740_v24  ;;  %9217 = vmatprep.subr.bf16.mxu0 %v13742_v27  ;;  %v13814_v27 = vpack.c.bf16 %v978_v53, %v974_v50  ;;  %v973_v24 = vld [vmem:[%s17139_s27 + $0x1c0] sm:$0xff]  ;;  %v17151_v53 = vmov 0.0  }
  0xbf   :  { %9249 = vmatprep.subr.bf16.mxu1 %v13754_v45  ;;  %v13812_v45 = vpack.c.bf16 %v971_v39, %v967_v23  ;;  %v979_v23 = vld [vmem:[%s17139_s27 + $0x1f0] sm:$0xff]  ;;  %v13832_v39 = vpack.c.bf16 %v977_v9, %v973_v24  ;;  %v983_v9 = vlaneseq }
  0xc0   :  { %v13836_v50 = vpack.c.bf16 %v979_v23, %v975_v43 }
  0xc1   :  { %9219 = vmatpush1.bf16.msra.mxu0 %v13772_v18  ;;  %v984_v24 = vshrl.u32 %v983_v9, 7 }
  0xc2   :  { %9251 = vmatpush1.bf16.msra.mxu1 %v13776_v7  ;;  %9221 = vmatprep.subr.bf16.mxu0 %v13778_v41 }
  0xc3   :  { %9253 = vmatprep.subr.bf16.mxu1 %v13790_v29  ;;  %v13879_v57 = vsub.s32 0, %v984_v24  ;;  %v13884_v43 = vsub.s32 1, %v984_v24 }
  0xc5   :  { %9223 = vmatpush1.bf16.msra.mxu0 %v13808_v5  ;;  %17152 = vst [vmem:[#allocation41_spill] sm:$0xff] %v13879_v57  ;;  %17153 = vst [vmem:[#allocation42_spill] sm:$0xff] %v13884_v43  ;;  %v13887_v23 = vrot.slane %v981_v2, %v13879_v57 }
  0xc6   :  { %9255 = vmatpush1.bf16.msra.mxu1 %v13812_v45  ;;  %9225 = vmatprep.subr.bf16.mxu0 %v13814_v27 }
  0xc7   :  { %9257 = vmatprep.subr.bf16.mxu1 %v13823_v40  ;;  %17154 = vst [vmem:[#allocation43_spill] sm:$0xff] %v13887_v23 }
  0xc9   :  { %9227 = vmatpush1.bf16.msra.mxu0 %v13832_v39 }
  0xca   :  { %9259 = vmatpush1.bf16.msra.mxu1 %v13836_v50  ;;  %9261 = vmatprep.subr.bf16.mxu0 %v13241_v56 }
  0xcb   :  { %9293 = vmatprep.subr.bf16.mxu1 %v13249_v62 }
  0xcc   :  { %1249 = vmatmul.mubr.f32.vlgmr.msra.gmra.mrb[30].mxu0 %v17151_v53 }
  0xcd   :  { %1320 = vmatmul.mubr.f32.vlgmr.msra.gmra.mrb[30].mxu1 %v17151_v53  ;;  %9263 = vmatpush1.bf16.msra.mxu0 %v13263_v3 }
  0xce   :  { %9295 = vmatpush1.bf16.msra.mxu1 %v13272_v6  ;;  %9265 = vmatprep.subr.bf16.mxu0 %v13281_v11 }
  0xcf   :  { %9297 = vmatprep.subr.bf16.mxu1 %v13290_v14  ;;  %1454 = vmatprep.mubr.f32.mxu0 %v17151_v53 }
  0xd0   :  { %1525 = vmatprep.mubr.f32.mxu1 %v17151_v53 }
  0xd1   :  { %9267 = vmatpush1.bf16.msra.mxu0 %v13300_v19 }
  0xd2   :  { %9299 = vmatpush1.bf16.msra.mxu1 %v13310_v22  ;;  %9269 = vmatprep.subr.bf16.mxu0 %v13320_v26 }
  0xd3   :  { %9301 = vmatprep.subr.bf16.mxu1 %v13330_v30 }
  0xd5   :  { %9271 = vmatpush1.bf16.msra.mxu0 %v13340_v16 }
  0xd6   :  { %9303 = vmatpush1.bf16.msra.mxu1 %v13350_v35  ;;  %9273 = vmatprep.subr.bf16.mxu0 %v13360_v37 }
  0xd7   :  { %9305 = vmatprep.subr.bf16.mxu1 %v13370_v42 }
  0xd9   :  { %9275 = vmatpush1.bf16.msra.mxu0 %v13380_v46 }
  0xda   :  { %9307 = vmatpush1.bf16.msra.mxu1 %v13390_v49  ;;  %9277 = vmatprep.subr.bf16.mxu0 %v13400_v51 }
  0xdb   :  { %9309 = vmatprep.subr.bf16.mxu1 %v13410_v54 }
  0xdd   :  { %9279 = vmatpush1.bf16.msra.mxu0 %v13420_v61 }
  0xde   :  { %9311 = vmatpush1.bf16.msra.mxu1 %v13430_v1  ;;  %9281 = vmatprep.subr.bf16.mxu0 %v13440_v4 }
  0xdf   :  { %9313 = vmatprep.subr.bf16.mxu1 %v13450_v10 }
  0xe1   :  { %9283 = vmatpush1.bf16.msra.mxu0 %v13460_v13 }
  0xe2   :  { %9315 = vmatpush1.bf16.msra.mxu1 %v13470_v20  ;;  %9285 = vmatprep.subr.bf16.mxu0 %v13480_v15  ;;  %v13899_v20 = vsub.s32 2, %v984_v24 }
  0xe3   :  { %9317 = vmatprep.subr.bf16.mxu1 %v13490_v28 }
  0xe4   :  { %17158 = vst [vmem:[#allocation47_spill] sm:$0xff] %v13899_v20  ;;  %v13903_v10 = vrot.slane %v981_v2, %v13899_v20 }
  0xe5   :  { %9287 = vmatpush1.bf16.msra.mxu0 %v13500_v32 }
  0xe6   :  { %9319 = vmatpush1.bf16.msra.mxu1 %v13510_v31  ;;  %9289 = vmatprep.subr.bf16.mxu0 %v13520_v38  ;;  %17159 = vst [vmem:[#allocation48_spill] sm:$0xff] %v13903_v10 }
  0xe7   :  { %9321 = vmatprep.subr.bf16.mxu1 %v13530_v44 }
  0xe9   :  { %9291 = vmatpush1.bf16.msra.mxu0 %v13540_v48  ;;  %v13890_v48 = vrot.slane %v981_v2, %v13884_v43 }
  0xea   :  { %9323 = vmatpush1.bf16.msra.mxu1 %v13550_v52  ;;  %9325 = vmatprep.subr.bf16.mxu0 %v13563_v60  ;;  %v13892_v60 = vsub.s32 3, %v984_v24 }
  0xeb   :  { %9357 = vmatprep.subr.bf16.mxu1 %v13576_v55  ;;  %17155 = vst [vmem:[#allocation44_spill] sm:$0xff] %v13890_v48 }
  0xec   :  { %17156 = vst [vmem:[#allocation45_spill] sm:$0xff] %v13892_v60  ;;  %v13897_v15 = vrot.slane %v981_v2, %v13892_v60 }
  0xee   :  { %17157 = vst [vmem:[#allocation46_spill] sm:$0xff] %v13897_v15 }
 0x17f   :  { %v1095_v52 = vpop.f32.mrb[0].mxu0 }
 0x180   :  { %v1175_v55 = vadd.f32 %v1095_v52, %v13887_v23  ;;  %v1166_v9 = vpop.f32.mrb[0].mxu1  ;;  %v1097_v44 = vpop.f32.mrb[1].mxu0 }
 0x181   :  { %v1176_v38 = vadd.f32 %v1097_v44, %v13890_v48  ;;  %v1168_v31 = vpop.f32.mrb[1].mxu1  ;;  %v1177_v23 = vadd.f32 %v1166_v9, %v13903_v10 }
 0x182   :  { %v8571_v32 = vmul.f32 -1.442695, %v1175_v55  ;;  %v1178_v13 = vadd.f32 %v1168_v31, %v13897_v15 }
 0x183   :  { %v8572_v28 = vmul.f32 -1.442695, %v1176_v38 }
 0x184   :  { %11727 = vpow2.f32 %v8571_v32  ;;  %v8573_v52 = vmul.f32 -1.442695, %v1178_v13 }
 0x185   :  { %11729 = vpow2.f32 %v8572_v28  ;;  %v1003_v28 = vld [vmem:[%s16900_s6] sm:$0xf] }
 0x186   :  { %11731 = vpow2.f32 %v8573_v52  ;;  %v13910_v9 = vrot.slane %v1003_v28, %v13879_v57 }
 0x187   :  { %11733 = vtanh.f32 %v1177_v23 }
 0x188   :  { %17160 = vst [vmem:[#allocation49_spill] sm:$0xff] %v13910_v9 }
 0x18e   :  { %v11728_v4 = vpop.eup %11727 }
 0x18f   :  { %v11730_v44 = vpop.eup %11729  ;;  %v1337_v48 = vadd.f32 1.0, %v11728_v4  ;;  %v13913_v4 = vrot.slane %v1003_v28, %v13884_v43 }
 0x190   :  { %v1343_v38 = vadd.f32 1.0, %v11730_v44  ;;  %v11732_v32 = vpop.eup %11731 }
 0x191   :  { %11735 = vrcp.f32 %v1337_v48  ;;  %v11734_v31 = vpop.eup %11733  ;;  %v1350_v13 = vadd.f32 1.0, %v11732_v32  ;;  %17161 = vst [vmem:[#allocation50_spill] sm:$0xff] %v13913_v4 }
 0x192   :  { %11737 = vrcp.f32 %v1343_v38 }
 0x193   :  { %11739 = vrcp.f32 %v1350_v13 }
 0x19b   :  { %v11736_v55 = vpop.eup %11735 }
 0x19c   :  { %v11738_v24 = vpop.eup %11737  ;;  %v1354_v2 = vmul.f32 %v11736_v55, %v11734_v31 }
 0x19d   :  { %v1353_v10 = vmul.f32 0.0, %v11738_v24  ;;  %v13921_v24 = vrot.slane %v1003_v28, %v13892_v60  ;;  %v11740_v13 = vpop.eup %11739  ;;  %v17169_v60 = vld [vmem:[#allocation40_spill] sm:$0xff] }
 0x19f   :  { %v13915_v23 = vadd.f32 %v1354_v2, %v1353_v10  ;;  %v1250_v48 = vpop.f32.mrb[30].mxu0  ;;  %v13925_v2 = vrot.slane %v1003_v28, %v13899_v20  ;;  %v17168_v20 = vld [vmem:[#allocation39_spill] sm:$0xff] }
 0x1a0   :  { %v1330_v52 = vadd.f32 %v1250_v48, %v13910_v9  ;;  %v1321_v44 = vpop.f32.mrb[30].mxu1  ;;  %v1252_v38 = vpop.f32.mrb[31].mxu0 }
 0x1a1   :  { %11741 = vtanh.f32 %v13915_v23  ;;  %v1331_v31 = vadd.f32 %v1252_v38, %v13913_v4  ;;  %v1323_v32 = vpop.f32.mrb[31].mxu1  ;;  %v1332_v38 = vadd.f32 %v1321_v44, %v13925_v2  ;;  %v17163_v44 = vld [vmem:[#allocation34_spill] sm:$0xff] }
 0x1a2   :  { %v8574_v55 = vmul.f32 -1.442695, %v1330_v52  ;;  %v1333_v10 = vadd.f32 %v1323_v32, %v13921_v24 }
 0x1a3   :  { %v8575_v57 = vmul.f32 -1.442695, %v1331_v31 }
 0x1a4   :  { %11743 = vpow2.f32 %v8574_v55  ;;  %v8576_v43 = vmul.f32 -1.442695, %v1333_v10 }
 0x1a5   :  { %11745 = vpow2.f32 %v8575_v57 }
 0x1a6   :  { %11747 = vpow2.f32 %v8576_v43 }
 0x1a7   :  { %11749 = vtanh.f32 %v1332_v38 }
 0x1ab   :  { %v11742_v48 = vpop.eup %11741 }
 0x1ac   :  { %v13927_v9 = vmul.f32 %v11742_v48, %v11740_v13  ;;  %v17164_v13 = vld [vmem:[#allocation35_spill] sm:$0xff]  ;;  %v17165_v48 = vld [vmem:[#allocation36_spill] sm:$0xff] }
 0x1ae   :  { %17162 = vst [vmem:[#allocation51_spill] sm:$0xff] %v13927_v9  ;;  %v11744_v4 = vpop.eup %11743  ;;  %1455 = vmatmul.mubr.f32.vlgmr.msra.gmra.mrb[2].mxu0 %v13927_v9  ;;  %1526 = vmatmul.mubr.f32.vlgmr.msra.gmra.mrb[2].mxu1 %v13927_v9  ;;  %v17177_v9 = vld [vmem:[#allocation26_spill] sm:$0xff] }
 0x1af   :  { %v11746_v52 = vpop.eup %11745  ;;  %v1361_v31 = vadd.f32 1.0, %v11744_v4  ;;  %9327 = vmatpush1.bf16.msra.mxu0 %v13586_v8  ;;  %9359 = vmatpush1.bf16.msra.mxu1 %v13590_v12 }
 0x1b0   :  { %v1367_v57 = vadd.f32 1.0, %v11746_v52  ;;  %9329 = vmatprep.subr.bf16.mxu0 %v13592_v17  ;;  %9361 = vmatprep.subr.bf16.mxu1 %v13605_v21  ;;  %v11748_v43 = vpop.eup %11747 }
 0x1b1   :  { %11751 = vrcp.f32 %v1361_v31  ;;  %1609 = vmatprep.mubr.f32.mxu0 %v17151_v53  ;;  %1680 = vmatprep.mubr.f32.mxu1 %v17151_v53  ;;  %v11750_v28 = vpop.eup %11749  ;;  %v1374_v10 = vadd.f32 1.0, %v11748_v43  ;;  %v17166_v31 = vld [vmem:[#allocation37_spill] sm:$0xff] }
 0x1b2   :  { %11753 = vrcp.f32 %v1367_v57  ;;  %v17167_v57 = vld [vmem:[#allocation38_spill] sm:$0xff] }
 0x1b3   :  { %9331 = vmatpush1.bf16.msra.mxu0 %v13626_v34  ;;  %9363 = vmatpush1.bf16.msra.mxu1 %v13630_v25  ;;  %11755 = vrcp.f32 %v1374_v10  ;;  %v17173_v10 = vld [vmem:[#allocation22_spill] sm:$0xff] }
 0x1b4   :  { %9333 = vmatprep.subr.bf16.mxu0 %v13632_v36  ;;  %9365 = vmatprep.subr.bf16.mxu1 %v13644_v47 }
 0x1b7   :  { %9335 = vmatpush1.bf16.msra.mxu0 %v13664_v63  ;;  %9367 = vmatpush1.bf16.msra.mxu1 %v13668_v0 }
 0x1b8   :  { %9337 = vmatprep.subr.bf16.mxu0 %v13670_v59  ;;  %9369 = vmatprep.subr.bf16.mxu1 %v13682_v58 }
 0x1bb   :  { %v11752_v4 = vpop.eup %11751  ;;  %9339 = vmatpush1.bf16.msra.mxu0 %v13700_v33  ;;  %9371 = vmatpush1.bf16.msra.mxu1 %v17163_v44 }
 0x1bc   :  { %v11754_v32 = vpop.eup %11753  ;;  %v1378_v55 = vmul.f32 %v11752_v4, %v11750_v28  ;;  %9341 = vmatprep.subr.bf16.mxu0 %v17164_v13  ;;  %9373 = vmatprep.subr.bf16.mxu1 %v17165_v48 }
 0x1bd   :  { %v1377_v38 = vmul.f32 0.0, %v11754_v32  ;;  %v11756_v43 = vpop.eup %11755  ;;  %v17171_v32 = vld [vmem:[#allocation20_spill] sm:$0xff] }
 0x1bf   :  { %v13950_v52 = vadd.f32 %v1378_v55, %v1377_v38  ;;  %9343 = vmatpush1.bf16.msra.mxu0 %v17166_v31  ;;  %9375 = vmatpush1.bf16.msra.mxu1 %v17167_v57  ;;  %v17172_v55 = vld [vmem:[#allocation21_spill] sm:$0xff]  ;;  %v17174_v38 = vld [vmem:[#allocation23_spill] sm:$0xff] }
 0x1c0   :  { %9345 = vmatprep.subr.bf16.mxu0 %v17168_v20  ;;  %9377 = vmatprep.subr.bf16.mxu1 %v17169_v60 }
 0x1c1   :  { %11757 = vtanh.f32 %v13950_v52 }
 0x1c3   :  { %9347 = vmatpush1.bf16.msra.mxu0 %v13772_v18  ;;  %9379 = vmatpush1.bf16.msra.mxu1 %v13776_v7 }
 0x1c4   :  { %9349 = vmatprep.subr.bf16.mxu0 %v13778_v41  ;;  %9381 = vmatprep.subr.bf16.mxu1 %v13790_v29 }
 0x1c7   :  { %9351 = vmatpush1.bf16.msra.mxu0 %v13808_v5  ;;  %9383 = vmatpush1.bf16.msra.mxu1 %v13812_v45 }
 0x1c8   :  { %9353 = vmatprep.subr.bf16.mxu0 %v13814_v27  ;;  %9385 = vmatprep.subr.bf16.mxu1 %v13823_v40 }
 0x1cb   :  { %v11758_v28 = vpop.eup %11757  ;;  %9355 = vmatpush1.bf16.msra.mxu0 %v13832_v39  ;;  %9387 = vmatpush1.bf16.msra.mxu1 %v13836_v50 }
 0x1cc   :  { %v13967_v4 = vmul.f32 %v11758_v28, %v11756_v43  ;;  %9389 = vmatprep.subr.bf16.mxu0 %v13241_v56  ;;  %9421 = vmatprep.subr.bf16.mxu1 %v13249_v62  ;;  %v17175_v43 = vld [vmem:[#allocation24_spill] sm:$0xff]  ;;  %v17176_v28 = vld [vmem:[#allocation25_spill] sm:$0xff] }
 0x1ce   :  { %17170 = vst [vmem:[#allocation34_spill] sm:$0xff] %v13967_v4  ;;  %1610 = vmatmul.mubr.f32.vlgmr.msra.gmra.mrb[28].mxu0 %v13967_v4  ;;  %1681 = vmatmul.mubr.f32.vlgmr.msra.gmra.mrb[28].mxu1 %v13967_v4  ;;  %v17178_v4 = vld [vmem:[#allocation27_spill] sm:$0xff] }
 0x1cf   :  { %9391 = vmatpush1.bf16.msra.mxu0 %v13263_v3  ;;  %9423 = vmatpush1.bf16.msra.mxu1 %v13272_v6 }
 0x1d0   :  { %9393 = vmatprep.subr.bf16.mxu0 %v13281_v11  ;;  %9425 = vmatprep.subr.bf16.mxu1 %v13290_v14 }
 0x1d1   :  { %1816 = vmatprep.mubr.f32.mxu0 %v17151_v53  ;;  %1887 = vmatprep.mubr.f32.mxu1 %v17151_v53 }
 0x1d3   :  { %9395 = vmatpush1.bf16.msra.mxu0 %v13300_v19  ;;  %9427 = vmatpush1.bf16.msra.mxu1 %v13310_v22 }
 0x1d4   :  { %9397 = vmatprep.subr.bf16.mxu0 %v13320_v26  ;;  %9429 = vmatprep.subr.bf16.mxu1 %v13330_v30 }
 0x1d7   :  { %9399 = vmatpush1.bf16.msra.mxu0 %v13340_v16  ;;  %9431 = vmatpush1.bf16.msra.mxu1 %v13350_v35 }
 0x1d8   :  { %9401 = vmatprep.subr.bf16.mxu0 %v13360_v37  ;;  %9433 = vmatprep.subr.bf16.mxu1 %v13370_v42 }
 0x1db   :  { %9403 = vmatpush1.bf16.msra.mxu0 %v13380_v46  ;;  %9435 = vmatpush1.bf16.msra.mxu1 %v13390_v49  ;;  %v17186_v46 = vld [vmem:[#allocation44_spill] sm:$0xff] }
 0x1dc   :  { %9405 = vmatprep.subr.bf16.mxu0 %v13400_v51  ;;  %9437 = vmatprep.subr.bf16.mxu1 %v13410_v54  ;;  %v17179_v54 = vld [vmem:[#allocation28_spill] sm:$0xff]  ;;  %v17185_v51 = vld [vmem:[#allocation43_spill] sm:$0xff] }
 0x1df   :  { %9407 = vmatpush1.bf16.msra.mxu0 %v13420_v61  ;;  %9439 = vmatpush1.bf16.msra.mxu1 %v13430_v1  ;;  %v17180_v61 = vld [vmem:[#allocation29_spill] sm:$0xff]  ;;  %v17181_v1 = vld [vmem:[#allocation30_spill] sm:$0xff] }
 0x1e0   :  { %9409 = vmatprep.subr.bf16.mxu0 %v17171_v32  ;;  %9441 = vmatprep.subr.bf16.mxu1 %v17172_v55  ;;  %v17182_v32 = vld [vmem:[#allocation31_spill] sm:$0xff]  ;;  %v17183_v55 = vld [vmem:[#allocation32_spill] sm:$0xff] }
 0x1e3   :  { %9411 = vmatpush1.bf16.msra.mxu0 %v17173_v10  ;;  %9443 = vmatpush1.bf16.msra.mxu1 %v17174_v38  ;;  %v17184_v10 = vld [vmem:[#allocation33_spill] sm:$0xff] }
 0x1e4   :  { %9413 = vmatprep.subr.bf16.mxu0 %v17175_v43  ;;  %9445 = vmatprep.subr.bf16.mxu1 %v17176_v28 }
 0x1e7   :  { %9415 = vmatpush1.bf16.msra.mxu0 %v17177_v9  ;;  %9447 = vmatpush1.bf16.msra.mxu1 %v17178_v4 }
 0x1e8   :  { %9417 = vmatprep.subr.bf16.mxu0 %v17179_v54  ;;  %9449 = vmatprep.subr.bf16.mxu1 %v17180_v61 }
 0x1eb   :  { %9419 = vmatpush1.bf16.msra.mxu0 %v17181_v1  ;;  %9451 = vmatpush1.bf16.msra.mxu1 %v17182_v32  ;;  %v17187_v32 = vld [vmem:[#allocation48_spill] sm:$0xff] }
 0x1ec   :  { %9453 = vmatprep.subr.bf16.mxu0 %v17183_v55  ;;  %9485 = vmatprep.subr.bf16.mxu1 %v17184_v10 }
 0x281   :  { %v1456_v38 = vpop.f32.mrb[2].mxu0  ;;  %v1527_v43 = vpop.f32.mrb[2].mxu1 }
 0x282   :  { %v1536_v28 = vadd.f32 %v1456_v38, %v17185_v51  ;;  %v1458_v49 = vpop.f32.mrb[3].mxu0  ;;  %v1529_v9 = vpop.f32.mrb[3].mxu1  ;;  %v1538_v37 = vadd.f32 %v1527_v43, %v17187_v32  ;;  %v17188_v32 = vld [vmem:[#allocation49_spill] sm:$0xff] }
 0x283   :  { %v1537_v4 = vadd.f32 %v1458_v49, %v17186_v46  ;;  %v1539_v1 = vadd.f32 %v1529_v9, %v13897_v15 }
 0x284   :  { %v8577_v42 = vmul.f32 -1.442695, %v1536_v28 }
 0x285   :  { %v8578_v54 = vmul.f32 -1.442695, %v1537_v4  ;;  %v8579_v61 = vmul.f32 -1.442695, %v1539_v1 }
 0x286   :  { %11759 = vpow2.f32 %v8577_v42 }
 0x287   :  { %11761 = vpow2.f32 %v8578_v54 }
 0x288   :  { %11763 = vpow2.f32 %v8579_v61 }
 0x289   :  { %11765 = vtanh.f32 %v1538_v37 }
 0x290   :  { %v11760_v55 = vpop.eup %11759 }
 0x291   :  { %v11762_v35 = vpop.eup %11761  ;;  %v1698_v10 = vadd.f32 1.0, %v11760_v55 }
 0x292   :  { %v1704_v16 = vadd.f32 1.0, %v11762_v35  ;;  %v11764_v38 = vpop.eup %11763 }
 0x293   :  { %11767 = vrcp.f32 %v1698_v10  ;;  %v11766_v51 = vpop.eup %11765  ;;  %v1711_v42 = vadd.f32 1.0, %v11764_v38 }
 0x294   :  { %11769 = vrcp.f32 %v1704_v16  ;;  %v17189_v16 = vld [vmem:[#allocation50_spill] sm:$0xff] }
 0x295   :  { %11771 = vrcp.f32 %v1711_v42 }
 0x29d   :  { %v11768_v49 = vpop.eup %11767 }
 0x29e   :  { %v11770_v28 = vpop.eup %11769  ;;  %v1715_v4 = vmul.f32 %v11768_v49, %v11766_v51 }
 0x29f   :  { %v1714_v54 = vmul.f32 %v11770_v28, %v13915_v23  ;;  %v11772_v23 = vpop.eup %11771 }
 0x2a1   :  { %v14012_v9 = vadd.f32 %v1715_v4, %v1714_v54  ;;  %v1611_v1 = vpop.f32.mrb[28].mxu0  ;;  %v1682_v43 = vpop.f32.mrb[28].mxu1 }
 0x2a2   :  { %v1691_v55 = vadd.f32 %v1611_v1, %v17188_v32  ;;  %v1613_v61 = vpop.f32.mrb[29].mxu0  ;;  %v1684_v37 = vpop.f32.mrb[29].mxu1  ;;  %v1693_v4 = vadd.f32 %v1682_v43, %v13925_v2 }
 0x2a3   :  { %11773 = vtanh.f32 %v14012_v9  ;;  %v1692_v35 = vadd.f32 %v1613_v61, %v17189_v16  ;;  %v1694_v51 = vadd.f32 %v1684_v37, %v13921_v24 }
 0x2a4   :  { %v8580_v10 = vmul.f32 -1.442695, %v1691_v55 }
 0x2a5   :  { %v8581_v15 = vmul.f32 -1.442695, %v1692_v35  ;;  %v8582_v49 = vmul.f32 -1.442695, %v1694_v51 }
 0x2a6   :  { %11775 = vpow2.f32 %v8580_v10 }
 0x2a7   :  { %11777 = vpow2.f32 %v8581_v15 }
 0x2a8   :  { %11779 = vpow2.f32 %v8582_v49 }
 0x2a9   :  { %11781 = vtanh.f32 %v1693_v4  ;;  %v17192_v4 = vld [vmem:[#allocation10_spill] sm:$0xff] }
 0x2ad   :  { %v11774_v38 = vpop.eup %11773 }
 0x2ae   :  { %v14018_v28 = vmul.f32 %v11774_v38, %v11772_v23 }
 0x2b0   :  { %17190 = vst [vmem:[#allocation35_spill] sm:$0xff] %v14018_v28  ;;  %v11776_v42 = vpop.eup %11775  ;;  %1817 = vmatmul.mubr.f32.vlgmr.msra.gmra.mrb[4].mxu0 %v14018_v28  ;;  %1888 = vmatmul.mubr.f32.vlgmr.msra.gmra.mrb[4].mxu1 %v14018_v28  ;;  %v17206_v28 = vld [vmem:[#allocation24_spill] sm:$0xff] }
 0x2b1   :  { %v11778_v54 = vpop.eup %11777  ;;  %v1722_v1 = vadd.f32 1.0, %v11776_v42  ;;  %9455 = vmatpush1.bf16.msra.mxu0 %v13586_v8  ;;  %9487 = vmatpush1.bf16.msra.mxu1 %v13590_v12  ;;  %v17193_v42 = vld [vmem:[#allocation11_spill] sm:$0xff] }
 0x2b2   :  { %v1728_v15 = vadd.f32 1.0, %v11778_v54  ;;  %9457 = vmatprep.subr.bf16.mxu0 %v13592_v17  ;;  %9489 = vmatprep.subr.bf16.mxu1 %v13605_v21  ;;  %v11780_v43 = vpop.eup %11779  ;;  %v17194_v54 = vld [vmem:[#allocation12_spill] sm:$0xff] }
 0x2b3   :  { %11783 = vrcp.f32 %v1722_v1  ;;  %1971 = vmatprep.mubr.f32.mxu0 %v17151_v53  ;;  %2042 = vmatprep.mubr.f32.mxu1 %v17151_v53  ;;  %v11782_v55 = vpop.eup %11781  ;;  %v1735_v10 = vadd.f32 1.0, %v11780_v43  ;;  %v17195_v1 = vld [vmem:[#allocation13_spill] sm:$0xff]  ;;  %v17197_v43 = vld [vmem:[#allocation15_spill] sm:$0xff] }
 0x2b4   :  { %11785 = vrcp.f32 %v1728_v15  ;;  %v17196_v15 = vld [vmem:[#allocation14_spill] sm:$0xff] }
 0x2b5   :  { %9459 = vmatpush1.bf16.msra.mxu0 %v13626_v34  ;;  %9491 = vmatpush1.bf16.msra.mxu1 %v13630_v25  ;;  %11787 = vrcp.f32 %v1735_v10  ;;  %v17202_v10 = vld [vmem:[#allocation20_spill] sm:$0xff] }
 0x2b6   :  { %9461 = vmatprep.subr.bf16.mxu0 %v13632_v36  ;;  %9493 = vmatprep.subr.bf16.mxu1 %v13644_v47 }
 0x2b9   :  { %9463 = vmatpush1.bf16.msra.mxu0 %v13664_v63  ;;  %9495 = vmatpush1.bf16.msra.mxu1 %v13668_v0 }
 0x2ba   :  { %9465 = vmatprep.subr.bf16.mxu0 %v13670_v59  ;;  %9497 = vmatprep.subr.bf16.mxu1 %v13682_v58 }
 0x2bd   :  { %v11784_v61 = vpop.eup %11783  ;;  %9467 = vmatpush1.bf16.msra.mxu0 %v13700_v33  ;;  %9499 = vmatpush1.bf16.msra.mxu1 %v17163_v44 }
 0x2be   :  { %v11786_v37 = vpop.eup %11785  ;;  %v1739_v35 = vmul.f32 %v11784_v61, %v11782_v55  ;;  %9469 = vmatprep.subr.bf16.mxu0 %v17164_v13  ;;  %9501 = vmatprep.subr.bf16.mxu1 %v17165_v48  ;;  %v17198_v55 = vld [vmem:[#allocation16_spill] sm:$0xff]  ;;  %v17199_v61 = vld [vmem:[#allocation17_spill] sm:$0xff] }
 0x2bf   :  { %v1738_v51 = vmul.f32 %v11786_v37, %v13950_v52  ;;  %v11788_v52 = vpop.eup %11787  ;;  %v17200_v37 = vld [vmem:[#allocation18_spill] sm:$0xff] }
 0x2c1   :  { %v14042_v23 = vadd.f32 %v1739_v35, %v1738_v51  ;;  %9471 = vmatpush1.bf16.msra.mxu0 %v17166_v31  ;;  %9503 = vmatpush1.bf16.msra.mxu1 %v17167_v57  ;;  %v17201_v35 = vld [vmem:[#allocation19_spill] sm:$0xff]  ;;  %v17203_v51 = vld [vmem:[#allocation21_spill] sm:$0xff] }
 0x2c2   :  { %9473 = vmatprep.subr.bf16.mxu0 %v17168_v20  ;;  %9505 = vmatprep.subr.bf16.mxu1 %v17169_v60 }
 0x2c3   :  { %11789 = vtanh.f32 %v14042_v23 }
 0x2c5   :  { %9475 = vmatpush1.bf16.msra.mxu0 %v13772_v18  ;;  %9507 = vmatpush1.bf16.msra.mxu1 %v13776_v7 }
 0x2c6   :  { %9477 = vmatprep.subr.bf16.mxu0 %v13778_v41  ;;  %9509 = vmatprep.subr.bf16.mxu1 %v13790_v29 }
 0x2c9   :  { %9479 = vmatpush1.bf16.msra.mxu0 %v13808_v5  ;;  %9511 = vmatpush1.bf16.msra.mxu1 %v13812_v45 }
 0x2ca   :  { %9481 = vmatprep.subr.bf16.mxu0 %v13814_v27  ;;  %9513 = vmatprep.subr.bf16.mxu1 %v13823_v40 }
 0x2cd   :  { %v11790_v38 = vpop.eup %11789  ;;  %9483 = vmatpush1.bf16.msra.mxu0 %v13832_v39  ;;  %9515 = vmatpush1.bf16.msra.mxu1 %v13836_v50 }
 0x2ce   :  { %v14059_v49 = vmul.f32 %v11790_v38, %v11788_v52  ;;  %9517 = vmatprep.subr.bf16.mxu0 %v13241_v56  ;;  %9549 = vmatprep.subr.bf16.mxu1 %v13249_v62  ;;  %v17204_v52 = vld [vmem:[#allocation22_spill] sm:$0xff]  ;;  %v17205_v38 = vld [vmem:[#allocation23_spill] sm:$0xff] }
 0x2d0   :  { %17191 = vst [vmem:[#allocation36_spill] sm:$0xff] %v14059_v49  ;;  %1972 = vmatmul.mubr.f32.vlgmr.msra.gmra.mrb[26].mxu0 %v14059_v49  ;;  %2043 = vmatmul.mubr.f32.vlgmr.msra.gmra.mrb[26].mxu1 %v14059_v49  ;;  %v17207_v49 = vld [vmem:[#allocation25_spill] sm:$0xff] }
 0x2d1   :  { %9519 = vmatpush1.bf16.msra.mxu0 %v13263_v3  ;;  %9551 = vmatpush1.bf16.msra.mxu1 %v13272_v6 }
 0x2d2   :  { %9521 = vmatprep.subr.bf16.mxu0 %v13281_v11  ;;  %9553 = vmatprep.subr.bf16.mxu1 %v13290_v14 }
 0x2d3   :  { %2178 = vmatprep.mubr.f32.mxu0 %v17151_v53  ;;  %2249 = vmatprep.mubr.f32.mxu1 %v17151_v53 }
 0x2d5   :  { %9523 = vmatpush1.bf16.msra.mxu0 %v13300_v19  ;;  %9555 = vmatpush1.bf16.msra.mxu1 %v13310_v22 }
 0x2d6   :  { %9525 = vmatprep.subr.bf16.mxu0 %v13320_v26  ;;  %9557 = vmatprep.subr.bf16.mxu1 %v13330_v30 }
 0x2d9   :  { %9527 = vmatpush1.bf16.msra.mxu0 %v17192_v4  ;;  %9559 = vmatpush1.bf16.msra.mxu1 %v17193_v42 }
 0x2da   :  { %9529 = vmatprep.subr.bf16.mxu0 %v17194_v54  ;;  %9561 = vmatprep.subr.bf16.mxu1 %v17195_v1 }
 0x2dd   :  { %9531 = vmatpush1.bf16.msra.mxu0 %v17196_v15  ;;  %9563 = vmatpush1.bf16.msra.mxu1 %v17197_v43  ;;  %v17208_v43 = vld [vmem:[#allocation26_spill] sm:$0xff]  ;;  %v17216_v15 = vld [vmem:[#allocation43_spill] sm:$0xff] }
 0x2de   :  { %9533 = vmatprep.subr.bf16.mxu0 %v17198_v55  ;;  %9565 = vmatprep.subr.bf16.mxu1 %v17199_v61  ;;  %v17209_v55 = vld [vmem:[#allocation27_spill] sm:$0xff]  ;;  %v17210_v61 = vld [vmem:[#allocation28_spill] sm:$0xff] }
 0x2e1   :  { %9535 = vmatpush1.bf16.msra.mxu0 %v17200_v37  ;;  %9567 = vmatpush1.bf16.msra.mxu1 %v17201_v35  ;;  %v17211_v37 = vld [vmem:[#allocation29_spill] sm:$0xff]  ;;  %v17212_v35 = vld [vmem:[#allocation30_spill] sm:$0xff] }
 0x2e2   :  { %9537 = vmatprep.subr.bf16.mxu0 %v17202_v10  ;;  %9569 = vmatprep.subr.bf16.mxu1 %v17203_v51  ;;  %v17213_v10 = vld [vmem:[#allocation31_spill] sm:$0xff]  ;;  %v17214_v51 = vld [vmem:[#allocation32_spill] sm:$0xff] }
 0x2e5   :  { %9539 = vmatpush1.bf16.msra.mxu0 %v17204_v52  ;;  %9571 = vmatpush1.bf16.msra.mxu1 %v17205_v38  ;;  %v17215_v52 = vld [vmem:[#allocation33_spill] sm:$0xff] }
 0x2e6   :  { %9541 = vmatprep.subr.bf16.mxu0 %v17206_v28  ;;  %9573 = vmatprep.subr.bf16.mxu1 %v17207_v49 }
 0x2e9   :  { %9543 = vmatpush1.bf16.msra.mxu0 %v17208_v43  ;;  %9575 = vmatpush1.bf16.msra.mxu1 %v17209_v55 }
 0x2ea   :  { %9545 = vmatprep.subr.bf16.mxu0 %v17210_v61  ;;  %9577 = vmatprep.subr.bf16.mxu1 %v17211_v37  ;;  %v17217_v37 = vld [vmem:[#allocation46_spill] sm:$0xff] }
 0x2ed   :  { %9547 = vmatpush1.bf16.msra.mxu0 %v17212_v35  ;;  %9579 = vmatpush1.bf16.msra.mxu1 %v17213_v10  ;;  %v17218_v10 = vld [vmem:[#allocation48_spill] sm:$0xff] }
 0x2ee   :  { %9581 = vmatprep.subr.bf16.mxu0 %v17214_v51  ;;  %9613 = vmatprep.subr.bf16.mxu1 %v17215_v52 }
 0x383   :  { %v1818_v38 = vpop.f32.mrb[4].mxu0  ;;  %v1889_v28 = vpop.f32.mrb[4].mxu1 }
 0x384   :  { %v1898_v49 = vadd.f32 %v1818_v38, %v17216_v15  ;;  %v1820_v1 = vpop.f32.mrb[5].mxu0  ;;  %v1891_v43 = vpop.f32.mrb[5].mxu1  ;;  %v1900_v4 = vadd.f32 %v1889_v28, %v17218_v10 }
 0x385   :  { %v1899_v55 = vadd.f32 %v1820_v1, %v17186_v46  ;;  %v1901_v35 = vadd.f32 %v1891_v43, %v17217_v37 }
 0x386   :  { %v8583_v54 = vmul.f32 -1.442695, %v1898_v49 }
 0x387   :  { %v8584_v61 = vmul.f32 -1.442695, %v1899_v55  ;;  %v8585_v42 = vmul.f32 -1.442695, %v1901_v35 }
 0x388   :  { %11791 = vpow2.f32 %v8583_v54 }
 0x389   :  { %11793 = vpow2.f32 %v8584_v61 }
 0x38a   :  { %11795 = vpow2.f32 %v8585_v42 }
 0x38b   :  { %11797 = vtanh.f32 %v1900_v4 }
 0x392   :  { %v11792_v51 = vpop.eup %11791 }
 0x393   :  { %v11794_v30 = vpop.eup %11793  ;;  %v2060_v52 = vadd.f32 1.0, %v11792_v51 }
 0x394   :  { %v2066_v26 = vadd.f32 1.0, %v11794_v30  ;;  %v11796_v38 = vpop.eup %11795 }
 0x395   :  { %11799 = vrcp.f32 %v2060_v52  ;;  %v11798_v15 = vpop.eup %11797  ;;  %v2073_v54 = vadd.f32 1.0, %v11796_v38 }
 0x396   :  { %11801 = vrcp.f32 %v2066_v26 }
 0x397   :  { %11803 = vrcp.f32 %v2073_v54 }
 0x39f   :  { %v11800_v1 = vpop.eup %11799 }
 0x3a0   :  { %v11802_v49 = vpop.eup %11801  ;;  %v2077_v55 = vmul.f32 %v11800_v1, %v11798_v15 }
 0x3a1   :  { %v2076_v61 = vmul.f32 %v11802_v49, %v14012_v9  ;;  %v11804_v9 = vpop.eup %11803 }
 0x3a3   :  { %v14104_v43 = vadd.f32 %v2077_v55, %v2076_v61  ;;  %v1973_v35 = vpop.f32.mrb[26].mxu0  ;;  %v2044_v28 = vpop.f32.mrb[26].mxu1 }
 0x3a4   :  { %v2053_v51 = vadd.f32 %v1973_v35, %v17188_v32  ;;  %v1975_v42 = vpop.f32.mrb[27].mxu0  ;;  %v2046_v4 = vpop.f32.mrb[27].mxu1  ;;  %v2055_v55 = vadd.f32 %v2044_v28, %v13925_v2 }
 0x3a5   :  { %11805 = vtanh.f32 %v14104_v43  ;;  %v2054_v26 = vadd.f32 %v1975_v42, %v17189_v16  ;;  %v2056_v15 = vadd.f32 %v2046_v4, %v13921_v24 }
 0x3a6   :  { %v8586_v30 = vmul.f32 -1.442695, %v2053_v51 }
 0x3a7   :  { %v8587_v52 = vmul.f32 -1.442695, %v2054_v26  ;;  %v8588_v1 = vmul.f32 -1.442695, %v2056_v15 }
 0x3a8   :  { %11807 = vpow2.f32 %v8586_v30 }
 0x3a9   :  { %11809 = vpow2.f32 %v8587_v52 }
 0x3aa   :  { %11811 = vpow2.f32 %v8588_v1 }
 0x3ab   :  { %11813 = vtanh.f32 %v2055_v55  ;;  %v17221_v55 = vld [vmem:[#allocation8_spill] sm:$0xff] }
 0x3af   :  { %v11806_v38 = vpop.eup %11805 }
 0x3b0   :  { %v14110_v49 = vmul.f32 %v11806_v38, %v11804_v9 }
 0x3b2   :  { %17219 = vst [vmem:[#allocation37_spill] sm:$0xff] %v14110_v49  ;;  %v11808_v54 = vpop.eup %11807  ;;  %2179 = vmatmul.mubr.f32.vlgmr.msra.gmra.mrb[6].mxu0 %v14110_v49  ;;  %2250 = vmatmul.mubr.f32.vlgmr.msra.gmra.mrb[6].mxu1 %v14110_v49  ;;  %v17235_v49 = vld [vmem:[#allocation22_spill] sm:$0xff] }
 0x3b3   :  { %v11810_v61 = vpop.eup %11809  ;;  %v2084_v35 = vadd.f32 1.0, %v11808_v54  ;;  %9583 = vmatpush1.bf16.msra.mxu0 %v13586_v8  ;;  %9615 = vmatpush1.bf16.msra.mxu1 %v13590_v12  ;;  %v17222_v54 = vld [vmem:[#allocation9_spill] sm:$0xff] }
 0x3b4   :  { %v2090_v51 = vadd.f32 1.0, %v11810_v61  ;;  %9585 = vmatprep.subr.bf16.mxu0 %v13592_v17  ;;  %9617 = vmatprep.subr.bf16.mxu1 %v13605_v21  ;;  %v11812_v28 = vpop.eup %11811  ;;  %v17223_v61 = vld [vmem:[#allocation10_spill] sm:$0xff] }
 0x3b5   :  { %11815 = vrcp.f32 %v2084_v35  ;;  %2333 = vmatprep.mubr.f32.mxu0 %v17151_v53  ;;  %2404 = vmatprep.mubr.f32.mxu1 %v17151_v53  ;;  %v11814_v42 = vpop.eup %11813  ;;  %v2097_v52 = vadd.f32 1.0, %v11812_v28  ;;  %v17224_v35 = vld [vmem:[#allocation11_spill] sm:$0xff]  ;;  %v17226_v28 = vld [vmem:[#allocation13_spill] sm:$0xff] }
 0x3b6   :  { %11817 = vrcp.f32 %v2090_v51  ;;  %v17225_v51 = vld [vmem:[#allocation12_spill] sm:$0xff] }
 0x3b7   :  { %9587 = vmatpush1.bf16.msra.mxu0 %v13626_v34  ;;  %9619 = vmatpush1.bf16.msra.mxu1 %v13630_v25  ;;  %11819 = vrcp.f32 %v2097_v52  ;;  %v17231_v52 = vld [vmem:[#allocation18_spill] sm:$0xff] }
 0x3b8   :  { %9589 = vmatprep.subr.bf16.mxu0 %v13632_v36  ;;  %9621 = vmatprep.subr.bf16.mxu1 %v13644_v47 }
 0x3bb   :  { %9591 = vmatpush1.bf16.msra.mxu0 %v13664_v63  ;;  %9623 = vmatpush1.bf16.msra.mxu1 %v13668_v0 }
 0x3bc   :  { %9593 = vmatprep.subr.bf16.mxu0 %v13670_v59  ;;  %9625 = vmatprep.subr.bf16.mxu1 %v13682_v58 }
 0x3bf   :  { %v11816_v4 = vpop.eup %11815  ;;  %9595 = vmatpush1.bf16.msra.mxu0 %v13700_v33  ;;  %9627 = vmatpush1.bf16.msra.mxu1 %v17163_v44 }
 0x3c0   :  { %v11818_v26 = vpop.eup %11817  ;;  %v2101_v30 = vmul.f32 %v11816_v4, %v11814_v42  ;;  %9597 = vmatprep.subr.bf16.mxu0 %v17164_v13  ;;  %9629 = vmatprep.subr.bf16.mxu1 %v17165_v48  ;;  %v17227_v42 = vld [vmem:[#allocation14_spill] sm:$0xff]  ;;  %v17228_v4 = vld [vmem:[#allocation15_spill] sm:$0xff] }
 0x3c1   :  { %v2100_v15 = vmul.f32 %v11818_v26, %v14042_v23  ;;  %v11820_v23 = vpop.eup %11819  ;;  %v17229_v26 = vld [vmem:[#allocation16_spill] sm:$0xff] }
 0x3c3   :  { %v14134_v9 = vadd.f32 %v2101_v30, %v2100_v15  ;;  %9599 = vmatpush1.bf16.msra.mxu0 %v17166_v31  ;;  %9631 = vmatpush1.bf16.msra.mxu1 %v17167_v57  ;;  %v17230_v30 = vld [vmem:[#allocation17_spill] sm:$0xff]  ;;  %v17232_v15 = vld [vmem:[#allocation19_spill] sm:$0xff] }
 0x3c4   :  { %9601 = vmatprep.subr.bf16.mxu0 %v17168_v20  ;;  %9633 = vmatprep.subr.bf16.mxu1 %v17169_v60 }
 0x3c5   :  { %11821 = vtanh.f32 %v14134_v9 }
 0x3c7   :  { %9603 = vmatpush1.bf16.msra.mxu0 %v13772_v18  ;;  %9635 = vmatpush1.bf16.msra.mxu1 %v13776_v7 }
 0x3c8   :  { %9605 = vmatprep.subr.bf16.mxu0 %v13778_v41  ;;  %9637 = vmatprep.subr.bf16.mxu1 %v13790_v29 }
 0x3cb   :  { %9607 = vmatpush1.bf16.msra.mxu0 %v13808_v5  ;;  %9639 = vmatpush1.bf16.msra.mxu1 %v13812_v45 }
 0x3cc   :  { %9609 = vmatprep.subr.bf16.mxu0 %v13814_v27  ;;  %9641 = vmatprep.subr.bf16.mxu1 %v13823_v40 }
 0x3cf   :  { %v11822_v38 = vpop.eup %11821  ;;  %9611 = vmatpush1.bf16.msra.mxu0 %v13832_v39  ;;  %9643 = vmatpush1.bf16.msra.mxu1 %v13836_v50 }
 0x3d0   :  { %v14151_v1 = vmul.f32 %v11822_v38, %v11820_v23  ;;  %9645 = vmatprep.subr.bf16.mxu0 %v13241_v56  ;;  %9677 = vmatprep.subr.bf16.mxu1 %v13249_v62  ;;  %v17233_v23 = vld [vmem:[#allocation20_spill] sm:$0xff]  ;;  %v17234_v38 = vld [vmem:[#allocation21_spill] sm:$0xff] }
 0x3d2   :  { %17220 = vst [vmem:[#allocation38_spill] sm:$0xff] %v14151_v1  ;;  %2334 = vmatmul.mubr.f32.vlgmr.msra.gmra.mrb[24].mxu0 %v14151_v1  ;;  %2405 = vmatmul.mubr.f32.vlgmr.msra.gmra.mrb[24].mxu1 %v14151_v1  ;;  %v17236_v1 = vld [vmem:[#allocation23_spill] sm:$0xff] }
 0x3d3   :  { %9647 = vmatpush1.bf16.msra.mxu0 %v13263_v3  ;;  %9679 = vmatpush1.bf16.msra.mxu1 %v13272_v6 }
 0x3d4   :  { %9649 = vmatprep.subr.bf16.mxu0 %v13281_v11  ;;  %9681 = vmatprep.subr.bf16.mxu1 %v13290_v14 }
 0x3d5   :  { %2540 = vmatprep.mubr.f32.mxu0 %v17151_v53  ;;  %2611 = vmatprep.mubr.f32.mxu1 %v17151_v53 }
 0x3d7   :  { %9651 = vmatpush1.bf16.msra.mxu0 %v13300_v19  ;;  %9683 = vmatpush1.bf16.msra.mxu1 %v13310_v22 }
 0x3d8   :  { %9653 = vmatprep.subr.bf16.mxu0 %v17221_v55  ;;  %9685 = vmatprep.subr.bf16.mxu1 %v17222_v54 }
 0x3db   :  { %9655 = vmatpush1.bf16.msra.mxu0 %v17223_v61  ;;  %9687 = vmatpush1.bf16.msra.mxu1 %v17224_v35 }
 0x3dc   :  { %9657 = vmatprep.subr.bf16.mxu0 %v17225_v51  ;;  %9689 = vmatprep.subr.bf16.mxu1 %v17226_v28  ;;  %v17237_v28 = vld [vmem:[#allocation24_spill] sm:$0xff]  ;;  %v17247_v51 = vld [vmem:[#allocation43_spill] sm:$0xff] }
 0x3df   :  { %9659 = vmatpush1.bf16.msra.mxu0 %v17227_v42  ;;  %9691 = vmatpush1.bf16.msra.mxu1 %v17228_v4  ;;  %v17238_v42 = vld [vmem:[#allocation25_spill] sm:$0xff]  ;;  %v17239_v4 = vld [vmem:[#allocation26_spill] sm:$0xff] }
 0x3e0   :  { %9661 = vmatprep.subr.bf16.mxu0 %v17229_v26  ;;  %9693 = vmatprep.subr.bf16.mxu1 %v17230_v30  ;;  %v17240_v26 = vld [vmem:[#allocation27_spill] sm:$0xff]  ;;  %v17241_v30 = vld [vmem:[#allocation28_spill] sm:$0xff] }
 0x3e3   :  { %9663 = vmatpush1.bf16.msra.mxu0 %v17231_v52  ;;  %9695 = vmatpush1.bf16.msra.mxu1 %v17232_v15  ;;  %v17242_v52 = vld [vmem:[#allocation29_spill] sm:$0xff]  ;;  %v17243_v15 = vld [vmem:[#allocation30_spill] sm:$0xff] }
 0x3e4   :  { %9665 = vmatprep.subr.bf16.mxu0 %v17233_v23  ;;  %9697 = vmatprep.subr.bf16.mxu1 %v17234_v38  ;;  %v17244_v23 = vld [vmem:[#allocation31_spill] sm:$0xff]  ;;  %v17245_v38 = vld [vmem:[#allocation32_spill] sm:$0xff] }
 0x3e7   :  { %9667 = vmatpush1.bf16.msra.mxu0 %v17235_v49  ;;  %9699 = vmatpush1.bf16.msra.mxu1 %v17236_v1  ;;  %v17246_v49 = vld [vmem:[#allocation33_spill] sm:$0xff] }
 0x3e8   :  { %9669 = vmatprep.subr.bf16.mxu0 %v17237_v28  ;;  %9701 = vmatprep.subr.bf16.mxu1 %v17238_v42 }
 0x3eb   :  { %9671 = vmatpush1.bf16.msra.mxu0 %v17239_v4  ;;  %9703 = vmatpush1.bf16.msra.mxu1 %v17240_v26 }
 0x3ec   :  { %9673 = vmatprep.subr.bf16.mxu0 %v17241_v30  ;;  %9705 = vmatprep.subr.bf16.mxu1 %v17242_v52 }
 0x3ef   :  { %9675 = vmatpush1.bf16.msra.mxu0 %v17243_v15  ;;  %9707 = vmatpush1.bf16.msra.mxu1 %v17244_v23 }
 0x3f0   :  { %9709 = vmatprep.subr.bf16.mxu0 %v17245_v38  ;;  %9741 = vmatprep.subr.bf16.mxu1 %v17246_v49 }
 0x485   :  { %v2180_v1 = vpop.f32.mrb[6].mxu0  ;;  %v2251_v28 = vpop.f32.mrb[6].mxu1 }
 0x486   :  { %v2260_v42 = vadd.f32 %v2180_v1, %v17247_v51  ;;  %v2182_v35 = vpop.f32.mrb[7].mxu0  ;;  %v2253_v4 = vpop.f32.mrb[7].mxu1  ;;  %v2262_v23 = vadd.f32 %v2251_v28, %v17218_v10 }
 0x487   :  { %v2261_v26 = vadd.f32 %v2182_v35, %v17186_v46  ;;  %v2263_v15 = vadd.f32 %v2253_v4, %v17217_v37 }
 0x488   :  { %v8589_v61 = vmul.f32 -1.442695, %v2260_v42 }
 0x489   :  { %v8590_v30 = vmul.f32 -1.442695, %v2261_v26  ;;  %v8591_v52 = vmul.f32 -1.442695, %v2263_v15 }
 0x48a   :  { %11823 = vpow2.f32 %v8589_v61 }
 0x48b   :  { %11825 = vpow2.f32 %v8590_v30 }
 0x48c   :  { %11827 = vpow2.f32 %v8591_v52 }
 0x48d   :  { %11829 = vtanh.f32 %v2262_v23 }
 0x494   :  { %v11824_v38 = vpop.eup %11823 }
 0x495   :  { %v11826_v54 = vpop.eup %11825  ;;  %v2422_v49 = vadd.f32 1.0, %v11824_v38 }
 0x496   :  { %v2428_v55 = vadd.f32 1.0, %v11826_v54  ;;  %v11828_v1 = vpop.eup %11827 }
 0x497   :  { %11831 = vrcp.f32 %v2422_v49  ;;  %v11830_v51 = vpop.eup %11829  ;;  %v2435_v61 = vadd.f32 1.0, %v11828_v1 }
 0x498   :  { %11833 = vrcp.f32 %v2428_v55 }
 0x499   :  { %11835 = vrcp.f32 %v2435_v61 }
 0x4a1   :  { %v11832_v35 = vpop.eup %11831 }
 0x4a2   :  { %v11834_v42 = vpop.eup %11833  ;;  %v2439_v26 = vmul.f32 %v11832_v35, %v11830_v51 }
 0x4a3   :  { %v2438_v30 = vmul.f32 %v11834_v42, %v14104_v43  ;;  %v11836_v43 = vpop.eup %11835 }
 0x4a5   :  { %v14196_v4 = vadd.f32 %v2439_v26, %v2438_v30  ;;  %v2335_v15 = vpop.f32.mrb[24].mxu0  ;;  %v2406_v28 = vpop.f32.mrb[24].mxu1 }
 0x4a6   :  { %v2415_v38 = vadd.f32 %v2335_v15, %v17188_v32  ;;  %v2337_v52 = vpop.f32.mrb[25].mxu0  ;;  %v2408_v23 = vpop.f32.mrb[25].mxu1  ;;  %v2417_v26 = vadd.f32 %v2406_v28, %v13925_v2 }
 0x4a7   :  { %11837 = vtanh.f32 %v14196_v4  ;;  %v2416_v49 = vadd.f32 %v2337_v52, %v17189_v16  ;;  %v2418_v51 = vadd.f32 %v2408_v23, %v13921_v24 }
 0x4a8   :  { %v8592_v55 = vmul.f32 -1.442695, %v2415_v38 }
 0x4a9   :  { %v8593_v54 = vmul.f32 -1.442695, %v2416_v49  ;;  %v8594_v35 = vmul.f32 -1.442695, %v2418_v51 }
 0x4aa   :  { %11839 = vpow2.f32 %v8592_v55 }
 0x4ab   :  { %11841 = vpow2.f32 %v8593_v54 }
 0x4ac   :  { %11843 = vpow2.f32 %v8594_v35 }
 0x4ad   :  { %11845 = vtanh.f32 %v2417_v26  ;;  %v17250_v26 = vld [vmem:[#allocation8_spill] sm:$0xff] }
 0x4b1   :  { %v11838_v1 = vpop.eup %11837 }
 0x4b2   :  { %v14202_v42 = vmul.f32 %v11838_v1, %v11836_v43 }
 0x4b4   :  { %17248 = vst [vmem:[#allocation39_spill] sm:$0xff] %v14202_v42  ;;  %v11840_v61 = vpop.eup %11839  ;;  %2541 = vmatmul.mubr.f32.vlgmr.msra.gmra.mrb[8].mxu0 %v14202_v42  ;;  %2612 = vmatmul.mubr.f32.vlgmr.msra.gmra.mrb[8].mxu1 %v14202_v42  ;;  %v17264_v42 = vld [vmem:[#allocation22_spill] sm:$0xff] }
 0x4b5   :  { %v11842_v30 = vpop.eup %11841  ;;  %v2446_v15 = vadd.f32 1.0, %v11840_v61  ;;  %9711 = vmatpush1.bf16.msra.mxu0 %v13586_v8  ;;  %9743 = vmatpush1.bf16.msra.mxu1 %v13590_v12  ;;  %v17251_v61 = vld [vmem:[#allocation9_spill] sm:$0xff] }
 0x4b6   :  { %v2452_v38 = vadd.f32 1.0, %v11842_v30  ;;  %9713 = vmatprep.subr.bf16.mxu0 %v13592_v17  ;;  %9745 = vmatprep.subr.bf16.mxu1 %v13605_v21  ;;  %v11844_v28 = vpop.eup %11843  ;;  %v17252_v30 = vld [vmem:[#allocation10_spill] sm:$0xff] }
 0x4b7   :  { %11847 = vrcp.f32 %v2446_v15  ;;  %2695 = vmatprep.mubr.f32.mxu0 %v17151_v53  ;;  %2766 = vmatprep.mubr.f32.mxu1 %v17151_v53  ;;  %v11846_v52 = vpop.eup %11845  ;;  %v2459_v54 = vadd.f32 1.0, %v11844_v28  ;;  %v17253_v15 = vld [vmem:[#allocation11_spill] sm:$0xff]  ;;  %v17255_v28 = vld [vmem:[#allocation13_spill] sm:$0xff] }
 0x4b8   :  { %11849 = vrcp.f32 %v2452_v38  ;;  %v17254_v38 = vld [vmem:[#allocation12_spill] sm:$0xff] }
 0x4b9   :  { %9715 = vmatpush1.bf16.msra.mxu0 %v13626_v34  ;;  %9747 = vmatpush1.bf16.msra.mxu1 %v13630_v25  ;;  %11851 = vrcp.f32 %v2459_v54  ;;  %v17260_v54 = vld [vmem:[#allocation18_spill] sm:$0xff] }
 0x4ba   :  { %9717 = vmatprep.subr.bf16.mxu0 %v13632_v36  ;;  %9749 = vmatprep.subr.bf16.mxu1 %v13644_v47 }
 0x4bd   :  { %9719 = vmatpush1.bf16.msra.mxu0 %v13664_v63  ;;  %9751 = vmatpush1.bf16.msra.mxu1 %v13668_v0 }
 0x4be   :  { %9721 = vmatprep.subr.bf16.mxu0 %v13670_v59  ;;  %9753 = vmatprep.subr.bf16.mxu1 %v13682_v58 }
 0x4c1   :  { %v11848_v23 = vpop.eup %11847  ;;  %9723 = vmatpush1.bf16.msra.mxu0 %v13700_v33  ;;  %9755 = vmatpush1.bf16.msra.mxu1 %v17163_v44 }
 0x4c2   :  { %v11850_v49 = vpop.eup %11849  ;;  %v2463_v55 = vmul.f32 %v11848_v23, %v11846_v52  ;;  %9725 = vmatprep.subr.bf16.mxu0 %v17164_v13  ;;  %9757 = vmatprep.subr.bf16.mxu1 %v17165_v48  ;;  %v17256_v52 = vld [vmem:[#allocation14_spill] sm:$0xff]  ;;  %v17257_v23 = vld [vmem:[#allocation15_spill] sm:$0xff] }
 0x4c3   :  { %v2462_v51 = vmul.f32 %v11850_v49, %v14134_v9  ;;  %v11852_v9 = vpop.eup %11851  ;;  %v17258_v49 = vld [vmem:[#allocation16_spill] sm:$0xff] }
 0x4c5   :  { %v14226_v43 = vadd.f32 %v2463_v55, %v2462_v51  ;;  %9727 = vmatpush1.bf16.msra.mxu0 %v17166_v31  ;;  %9759 = vmatpush1.bf16.msra.mxu1 %v17167_v57  ;;  %v17259_v55 = vld [vmem:[#allocation17_spill] sm:$0xff]  ;;  %v17261_v51 = vld [vmem:[#allocation19_spill] sm:$0xff] }
 0x4c6   :  { %9729 = vmatprep.subr.bf16.mxu0 %v17168_v20  ;;  %9761 = vmatprep.subr.bf16.mxu1 %v17169_v60 }
 0x4c7   :  { %11853 = vtanh.f32 %v14226_v43 }
 0x4c9   :  { %9731 = vmatpush1.bf16.msra.mxu0 %v13772_v18  ;;  %9763 = vmatpush1.bf16.msra.mxu1 %v13776_v7 }
 0x4ca   :  { %9733 = vmatprep.subr.bf16.mxu0 %v13778_v41  ;;  %9765 = vmatprep.subr.bf16.mxu1 %v13790_v29 }
 0x4cd   :  { %9735 = vmatpush1.bf16.msra.mxu0 %v13808_v5  ;;  %9767 = vmatpush1.bf16.msra.mxu1 %v13812_v45 }
 0x4ce   :  { %9737 = vmatprep.subr.bf16.mxu0 %v13814_v27  ;;  %9769 = vmatprep.subr.bf16.mxu1 %v13823_v40 }
 0x4d1   :  { %v11854_v1 = vpop.eup %11853  ;;  %9739 = vmatpush1.bf16.msra.mxu0 %v13832_v39  ;;  %9771 = vmatpush1.bf16.msra.mxu1 %v13836_v50 }
 0x4d2   :  { %v14243_v35 = vmul.f32 %v11854_v1, %v11852_v9  ;;  %9773 = vmatprep.subr.bf16.mxu0 %v13241_v56  ;;  %9805 = vmatprep.subr.bf16.mxu1 %v13249_v62  ;;  %v17262_v9 = vld [vmem:[#allocation20_spill] sm:$0xff]  ;;  %v17263_v1 = vld [vmem:[#allocation21_spill] sm:$0xff] }
 0x4d4   :  { %17249 = vst [vmem:[#allocation40_spill] sm:$0xff] %v14243_v35  ;;  %2696 = vmatmul.mubr.f32.vlgmr.msra.gmra.mrb[22].mxu0 %v14243_v35  ;;  %2767 = vmatmul.mubr.f32.vlgmr.msra.gmra.mrb[22].mxu1 %v14243_v35  ;;  %v17265_v35 = vld [vmem:[#allocation23_spill] sm:$0xff] }
 0x4d5   :  { %9775 = vmatpush1.bf16.msra.mxu0 %v13263_v3  ;;  %9807 = vmatpush1.bf16.msra.mxu1 %v13272_v6 }
 0x4d6   :  { %9777 = vmatprep.subr.bf16.mxu0 %v13281_v11  ;;  %9809 = vmatprep.subr.bf16.mxu1 %v13290_v14 }
 0x4d7   :  { %2902 = vmatprep.mubr.f32.mxu0 %v17151_v53  ;;  %2973 = vmatprep.mubr.f32.mxu1 %v17151_v53 }
 0x4d9   :  { %9779 = vmatpush1.bf16.msra.mxu0 %v13300_v19  ;;  %9811 = vmatpush1.bf16.msra.mxu1 %v13310_v22 }
 0x4da   :  { %9781 = vmatprep.subr.bf16.mxu0 %v17250_v26  ;;  %9813 = vmatprep.subr.bf16.mxu1 %v17251_v61 }
 0x4dd   :  { %9783 = vmatpush1.bf16.msra.mxu0 %v17252_v30  ;;  %9815 = vmatpush1.bf16.msra.mxu1 %v17253_v15 }
 0x4de   :  { %9785 = vmatprep.subr.bf16.mxu0 %v17254_v38  ;;  %9817 = vmatprep.subr.bf16.mxu1 %v17255_v28  ;;  %v17266_v28 = vld [vmem:[#allocation24_spill] sm:$0xff]  ;;  %v17276_v38 = vld [vmem:[#allocation43_spill] sm:$0xff] }
 0x4e1   :  { %9787 = vmatpush1.bf16.msra.mxu0 %v17256_v52  ;;  %9819 = vmatpush1.bf16.msra.mxu1 %v17257_v23  ;;  %v17267_v52 = vld [vmem:[#allocation25_spill] sm:$0xff]  ;;  %v17268_v23 = vld [vmem:[#allocation26_spill] sm:$0xff] }
 0x4e2   :  { %9789 = vmatprep.subr.bf16.mxu0 %v17258_v49  ;;  %9821 = vmatprep.subr.bf16.mxu1 %v17259_v55  ;;  %v17269_v49 = vld [vmem:[#allocation27_spill] sm:$0xff]  ;;  %v17270_v55 = vld [vmem:[#allocation28_spill] sm:$0xff] }
 0x4e5   :  { %9791 = vmatpush1.bf16.msra.mxu0 %v17260_v54  ;;  %9823 = vmatpush1.bf16.msra.mxu1 %v17261_v51  ;;  %v17271_v54 = vld [vmem:[#allocation29_spill] sm:$0xff]  ;;  %v17272_v51 = vld [vmem:[#allocation30_spill] sm:$0xff] }
 0x4e6   :  { %9793 = vmatprep.subr.bf16.mxu0 %v17262_v9  ;;  %9825 = vmatprep.subr.bf16.mxu1 %v17263_v1  ;;  %v17273_v9 = vld [vmem:[#allocation31_spill] sm:$0xff]  ;;  %v17274_v1 = vld [vmem:[#allocation32_spill] sm:$0xff] }
 0x4e9   :  { %9795 = vmatpush1.bf16.msra.mxu0 %v17264_v42  ;;  %9827 = vmatpush1.bf16.msra.mxu1 %v17265_v35  ;;  %v17275_v42 = vld [vmem:[#allocation33_spill] sm:$0xff] }
 0x4ea   :  { %9797 = vmatprep.subr.bf16.mxu0 %v17266_v28  ;;  %9829 = vmatprep.subr.bf16.mxu1 %v17267_v52 }
 0x4ed   :  { %9799 = vmatpush1.bf16.msra.mxu0 %v17268_v23  ;;  %9831 = vmatpush1.bf16.msra.mxu1 %v17269_v49 }
 0x4ee   :  { %9801 = vmatprep.subr.bf16.mxu0 %v17270_v55  ;;  %9833 = vmatprep.subr.bf16.mxu1 %v17271_v54 }
 0x4f1   :  { %9803 = vmatpush1.bf16.msra.mxu0 %v17272_v51  ;;  %9835 = vmatpush1.bf16.msra.mxu1 %v17273_v9 }
 0x4f2   :  { %9837 = vmatprep.subr.bf16.mxu0 %v17274_v1  ;;  %9869 = vmatprep.subr.bf16.mxu1 %v17275_v42 }
 0x587   :  { %v2542_v35 = vpop.f32.mrb[8].mxu0  ;;  %v2613_v28 = vpop.f32.mrb[8].mxu1 }
 0x588   :  { %v2622_v52 = vadd.f32 %v2542_v35, %v17276_v38  ;;  %v2544_v15 = vpop.f32.mrb[9].mxu0  ;;  %v2615_v23 = vpop.f32.mrb[9].mxu1  ;;  %v2624_v9 = vadd.f32 %v2613_v28, %v17218_v10 }
 0x589   :  { %v2623_v49 = vadd.f32 %v2544_v15, %v17186_v46  ;;  %v2625_v51 = vadd.f32 %v2615_v23, %v17217_v37 }
 0x58a   :  { %v8595_v30 = vmul.f32 -1.442695, %v2622_v52 }
 0x58b   :  { %v8596_v55 = vmul.f32 -1.442695, %v2623_v49  ;;  %v8597_v54 = vmul.f32 -1.442695, %v2625_v51 }
 0x58c   :  { %11855 = vpow2.f32 %v8595_v30 }
 0x58d   :  { %11857 = vpow2.f32 %v8596_v55 }
 0x58e   :  { %11859 = vpow2.f32 %v8597_v54 }
 0x58f   :  { %11861 = vtanh.f32 %v2624_v9 }
 0x596   :  { %v11856_v1 = vpop.eup %11855 }
 0x597   :  { %v11858_v61 = vpop.eup %11857  ;;  %v2784_v42 = vadd.f32 1.0, %v11856_v1 }
 0x598   :  { %v2790_v26 = vadd.f32 1.0, %v11858_v61  ;;  %v11860_v35 = vpop.eup %11859 }
 0x599   :  { %11863 = vrcp.f32 %v2784_v42  ;;  %v11862_v38 = vpop.eup %11861  ;;  %v2797_v30 = vadd.f32 1.0, %v11860_v35 }
 0x59a   :  { %11865 = vrcp.f32 %v2790_v26 }
 0x59b   :  { %11867 = vrcp.f32 %v2797_v30 }
 0x5a3   :  { %v11864_v15 = vpop.eup %11863 }
 0x5a4   :  { %v11866_v52 = vpop.eup %11865  ;;  %v2801_v49 = vmul.f32 %v11864_v15, %v11862_v38 }
 0x5a5   :  { %v2800_v55 = vmul.f32 %v11866_v52, %v14196_v4  ;;  %v11868_v4 = vpop.eup %11867 }
 0x5a7   :  { %v14288_v23 = vadd.f32 %v2801_v49, %v2800_v55  ;;  %v2697_v51 = vpop.f32.mrb[22].mxu0  ;;  %v2768_v28 = vpop.f32.mrb[22].mxu1 }
 0x5a8   :  { %v2777_v1 = vadd.f32 %v2697_v51, %v17188_v32  ;;  %v2699_v54 = vpop.f32.mrb[23].mxu0  ;;  %v2770_v9 = vpop.f32.mrb[23].mxu1  ;;  %v2779_v49 = vadd.f32 %v2768_v28, %v13925_v2 }
 0x5a9   :  { %11869 = vtanh.f32 %v14288_v23  ;;  %v2778_v42 = vadd.f32 %v2699_v54, %v17189_v16  ;;  %v2780_v38 = vadd.f32 %v2770_v9, %v13921_v24 }
 0x5aa   :  { %v8598_v26 = vmul.f32 -1.442695, %v2777_v1 }
 0x5ab   :  { %v8599_v61 = vmul.f32 -1.442695, %v2778_v42  ;;  %v8600_v15 = vmul.f32 -1.442695, %v2780_v38 }
 0x5ac   :  { %11871 = vpow2.f32 %v8598_v26 }
 0x5ad   :  { %11873 = vpow2.f32 %v8599_v61 }
 0x5ae   :  { %11875 = vpow2.f32 %v8600_v15 }
 0x5af   :  { %11877 = vtanh.f32 %v2779_v49  ;;  %v17279_v49 = vld [vmem:[#allocation8_spill] sm:$0xff] }
 0x5b3   :  { %v11870_v35 = vpop.eup %11869 }
 0x5b4   :  { %v14294_v52 = vmul.f32 %v11870_v35, %v11868_v4 }
 0x5b6   :  { %17277 = vst [vmem:[#allocation44_spill] sm:$0xff] %v14294_v52  ;;  %v11872_v30 = vpop.eup %11871  ;;  %2903 = vmatmul.mubr.f32.vlgmr.msra.gmra.mrb[10].mxu0 %v14294_v52  ;;  %2974 = vmatmul.mubr.f32.vlgmr.msra.gmra.mrb[10].mxu1 %v14294_v52  ;;  %v17293_v52 = vld [vmem:[#allocation22_spill] sm:$0xff] }
 0x5b7   :  { %v11874_v55 = vpop.eup %11873  ;;  %v2808_v51 = vadd.f32 1.0, %v11872_v30  ;;  %9839 = vmatpush1.bf16.msra.mxu0 %v13586_v8  ;;  %9871 = vmatpush1.bf16.msra.mxu1 %v13590_v12  ;;  %v17280_v30 = vld [vmem:[#allocation9_spill] sm:$0xff] }
 0x5b8   :  { %v2814_v1 = vadd.f32 1.0, %v11874_v55  ;;  %9841 = vmatprep.subr.bf16.mxu0 %v13592_v17  ;;  %9873 = vmatprep.subr.bf16.mxu1 %v13605_v21  ;;  %v11876_v28 = vpop.eup %11875  ;;  %v17281_v55 = vld [vmem:[#allocation10_spill] sm:$0xff] }
 0x5b9   :  { %11879 = vrcp.f32 %v2808_v51  ;;  %3057 = vmatprep.mubr.f32.mxu0 %v17151_v53  ;;  %3128 = vmatprep.mubr.f32.mxu1 %v17151_v53  ;;  %v11878_v54 = vpop.eup %11877  ;;  %v2821_v61 = vadd.f32 1.0, %v11876_v28  ;;  %v17282_v51 = vld [vmem:[#allocation11_spill] sm:$0xff]  ;;  %v17284_v28 = vld [vmem:[#allocation13_spill] sm:$0xff] }
 0x5ba   :  { %11881 = vrcp.f32 %v2814_v1  ;;  %v17283_v1 = vld [vmem:[#allocation12_spill] sm:$0xff] }
 0x5bb   :  { %9843 = vmatpush1.bf16.msra.mxu0 %v13626_v34  ;;  %9875 = vmatpush1.bf16.msra.mxu1 %v13630_v25  ;;  %11883 = vrcp.f32 %v2821_v61  ;;  %v17289_v61 = vld [vmem:[#allocation18_spill] sm:$0xff] }
 0x5bc   :  { %9845 = vmatprep.subr.bf16.mxu0 %v13632_v36  ;;  %9877 = vmatprep.subr.bf16.mxu1 %v13644_v47 }
 0x5bf   :  { %9847 = vmatpush1.bf16.msra.mxu0 %v13664_v63  ;;  %9879 = vmatpush1.bf16.msra.mxu1 %v13668_v0 }
 0x5c0   :  { %9849 = vmatprep.subr.bf16.mxu0 %v13670_v59  ;;  %9881 = vmatprep.subr.bf16.mxu1 %v13682_v58 }
 0x5c3   :  { %v11880_v9 = vpop.eup %11879  ;;  %9851 = vmatpush1.bf16.msra.mxu0 %v13700_v33  ;;  %9883 = vmatpush1.bf16.msra.mxu1 %v17163_v44 }
 0x5c4   :  { %v11882_v42 = vpop.eup %11881  ;;  %v2825_v26 = vmul.f32 %v11880_v9, %v11878_v54  ;;  %9853 = vmatprep.subr.bf16.mxu0 %v17164_v13  ;;  %9885 = vmatprep.subr.bf16.mxu1 %v17165_v48  ;;  %v17285_v54 = vld [vmem:[#allocation14_spill] sm:$0xff]  ;;  %v17286_v9 = vld [vmem:[#allocation15_spill] sm:$0xff] }
 0x5c5   :  { %v2824_v38 = vmul.f32 %v11882_v42, %v14226_v43  ;;  %v11884_v43 = vpop.eup %11883  ;;  %v17287_v42 = vld [vmem:[#allocation16_spill] sm:$0xff] }
 0x5c7   :  { %v14318_v4 = vadd.f32 %v2825_v26, %v2824_v38  ;;  %9855 = vmatpush1.bf16.msra.mxu0 %v17166_v31  ;;  %9887 = vmatpush1.bf16.msra.mxu1 %v17167_v57  ;;  %v17288_v26 = vld [vmem:[#allocation17_spill] sm:$0xff]  ;;  %v17290_v38 = vld [vmem:[#allocation19_spill] sm:$0xff] }
 0x5c8   :  { %9857 = vmatprep.subr.bf16.mxu0 %v17168_v20  ;;  %9889 = vmatprep.subr.bf16.mxu1 %v17169_v60 }
 0x5c9   :  { %11885 = vtanh.f32 %v14318_v4 }
 0x5cb   :  { %9859 = vmatpush1.bf16.msra.mxu0 %v13772_v18  ;;  %9891 = vmatpush1.bf16.msra.mxu1 %v13776_v7 }
 0x5cc   :  { %9861 = vmatprep.subr.bf16.mxu0 %v13778_v41  ;;  %9893 = vmatprep.subr.bf16.mxu1 %v13790_v29 }
 0x5cf   :  { %9863 = vmatpush1.bf16.msra.mxu0 %v13808_v5  ;;  %9895 = vmatpush1.bf16.msra.mxu1 %v13812_v45 }
 0x5d0   :  { %9865 = vmatprep.subr.bf16.mxu0 %v13814_v27  ;;  %9897 = vmatprep.subr.bf16.mxu1 %v13823_v40 }
 0x5d3   :  { %v11886_v35 = vpop.eup %11885  ;;  %9867 = vmatpush1.bf16.msra.mxu0 %v13832_v39  ;;  %9899 = vmatpush1.bf16.msra.mxu1 %v13836_v50 }
 0x5d4   :  { %v14335_v15 = vmul.f32 %v11886_v35, %v11884_v43  ;;  %9901 = vmatprep.subr.bf16.mxu0 %v13241_v56  ;;  %9933 = vmatprep.subr.bf16.mxu1 %v13249_v62  ;;  %v17291_v43 = vld [vmem:[#allocation20_spill] sm:$0xff]  ;;  %v17292_v35 = vld [vmem:[#allocation21_spill] sm:$0xff] }
 0x5d6   :  { %17278 = vst [vmem:[#allocation49_spill] sm:$0xff] %v14335_v15  ;;  %3058 = vmatmul.mubr.f32.vlgmr.msra.gmra.mrb[20].mxu0 %v14335_v15  ;;  %3129 = vmatmul.mubr.f32.vlgmr.msra.gmra.mrb[20].mxu1 %v14335_v15  ;;  %v17294_v15 = vld [vmem:[#allocation23_spill] sm:$0xff] }
 0x5d7   :  { %9903 = vmatpush1.bf16.msra.mxu0 %v13263_v3  ;;  %9935 = vmatpush1.bf16.msra.mxu1 %v13272_v6 }
 0x5d8   :  { %9905 = vmatprep.subr.bf16.mxu0 %v13281_v11  ;;  %9937 = vmatprep.subr.bf16.mxu1 %v13290_v14 }
 0x5d9   :  { %3264 = vmatprep.mubr.f32.mxu0 %v17151_v53  ;;  %3335 = vmatprep.mubr.f32.mxu1 %v17151_v53 }
 0x5db   :  { %9907 = vmatpush1.bf16.msra.mxu0 %v13300_v19  ;;  %9939 = vmatpush1.bf16.msra.mxu1 %v13310_v22 }
 0x5dc   :  { %9909 = vmatprep.subr.bf16.mxu0 %v17279_v49  ;;  %9941 = vmatprep.subr.bf16.mxu1 %v17280_v30 }
 0x5df   :  { %9911 = vmatpush1.bf16.msra.mxu0 %v17281_v55  ;;  %9943 = vmatpush1.bf16.msra.mxu1 %v17282_v51 }
 0x5e0   :  { %9913 = vmatprep.subr.bf16.mxu0 %v17283_v1  ;;  %9945 = vmatprep.subr.bf16.mxu1 %v17284_v28  ;;  %v17295_v28 = vld [vmem:[#allocation24_spill] sm:$0xff]  ;;  %v17305_v1 = vld [vmem:[#allocation43_spill] sm:$0xff] }
 0x5e3   :  { %9915 = vmatpush1.bf16.msra.mxu0 %v17285_v54  ;;  %9947 = vmatpush1.bf16.msra.mxu1 %v17286_v9  ;;  %v17296_v54 = vld [vmem:[#allocation25_spill] sm:$0xff]  ;;  %v17297_v9 = vld [vmem:[#allocation26_spill] sm:$0xff] }
 0x5e4   :  { %9917 = vmatprep.subr.bf16.mxu0 %v17287_v42  ;;  %9949 = vmatprep.subr.bf16.mxu1 %v17288_v26  ;;  %v17298_v42 = vld [vmem:[#allocation27_spill] sm:$0xff]  ;;  %v17299_v26 = vld [vmem:[#allocation28_spill] sm:$0xff] }
 0x5e7   :  { %9919 = vmatpush1.bf16.msra.mxu0 %v17289_v61  ;;  %9951 = vmatpush1.bf16.msra.mxu1 %v17290_v38  ;;  %v17300_v61 = vld [vmem:[#allocation29_spill] sm:$0xff]  ;;  %v17301_v38 = vld [vmem:[#allocation30_spill] sm:$0xff] }
 0x5e8   :  { %9921 = vmatprep.subr.bf16.mxu0 %v17291_v43  ;;  %9953 = vmatprep.subr.bf16.mxu1 %v17292_v35  ;;  %v17302_v43 = vld [vmem:[#allocation31_spill] sm:$0xff]  ;;  %v17303_v35 = vld [vmem:[#allocation32_spill] sm:$0xff] }
 0x5eb   :  { %9923 = vmatpush1.bf16.msra.mxu0 %v17293_v52  ;;  %9955 = vmatpush1.bf16.msra.mxu1 %v17294_v15  ;;  %v17304_v52 = vld [vmem:[#allocation33_spill] sm:$0xff] }
 0x5ec   :  { %9925 = vmatprep.subr.bf16.mxu0 %v17295_v28  ;;  %9957 = vmatprep.subr.bf16.mxu1 %v17296_v54 }
 0x5ef   :  { %9927 = vmatpush1.bf16.msra.mxu0 %v17297_v9  ;;  %9959 = vmatpush1.bf16.msra.mxu1 %v17298_v42 }
 0x5f0   :  { %9929 = vmatprep.subr.bf16.mxu0 %v17299_v26  ;;  %9961 = vmatprep.subr.bf16.mxu1 %v17300_v61 }
 0x5f3   :  { %9931 = vmatpush1.bf16.msra.mxu0 %v17301_v38  ;;  %9963 = vmatpush1.bf16.msra.mxu1 %v17302_v43 }
 0x5f4   :  { %9965 = vmatprep.subr.bf16.mxu0 %v17303_v35  ;;  %9997 = vmatprep.subr.bf16.mxu1 %v17304_v52 }
 0x689   :  { %v2904_v15 = vpop.f32.mrb[10].mxu0  ;;  %v2975_v28 = vpop.f32.mrb[10].mxu1 }
 0x68a   :  { %v2984_v54 = vadd.f32 %v2904_v15, %v17305_v1  ;;  %v2906_v51 = vpop.f32.mrb[11].mxu0  ;;  %v2977_v9 = vpop.f32.mrb[11].mxu1  ;;  %v2986_v43 = vadd.f32 %v2975_v28, %v17218_v10 }
 0x68b   :  { %v2985_v42 = vadd.f32 %v2906_v51, %v17186_v46  ;;  %v2987_v38 = vadd.f32 %v2977_v9, %v17217_v37 }
 0x68c   :  { %v8601_v55 = vmul.f32 -1.442695, %v2984_v54 }
 0x68d   :  { %v8602_v26 = vmul.f32 -1.442695, %v2985_v42  ;;  %v8603_v61 = vmul.f32 -1.442695, %v2987_v38 }
 0x68e   :  { %11887 = vpow2.f32 %v8601_v55 }
 0x68f   :  { %11889 = vpow2.f32 %v8602_v26 }
 0x690   :  { %11891 = vpow2.f32 %v8603_v61 }
 0x691   :  { %11893 = vtanh.f32 %v2986_v43 }
 0x698   :  { %v11888_v35 = vpop.eup %11887 }
 0x699   :  { %v11890_v30 = vpop.eup %11889  ;;  %v3146_v52 = vadd.f32 1.0, %v11888_v35 }
 0x69a   :  { %v3152_v49 = vadd.f32 1.0, %v11890_v30  ;;  %v11892_v15 = vpop.eup %11891 }
 0x69b   :  { %11895 = vrcp.f32 %v3146_v52  ;;  %v11894_v1 = vpop.eup %11893  ;;  %v3159_v55 = vadd.f32 1.0, %v11892_v15 }
 0x69c   :  { %11897 = vrcp.f32 %v3152_v49 }
 0x69d   :  { %11899 = vrcp.f32 %v3159_v55 }
 0x6a5   :  { %v11896_v51 = vpop.eup %11895 }
 0x6a6   :  { %v11898_v54 = vpop.eup %11897  ;;  %v3163_v42 = vmul.f32 %v11896_v51, %v11894_v1 }
 0x6a7   :  { %v3162_v26 = vmul.f32 %v11898_v54, %v14288_v23  ;;  %v11900_v23 = vpop.eup %11899 }
 0x6a9   :  { %v14380_v9 = vadd.f32 %v3163_v42, %v3162_v26  ;;  %v3059_v38 = vpop.f32.mrb[20].mxu0  ;;  %v3130_v28 = vpop.f32.mrb[20].mxu1 }
 0x6aa   :  { %v3139_v35 = vadd.f32 %v3059_v38, %v17188_v32  ;;  %v3061_v61 = vpop.f32.mrb[21].mxu0  ;;  %v3132_v43 = vpop.f32.mrb[21].mxu1  ;;  %v3141_v42 = vadd.f32 %v3130_v28, %v13925_v2 }
 0x6ab   :  { %11901 = vtanh.f32 %v14380_v9  ;;  %v3140_v52 = vadd.f32 %v3061_v61, %v17189_v16  ;;  %v3142_v1 = vadd.f32 %v3132_v43, %v13921_v24 }
 0x6ac   :  { %v8604_v49 = vmul.f32 -1.442695, %v3139_v35 }
 0x6ad   :  { %v8605_v30 = vmul.f32 -1.442695, %v3140_v52  ;;  %v8606_v51 = vmul.f32 -1.442695, %v3142_v1 }
 0x6ae   :  { %11903 = vpow2.f32 %v8604_v49 }
 0x6af   :  { %11905 = vpow2.f32 %v8605_v30 }
 0x6b0   :  { %11907 = vpow2.f32 %v8606_v51 }
 0x6b1   :  { %11909 = vtanh.f32 %v3141_v42  ;;  %v17308_v42 = vld [vmem:[#allocation10_spill] sm:$0xff] }
 0x6b5   :  { %v11902_v15 = vpop.eup %11901 }
 0x6b6   :  { %v14386_v54 = vmul.f32 %v11902_v15, %v11900_v23 }
 0x6b8   :  { %v11904_v55 = vpop.eup %11903  ;;  %3265 = vmatmul.mubr.f32.vlgmr.msra.gmra.mrb[12].mxu0 %v14386_v54  ;;  %3336 = vmatmul.mubr.f32.vlgmr.msra.gmra.mrb[12].mxu1 %v14386_v54 }
 0x6b9   :  { %v11906_v26 = vpop.eup %11905  ;;  %v3170_v38 = vadd.f32 1.0, %v11904_v55  ;;  %9967 = vmatpush1.bf16.msra.mxu0 %v13586_v8  ;;  %9999 = vmatpush1.bf16.msra.mxu1 %v13590_v12  ;;  %v17313_v55 = vld [vmem:[#allocation15_spill] sm:$0xff] }
 0x6ba   :  { %v3176_v35 = vadd.f32 1.0, %v11906_v26  ;;  %9969 = vmatprep.subr.bf16.mxu0 %v13592_v17  ;;  %10001 = vmatprep.subr.bf16.mxu1 %v13605_v21  ;;  %v11908_v28 = vpop.eup %11907  ;;  %v17314_v26 = vld [vmem:[#allocation16_spill] sm:$0xff] }
 0x6bb   :  { %11911 = vrcp.f32 %v3170_v38  ;;  %3419 = vmatprep.mubr.f32.mxu0 %v17151_v53  ;;  %3490 = vmatprep.mubr.f32.mxu1 %v17151_v53  ;;  %v11910_v61 = vpop.eup %11909  ;;  %v3183_v30 = vadd.f32 1.0, %v11908_v28  ;;  %v17317_v38 = vld [vmem:[#allocation19_spill] sm:$0xff]  ;;  %v17319_v28 = vld [vmem:[#allocation21_spill] sm:$0xff] }
 0x6bc   :  { %11913 = vrcp.f32 %v3176_v35  ;;  %v17318_v35 = vld [vmem:[#allocation20_spill] sm:$0xff] }
 0x6bd   :  { %9971 = vmatpush1.bf16.msra.mxu0 %v13626_v34  ;;  %10003 = vmatpush1.bf16.msra.mxu1 %v13630_v25  ;;  %11915 = vrcp.f32 %v3183_v30  ;;  %v17324_v30 = vld [vmem:[#allocation26_spill] sm:$0xff] }
 0x6be   :  { %9973 = vmatprep.subr.bf16.mxu0 %v13632_v36  ;;  %10005 = vmatprep.subr.bf16.mxu1 %v13644_v47 }
 0x6c1   :  { %9975 = vmatpush1.bf16.msra.mxu0 %v13664_v63  ;;  %10007 = vmatpush1.bf16.msra.mxu1 %v13668_v0 }
 0x6c2   :  { %9977 = vmatprep.subr.bf16.mxu0 %v13670_v59  ;;  %10009 = vmatprep.subr.bf16.mxu1 %v13682_v58 }
 0x6c5   :  { %v11912_v43 = vpop.eup %11911  ;;  %9979 = vmatpush1.bf16.msra.mxu0 %v13700_v33  ;;  %10011 = vmatpush1.bf16.msra.mxu1 %v17163_v44 }
 0x6c6   :  { %v11914_v52 = vpop.eup %11913  ;;  %v3187_v49 = vmul.f32 %v11912_v43, %v11910_v61  ;;  %9981 = vmatprep.subr.bf16.mxu0 %v17164_v13  ;;  %10013 = vmatprep.subr.bf16.mxu1 %v17165_v48  ;;  %v17320_v61 = vld [vmem:[#allocation22_spill] sm:$0xff]  ;;  %v17321_v43 = vld [vmem:[#allocation23_spill] sm:$0xff] }
 0x6c7   :  { %v3186_v1 = vmul.f32 %v11914_v52, %v14318_v4  ;;  %v11916_v4 = vpop.eup %11915  ;;  %v17322_v52 = vld [vmem:[#allocation24_spill] sm:$0xff] }
 0x6c9   :  { %v14410_v23 = vadd.f32 %v3187_v49, %v3186_v1  ;;  %9983 = vmatpush1.bf16.msra.mxu0 %v17166_v31  ;;  %10015 = vmatpush1.bf16.msra.mxu1 %v17167_v57  ;;  %v17323_v49 = vld [vmem:[#allocation25_spill] sm:$0xff]  ;;  %v17325_v1 = vld [vmem:[#allocation27_spill] sm:$0xff] }
 0x6ca   :  { %9985 = vmatprep.subr.bf16.mxu0 %v17168_v20  ;;  %10017 = vmatprep.subr.bf16.mxu1 %v17169_v60 }
 0x6cb   :  { %11917 = vtanh.f32 %v14410_v23 }
 0x6cd   :  { %9987 = vmatpush1.bf16.msra.mxu0 %v13772_v18  ;;  %10019 = vmatpush1.bf16.msra.mxu1 %v13776_v7 }
 0x6ce   :  { %9989 = vmatprep.subr.bf16.mxu0 %v13778_v41  ;;  %10021 = vmatprep.subr.bf16.mxu1 %v13790_v29 }
 0x6d1   :  { %9991 = vmatpush1.bf16.msra.mxu0 %v13808_v5  ;;  %10023 = vmatpush1.bf16.msra.mxu1 %v13812_v45 }
 0x6d2   :  { %9993 = vmatprep.subr.bf16.mxu0 %v13814_v27  ;;  %10025 = vmatprep.subr.bf16.mxu1 %v13823_v40 }
 0x6d5   :  { %v11918_v15 = vpop.eup %11917  ;;  %9995 = vmatpush1.bf16.msra.mxu0 %v13832_v39  ;;  %10027 = vmatpush1.bf16.msra.mxu1 %v13836_v50 }
 0x6d6   :  { %v14427_v51 = vmul.f32 %v11918_v15, %v11916_v4  ;;  %10029 = vmatprep.subr.bf16.mxu0 %v13241_v56  ;;  %10061 = vmatprep.subr.bf16.mxu1 %v13249_v62  ;;  %v17306_v56 = vld [vmem:[#allocation8_spill] sm:$0xff]  ;;  %v17307_v62 = vld [vmem:[#allocation9_spill] sm:$0xff] }
 0x6d7   :  { %v17326_v4 = vld [vmem:[#allocation28_spill] sm:$0xff]  ;;  %v17327_v15 = vld [vmem:[#allocation29_spill] sm:$0xff] }
 0x6d8   :  { %3420 = vmatmul.mubr.f32.vlgmr.msra.gmra.mrb[18].mxu0 %v14427_v51  ;;  %3491 = vmatmul.mubr.f32.vlgmr.msra.gmra.mrb[18].mxu1 %v14427_v51 }
 0x6d9   :  { %10031 = vmatpush1.bf16.msra.mxu0 %v13263_v3  ;;  %10063 = vmatpush1.bf16.msra.mxu1 %v13272_v6  ;;  %v17309_v3 = vld [vmem:[#allocation11_spill] sm:$0xff]  ;;  %v17310_v6 = vld [vmem:[#allocation12_spill] sm:$0xff] }
 0x6da   :  { %10033 = vmatprep.subr.bf16.mxu0 %v13281_v11  ;;  %10065 = vmatprep.subr.bf16.mxu1 %v13290_v14  ;;  %v17311_v11 = vld [vmem:[#allocation13_spill] sm:$0xff]  ;;  %v17312_v14 = vld [vmem:[#allocation14_spill] sm:$0xff] }
 0x6db   :  { %3626 = vmatprep.mubr.f32.mxu0 %v17151_v53  ;;  %3697 = vmatprep.mubr.f32.mxu1 %v17151_v53 }
 0x6dd   :  { %10035 = vmatpush1.bf16.msra.mxu0 %v13300_v19  ;;  %10067 = vmatpush1.bf16.msra.mxu1 %v13310_v22  ;;  %v17315_v19 = vld [vmem:[#allocation17_spill] sm:$0xff]  ;;  %v17316_v22 = vld [vmem:[#allocation18_spill] sm:$0xff] }
 0x6de   :  { %10037 = vmatprep.subr.bf16.mxu0 %v17306_v56  ;;  %10069 = vmatprep.subr.bf16.mxu1 %v17307_v62  ;;  %v17328_v56 = vld [vmem:[#allocation30_spill] sm:$0xff]  ;;  %v17329_v62 = vld [vmem:[#allocation31_spill] sm:$0xff] }
 0x6e1   :  { %10039 = vmatpush1.bf16.msra.mxu0 %v17308_v42  ;;  %10071 = vmatpush1.bf16.msra.mxu1 %v17309_v3  ;;  %v17330_v42 = vld [vmem:[#allocation32_spill] sm:$0xff]  ;;  %v17331_v3 = vld [vmem:[#allocation33_spill] sm:$0xff] }
 0x6e2   :  { %10041 = vmatprep.subr.bf16.mxu0 %v17310_v6  ;;  %10073 = vmatprep.subr.bf16.mxu1 %v17311_v11 }
 0x6e5   :  { %10043 = vmatpush1.bf16.msra.mxu0 %v17312_v14  ;;  %10075 = vmatpush1.bf16.msra.mxu1 %v17313_v55  ;;  %v17332_v14 = vld [vmem:[#allocation43_spill] sm:$0xff] }
 0x6e6   :  { %10045 = vmatprep.subr.bf16.mxu0 %v17314_v26  ;;  %10077 = vmatprep.subr.bf16.mxu1 %v17315_v19 }
 0x6e9   :  { %10047 = vmatpush1.bf16.msra.mxu0 %v17316_v22  ;;  %10079 = vmatpush1.bf16.msra.mxu1 %v17317_v38 }
 0x6ea   :  { %10049 = vmatprep.subr.bf16.mxu0 %v17318_v35  ;;  %10081 = vmatprep.subr.bf16.mxu1 %v17319_v28 }
 0x6ed   :  { %10051 = vmatpush1.bf16.msra.mxu0 %v17320_v61  ;;  %10083 = vmatpush1.bf16.msra.mxu1 %v17321_v43 }
 0x6ee   :  { %10053 = vmatprep.subr.bf16.mxu0 %v17322_v52  ;;  %10085 = vmatprep.subr.bf16.mxu1 %v17323_v49 }
 0x6f1   :  { %10055 = vmatpush1.bf16.msra.mxu0 %v17324_v30  ;;  %10087 = vmatpush1.bf16.msra.mxu1 %v17325_v1 }
 0x6f2   :  { %10057 = vmatprep.subr.bf16.mxu0 %v17326_v4  ;;  %10089 = vmatprep.subr.bf16.mxu1 %v17327_v15 }
 0x6f5   :  { %10059 = vmatpush1.bf16.msra.mxu0 %v17328_v56  ;;  %10091 = vmatpush1.bf16.msra.mxu1 %v17329_v62 }
 0x6f6   :  { %10093 = vmatprep.subr.bf16.mxu0 %v17330_v42  ;;  %10125 = vmatprep.subr.bf16.mxu1 %v17331_v3 }
 0x78b   :  { %v3266_v6 = vpop.f32.mrb[12].mxu0  ;;  %v3337_v11 = vpop.f32.mrb[12].mxu1 }
 0x78c   :  { %v3346_v55 = vadd.f32 %v3266_v6, %v17332_v14  ;;  %v3268_v26 = vpop.f32.mrb[13].mxu0  ;;  %v3339_v19 = vpop.f32.mrb[13].mxu1  ;;  %v3348_v43 = vadd.f32 %v3337_v11, %v17218_v10 }
 0x78d   :  { %v3347_v22 = vadd.f32 %v3268_v26, %v17186_v46  ;;  %v3349_v28 = vadd.f32 %v3339_v19, %v17217_v37 }
 0x78e   :  { %v8607_v38 = vmul.f32 -1.442695, %v3346_v55 }
 0x78f   :  { %v8608_v35 = vmul.f32 -1.442695, %v3347_v22  ;;  %v8609_v61 = vmul.f32 -1.442695, %v3349_v28 }
 0x790   :  { %11919 = vpow2.f32 %v8607_v38 }
 0x791   :  { %11921 = vpow2.f32 %v8608_v35 }
 0x792   :  { %11923 = vpow2.f32 %v8609_v61 }
 0x793   :  { %11925 = vtanh.f32 %v3348_v43 }
 0x79a   :  { %v11920_v52 = vpop.eup %11919 }
 0x79b   :  { %v11922_v49 = vpop.eup %11921  ;;  %v3508_v30 = vadd.f32 1.0, %v11920_v52 }
 0x79c   :  { %v3514_v1 = vadd.f32 1.0, %v11922_v49  ;;  %v11924_v4 = vpop.eup %11923 }
 0x79d   :  { %11927 = vrcp.f32 %v3508_v30  ;;  %v11926_v15 = vpop.eup %11925  ;;  %v3521_v3 = vadd.f32 1.0, %v11924_v4 }
 0x79e   :  { %11929 = vrcp.f32 %v3514_v1 }
 0x79f   :  { %11931 = vrcp.f32 %v3521_v3  ;;  %v4007_v3 = vld [vmem:[%s16901_s8 + $0x50] sm:$0xff] }
 0x7a7   :  { %v11928_v56 = vpop.eup %11927 }
 0x7a8   :  { %v11930_v62 = vpop.eup %11929  ;;  %v3525_v42 = vmul.f32 %v11928_v56, %v11926_v15 }
 0x7a9   :  { %v3524_v6 = vmul.f32 %v11930_v62, %v14380_v9  ;;  %v11932_v9 = vpop.eup %11931 }
 0x7ab   :  { %v14472_v55 = vadd.f32 %v3525_v42, %v3524_v6  ;;  %v3421_v26 = vpop.f32.mrb[18].mxu0  ;;  %v3492_v11 = vpop.f32.mrb[18].mxu1  ;;  %v4011_v6 = vld [vmem:[%s16901_s8 + $0x70] sm:$0xff] }
 0x7ac   :  { %v3501_v19 = vadd.f32 %v3421_v26, %v17188_v32  ;;  %v3423_v22 = vpop.f32.mrb[19].mxu0  ;;  %v3494_v38 = vpop.f32.mrb[19].mxu1  ;;  %v3503_v1 = vadd.f32 %v3492_v11, %v13925_v2  ;;  %v10194_v26 = vpack.c.bf16 %v4011_v6, %v4007_v3  ;;  %v4014_v11 = vld [vmem:[%s16901_s8 + $0x88] sm:$0xff]  ;;  %v4043_v3 = vld [vmem:[%s16901_s8 + $0x170] sm:$0xff] }
 0x7ad   :  { %11933 = vtanh.f32 %v14472_v55  ;;  %v3502_v35 = vadd.f32 %v3423_v22, %v17189_v16  ;;  %v3504_v43 = vadd.f32 %v3494_v38, %v13921_v24  ;;  %v4016_v22 = vld [vmem:[%s16901_s8 + $0x98] sm:$0xff]  ;;  %v4046_v6 = vld [vmem:[%s16901_s8 + $0x188] sm:$0xff] }
 0x7ae   :  { %v8610_v28 = vmul.f32 -1.442695, %v3501_v19  ;;  %v4018_v19 = vld [vmem:[%s16901_s8 + $0xa8] sm:$0xff] }
 0x7af   :  { %v8611_v61 = vmul.f32 -1.442695, %v3502_v35  ;;  %v8612_v49 = vmul.f32 -1.442695, %v3504_v43  ;;  %v10164_v38 = vpack.c.bf16 %v4018_v19, %v4014_v11  ;;  %v4020_v35 = vld [vmem:[%s16901_s8 + $0xb8] sm:$0xff]  ;;  %v4050_v11 = vld [vmem:[%s16901_s8 + $0x1a8] sm:$0xff] }
 0x7b0   :  { %11935 = vpow2.f32 %v8610_v28  ;;  %v4013_v28 = vld [vmem:[%s16901_s8 + $0x80] sm:$0xff]  ;;  %v10196_v43 = vpack.c.bf16 %v4020_v35, %v4016_v22  ;;  %v4048_v19 = vld [vmem:[%s16901_s8 + $0x198] sm:$0xff] }
 0x7b1   :  { %11937 = vpow2.f32 %v8611_v61  ;;  %v4017_v61 = vld [vmem:[%s16901_s8 + $0xa0] sm:$0xff]  ;;  %v4052_v22 = vld [vmem:[%s16901_s8 + $0x1b8] sm:$0xff] }
 0x7b2   :  { %11939 = vpow2.f32 %v8612_v49  ;;  %v4019_v49 = vld [vmem:[%s16901_s8 + $0xb0] sm:$0xff]  ;;  %v10212_v35 = vpack.c.bf16 %v4052_v22, %v4048_v19 }
 0x7b3   :  { %11941 = vtanh.f32 %v3503_v1 }
 0x7b7   :  { %v11934_v52 = vpop.eup %11933 }
 0x7b8   :  { %v14478_v30 = vmul.f32 %v11934_v52, %v11932_v9  ;;  %v10166_v9 = vpack.c.bf16 %v4017_v61, %v4013_v28  ;;  %v4015_v52 = vld [vmem:[%s16901_s8 + $0x90] sm:$0xff]  ;;  %v4045_v28 = vld [vmem:[%s16901_s8 + $0x180] sm:$0xff] }
 0x7b9   :  { %v10198_v1 = vpack.c.bf16 %v4019_v49, %v4015_v52  ;;  %v4049_v61 = vld [vmem:[%s16901_s8 + $0x1a0] sm:$0xff]  ;;  %v4051_v52 = vld [vmem:[%s16901_s8 + $0x1b0] sm:$0xff]  ;;  %v4054_v49 = vld [vmem:[%s16901_s8 + $0x1c8] sm:$0xff] }
 0x7ba   :  { %v11936_v4 = vpop.eup %11935  ;;  %3627 = vmatmul.mubr.f32.vlgmr.msra.gmra.mrb[14].mxu0 %v14478_v30  ;;  %3698 = vmatmul.mubr.f32.vlgmr.msra.gmra.mrb[14].mxu1 %v14478_v30 }
 0x7bb   :  { %v11938_v15 = vpop.eup %11937  ;;  %v3532_v56 = vadd.f32 1.0, %v11936_v4  ;;  %10095 = vmatpush1.bf16.msra.mxu0 %v13586_v8  ;;  %10127 = vmatpush1.bf16.msra.mxu1 %v13590_v12  ;;  %v4022_v4 = vld [vmem:[%s16901_s8 + $0xc8] sm:$0xff] }
 0x7bc   :  { %v3538_v62 = vadd.f32 1.0, %v11938_v15  ;;  %10097 = vmatprep.subr.bf16.mxu0 %v13592_v17  ;;  %10129 = vmatprep.subr.bf16.mxu1 %v13605_v21  ;;  %v11940_v8 = vpop.eup %11939  ;;  %v4026_v15 = vld [vmem:[%s16901_s8 + $0xe8] sm:$0xff] }
 0x7bd   :  { %11943 = vrcp.f32 %v3532_v56  ;;  %3780 = vmatprep.mubr.f32.mxu0 %v17151_v53  ;;  %3851 = vmatprep.mubr.f32.mxu1 %v17151_v53  ;;  %v11942_v12 = vpop.eup %11941  ;;  %v4024_v56 = vld [vmem:[%s16901_s8 + $0xd8] sm:$0xff] }
 0x7be   :  { %11945 = vrcp.f32 %v3538_v62  ;;  %v10168_v62 = vpack.c.bf16 %v4026_v15, %v4022_v4 }
 0x7bf   :  { %10099 = vmatpush1.bf16.msra.mxu0 %v13626_v34  ;;  %10131 = vmatpush1.bf16.msra.mxu1 %v13630_v25  ;;  %v3545_v25 = vadd.f32 1.0, %v11940_v8  ;;  %v4028_v8 = vld [vmem:[%s16901_s8 + $0xf8] sm:$0xff] }
 0x7c0   :  { %10101 = vmatprep.subr.bf16.mxu0 %v13632_v36  ;;  %10133 = vmatprep.subr.bf16.mxu1 %v13644_v47 }
 0x7c1   :  { %11947 = vrcp.f32 %v3545_v25  ;;  %v4023_v25 = vld [vmem:[%s16901_s8 + $0xd0] sm:$0xff] }
 0x7c3   :  { %10103 = vmatpush1.bf16.msra.mxu0 %v13664_v63  ;;  %10135 = vmatpush1.bf16.msra.mxu1 %v13668_v0  ;;  %v4002_v0 = vld [vmem:[%s16901_s8 + $0x28] sm:$0xff] }
 0x7c4   :  { %10105 = vmatprep.subr.bf16.mxu0 %v13670_v59  ;;  %10137 = vmatprep.subr.bf16.mxu1 %v13682_v58  ;;  %v4000_v59 = vld [vmem:[%s16901_s8 + $0x18] sm:$0xff] }
 0x7c7   :  { %v11944_v17 = vpop.eup %11943  ;;  %10107 = vmatpush1.bf16.msra.mxu0 %v13700_v33  ;;  %10139 = vmatpush1.bf16.msra.mxu1 %v17163_v44  ;;  %v4004_v33 = vld [vmem:[%s16901_s8 + $0x38] sm:$0xff] }
 0x7c8   :  { %v11946_v21 = vpop.eup %11945  ;;  %v3549_v34 = vmul.f32 %v11944_v17, %v11942_v12  ;;  %10109 = vmatprep.subr.bf16.mxu0 %v17164_v13  ;;  %10141 = vmatprep.subr.bf16.mxu1 %v17165_v48  ;;  %v4008_v44 = vld [vmem:[%s16901_s8 + $0x58] sm:$0xff]  ;;  %v4021_v12 = vld [vmem:[%s16901_s8 + $0xc0] sm:$0xff] }
 0x7c9   :  { %v3548_v36 = vmul.f32 %v11946_v21, %v14410_v23  ;;  %v4012_v48 = vld [vmem:[%s16901_s8 + $0x78] sm:$0xff]  ;;  %v4025_v17 = vld [vmem:[%s16901_s8 + $0xe0] sm:$0xff]  ;;  %v10200_v21 = vpack.c.bf16 %v4028_v8, %v4024_v56 }
 0x7ca   :  { %v10192_v23 = vpack.c.bf16 %v4012_v48, %v4008_v44  ;;  %v4037_v48 = vld [vmem:[%s16901_s8 + $0x140] sm:$0xff]  ;;  %v4056_v56 = vld [vmem:[%s16901_s8 + $0x1d8] sm:$0xff] }
 0x7cb   :  { %v14502_v47 = vadd.f32 %v3549_v34, %v3548_v36  ;;  %10111 = vmatpush1.bf16.msra.mxu0 %v17166_v31  ;;  %10143 = vmatpush1.bf16.msra.mxu1 %v17167_v57  ;;  %v4005_v31 = vld [vmem:[%s16901_s8 + $0x40] sm:$0xff]  ;;  %v10170_v34 = vpack.c.bf16 %v4025_v17, %v4021_v12  ;;  %v4027_v36 = vld [vmem:[%s16901_s8 + $0xf0] sm:$0xff] }
 0x7cc   :  { %10113 = vmatprep.subr.bf16.mxu0 %v17168_v20  ;;  %10145 = vmatprep.subr.bf16.mxu1 %v17169_v60  ;;  %v11948_v20 = vpop.eup %11947  ;;  %v4009_v57 = vld [vmem:[%s16901_s8 + $0x60] sm:$0xff] }
 0x7cd   :  { %11949 = vtanh.f32 %v14502_v47  ;;  %v10162_v42 = vpack.c.bf16 %v4009_v57, %v4005_v31  ;;  %v4041_v31 = vld [vmem:[%s16901_s8 + $0x160] sm:$0xff] }
 0x7ce   :  { %v4053_v8 = vld [vmem:[%s16901_s8 + $0x1c0] sm:$0xff] }
 0x7cf   :  { %10115 = vmatpush1.bf16.msra.mxu0 %v13772_v18  ;;  %10147 = vmatpush1.bf16.msra.mxu1 %v13776_v7  ;;  %v3998_v7 = vld [vmem:[%s16901_s8 + $0x8] sm:$0xff]  ;;  %v4057_v17 = vld [vmem:[%s16901_s8 + $0x1e0] sm:$0xff] }
 0x7d0   :  { %10117 = vmatprep.subr.bf16.mxu0 %v13778_v41  ;;  %10149 = vmatprep.subr.bf16.mxu1 %v13790_v29  ;;  %v10156_v58 = vpack.c.bf16 %v4002_v0, %v3998_v7  ;;  %v3997_v41 = vld [vmem:[%s16901_s8] sm:$0xff]  ;;  %v3999_v29 = vld [vmem:[%s16901_s8 + $0x10] sm:$0xff]  ;;  %v4034_v7 = vld [vmem:[%s16901_s8 + $0x128] sm:$0xff] }
 0x7d1   :  { %v4032_v0 = vld [vmem:[%s16901_s8 + $0x118] sm:$0xff] }
 0x7d3   :  { %10119 = vmatpush1.bf16.msra.mxu0 %v13808_v5  ;;  %10151 = vmatpush1.bf16.msra.mxu1 %v13812_v45  ;;  %v10188_v45 = vpack.c.bf16 %v4004_v33, %v4000_v59  ;;  %v4003_v5 = vld [vmem:[%s16901_s8 + $0x30] sm:$0xff]  ;;  %v4029_v33 = vld [vmem:[%s16901_s8 + $0x100] sm:$0xff] }
 0x7d4   :  { %10121 = vmatprep.subr.bf16.mxu0 %v13814_v27  ;;  %10153 = vmatprep.subr.bf16.mxu1 %v13823_v40  ;;  %v4001_v27 = vld [vmem:[%s16901_s8 + $0x20] sm:$0xff]  ;;  %v10190_v40 = vpack.c.bf16 %v4003_v5, %v3999_v29  ;;  %v4035_v29 = vld [vmem:[%s16901_s8 + $0x130] sm:$0xff] }
 0x7d5   :  { %v10158_v18 = vpack.c.bf16 %v4001_v27, %v3997_v41  ;;  %v4033_v41 = vld [vmem:[%s16901_s8 + $0x120] sm:$0xff] }
 0x7d7   :  { %v11950_v60 = vpop.eup %11949  ;;  %10123 = vmatpush1.bf16.msra.mxu0 %v13832_v39  ;;  %10155 = vmatpush1.bf16.msra.mxu1 %v13836_v50  ;;  %v4006_v39 = vld [vmem:[%s16901_s8 + $0x48] sm:$0xff] }
 0x7d8   :  { %v14519_v63 = vmul.f32 %v11950_v60, %v11948_v20  ;;  %10157 = vmatprep.subr.bf16.mxu0 %v10156_v58  ;;  %10189 = vmatprep.subr.bf16.mxu1 %v10188_v45  ;;  %v4010_v50 = vld [vmem:[%s16901_s8 + $0x68] sm:$0xff]  ;;  %v10202_v20 = vpack.c.bf16 %v4027_v36, %v4023_v25  ;;  %v4036_v58 = vld [vmem:[%s16901_s8 + $0x138] sm:$0xff]  ;;  %v10174_v45 = vpack.c.bf16 %v4033_v41, %v4029_v33 }
 0x7d9   :  { %v10160_v13 = vpack.c.bf16 %v4010_v50, %v4006_v39  ;;  %v4030_v60 = vld [vmem:[%s16901_s8 + $0x108] sm:$0xff]  ;;  %v10204_v27 = vpack.c.bf16 %v4036_v58, %v4032_v0  ;;  %v4040_v50 = vld [vmem:[%s16901_s8 + $0x158] sm:$0xff]  ;;  %v10186_v25 = vpack.c.bf16 %v4057_v17, %v4053_v8 }
 0x7da   :  { %3781 = vmatmul.mubr.f32.vlgmr.msra.gmra.mrb[16].mxu0 %v14519_v63  ;;  %3852 = vmatmul.mubr.f32.vlgmr.msra.gmra.mrb[16].mxu1 %v14519_v63  ;;  %v10172_v59 = vpack.c.bf16 %v4034_v7, %v4030_v60  ;;  %v4042_v39 = vld [vmem:[%s16901_s8 + $0x168] sm:$0xff]  ;;  %v3936_v60 = vld [vmem:[%s16902_s7 + $0x18] sm:$0xff] }
 0x7db   :  { %4125 = vmatprep.mubr.f32.mxu0 %v17151_v53  ;;  %4238 = vmatprep.mubr.f32.mxu1 %v17151_v53  ;;  %v3934_v36 = vld [vmem:[%s16902_s7 + $0x8] sm:$0xff] }
 0x7dc   :  { %10159 = vmatpush1.bf16.msra.mxu0 %v10158_v18  ;;  %10191 = vmatpush1.bf16.msra.mxu1 %v10190_v40  ;;  %v4031_v18 = vld [vmem:[%s16901_s8 + $0x110] sm:$0xff]  ;;  %v4038_v40 = vld [vmem:[%s16901_s8 + $0x148] sm:$0xff] }
 0x7dd   :  { %10161 = vmatprep.subr.bf16.mxu0 %v10160_v13  ;;  %10193 = vmatprep.subr.bf16.mxu1 %v10192_v23  ;;  %v10206_v5 = vpack.c.bf16 %v4035_v29, %v4031_v18  ;;  %v10176_v44 = vpack.c.bf16 %v4042_v39, %v4038_v40  ;;  %v4044_v13 = vld [vmem:[%s16901_s8 + $0x178] sm:$0xff]  ;;  %v10178_v23 = vpack.c.bf16 %v4041_v31, %v4037_v48 }
 0x7de   :  { %v10208_v57 = vpack.c.bf16 %v4044_v13, %v4040_v50 }
 0x7e0   :  { %10163 = vmatpush1.bf16.msra.mxu0 %v10162_v42  ;;  %10195 = vmatpush1.bf16.msra.mxu1 %v10194_v26  ;;  %v4039_v42 = vld [vmem:[%s16901_s8 + $0x150] sm:$0xff] }
 0x7e1   :  { %10165 = vmatprep.subr.bf16.mxu0 %v10164_v38  ;;  %10197 = vmatprep.subr.bf16.mxu1 %v10196_v43  ;;  %v10210_v26 = vpack.c.bf16 %v4043_v3, %v4039_v42  ;;  %v10180_v38 = vpack.c.bf16 %v4050_v11, %v4046_v6  ;;  %v4047_v43 = vld [vmem:[%s16901_s8 + $0x190] sm:$0xff] }
 0x7e2   :  { %v10214_v4 = vpack.c.bf16 %v4051_v52, %v4047_v43 }
 0x7e4   :  { %10167 = vmatpush1.bf16.msra.mxu0 %v10166_v9  ;;  %10199 = vmatpush1.bf16.msra.mxu1 %v10198_v1  ;;  %v10182_v9 = vpack.c.bf16 %v4049_v61, %v4045_v28  ;;  %v4058_v1 = vld [vmem:[%s16901_s8 + $0x1e8] sm:$0xff] }
 0x7e5   :  { %10169 = vmatprep.subr.bf16.mxu0 %v10168_v62  ;;  %10201 = vmatprep.subr.bf16.mxu1 %v10200_v21  ;;  %v10184_v15 = vpack.c.bf16 %v4058_v1, %v4054_v49  ;;  %v4060_v62 = vld [vmem:[%s16901_s8 + $0x1f8] sm:$0xff]  ;;  %v4055_v21 = vld [vmem:[%s16901_s8 + $0x1d0] sm:$0xff] }
 0x7e6   :  { %v10216_v12 = vpack.c.bf16 %v4060_v62, %v4056_v56 }
 0x7e8   :  { %10171 = vmatpush1.bf16.msra.mxu0 %v10170_v34  ;;  %10203 = vmatpush1.bf16.msra.mxu1 %v10202_v20  ;;  %v4059_v34 = vld [vmem:[%s16901_s8 + $0x1f0] sm:$0xff]  ;;  %v3938_v20 = vld [vmem:[%s16902_s7 + $0x28] sm:$0xff] }
 0x7e9   :  { %10173 = vmatprep.subr.bf16.mxu0 %v10172_v59  ;;  %10205 = vmatprep.subr.bf16.mxu1 %v10204_v27  ;;  %v10218_v7 = vpack.c.bf16 %v4059_v34, %v4055_v21  ;;  %v10220_v0 = vpack.c.bf16 %v3938_v20, %v3934_v36  ;;  %v3940_v59 = vld [vmem:[%s16902_s7 + $0x38] sm:$0xff]  ;;  %v3935_v36 = vld [vmem:[%s16902_s7 + $0x10] sm:$0xff] }
 0x7ea   :  { %v10252_v58 = vpack.c.bf16 %v3940_v59, %v3936_v60  ;;  %v3939_v20 = vld [vmem:[%s16902_s7 + $0x30] sm:$0xff]  ;;  %v3948_v59 = vld [vmem:[%s16902_s7 + $0x78] sm:$0xff] }
 0x7ec   :  { %10175 = vmatpush1.bf16.msra.mxu0 %v10174_v45  ;;  %10207 = vmatpush1.bf16.msra.mxu1 %v10206_v5 }
 0x7ed   :  { %10177 = vmatprep.subr.bf16.mxu0 %v10176_v44  ;;  %10209 = vmatprep.subr.bf16.mxu1 %v10208_v57 }
 0x7f0   :  { %10179 = vmatpush1.bf16.msra.mxu0 %v10178_v23  ;;  %10211 = vmatpush1.bf16.msra.mxu1 %v10210_v26 }
 0x7f1   :  { %10181 = vmatprep.subr.bf16.mxu0 %v10180_v38  ;;  %10213 = vmatprep.subr.bf16.mxu1 %v10212_v35 }
 0x7f4   :  { %10183 = vmatpush1.bf16.msra.mxu0 %v10182_v9  ;;  %10215 = vmatpush1.bf16.msra.mxu1 %v10214_v4 }
 0x7f5   :  { %10185 = vmatprep.subr.bf16.mxu0 %v10184_v15  ;;  %10217 = vmatprep.subr.bf16.mxu1 %v10216_v12 }
 0x7f8   :  { %10187 = vmatpush1.bf16.msra.mxu0 %v10186_v25  ;;  %10219 = vmatpush1.bf16.msra.mxu1 %v10218_v7  ;;  %v3937_v25 = vld [vmem:[%s16902_s7 + $0x20] sm:$0xff]  ;;  %v3946_v7 = vld [vmem:[%s16902_s7 + $0x68] sm:$0xff] }
 0x7f9   :  { %10221 = vmatprep.subr.bf16.mxu0 %v10220_v0  ;;  %10253 = vmatprep.subr.bf16.mxu1 %v10252_v58  ;;  %v3944_v0 = vld [vmem:[%s16902_s7 + $0x58] sm:$0xff] }
 0x88d   :  { %v3628_v33 = vpop.f32.mrb[14].mxu0  ;;  %v3699_v41 = vpop.f32.mrb[14].mxu1 }
 0x88e   :  { %v3708_v27 = vadd.f32 %v3628_v33, %v17332_v14  ;;  %v3630_v45 = vpop.f32.mrb[15].mxu0  ;;  %v3701_v18 = vpop.f32.mrb[15].mxu1  ;;  %v3710_v44 = vadd.f32 %v3699_v41, %v17218_v10  ;;  %v10254_v41 = vpack.c.bf16 %v3939_v20, %v3935_v36 }
 0x88f   :  { %v3709_v29 = vadd.f32 %v3630_v45, %v17186_v46  ;;  %v3711_v39 = vadd.f32 %v3701_v18, %v17217_v37  ;;  %v3945_v18 = vld [vmem:[%s16902_s7 + $0x60] sm:$0xff] }
 0x890   :  { %v8613_v5 = vmul.f32 -1.442695, %v3708_v27  ;;  %v3941_v27 = vld [vmem:[%s16902_s7 + $0x40] sm:$0xff] }
 0x891   :  { %v8614_v40 = vmul.f32 -1.442695, %v3709_v29  ;;  %v8615_v50 = vmul.f32 -1.442695, %v3711_v39  ;;  %v3943_v29 = vld [vmem:[%s16902_s7 + $0x50] sm:$0xff]  ;;  %v10256_v39 = vpack.c.bf16 %v3948_v59, %v3944_v0 }
 0x892   :  { %11951 = vpow2.f32 %v8613_v5  ;;  %v3947_v5 = vld [vmem:[%s16902_s7 + $0x70] sm:$0xff] }
 0x893   :  { %11953 = vpow2.f32 %v8614_v40  ;;  %v3979_v0 = vld [vmem:[%s16902_s7 + $0x170] sm:$0xff] }
 0x894   :  { %11955 = vpow2.f32 %v8615_v50  ;;  %v3950_v50 = vld [vmem:[%s16902_s7 + $0x88] sm:$0xff] }
 0x895   :  { %11957 = vtanh.f32 %v3710_v44  ;;  %v3954_v44 = vld [vmem:[%s16902_s7 + $0xa8] sm:$0xff] }
 0x89c   :  { %v11952_v13 = vpop.eup %11951 }
 0x89d   :  { %v11954_v48 = vpop.eup %11953  ;;  %v3869_v31 = vadd.f32 1.0, %v11952_v13  ;;  %v3952_v13 = vld [vmem:[%s16902_s7 + $0x98] sm:$0xff] }
 0x89e   :  { %v3875_v57 = vadd.f32 1.0, %v11954_v48  ;;  %v11956_v14 = vpop.eup %11955  ;;  %v3956_v48 = vld [vmem:[%s16902_s7 + $0xb8] sm:$0xff] }
 0x89f   :  { %11959 = vrcp.f32 %v3869_v31  ;;  %v11958_v23 = vpop.eup %11957  ;;  %v3882_v6 = vadd.f32 1.0, %v11956_v14  ;;  %v10226_v31 = vpack.c.bf16 %v3945_v18, %v3941_v27  ;;  %v3949_v14 = vld [vmem:[%s16902_s7 + $0x80] sm:$0xff]  ;;  %v3986_v27 = vld [vmem:[%s16902_s7 + $0x1a8] sm:$0xff]  ;;  %v3984_v18 = vld [vmem:[%s16902_s7 + $0x198] sm:$0xff] }
 0x8a0   :  { %11961 = vrcp.f32 %v3875_v57  ;;  %v10258_v57 = vpack.c.bf16 %v3947_v5, %v3943_v29  ;;  %v3988_v29 = vld [vmem:[%s16902_s7 + $0x1b8] sm:$0xff] }
 0x8a1   :  { %11963 = vrcp.f32 %v3882_v6  ;;  %v10260_v6 = vpack.c.bf16 %v3956_v48, %v3952_v13  ;;  %v3987_v13 = vld [vmem:[%s16902_s7 + $0x1b0] sm:$0xff] }
 0x8a9   :  { %v11960_v46 = vpop.eup %11959 }
 0x8aa   :  { %v11962_v42 = vpop.eup %11961  ;;  %v3886_v3 = vmul.f32 %v11960_v46, %v11958_v23  ;;  %v3953_v23 = vld [vmem:[%s16902_s7 + $0xa0] sm:$0xff]  ;;  %v3951_v46 = vld [vmem:[%s16902_s7 + $0x90] sm:$0xff] }
 0x8ab   :  { %v3885_v26 = vmul.f32 %v11962_v42, %v14472_v55  ;;  %v11964_v9 = vpop.eup %11963  ;;  %v3955_v42 = vld [vmem:[%s16902_s7 + $0xb0] sm:$0xff] }
 0x8ad   :  { %v3887_v37 = vadd.f32 %v3886_v3, %v3885_v26  ;;  %v3782_v11 = vpop.f32.mrb[16].mxu0  ;;  %v3853_v19 = vpop.f32.mrb[16].mxu1  ;;  %v10228_v3 = vpack.c.bf16 %v3954_v44, %v3950_v50  ;;  %v3958_v26 = vld [vmem:[%s16902_s7 + $0xc8] sm:$0xff]  ;;  %v3985_v50 = vld [vmem:[%s16902_s7 + $0x1a0] sm:$0xff]  ;;  %v3983_v44 = vld [vmem:[%s16902_s7 + $0x190] sm:$0xff] }
 0x8ae   :  { %v3862_v10 = vadd.f32 %v3782_v11, %v17188_v32  ;;  %v3784_v22 = vpop.f32.mrb[17].mxu0  ;;  %v3855_v38 = vpop.f32.mrb[17].mxu1  ;;  %v3864_v49 = vadd.f32 %v3853_v19, %v13925_v2  ;;  %v3933_v2 = vld [vmem:[%s16902_s7] sm:$0xff]  ;;  %v3960_v11 = vld [vmem:[%s16902_s7 + $0xd8] sm:$0xff] }
 0x8af   :  { %11965 = vtanh.f32 %v3887_v37  ;;  %v3863_v35 = vadd.f32 %v3784_v22, %v17189_v16  ;;  %v3865_v43 = vadd.f32 %v3855_v38, %v13921_v24  ;;  %v10222_v33 = vpack.c.bf16 %v3937_v25, %v3933_v2  ;;  %v3962_v37 = vld [vmem:[%s16902_s7 + $0xe8] sm:$0xff]  ;;  %v3964_v19 = vld [vmem:[%s16902_s7 + $0xf8] sm:$0xff]  ;;  %v3957_v38 = vld [vmem:[%s16902_s7 + $0xc0] sm:$0xff] }
 0x8b0   :  { %v8616_v28 = vmul.f32 -1.442695, %v3862_v10  ;;  %v10230_v10 = vpack.c.bf16 %v3953_v23, %v3949_v14  ;;  %v10262_v22 = vpack.c.bf16 %v3955_v42, %v3951_v46  ;;  %v3976_v2 = vld [vmem:[%s16902_s7 + $0x158] sm:$0xff]  ;;  %v17335_v14 = vld [vmem:[#allocation38_spill] sm:$0xff]  ;;  %v3994_v23 = vld [vmem:[%s16902_s7 + $0x1e8] sm:$0xff] }
 0x8b1   :  { %v8617_v61 = vmul.f32 -1.442695, %v3863_v35  ;;  %v8618_v55 = vmul.f32 -1.442695, %v3865_v43  ;;  %v3961_v35 = vld [vmem:[%s16902_s7 + $0xe0] sm:$0xff]  ;;  %v10232_v43 = vpack.c.bf16 %v3962_v37, %v3958_v26  ;;  %v3980_v25 = vld [vmem:[%s16902_s7 + $0x178] sm:$0xff] }
 0x8b2   :  { %11967 = vpow2.f32 %v8616_v28  ;;  %v3959_v28 = vld [vmem:[%s16902_s7 + $0xd0] sm:$0xff]  ;;  %v3992_v46 = vld [vmem:[%s16902_s7 + $0x1d8] sm:$0xff]  ;;  %v3989_v26 = vld [vmem:[%s16902_s7 + $0x1c0] sm:$0xff] }
 0x8b3   :  { %11969 = vpow2.f32 %v8617_v61  ;;  %v3963_v61 = vld [vmem:[%s16902_s7 + $0xf0] sm:$0xff]  ;;  %v3996_v42 = vld [vmem:[%s16902_s7 + $0x1f8] sm:$0xff]  ;;  %v3993_v37 = vld [vmem:[%s16902_s7 + $0x1e0] sm:$0xff] }
 0x8b4   :  { %11971 = vpow2.f32 %v8618_v55  ;;  %v3970_v55 = vld [vmem:[%s16902_s7 + $0x128] sm:$0xff] }
 0x8b5   :  { %11973 = vtanh.f32 %v3864_v49  ;;  %v3968_v49 = vld [vmem:[%s16902_s7 + $0x118] sm:$0xff] }
 0x8b9   :  { %v11966_v52 = vpop.eup %11965 }
 0x8ba   :  { %v14738_v1 = vmul.f32 %v11966_v52, %v11964_v9  ;;  %v10264_v9 = vpack.c.bf16 %v3964_v19, %v3960_v11  ;;  %v3966_v52 = vld [vmem:[%s16902_s7 + $0x108] sm:$0xff]  ;;  %v3991_v11 = vld [vmem:[%s16902_s7 + $0x1d0] sm:$0xff] }
 0x8bb   :  { %v3995_v19 = vld [vmem:[%s16902_s7 + $0x1f0] sm:$0xff] }
 0x8bc   :  { %v11968_v4 = vpop.eup %11967 }
 0x8bd   :  { %v11970_v32 = vpop.eup %11969  ;;  %v3893_v15 = vadd.f32 1.0, %v11968_v4  ;;  %v3972_v4 = vld [vmem:[%s16902_s7 + $0x138] sm:$0xff] }
 0x8be   :  { %v3899_v56 = vadd.f32 1.0, %v11970_v32  ;;  %v11972_v16 = vpop.eup %11971  ;;  %v10234_v32 = vpack.c.bf16 %v3961_v35, %v3957_v38  ;;  %v4610_v38 = vld [vmem:[%s16903_s12 + $0x8] sm:$0xff]  ;;  %v17336_v35 = vld [vmem:[#allocation36_spill] sm:$0xff] }
 0x8bf   :  { %11975 = vrcp.f32 %v3893_v15  ;;  %v11974_v62 = vpop.eup %11973  ;;  %v3906_v17 = vadd.f32 1.0, %v11972_v16  ;;  %v10266_v15 = vpack.c.bf16 %v3963_v61, %v3959_v28  ;;  %v3969_v16 = vld [vmem:[%s16902_s7 + $0x120] sm:$0xff]  ;;  %v4614_v28 = vld [vmem:[%s16903_s12 + $0x28] sm:$0xff]  ;;  %v4612_v61 = vld [vmem:[%s16903_s12 + $0x18] sm:$0xff] }
 0x8c0   :  { %11977 = vrcp.f32 %v3899_v56  ;;  %v3965_v56 = vld [vmem:[%s16902_s7 + $0x100] sm:$0xff] }
 0x8c1   :  { %11979 = vrcp.f32 %v3906_v17  ;;  %v3974_v17 = vld [vmem:[%s16902_s7 + $0x148] sm:$0xff]  ;;  %v10238_v36 = vpack.c.bf16 %v3969_v16, %v3965_v56 }
 0x8c2   :  { %v4618_v16 = vld [vmem:[%s16903_s12 + $0x48] sm:$0xff] }
 0x8c9   :  { %v11976_v8 = vpop.eup %11975 }
 0x8ca   :  { %v11978_v12 = vpop.eup %11977  ;;  %v3910_v24 = vmul.f32 %v11976_v8, %v11974_v62  ;;  %v3967_v62 = vld [vmem:[%s16902_s7 + $0x110] sm:$0xff] }
 0x8cb   :  { %v3909_v21 = vmul.f32 %v11978_v12, %v14502_v47  ;;  %v3942_v47 = vld [vmem:[%s16902_s7 + $0x48] sm:$0xff]  ;;  %v11980_v60 = vpop.eup %11979  ;;  %v3971_v8 = vld [vmem:[%s16902_s7 + $0x130] sm:$0xff]  ;;  %v10236_v12 = vpack.c.bf16 %v3970_v55, %v3966_v52  ;;  %v10282_v52 = vpack.c.bf16 %v3995_v19, %v3991_v11  ;;  %v4609_v55 = vld [vmem:[%s16903_s12] sm:$0xff] }
 0x8cc   :  { %v10224_v40 = vpack.c.bf16 %v3946_v7, %v3942_v47  ;;  %v10270_v20 = vpack.c.bf16 %v3971_v8, %v3967_v62  ;;  %v3973_v47 = vld [vmem:[%s16902_s7 + $0x140] sm:$0xff]  ;;  %v3975_v7 = vld [vmem:[%s16902_s7 + $0x150] sm:$0xff]  ;;  %v4622_v8 = vld [vmem:[%s16903_s12 + $0x68] sm:$0xff] }
 0x8cd   :  { %v3911_v34 = vadd.f32 %v3910_v24, %v3909_v21  ;;  %v10268_v24 = vpack.c.bf16 %v3972_v4, %v3968_v49  ;;  %v17333_v21 = vld [vmem:[#allocation49_spill] sm:$0xff]  ;;  %v4613_v49 = vld [vmem:[%s16903_s12 + $0x20] sm:$0xff]  ;;  %v4611_v4 = vld [vmem:[%s16903_s12 + $0x10] sm:$0xff] }
 0x8ce   :  { %v17337_v62 = vld [vmem:[#allocation34_spill] sm:$0xff] }
 0x8cf   :  { %11981 = vtanh.f32 %v3911_v34  ;;  %v3978_v34 = vld [vmem:[%s16902_s7 + $0x168] sm:$0xff] }
 0x8d0   :  { %v10240_v59 = vpack.c.bf16 %v3978_v34, %v3974_v17  ;;  %v10286_v17 = vpack.c.bf16 %v4613_v49, %v4609_v55  ;;  %v4645_v55 = vld [vmem:[%s16903_s12 + $0x120] sm:$0xff]  ;;  %v4643_v49 = vld [vmem:[%s16903_s12 + $0x110] sm:$0xff] }
 0x8d9   :  { %v11982_v58 = vpop.eup %11981 }
 0x8da   :  { %v14768_v45 = vmul.f32 %v11982_v58, %v11980_v60  ;;  %v3977_v60 = vld [vmem:[%s16902_s7 + $0x160] sm:$0xff]  ;;  %v10272_v58 = vpack.c.bf16 %v3980_v25, %v3976_v2 }
 0x8db   :  { %v10242_v5 = vpack.c.bf16 %v3977_v60, %v3973_v47  ;;  %v4617_v2 = vld [vmem:[%s16903_s12 + $0x40] sm:$0xff]  ;;  %v10288_v47 = vpack.c.bf16 %v4622_v8, %v4618_v16  ;;  %v17341_v16 = vld [vmem:[#allocation39_spill] sm:$0xff]  ;;  %v4654_v8 = vld [vmem:[%s16903_s12 + $0x168] sm:$0xff] }
 0x8dc   :  { %4126 = vmatmul.mubr.f32.vlgmr.msra.gmra.mrb[32].mxu0 %v14768_v45  ;;  %4239 = vmatmul.mubr.f32.vlgmr.msra.gmra.mrb[32].mxu1 %v14768_v45  ;;  %v4621_v25 = vld [vmem:[%s16903_s12 + $0x60] sm:$0xff] }
 0x8dd   :  { %10223 = vmatpush1.bf16.msra.mxu0 %v10222_v33  ;;  %10255 = vmatpush1.bf16.msra.mxu1 %v10254_v41  ;;  %v3982_v33 = vld [vmem:[%s16902_s7 + $0x188] sm:$0xff]  ;;  %v17334_v41 = vld [vmem:[#allocation40_spill] sm:$0xff] }
 0x8de   :  { %4131 = vmatprep.mubr.f32.mxu0 %v17151_v53  ;;  %4244 = vmatprep.mubr.f32.mxu1 %v17151_v53  ;;  %v10244_v48 = vpack.c.bf16 %v3986_v27, %v3982_v33  ;;  %v4632_v33 = vld [vmem:[%s16903_s12 + $0xb8] sm:$0xff]  ;;  %v10290_v27 = vpack.c.bf16 %v4621_v25, %v4617_v2  ;;  %v4649_v2 = vld [vmem:[%s16903_s12 + $0x140] sm:$0xff] }
 0x8df   :  { %10225 = vmatprep.subr.bf16.mxu0 %v10224_v40  ;;  %10257 = vmatprep.subr.bf16.mxu1 %v10256_v39  ;;  %v10274_v40 = vpack.c.bf16 %v3979_v0, %v3975_v7  ;;  %v3981_v39 = vld [vmem:[%s16902_s7 + $0x180] sm:$0xff]  ;;  %v4626_v7 = vld [vmem:[%s16903_s12 + $0x88] sm:$0xff]  ;;  %v17338_v0 = vld [vmem:[#allocation51_spill] sm:$0xff] }
 0x8e0   :  { %4132 = vmatmul.mubr.f32.gmra.mrb[34].mxu0 %v14519_v63  ;;  %4245 = vmatmul.mubr.f32.gmra.mrb[34].mxu1 %v14519_v63  ;;  %v4653_v25 = vld [vmem:[%s16903_s12 + $0x160] sm:$0xff] }
 0x8e1   :  { %10227 = vmatpush1.bf16.msra.mxu0 %v10226_v31  ;;  %10259 = vmatpush1.bf16.msra.mxu1 %v10258_v57  ;;  %v10276_v31 = vpack.c.bf16 %v3988_v29, %v3984_v18  ;;  %v3990_v57 = vld [vmem:[%s16902_s7 + $0x1c8] sm:$0xff]  ;;  %v4625_v29 = vld [vmem:[%s16903_s12 + $0x80] sm:$0xff] }
 0x8e2   :  { %4137 = vmatprep.mubr.f32.mxu0 %v17151_v53  ;;  %4250 = vmatprep.mubr.f32.mxu1 %v17151_v53 }
 0x8e3   :  { %10229 = vmatprep.subr.bf16.mxu0 %v10228_v3  ;;  %10261 = vmatprep.subr.bf16.mxu1 %v10260_v6  ;;  %v10246_v3 = vpack.c.bf16 %v3985_v50, %v3981_v39  ;;  %v10278_v6 = vpack.c.bf16 %v3987_v13, %v3983_v44  ;;  %v4631_v39 = vld [vmem:[%s16903_s12 + $0xb0] sm:$0xff]  ;;  %v4634_v13 = vld [vmem:[%s16903_s12 + $0xc8] sm:$0xff] }
 0x8e4   :  { %4138 = vmatmul.mubr.f32.gmra.mrb[36].mxu0 %v14427_v51  ;;  %4251 = vmatmul.mubr.f32.gmra.mrb[36].mxu1 %v14427_v51 }
 0x8e5   :  { %10231 = vmatpush1.bf16.msra.mxu0 %v10230_v10  ;;  %10263 = vmatpush1.bf16.msra.mxu1 %v10262_v22  ;;  %v10248_v10 = vpack.c.bf16 %v3994_v23, %v3990_v57  ;;  %v10280_v22 = vpack.c.bf16 %v3996_v42, %v3992_v46  ;;  %v4636_v57 = vld [vmem:[%s16903_s12 + $0xd8] sm:$0xff] }
 0x8e6   :  { %4143 = vmatprep.mubr.f32.mxu0 %v17151_v53  ;;  %4256 = vmatprep.mubr.f32.mxu1 %v17151_v53  ;;  %v4640_v23 = vld [vmem:[%s16903_s12 + $0xf8] sm:$0xff] }
 0x8e7   :  { %10233 = vmatprep.subr.bf16.mxu0 %v10232_v43  ;;  %10265 = vmatprep.subr.bf16.mxu1 %v10264_v9  ;;  %v4616_v43 = vld [vmem:[%s16903_s12 + $0x38] sm:$0xff]  ;;  %v10250_v9 = vpack.c.bf16 %v3993_v37, %v3989_v26  ;;  %v4635_v26 = vld [vmem:[%s16903_s12 + $0xd0] sm:$0xff]  ;;  %v10328_v19 = vpack.c.bf16 %v4640_v23, %v4636_v57  ;;  %v4670_v57 = vld [vmem:[%s16903_s12 + $0x1e8] sm:$0xff] }
 0x8e8   :  { %4144 = vmatmul.mubr.f32.gmra.mrb[38].mxu0 %v17333_v21  ;;  %4257 = vmatmul.mubr.f32.gmra.mrb[38].mxu1 %v17333_v21  ;;  %v10316_v56 = vpack.c.bf16 %v4616_v43, %v4612_v61  ;;  %v4639_v37 = vld [vmem:[%s16903_s12 + $0xf0] sm:$0xff]  ;;  %v4648_v61 = vld [vmem:[%s16903_s12 + $0x138] sm:$0xff] }
 0x8e9   :  { %10235 = vmatpush1.bf16.msra.mxu0 %v10234_v32  ;;  %10267 = vmatpush1.bf16.msra.mxu1 %v10266_v15  ;;  %v4615_v32 = vld [vmem:[%s16903_s12 + $0x30] sm:$0xff]  ;;  %v10284_v15 = vpack.c.bf16 %v4614_v28, %v4610_v38  ;;  %v4646_v38 = vld [vmem:[%s16903_s12 + $0x128] sm:$0xff]  ;;  %v4644_v28 = vld [vmem:[%s16903_s12 + $0x118] sm:$0xff] }
 0x8ea   :  { %4149 = vmatprep.mubr.f32.mxu0 %v17151_v53  ;;  %4262 = vmatprep.mubr.f32.mxu1 %v17151_v53  ;;  %v10318_v34 = vpack.c.bf16 %v4615_v32, %v4611_v4  ;;  %v4647_v4 = vld [vmem:[%s16903_s12 + $0x130] sm:$0xff]  ;;  %v4668_v23 = vld [vmem:[%s16903_s12 + $0x1d8] sm:$0xff] }
 0x8eb   :  { %10237 = vmatprep.subr.bf16.mxu0 %v10236_v12  ;;  %10269 = vmatprep.subr.bf16.mxu1 %v10268_v24  ;;  %v4620_v12 = vld [vmem:[%s16903_s12 + $0x58] sm:$0xff] }
 0x8ec   :  { %4150 = vmatmul.mubr.f32.gmra.mrb[40].mxu0 %v17334_v41  ;;  %4263 = vmatmul.mubr.f32.gmra.mrb[40].mxu1 %v17334_v41  ;;  %v4624_v24 = vld [vmem:[%s16903_s12 + $0x78] sm:$0xff] }
 0x8ed   :  { %10239 = vmatpush1.bf16.msra.mxu0 %v10238_v36  ;;  %10271 = vmatpush1.bf16.msra.mxu1 %v10270_v20  ;;  %v4619_v36 = vld [vmem:[%s16903_s12 + $0x50] sm:$0xff]  ;;  %v10320_v60 = vpack.c.bf16 %v4624_v24, %v4620_v12  ;;  %v4652_v12 = vld [vmem:[%s16903_s12 + $0x158] sm:$0xff] }
 0x8ee   :  { %4155 = vmatprep.mubr.f32.mxu0 %v17151_v53  ;;  %4268 = vmatprep.mubr.f32.mxu1 %v17151_v53  ;;  %v4623_v20 = vld [vmem:[%s16903_s12 + $0x70] sm:$0xff]  ;;  %v4656_v24 = vld [vmem:[%s16903_s12 + $0x178] sm:$0xff] }
 0x8ef   :  { %10241 = vmatprep.subr.bf16.mxu0 %v10240_v59  ;;  %10273 = vmatprep.subr.bf16.mxu1 %v10272_v58  ;;  %v4630_v59 = vld [vmem:[%s16903_s12 + $0xa8] sm:$0xff]  ;;  %v4628_v58 = vld [vmem:[%s16903_s12 + $0x98] sm:$0xff]  ;;  %v10322_v18 = vpack.c.bf16 %v4623_v20, %v4619_v36  ;;  %v4651_v36 = vld [vmem:[%s16903_s12 + $0x150] sm:$0xff] }
 0x8f0   :  { %4156 = vmatmul.mubr.f32.gmra.mrb[42].mxu0 %v17335_v14  ;;  %4269 = vmatmul.mubr.f32.gmra.mrb[42].mxu1 %v17335_v14  ;;  %v10292_v50 = vpack.c.bf16 %v4630_v59, %v4626_v7  ;;  %v10324_v44 = vpack.c.bf16 %v4632_v33, %v4628_v58  ;;  %v4655_v20 = vld [vmem:[%s16903_s12 + $0x170] sm:$0xff]  ;;  %v4658_v7 = vld [vmem:[%s16903_s12 + $0x188] sm:$0xff]  ;;  %v17342_v59 = vld [vmem:[#allocation44_spill] sm:$0xff] }
 0x8f1   :  { %10243 = vmatpush1.bf16.msra.mxu0 %v10242_v5  ;;  %10275 = vmatpush1.bf16.msra.mxu1 %v10274_v40  ;;  %v4629_v5 = vld [vmem:[%s16903_s12 + $0xa0] sm:$0xff]  ;;  %v4627_v40 = vld [vmem:[%s16903_s12 + $0x90] sm:$0xff]  ;;  %v4662_v58 = vld [vmem:[%s16903_s12 + $0x1a8] sm:$0xff] }
 0x8f2   :  { %4161 = vmatprep.mubr.f32.mxu0 %v17151_v53  ;;  %4274 = vmatprep.mubr.f32.mxu1 %v17151_v53  ;;  %v10294_v46 = vpack.c.bf16 %v4629_v5, %v4625_v29  ;;  %v10326_v42 = vpack.c.bf16 %v4631_v39, %v4627_v40  ;;  %v4660_v33 = vld [vmem:[%s16903_s12 + $0x198] sm:$0xff]  ;;  %v10338_v29 = vpack.c.bf16 %v4655_v20, %v4651_v36  ;;  %v4657_v5 = vld [vmem:[%s16903_s12 + $0x180] sm:$0xff]  ;;  %v4659_v39 = vld [vmem:[%s16903_s12 + $0x190] sm:$0xff] }
 0x8f3   :  { %10245 = vmatprep.subr.bf16.mxu0 %v10244_v48  ;;  %10277 = vmatprep.subr.bf16.mxu1 %v10276_v31  ;;  %v17339_v48 = vld [vmem:[#allocation35_spill] sm:$0xff]  ;;  %v4638_v31 = vld [vmem:[%s16903_s12 + $0xe8] sm:$0xff]  ;;  %v4661_v40 = vld [vmem:[%s16903_s12 + $0x1a0] sm:$0xff] }
 0x8f4   :  { %4162 = vmatmul.mubr.f32.gmra.mrb[44].mxu0 %v17336_v35  ;;  %4275 = vmatmul.mubr.f32.gmra.mrb[44].mxu1 %v17336_v35  ;;  %v10296_v11 = vpack.c.bf16 %v4638_v31, %v4634_v13  ;;  %v4666_v31 = vld [vmem:[%s16903_s12 + $0x1c8] sm:$0xff]  ;;  %v4557_v36 = vld [vmem:[%s16904_s11 + $0x60] sm:$0xff]  ;;  %v4555_v20 = vld [vmem:[%s16904_s11 + $0x50] sm:$0xff] }
 0x8f5   :  { %10247 = vmatpush1.bf16.msra.mxu0 %v10246_v3  ;;  %10279 = vmatpush1.bf16.msra.mxu1 %v10278_v6  ;;  %v4633_v3 = vld [vmem:[%s16903_s12 + $0xc0] sm:$0xff] }
 0x8f6   :  { %4167 = vmatprep.mubr.f32.mxu0 %v17151_v53  ;;  %4280 = vmatprep.mubr.f32.mxu1 %v17151_v53  ;;  %v4637_v6 = vld [vmem:[%s16903_s12 + $0xe0] sm:$0xff] }
 0x8f7   :  { %10249 = vmatprep.subr.bf16.mxu0 %v10248_v10  ;;  %10281 = vmatprep.subr.bf16.mxu1 %v10280_v22  ;;  %v4642_v10 = vld [vmem:[%s16903_s12 + $0x108] sm:$0xff]  ;;  %v10298_v43 = vpack.c.bf16 %v4637_v6, %v4633_v3  ;;  %v4665_v6 = vld [vmem:[%s16903_s12 + $0x1c0] sm:$0xff] }
 0x8f8   :  { %4168 = vmatmul.mubr.f32.gmra.mrb[46].mxu0 %v17337_v62  ;;  %4281 = vmatmul.mubr.f32.gmra.mrb[46].mxu1 %v17337_v62  ;;  %v17340_v22 = vld [vmem:[#allocation37_spill] sm:$0xff]  ;;  %v10300_v32 = vpack.c.bf16 %v4646_v38, %v4642_v10 }
 0x8f9   :  { %10251 = vmatpush1.bf16.msra.mxu0 %v10250_v9  ;;  %10283 = vmatpush1.bf16.msra.mxu1 %v10282_v52  ;;  %v10330_v9 = vpack.c.bf16 %v4639_v37, %v4635_v26  ;;  %v4641_v52 = vld [vmem:[%s16903_s12 + $0x100] sm:$0xff]  ;;  %v4667_v37 = vld [vmem:[%s16903_s12 + $0x1d0] sm:$0xff]  ;;  %v4546_v38 = vld [vmem:[%s16904_s11 + $0x8] sm:$0xff] }
 0x8fa   :  { %4351 = vmatprep.mubr.f32.mxu0 %v17151_v53  ;;  %4464 = vmatprep.mubr.f32.mxu1 %v17151_v53  ;;  %v4669_v26 = vld [vmem:[%s16903_s12 + $0x1e0] sm:$0xff] }
 0x8fb   :  { %10285 = vmatprep.subr.bf16.mxu0 %v10284_v15  ;;  %10317 = vmatprep.subr.bf16.mxu1 %v10316_v56  ;;  %v10332_v15 = vpack.c.bf16 %v4648_v61, %v4644_v28  ;;  %v4650_v56 = vld [vmem:[%s16903_s12 + $0x148] sm:$0xff]  ;;  %v4548_v61 = vld [vmem:[%s16904_s11 + $0x18] sm:$0xff] }
 0x8fc   :  { %4352 = vmatmul.mubr.f32.vlgmr.msra.gmra.mrb[32].mxu0 %v17338_v0  ;;  %4465 = vmatmul.mubr.f32.vlgmr.msra.gmra.mrb[32].mxu1 %v17338_v0  ;;  %v4550_v28 = vld [vmem:[%s16904_s11 + $0x28] sm:$0xff] }
 0x8fd   :  { %10287 = vmatpush1.bf16.msra.mxu0 %v10286_v17  ;;  %10319 = vmatpush1.bf16.msra.mxu1 %v10318_v34  ;;  %v10302_v17 = vpack.c.bf16 %v4645_v55, %v4641_v52  ;;  %v10334_v34 = vpack.c.bf16 %v4647_v4, %v4643_v49  ;;  %v4545_v55 = vld [vmem:[%s16904_s11] sm:$0xff]  ;;  %v4547_v4 = vld [vmem:[%s16904_s11 + $0x10] sm:$0xff] }
 0x8fe   :  { %4357 = vmatprep.mubr.f32.mxu0 %v17151_v53  ;;  %4470 = vmatprep.mubr.f32.mxu1 %v17151_v53  ;;  %v4549_v49 = vld [vmem:[%s16904_s11 + $0x20] sm:$0xff] }
 0x8ff   :  { %10289 = vmatprep.subr.bf16.mxu0 %v10288_v47  ;;  %10321 = vmatprep.subr.bf16.mxu1 %v10320_v60  ;;  %v10304_v47 = vpack.c.bf16 %v4654_v8, %v4650_v56  ;;  %v10336_v60 = vpack.c.bf16 %v4656_v24, %v4652_v12  ;;  %v4554_v8 = vld [vmem:[%s16904_s11 + $0x48] sm:$0xff]  ;;  %v4556_v24 = vld [vmem:[%s16904_s11 + $0x58] sm:$0xff] }
 0x900   :  { %4358 = vmatmul.mubr.f32.gmra.mrb[34].mxu0 %v17339_v48  ;;  %4471 = vmatmul.mubr.f32.gmra.mrb[34].mxu1 %v17339_v48  ;;  %v4558_v12 = vld [vmem:[%s16904_s11 + $0x68] sm:$0xff] }
 0x901   :  { %10291 = vmatpush1.bf16.msra.mxu0 %v10290_v27  ;;  %10323 = vmatpush1.bf16.msra.mxu1 %v10322_v18  ;;  %v4664_v27 = vld [vmem:[%s16903_s12 + $0x1b8] sm:$0xff]  ;;  %v10306_v18 = vpack.c.bf16 %v4653_v25, %v4649_v2  ;;  %v4553_v25 = vld [vmem:[%s16904_s11 + $0x40] sm:$0xff] }
 0x902   :  { %4363 = vmatprep.mubr.f32.mxu0 %v17151_v53  ;;  %4476 = vmatprep.mubr.f32.mxu1 %v17151_v53  ;;  %v10340_v13 = vpack.c.bf16 %v4664_v27, %v4660_v33  ;;  %v4566_v33 = vld [vmem:[%s16904_s11 + $0xa8] sm:$0xff]  ;;  %v4564_v27 = vld [vmem:[%s16904_s11 + $0x98] sm:$0xff] }
 0x903   :  { %10293 = vmatprep.subr.bf16.mxu0 %v10292_v50  ;;  %10325 = vmatprep.subr.bf16.mxu1 %v10324_v44  ;;  %v4663_v50 = vld [vmem:[%s16903_s12 + $0x1b0] sm:$0xff]  ;;  %v10308_v44 = vpack.c.bf16 %v4662_v58, %v4658_v7  ;;  %v4562_v58 = vld [vmem:[%s16904_s11 + $0x88] sm:$0xff] }
 0x904   :  { %4364 = vmatmul.mubr.f32.gmra.mrb[36].mxu0 %v17340_v22  ;;  %4477 = vmatmul.mubr.f32.gmra.mrb[36].mxu1 %v17340_v22  ;;  %v10342_v3 = vpack.c.bf16 %v4663_v50, %v4659_v39  ;;  %v4563_v39 = vld [vmem:[%s16904_s11 + $0x90] sm:$0xff] }
 0x905   :  { %10295 = vmatpush1.bf16.msra.mxu0 %v10294_v46  ;;  %10327 = vmatpush1.bf16.msra.mxu1 %v10326_v42  ;;  %v4672_v46 = vld [vmem:[%s16903_s12 + $0x1f8] sm:$0xff]  ;;  %v10310_v42 = vpack.c.bf16 %v4661_v40, %v4657_v5  ;;  %v4565_v40 = vld [vmem:[%s16904_s11 + $0xa0] sm:$0xff]  ;;  %v4567_v50 = vld [vmem:[%s16904_s11 + $0xb0] sm:$0xff] }
 0x906   :  { %4369 = vmatprep.mubr.f32.mxu0 %v17151_v53  ;;  %4482 = vmatprep.mubr.f32.mxu1 %v17151_v53  ;;  %v10344_v10 = vpack.c.bf16 %v4672_v46, %v4668_v23  ;;  %v4572_v23 = vld [vmem:[%s16904_s11 + $0xd8] sm:$0xff] }
 0x907   :  { %10297 = vmatprep.subr.bf16.mxu0 %v10296_v11  ;;  %10329 = vmatprep.subr.bf16.mxu1 %v10328_v19  ;;  %v4671_v11 = vld [vmem:[%s16903_s12 + $0x1f0] sm:$0xff]  ;;  %v10312_v19 = vpack.c.bf16 %v4670_v57, %v4666_v31  ;;  %v4570_v31 = vld [vmem:[%s16904_s11 + $0xc8] sm:$0xff]  ;;  %v4576_v46 = vld [vmem:[%s16904_s11 + $0xf8] sm:$0xff] }
 0x908   :  { %4370 = vmatmul.mubr.f32.gmra.mrb[38].mxu0 %v17341_v16  ;;  %4483 = vmatmul.mubr.f32.gmra.mrb[38].mxu1 %v17341_v16  ;;  %v10346_v52 = vpack.c.bf16 %v4671_v11, %v4667_v37  ;;  %v4574_v57 = vld [vmem:[%s16904_s11 + $0xe8] sm:$0xff]  ;;  %v4575_v37 = vld [vmem:[%s16904_s11 + $0xf0] sm:$0xff] }
 0x909   :  { %10299 = vmatpush1.bf16.msra.mxu0 %v10298_v43  ;;  %10331 = vmatpush1.bf16.msra.mxu1 %v10330_v9  ;;  %v4552_v43 = vld [vmem:[%s16904_s11 + $0x38] sm:$0xff]  ;;  %v10314_v9 = vpack.c.bf16 %v4669_v26, %v4665_v6  ;;  %v4573_v6 = vld [vmem:[%s16904_s11 + $0xe0] sm:$0xff]  ;;  %v4571_v26 = vld [vmem:[%s16904_s11 + $0xd0] sm:$0xff]  ;;  %v10360_v11 = vpack.c.bf16 %v4574_v57, %v4570_v31 }
 0x90a   :  { %4375 = vmatprep.mubr.f32.mxu0 %v17151_v53  ;;  %4488 = vmatprep.mubr.f32.mxu1 %v17151_v53  ;;  %v10380_v56 = vpack.c.bf16 %v4552_v43, %v4548_v61  ;;  %v4584_v61 = vld [vmem:[%s16904_s11 + $0x138] sm:$0xff] }
 0x90b   :  { %10301 = vmatprep.subr.bf16.mxu0 %v10300_v32  ;;  %10333 = vmatprep.subr.bf16.mxu1 %v10332_v15  ;;  %v4551_v32 = vld [vmem:[%s16904_s11 + $0x30] sm:$0xff]  ;;  %v10348_v15 = vpack.c.bf16 %v4550_v28, %v4546_v38  ;;  %v4582_v38 = vld [vmem:[%s16904_s11 + $0x128] sm:$0xff]  ;;  %v4580_v28 = vld [vmem:[%s16904_s11 + $0x118] sm:$0xff] }
 0x90c   :  { %4376 = vmatmul.mubr.f32.gmra.mrb[40].mxu0 %v17342_v59  ;;  %4489 = vmatmul.mubr.f32.gmra.mrb[40].mxu1 %v17342_v59  ;;  %v10382_v2 = vpack.c.bf16 %v4551_v32, %v4547_v4  ;;  %v10396_v32 = vpack.c.bf16 %v4584_v61, %v4580_v28  ;;  %v5159_v28 = vld [vmem:[%s16905_s9 + $0x10] sm:$0xff] }
 0x90d   :  { %10303 = vmatpush1.bf16.msra.mxu0 %v10302_v17  ;;  %10335 = vmatpush1.bf16.msra.mxu1 %v10334_v34  ;;  %v4560_v17 = vld [vmem:[%s16904_s11 + $0x78] sm:$0xff]  ;;  %v10350_v34 = vpack.c.bf16 %v4549_v49, %v4545_v55  ;;  %v4579_v55 = vld [vmem:[%s16904_s11 + $0x110] sm:$0xff] }
 0x90e   :  { %4381 = vmatprep.mubr.f32.mxu0 %v17151_v53  ;;  %4494 = vmatprep.mubr.f32.mxu1 %v17151_v53  ;;  %v10384_v7 = vpack.c.bf16 %v4560_v17, %v4556_v24  ;;  %v4583_v49 = vld [vmem:[%s16904_s11 + $0x130] sm:$0xff] }
 0x90f   :  { %10305 = vmatprep.subr.bf16.mxu0 %v10304_v47  ;;  %10337 = vmatprep.subr.bf16.mxu1 %v10336_v60  ;;  %v4559_v47 = vld [vmem:[%s16904_s11 + $0x70] sm:$0xff]  ;;  %v10352_v60 = vpack.c.bf16 %v4558_v12, %v4554_v8  ;;  %v4588_v8 = vld [vmem:[%s16904_s11 + $0x158] sm:$0xff]  ;;  %v10398_v17 = vpack.c.bf16 %v4583_v49, %v4579_v55 }
 0x910   :  { %4382 = vmatmul.mubr.f32.gmra.mrb[42].mxu0 %v14386_v54  ;;  %4495 = vmatmul.mubr.f32.gmra.mrb[42].mxu1 %v14386_v54  ;;  %v10386_v5 = vpack.c.bf16 %v4559_v47, %v4555_v20  ;;  %v4592_v12 = vld [vmem:[%s16904_s11 + $0x178] sm:$0xff]  ;;  %v4594_v47 = vld [vmem:[%s16904_s11 + $0x188] sm:$0xff]  ;;  %v5163_v61 = vld [vmem:[%s16905_s9 + $0x30] sm:$0xff] }
 0x911   :  { %10307 = vmatpush1.bf16.msra.mxu0 %v10306_v18  ;;  %10339 = vmatpush1.bf16.msra.mxu1 %v10338_v29  ;;  %v4568_v18 = vld [vmem:[%s16904_s11 + $0xb8] sm:$0xff]  ;;  %v10354_v29 = vpack.c.bf16 %v4557_v36, %v4553_v25  ;;  %v4591_v25 = vld [vmem:[%s16904_s11 + $0x170] sm:$0xff]  ;;  %v10400_v20 = vpack.c.bf16 %v4592_v12, %v4588_v8 }
 0x912   :  { %4387 = vmatprep.mubr.f32.mxu0 %v17151_v53  ;;  %4500 = vmatprep.mubr.f32.mxu1 %v17151_v53  ;;  %v5168_v55 = vld [vmem:[%s16905_s9 + $0x58] sm:$0xff]  ;;  %v5171_v8 = vld [vmem:[%s16905_s9 + $0x70] sm:$0xff] }
 0x913   :  { %10309 = vmatprep.subr.bf16.mxu0 %v10308_v44  ;;  %10341 = vmatprep.subr.bf16.mxu1 %v10340_v13  ;;  %v10356_v44 = vpack.c.bf16 %v4566_v33, %v4562_v58  ;;  %v10388_v13 = vpack.c.bf16 %v4568_v18, %v4564_v27  ;;  %v4600_v58 = vld [vmem:[%s16904_s11 + $0x1b8] sm:$0xff]  ;;  %v4597_v18 = vld [vmem:[%s16904_s11 + $0x1a0] sm:$0xff] }
 0x914   :  { %4388 = vmatmul.mubr.f32.gmra.mrb[44].mxu0 %v14478_v30  ;;  %4501 = vmatmul.mubr.f32.gmra.mrb[44].mxu1 %v14478_v30  ;;  %v5172_v49 = vld [vmem:[%s16905_s9 + $0x78] sm:$0xff] }
 0x915   :  { %10311 = vmatpush1.bf16.msra.mxu0 %v10310_v42  ;;  %10343 = vmatpush1.bf16.msra.mxu1 %v10342_v3  ;;  %v10390_v3 = vpack.c.bf16 %v4567_v50, %v4563_v39  ;;  %v4602_v39 = vld [vmem:[%s16904_s11 + $0x1c8] sm:$0xff] }
 0x916   :  { %4393 = vmatprep.mubr.f32.mxu0 %v17151_v53  ;;  %4506 = vmatprep.mubr.f32.mxu1 %v17151_v53  ;;  %v4606_v50 = vld [vmem:[%s16904_s11 + $0x1e8] sm:$0xff] }
 0x917   :  { %10313 = vmatprep.subr.bf16.mxu0 %v10312_v19  ;;  %10345 = vmatprep.subr.bf16.mxu1 %v10344_v10  ;;  %v10392_v19 = vpack.c.bf16 %v4576_v46, %v4572_v23  ;;  %v4578_v10 = vld [vmem:[%s16904_s11 + $0x108] sm:$0xff]  ;;  %v4605_v23 = vld [vmem:[%s16904_s11 + $0x1e0] sm:$0xff]  ;;  %v4603_v46 = vld [vmem:[%s16904_s11 + $0x1d0] sm:$0xff] }
 0x918   :  { %4394 = vmatmul.mubr.f32.gmra.mrb[46].mxu0 %v14738_v1  ;;  %4507 = vmatmul.mubr.f32.gmra.mrb[46].mxu1 %v14738_v1  ;;  %v10364_v4 = vpack.c.bf16 %v4582_v38, %v4578_v10  ;;  %v5161_v38 = vld [vmem:[%s16905_s9 + $0x20] sm:$0xff] }
 0x919   :  { %10315 = vmatpush1.bf16.msra.mxu0 %v10314_v9  ;;  %10347 = vmatpush1.bf16.msra.mxu1 %v10346_v52  ;;  %v10394_v9 = vpack.c.bf16 %v4575_v37, %v4571_v26  ;;  %v4581_v52 = vld [vmem:[%s16904_s11 + $0x120] sm:$0xff]  ;;  %v5162_v26 = vld [vmem:[%s16905_s9 + $0x28] sm:$0xff]  ;;  %v5160_v37 = vld [vmem:[%s16905_s9 + $0x18] sm:$0xff] }
 0x91a   :  { %4737 = vmatprep.mubr.f32.mxu0 %v17151_v53  ;;  %4850 = vmatprep.mubr.f32.mxu1 %v17151_v53 }
 0x91b   :  { %10349 = vmatprep.subr.bf16.mxu0 %v10348_v15  ;;  %10381 = vmatprep.subr.bf16.mxu1 %v10380_v56  ;;  %v4586_v15 = vld [vmem:[%s16904_s11 + $0x148] sm:$0xff] }
 0x91c   :  { %4738 = vmatmul.mubr.f32.vlgmr.msra.gmra.mrb[48].mxu0 %v14768_v45  ;;  %4851 = vmatmul.mubr.f32.vlgmr.msra.gmra.mrb[48].mxu1 %v14768_v45  ;;  %v4561_v45 = vld [vmem:[%s16904_s11 + $0x80] sm:$0xff]  ;;  %v4590_v56 = vld [vmem:[%s16904_s11 + $0x168] sm:$0xff] }
 0x91d   :  { %10351 = vmatpush1.bf16.msra.mxu0 %v10350_v34  ;;  %10383 = vmatpush1.bf16.msra.mxu1 %v10382_v2  ;;  %v10358_v42 = vpack.c.bf16 %v4565_v40, %v4561_v45  ;;  %v4589_v34 = vld [vmem:[%s16904_s11 + $0x160] sm:$0xff]  ;;  %v4587_v2 = vld [vmem:[%s16904_s11 + $0x150] sm:$0xff]  ;;  %v10368_v36 = vpack.c.bf16 %v4590_v56, %v4586_v15 }
 0x91e   :  { %4743 = vmatprep.mubr.f32.mxu0 %v17151_v53  ;;  %4856 = vmatprep.mubr.f32.mxu1 %v17151_v53  ;;  %v10402_v27 = vpack.c.bf16 %v4591_v25, %v4587_v2  ;;  %v5169_v15 = vld [vmem:[%s16905_s9 + $0x60] sm:$0xff]  ;;  %v5167_v56 = vld [vmem:[%s16905_s9 + $0x50] sm:$0xff]  ;;  %v5180_v2 = vld [vmem:[%s16905_s9 + $0xb8] sm:$0xff] }
 0x91f   :  { %10353 = vmatprep.subr.bf16.mxu0 %v10352_v60  ;;  %10385 = vmatprep.subr.bf16.mxu1 %v10384_v7  ;;  %v4598_v60 = vld [vmem:[%s16904_s11 + $0x1a8] sm:$0xff]  ;;  %v4596_v7 = vld [vmem:[%s16904_s11 + $0x198] sm:$0xff] }
 0x920   :  { %4744 = vmatmul.mubr.f32.gmra.mrb[50].mxu0 %v14519_v63  ;;  %4857 = vmatmul.mubr.f32.gmra.mrb[50].mxu1 %v14519_v63  ;;  %v4569_v63 = vld [vmem:[%s16904_s11 + $0xc0] sm:$0xff]  ;;  %v10372_v45 = vpack.c.bf16 %v4598_v60, %v4594_v47  ;;  %v10404_v40 = vpack.c.bf16 %v4600_v58, %v4596_v7  ;;  %v5175_v47 = vld [vmem:[%s16905_s9 + $0x90] sm:$0xff] }
 0x921   :  { %10355 = vmatpush1.bf16.msra.mxu0 %v10354_v29  ;;  %10387 = vmatpush1.bf16.msra.mxu1 %v10386_v5  ;;  %v10362_v43 = vpack.c.bf16 %v4573_v6, %v4569_v63  ;;  %v4595_v29 = vld [vmem:[%s16904_s11 + $0x190] sm:$0xff]  ;;  %v5158_v6 = vld [vmem:[%s16905_s9 + $0x8] sm:$0xff] }
 0x922   :  { %4749 = vmatprep.mubr.f32.mxu0 %v17151_v53  ;;  %4862 = vmatprep.mubr.f32.mxu1 %v17151_v53  ;;  %v4599_v5 = vld [vmem:[%s16904_s11 + $0x1b0] sm:$0xff] }
 0x923   :  { %10357 = vmatprep.subr.bf16.mxu0 %v10356_v44  ;;  %10389 = vmatprep.subr.bf16.mxu1 %v10388_v13  ;;  %v4604_v44 = vld [vmem:[%s16904_s11 + $0x1d8] sm:$0xff]  ;;  %v10406_v57 = vpack.c.bf16 %v4599_v5, %v4595_v29  ;;  %v5179_v60 = vld [vmem:[%s16905_s9 + $0xb0] sm:$0xff] }
 0x924   :  { %4750 = vmatmul.mubr.f32.gmra.mrb[52].mxu0 %v14427_v51  ;;  %4863 = vmatmul.mubr.f32.gmra.mrb[52].mxu1 %v14427_v51  ;;  %v4577_v51 = vld [vmem:[%s16904_s11 + $0x100] sm:$0xff]  ;;  %v4608_v13 = vld [vmem:[%s16904_s11 + $0x1f8] sm:$0xff]  ;;  %v15523_v5 = vpack.c.bf16 %v5179_v60, %v5175_v47  ;;  %v5214_v47 = vld [vmem:[%s16905_s9 + $0x1c8] sm:$0xff] }
 0x925   :  { %10359 = vmatpush1.bf16.msra.mxu0 %v10358_v42  ;;  %10391 = vmatpush1.bf16.msra.mxu1 %v10390_v3  ;;  %v10366_v24 = vpack.c.bf16 %v4581_v52, %v4577_v51  ;;  %v4607_v42 = vld [vmem:[%s16904_s11 + $0x1f0] sm:$0xff]  ;;  %v10376_v3 = vpack.c.bf16 %v4606_v50, %v4602_v39  ;;  %v10408_v63 = vpack.c.bf16 %v4608_v13, %v4604_v44  ;;  %v5166_v51 = vld [vmem:[%s16905_s9 + $0x48] sm:$0xff] }
 0x926   :  { %4755 = vmatprep.mubr.f32.mxu0 %v17151_v53  ;;  %4868 = vmatprep.mubr.f32.mxu1 %v17151_v53  ;;  %v10410_v10 = vpack.c.bf16 %v4607_v42, %v4603_v46  ;;  %v5170_v52 = vld [vmem:[%s16905_s9 + $0x68] sm:$0xff]  ;;  %17346 = vst [vmem:[#allocation8_spill] sm:$0xff] %v15523_v5  ;;  %v5187_v39 = vld [vmem:[%s16905_s9 + $0xf0] sm:$0xff]  ;;  %v5193_v42 = vld [vmem:[%s16905_s9 + $0x120] sm:$0xff] }
 0x927   :  { %10361 = vmatprep.subr.bf16.mxu0 %v10360_v11  ;;  %10393 = vmatprep.subr.bf16.mxu1 %v10392_v19  ;;  %v5164_v11 = vld [vmem:[%s16905_s9 + $0x38] sm:$0xff]  ;;  %v15461_v12 = vpack.c.bf16 %v5170_v52, %v5166_v51  ;;  %v5190_v13 = vld [vmem:[%s16905_s9 + $0x108] sm:$0xff]  ;;  %v5203_v51 = vld [vmem:[%s16905_s9 + $0x170] sm:$0xff] }
 0x928   :  { %4756 = vmatmul.mubr.f32.gmra.mrb[54].mxu0 %v17333_v21  ;;  %4869 = vmatmul.mubr.f32.gmra.mrb[54].mxu1 %v17333_v21  ;;  %v4585_v21 = vld [vmem:[%s16904_s11 + $0x140] sm:$0xff]  ;;  %v5218_v60 = vld [vmem:[%s16905_s9 + $0x1e8] sm:$0xff] }
 0x929   :  { %10363 = vmatpush1.bf16.msra.mxu0 %v10362_v43  ;;  %10395 = vmatpush1.bf16.msra.mxu1 %v10394_v9  ;;  %v10370_v33 = vpack.c.bf16 %v4589_v34, %v4585_v21  ;;  %v15423_v43 = vpack.c.bf16 %v5162_v26, %v5158_v6  ;;  %v15425_v9 = vpack.c.bf16 %v5164_v11, %v5160_v37  ;;  %v5178_v21 = vld [vmem:[%s16905_s9 + $0xa8] sm:$0xff]  ;;  %v5176_v34 = vld [vmem:[%s16905_s9 + $0x98] sm:$0xff] }
 0x92a   :  { %4761 = vmatprep.mubr.f32.mxu0 %v17151_v53  ;;  %4874 = vmatprep.mubr.f32.mxu1 %v17151_v53  ;;  %v15503_v58 = vpack.c.bf16 %v5180_v2, %v5176_v34  ;;  %v5198_v37 = vld [vmem:[%s16905_s9 + $0x148] sm:$0xff]  ;;  %v5207_v34 = vld [vmem:[%s16905_s9 + $0x190] sm:$0xff] }
 0x92b   :  { %10365 = vmatprep.subr.bf16.mxu0 %v10364_v4  ;;  %10397 = vmatprep.subr.bf16.mxu1 %v10396_v32  ;;  %v15443_v32 = vpack.c.bf16 %v5163_v61, %v5159_v28  ;;  %v5202_v11 = vld [vmem:[%s16905_s9 + $0x168] sm:$0xff]  ;;  %v5201_v28 = vld [vmem:[%s16905_s9 + $0x160] sm:$0xff]  ;;  %v5199_v61 = vld [vmem:[%s16905_s9 + $0x150] sm:$0xff] }
 0x92c   :  { %4762 = vmatmul.mubr.f32.gmra.mrb[56].mxu0 %v17334_v41  ;;  %4875 = vmatmul.mubr.f32.gmra.mrb[56].mxu1 %v17334_v41  ;;  %v4593_v41 = vld [vmem:[%s16904_s11 + $0x180] sm:$0xff]  ;;  %17344 = vst [vmem:[#allocation46_spill] sm:$0xff] %v15503_v58  ;;  %v15621_v52 = vpack.c.bf16 %v5202_v11, %v5198_v37  ;;  %v5211_v2 = vld [vmem:[%s16905_s9 + $0x1b0] sm:$0xff] }
 0x92d   :  { %10367 = vmatpush1.bf16.msra.mxu0 %v10366_v24  ;;  %10399 = vmatpush1.bf16.msra.mxu1 %v10398_v17  ;;  %v10374_v31 = vpack.c.bf16 %v4597_v18, %v4593_v41  ;;  %v15463_v24 = vpack.c.bf16 %v5172_v49, %v5168_v55  ;;  %v5174_v17 = vld [vmem:[%s16905_s9 + $0x88] sm:$0xff]  ;;  %v5184_v41 = vld [vmem:[%s16905_s9 + $0xd8] sm:$0xff]  ;;  %v5223_v37 = vld [vmem:[%s16906_s13 + $0x10] sm:$0xff] }
 0x92e   :  { %4767 = vmatprep.mubr.f32.mxu0 %v17151_v53  ;;  %4880 = vmatprep.mubr.f32.mxu1 %v17151_v53  ;;  %v15501_v7 = vpack.c.bf16 %v5178_v21, %v5174_v17  ;;  %v5188_v18 = vld [vmem:[%s16905_s9 + $0xf8] sm:$0xff]  ;;  %17355 = vst [vmem:[#allocation17_spill] sm:$0xff] %v15621_v52  ;;  %v5206_v49 = vld [vmem:[%s16905_s9 + $0x188] sm:$0xff]  ;;  %v15643_v17 = vpack.c.bf16 %v5203_v51, %v5199_v61  ;;  %v5209_v21 = vld [vmem:[%s16905_s9 + $0x1a0] sm:$0xff] }
 0x92f   :  { %10369 = vmatprep.subr.bf16.mxu0 %v10368_v36  ;;  %10401 = vmatprep.subr.bf16.mxu1 %v10400_v20  ;;  %v15483_v36 = vpack.c.bf16 %v5171_v8, %v5167_v56  ;;  %v5177_v20 = vld [vmem:[%s16905_s9 + $0xa0] sm:$0xff]  ;;  %v15543_v44 = vpack.c.bf16 %v5188_v18, %v5184_v41  ;;  %v5212_v56 = vld [vmem:[%s16905_s9 + $0x1b8] sm:$0xff]  ;;  %v15683_v18 = vpack.c.bf16 %v5211_v2, %v5207_v34  ;;  %v5227_v11 = vld [vmem:[%s16906_s13 + $0x30] sm:$0xff] }
 0x930   :  { %4768 = vmatmul.mubr.f32.gmra.mrb[58].mxu0 %v17335_v14  ;;  %4881 = vmatmul.mubr.f32.gmra.mrb[58].mxu1 %v17335_v14  ;;  %v4601_v14 = vld [vmem:[%s16904_s11 + $0x1c0] sm:$0xff]  ;;  %17343 = vst [vmem:[#allocation50_spill] sm:$0xff] %v15501_v7  ;;  %17358 = vst [vmem:[#allocation20_spill] sm:$0xff] %v15643_v17  ;;  %v5232_v61 = vld [vmem:[%s16906_s13 + $0x58] sm:$0xff] }
 0x931   :  { %10371 = vmatpush1.bf16.msra.mxu0 %v10370_v33  ;;  %10403 = vmatpush1.bf16.msra.mxu1 %v10402_v27  ;;  %v10378_v19 = vpack.c.bf16 %v4605_v23, %v4601_v14  ;;  %v5182_v33 = vld [vmem:[%s16905_s9 + $0xc8] sm:$0xff]  ;;  %17348 = vst [vmem:[#allocation10_spill] sm:$0xff] %v15543_v44  ;;  %v5196_v14 = vld [vmem:[%s16905_s9 + $0x138] sm:$0xff]  ;;  %17362 = vst [vmem:[#allocation24_spill] sm:$0xff] %v15683_v18 }
 0x932   :  { %4773 = vmatprep.mubr.f32.mxu0 %v17151_v53  ;;  %4886 = vmatprep.mubr.f32.mxu1 %v17151_v53  ;;  %v5186_v27 = vld [vmem:[%s16905_s9 + $0xe8] sm:$0xff]  ;;  %v5236_v51 = vld [vmem:[%s16906_s13 + $0x78] sm:$0xff]  ;;  %v5235_v34 = vld [vmem:[%s16906_s13 + $0x70] sm:$0xff] }
 0x933   :  { %10373 = vmatprep.subr.bf16.mxu0 %v10372_v45  ;;  %10405 = vmatprep.subr.bf16.mxu1 %v10404_v40  ;;  %v5185_v45 = vld [vmem:[%s16905_s9 + $0xe0] sm:$0xff]  ;;  %v5183_v40 = vld [vmem:[%s16905_s9 + $0xd0] sm:$0xff]  ;;  %v15541_v50 = vpack.c.bf16 %v5186_v27, %v5182_v33  ;;  %v5216_v33 = vld [vmem:[%s16905_s9 + $0x1d8] sm:$0xff] }
 0x934   :  { %4774 = vmatmul.mubr.f32.gmra.mrb[60].mxu0 %v17336_v35  ;;  %4887 = vmatmul.mubr.f32.gmra.mrb[60].mxu1 %v17336_v35  ;;  %v5157_v35 = vld [vmem:[%s16905_s9] sm:$0xff]  ;;  %v15563_v46 = vpack.c.bf16 %v5187_v39, %v5183_v40  ;;  %v5220_v27 = vld [vmem:[%s16905_s9 + $0x1f8] sm:$0xff]  ;;  %v5219_v40 = vld [vmem:[%s16905_s9 + $0x1f0] sm:$0xff]  ;;  %v15701_v39 = vpack.c.bf16 %v5218_v60, %v5214_v47 }
 0x935   :  { %10375 = vmatpush1.bf16.msra.mxu0 %v10374_v31  ;;  %10407 = vmatpush1.bf16.msra.mxu1 %v10406_v57  ;;  %v15441_v4 = vpack.c.bf16 %v5161_v38, %v5157_v35  ;;  %17347 = vst [vmem:[#allocation9_spill] sm:$0xff] %v15541_v50  ;;  %v5194_v31 = vld [vmem:[%s16905_s9 + $0x128] sm:$0xff]  ;;  %v5192_v57 = vld [vmem:[%s16905_s9 + $0x118] sm:$0xff] }
 0x936   :  { %4779 = vmatprep.mubr.f32.mxu0 %v17151_v53  ;;  %4892 = vmatprep.mubr.f32.mxu1 %v17151_v53  ;;  %17350 = vst [vmem:[#allocation12_spill] sm:$0xff] %v15563_v46  ;;  %v15581_v6 = vpack.c.bf16 %v5194_v31, %v5190_v13  ;;  %v15583_v26 = vpack.c.bf16 %v5196_v14, %v5192_v57  ;;  %17363 = vst [vmem:[#allocation25_spill] sm:$0xff] %v15701_v39  ;;  %v5222_v31 = vld [vmem:[%s16906_s13 + $0x8] sm:$0xff]  ;;  %v5224_v14 = vld [vmem:[%s16906_s13 + $0x18] sm:$0xff] }
 0x937   :  { %10377 = vmatprep.subr.bf16.mxu0 %v10376_v3  ;;  %10409 = vmatprep.subr.bf16.mxu1 %v10408_v63  ;;  %v5191_v3 = vld [vmem:[%s16905_s9 + $0x110] sm:$0xff]  ;;  %v15703_v13 = vpack.c.bf16 %v5220_v27, %v5216_v33  ;;  %v5226_v57 = vld [vmem:[%s16906_s13 + $0x28] sm:$0xff]  ;;  %v5240_v60 = vld [vmem:[%s16906_s13 + $0x98] sm:$0xff] }
 0x938   :  { %4780 = vmatmul.mubr.f32.gmra.mrb[62].mxu0 %v17337_v62  ;;  %4893 = vmatmul.mubr.f32.gmra.mrb[62].mxu1 %v17337_v62  ;;  %v5165_v62 = vld [vmem:[%s16905_s9 + $0x40] sm:$0xff]  ;;  %v5195_v63 = vld [vmem:[%s16905_s9 + $0x130] sm:$0xff]  ;;  %17351 = vst [vmem:[#allocation13_spill] sm:$0xff] %v15581_v6  ;;  %17352 = vst [vmem:[#allocation14_spill] sm:$0xff] %v15583_v26 }
 0x939   :  { %10379 = vmatpush1.bf16.msra.mxu0 %v10378_v19  ;;  %10411 = vmatpush1.bf16.msra.mxu1 %v10410_v10  ;;  %v15481_v25 = vpack.c.bf16 %v5169_v15, %v5165_v62  ;;  %v5200_v19 = vld [vmem:[%s16905_s9 + $0x158] sm:$0xff]  ;;  %v15603_v38 = vpack.c.bf16 %v5195_v63, %v5191_v3  ;;  %v5210_v62 = vld [vmem:[%s16905_s9 + $0x1a8] sm:$0xff]  ;;  %17364 = vst [vmem:[#allocation26_spill] sm:$0xff] %v15703_v13  ;;  %v5225_v63 = vld [vmem:[%s16906_s13 + $0x20] sm:$0xff] }
 0x93a   :  { %4963 = vmatprep.mubr.f32.mxu0 %v17151_v53  ;;  %5076 = vmatprep.mubr.f32.mxu1 %v17151_v53  ;;  %v5204_v10 = vld [vmem:[%s16905_s9 + $0x178] sm:$0xff]  ;;  %v5238_v2 = vld [vmem:[%s16906_s13 + $0x88] sm:$0xff] }
 0x93b   :  { %10413 = vmatprep.subr.bf16.mxu0 %v15423_v43  ;;  %10445 = vmatprep.subr.bf16.mxu1 %v15425_v9  ;;  %17354 = vst [vmem:[#allocation16_spill] sm:$0xff] %v15603_v38  ;;  %v15623_v55 = vpack.c.bf16 %v5204_v10, %v5200_v19  ;;  %v5208_v15 = vld [vmem:[%s16905_s9 + $0x198] sm:$0xff]  ;;  %v5230_v19 = vld [vmem:[%s16906_s13 + $0x48] sm:$0xff]  ;;  %v15744_v10 = vpack.c.bf16 %v5226_v57, %v5222_v31  ;;  %v5239_v57 = vld [vmem:[%s16906_s13 + $0x90] sm:$0xff] }
 0x93c   :  { %4964 = vmatmul.mubr.f32.vlgmr.msra.gmra.mrb[48].mxu0 %v17338_v0  ;;  %5077 = vmatmul.mubr.f32.vlgmr.msra.gmra.mrb[48].mxu1 %v17338_v0  ;;  %v5173_v0 = vld [vmem:[%s16905_s9 + $0x80] sm:$0xff]  ;;  %v5242_v47 = vld [vmem:[%s16906_s13 + $0xa8] sm:$0xff]  ;;  %v5244_v33 = vld [vmem:[%s16906_s13 + $0xb8] sm:$0xff] }
 0x93d   :  { %10415 = vmatpush1.bf16.msra.mxu0 %v15441_v4  ;;  %10447 = vmatpush1.bf16.msra.mxu1 %v15443_v32  ;;  %v15521_v29 = vpack.c.bf16 %v5177_v20, %v5173_v0  ;;  %17356 = vst [vmem:[#allocation18_spill] sm:$0xff] %v15623_v55  ;;  %v15661_v0 = vpack.c.bf16 %v5210_v62, %v5206_v49  ;;  %17367 = vst [vmem:[#allocation29_spill] sm:$0xff] %v15744_v10 }
 0x93e   :  { %4969 = vmatprep.mubr.f32.mxu0 %v17151_v53  ;;  %5082 = vmatprep.mubr.f32.mxu1 %v17151_v53  ;;  %v15663_v20 = vpack.c.bf16 %v5212_v56, %v5208_v15  ;;  %v15763_v62 = vpack.c.bf16 %v5227_v11, %v5223_v37  ;;  %v5229_v15 = vld [vmem:[%s16906_s13 + $0x40] sm:$0xff]  ;;  %v15815_v31 = vpack.c.bf16 %v5244_v33, %v5240_v60  ;;  %v5252_v37 = vld [vmem:[%s16906_s13 + $0xf8] sm:$0xff] }
 0x93f   :  { %10417 = vmatprep.subr.bf16.mxu0 %v15461_v12  ;;  %10449 = vmatprep.subr.bf16.mxu1 %v15463_v24  ;;  %17345 = vst [vmem:[#allocation48_spill] sm:$0xff] %v15521_v29  ;;  %17359 = vst [vmem:[#allocation21_spill] sm:$0xff] %v15661_v0  ;;  %v5233_v56 = vld [vmem:[%s16906_s13 + $0x60] sm:$0xff]  ;;  %v5260_v60 = vld [vmem:[%s16906_s13 + $0x138] sm:$0xff] }
 0x940   :  { %4970 = vmatmul.mubr.f32.gmra.mrb[50].mxu0 %v17339_v48  ;;  %5083 = vmatmul.mubr.f32.gmra.mrb[50].mxu1 %v17339_v48  ;;  %v5181_v48 = vld [vmem:[%s16905_s9 + $0xc0] sm:$0xff]  ;;  %17360 = vst [vmem:[#allocation22_spill] sm:$0xff] %v15663_v20  ;;  %v15801_v27 = vpack.c.bf16 %v5233_v56, %v5229_v15  ;;  %v5247_v56 = vld [vmem:[%s16906_s13 + $0xd0] sm:$0xff] }
 0x941   :  { %10419 = vmatpush1.bf16.msra.mxu0 %v15481_v25  ;;  %10451 = vmatpush1.bf16.msra.mxu1 %v15483_v36  ;;  %v15561_v23 = vpack.c.bf16 %v5185_v45, %v5181_v48  ;;  %v5217_v48 = vld [vmem:[%s16905_s9 + $0x1e0] sm:$0xff]  ;;  %v5215_v45 = vld [vmem:[%s16905_s9 + $0x1d0] sm:$0xff] }
 0x942   :  { %4975 = vmatprep.mubr.f32.mxu0 %v17151_v53  ;;  %5088 = vmatprep.mubr.f32.mxu1 %v17151_v53  ;;  %v15723_v3 = vpack.c.bf16 %v5219_v40, %v5215_v45  ;;  %v5241_v45 = vld [vmem:[%s16906_s13 + $0xa0] sm:$0xff]  ;;  %v15813_v40 = vpack.c.bf16 %v5242_v47, %v5238_v2  ;;  %v5258_v2 = vld [vmem:[%s16906_s13 + $0x128] sm:$0xff]  ;;  %v5256_v47 = vld [vmem:[%s16906_s13 + $0x118] sm:$0xff] }
 0x943   :  { %10421 = vmatprep.subr.bf16.mxu0 %v15501_v7  ;;  %10453 = vmatprep.subr.bf16.mxu1 %v15503_v58  ;;  %17349 = vst [vmem:[#allocation11_spill] sm:$0xff] %v15561_v23 }
 0x944   :  { %4976 = vmatmul.mubr.f32.gmra.mrb[52].mxu0 %v17340_v22  ;;  %5089 = vmatmul.mubr.f32.gmra.mrb[52].mxu1 %v17340_v22  ;;  %v5189_v22 = vld [vmem:[%s16905_s9 + $0x100] sm:$0xff]  ;;  %17366 = vst [vmem:[#allocation28_spill] sm:$0xff] %v15723_v3 }
 0x945   :  { %10423 = vmatpush1.bf16.msra.mxu0 %v15521_v29  ;;  %10455 = vmatpush1.bf16.msra.mxu1 %v15523_v5  ;;  %v15601_v35 = vpack.c.bf16 %v5193_v42, %v5189_v22  ;;  %v5228_v22 = vld [vmem:[%s16906_s13 + $0x38] sm:$0xff] }
 0x946   :  { %4981 = vmatprep.mubr.f32.mxu0 %v17151_v53  ;;  %5094 = vmatprep.mubr.f32.mxu1 %v17151_v53 }
 0x947   :  { %10425 = vmatprep.subr.bf16.mxu0 %v15541_v50  ;;  %10457 = vmatprep.subr.bf16.mxu1 %v15543_v44  ;;  %17353 = vst [vmem:[#allocation15_spill] sm:$0xff] %v15601_v35 }
 0x948   :  { %4982 = vmatmul.mubr.f32.gmra.mrb[54].mxu0 %v17341_v16  ;;  %5095 = vmatmul.mubr.f32.gmra.mrb[54].mxu1 %v17341_v16  ;;  %v5197_v16 = vld [vmem:[%s16905_s9 + $0x140] sm:$0xff] }
 0x949   :  { %10427 = vmatpush1.bf16.msra.mxu0 %v15561_v23  ;;  %10459 = vmatpush1.bf16.msra.mxu1 %v15563_v46  ;;  %v15641_v8 = vpack.c.bf16 %v5201_v28, %v5197_v16  ;;  %v15746_v16 = vpack.c.bf16 %v5228_v22, %v5224_v14  ;;  %v5234_v28 = vld [vmem:[%s16906_s13 + $0x68] sm:$0xff]  ;;  %v5243_v14 = vld [vmem:[%s16906_s13 + $0xb0] sm:$0xff] }
 0x94a   :  { %4987 = vmatprep.mubr.f32.mxu0 %v17151_v53  ;;  %5100 = vmatprep.mubr.f32.mxu1 %v17151_v53  ;;  %v5246_v22 = vld [vmem:[%s16906_s13 + $0xc8] sm:$0xff] }
 0x94b   :  { %10429 = vmatprep.subr.bf16.mxu0 %v15581_v6  ;;  %10461 = vmatprep.subr.bf16.mxu1 %v15583_v26  ;;  %17357 = vst [vmem:[#allocation19_spill] sm:$0xff] %v15641_v8  ;;  %17368 = vst [vmem:[#allocation30_spill] sm:$0xff] %v15746_v16 }
 0x94c   :  { %4988 = vmatmul.mubr.f32.gmra.mrb[56].mxu0 %v17342_v59  ;;  %5101 = vmatmul.mubr.f32.gmra.mrb[56].mxu1 %v17342_v59  ;;  %v5205_v59 = vld [vmem:[%s16905_s9 + $0x180] sm:$0xff] }
 0x94d   :  { %10431 = vmatpush1.bf16.msra.mxu0 %v15601_v35  ;;  %10463 = vmatpush1.bf16.msra.mxu1 %v15603_v38  ;;  %v15681_v41 = vpack.c.bf16 %v5209_v21, %v5205_v59  ;;  %v15775_v59 = vpack.c.bf16 %v5236_v51, %v5232_v61  ;;  %v5231_v21 = vld [vmem:[%s16906_s13 + $0x50] sm:$0xff]  ;;  %v5249_v61 = vld [vmem:[%s16906_s13 + $0xe0] sm:$0xff] }
 0x94e   :  { %4993 = vmatprep.mubr.f32.mxu0 %v17151_v53  ;;  %5106 = vmatprep.mubr.f32.mxu1 %v17151_v53 }
 0x94f   :  { %10433 = vmatprep.subr.bf16.mxu0 %v15621_v52  ;;  %10465 = vmatprep.subr.bf16.mxu1 %v15623_v55  ;;  %17361 = vst [vmem:[#allocation23_spill] sm:$0xff] %v15681_v41 }
 0x950   :  { %4994 = vmatmul.mubr.f32.gmra.mrb[58].mxu0 %v14386_v54  ;;  %5107 = vmatmul.mubr.f32.gmra.mrb[58].mxu1 %v14386_v54  ;;  %v5213_v54 = vld [vmem:[%s16905_s9 + $0x1c0] sm:$0xff] }
 0x951   :  { %10435 = vmatpush1.bf16.msra.mxu0 %v15641_v8  ;;  %10467 = vmatpush1.bf16.msra.mxu1 %v15643_v17  ;;  %v15721_v42 = vpack.c.bf16 %v5217_v48, %v5213_v54  ;;  %v15803_v54 = vpack.c.bf16 %v5235_v34, %v5231_v21  ;;  %v5237_v48 = vld [vmem:[%s16906_s13 + $0x80] sm:$0xff]  ;;  %v5251_v21 = vld [vmem:[%s16906_s13 + $0xf0] sm:$0xff]  ;;  %v5254_v34 = vld [vmem:[%s16906_s13 + $0x108] sm:$0xff] }
 0x952   :  { %4999 = vmatprep.mubr.f32.mxu0 %v17151_v53  ;;  %5112 = vmatprep.mubr.f32.mxu1 %v17151_v53  ;;  %v15839_v11 = vpack.c.bf16 %v5241_v45, %v5237_v48  ;;  %v15877_v48 = vpack.c.bf16 %v5251_v21, %v5247_v56  ;;  %v5253_v45 = vld [vmem:[%s16906_s13 + $0x100] sm:$0xff]  ;;  %v5268_v56 = vld [vmem:[%s16906_s13 + $0x178] sm:$0xff] }
 0x953   :  { %10437 = vmatprep.subr.bf16.mxu0 %v15661_v0  ;;  %10469 = vmatprep.subr.bf16.mxu1 %v15663_v20  ;;  %17365 = vst [vmem:[#allocation27_spill] sm:$0xff] %v15721_v42 }
 0x954   :  { %5000 = vmatmul.mubr.f32.gmra.mrb[60].mxu0 %v14478_v30  ;;  %5113 = vmatmul.mubr.f32.gmra.mrb[60].mxu1 %v14478_v30  ;;  %v5221_v30 = vld [vmem:[%s16906_s13] sm:$0xff]  ;;  %17370 = vst [vmem:[#allocation32_spill] sm:$0xff] %v15877_v48 }
 0x955   :  { %10439 = vmatpush1.bf16.msra.mxu0 %v15681_v41  ;;  %10471 = vmatpush1.bf16.msra.mxu1 %v15683_v18  ;;  %v15761_v49 = vpack.c.bf16 %v5225_v63, %v5221_v30  ;;  %v5250_v30 = vld [vmem:[%s16906_s13 + $0xe8] sm:$0xff]  ;;  %v5248_v63 = vld [vmem:[%s16906_s13 + $0xd8] sm:$0xff] }
 0x956   :  { %5005 = vmatprep.mubr.f32.mxu0 %v17151_v53  ;;  %5118 = vmatprep.mubr.f32.mxu1 %v17151_v53  ;;  %v15851_v51 = vpack.c.bf16 %v5250_v30, %v5246_v22  ;;  %v15853_v15 = vpack.c.bf16 %v5252_v37, %v5248_v63  ;;  %v15889_v22 = vpack.c.bf16 %v5260_v60, %v5256_v47  ;;  %v5255_v30 = vld [vmem:[%s16906_s13 + $0x110] sm:$0xff]  ;;  %v5262_v37 = vld [vmem:[%s16906_s13 + $0x148] sm:$0xff]  ;;  %v5265_v47 = vld [vmem:[%s16906_s13 + $0x160] sm:$0xff] }
 0x957   :  { %10441 = vmatprep.subr.bf16.mxu0 %v15701_v39  ;;  %10473 = vmatprep.subr.bf16.mxu1 %v15703_v13  ;;  %v5259_v63 = vld [vmem:[%s16906_s13 + $0x130] sm:$0xff] }
 0x958   :  { %5006 = vmatmul.mubr.f32.gmra.mrb[62].mxu0 %v14738_v1  ;;  %5119 = vmatmul.mubr.f32.gmra.mrb[62].mxu1 %v14738_v1  ;;  %v15773_v1 = vpack.c.bf16 %v5234_v28, %v5230_v19  ;;  %v15841_v19 = vpack.c.bf16 %v5243_v14, %v5239_v57  ;;  %v5245_v28 = vld [vmem:[%s16906_s13 + $0xc0] sm:$0xff]  ;;  %v15887_v14 = vpack.c.bf16 %v5258_v2, %v5254_v34 }
 0x959   :  { %10443 = vmatpush1.bf16.msra.mxu0 %v15721_v42  ;;  %10475 = vmatpush1.bf16.msra.mxu1 %v15723_v3  ;;  %v15875_v33 = vpack.c.bf16 %v5249_v61, %v5245_v28  ;;  %v5257_v57 = vld [vmem:[%s16906_s13 + $0x120] sm:$0xff]  ;;  %17372 = vst [vmem:[#allocation43_spill] sm:$0xff] %v15889_v22  ;;  %v5266_v28 = vld [vmem:[%s16906_s13 + $0x168] sm:$0xff]  ;;  %v5264_v61 = vld [vmem:[%s16906_s13 + $0x158] sm:$0xff]  ;;  %v15913_v34 = vpack.c.bf16 %v5259_v63, %v5255_v30 }
 0x95a   :  { %5397 = vmatprep.mubr.f32.mxu0 %v17151_v53  ;;  %5468 = vmatprep.mubr.f32.mxu1 %v17151_v53  ;;  %17371 = vst [vmem:[#allocation33_spill] sm:$0xff] %v15887_v14  ;;  %v15911_v21 = vpack.c.bf16 %v5257_v57, %v5253_v45  ;;  %v5261_v2 = vld [vmem:[%s16906_s13 + $0x140] sm:$0xff]  ;;  %v15923_v60 = vpack.c.bf16 %v5266_v28, %v5262_v37  ;;  %v5263_v45 = vld [vmem:[%s16906_s13 + $0x150] sm:$0xff]  ;;  %v5270_v30 = vld [vmem:[%s16906_s13 + $0x188] sm:$0xff] }
 0x95b   :  { %10477 = vmatprep.subr.bf16.mxu0 %v15744_v10  ;;  %10509 = vmatprep.subr.bf16.mxu1 %v15746_v16  ;;  %17369 = vst [vmem:[#allocation31_spill] sm:$0xff] %v15875_v33  ;;  %17374 = vst [vmem:[#allocation40_spill] sm:$0xff] %v15913_v34  ;;  %v5267_v57 = vld [vmem:[%s16906_s13 + $0x170] sm:$0xff]  ;;  %v5274_v63 = vld [vmem:[%s16906_s13 + $0x1a8] sm:$0xff] }
 0x95c   :  { %5398 = vmatmul.mubr.f32.vlgmr.msra.gmra.mrb[32].mxu0 %v17151_v53  ;;  %5469 = vmatmul.mubr.f32.vlgmr.msra.gmra.mrb[32].mxu1 %v17151_v53  ;;  %17373 = vst [vmem:[#allocation49_spill] sm:$0xff] %v15911_v21  ;;  %17375 = vst [vmem:[#allocation38_spill] sm:$0xff] %v15923_v60  ;;  %v5272_v37 = vld [vmem:[%s16906_s13 + $0x198] sm:$0xff] }
 0x95d   :  { %10479 = vmatpush1.bf16.msra.mxu0 %v15761_v49  ;;  %10511 = vmatpush1.bf16.msra.mxu1 %v15763_v62  ;;  %v5276_v28 = vld [vmem:[%s16906_s13 + $0x1b8] sm:$0xff] }
 0x95e   :  { %10481 = vmatprep.subr.bf16.mxu0 %v15773_v1  ;;  %10513 = vmatprep.subr.bf16.mxu1 %v15775_v59 }
 0x95f   :  { %5551 = vmatprep.mubr.f32.mxu0 %v17151_v53  ;;  %5622 = vmatprep.mubr.f32.mxu1 %v17151_v53 }
 0x961   :  { %10483 = vmatpush1.bf16.msra.mxu0 %v15801_v27  ;;  %10515 = vmatpush1.bf16.msra.mxu1 %v15803_v54 }
 0x962   :  { %10485 = vmatprep.subr.bf16.mxu0 %v15813_v40  ;;  %10517 = vmatprep.subr.bf16.mxu1 %v15815_v31 }
 0x965   :  { %10487 = vmatpush1.bf16.msra.mxu0 %v15839_v11  ;;  %10519 = vmatpush1.bf16.msra.mxu1 %v15841_v19 }
 0x966   :  { %10489 = vmatprep.subr.bf16.mxu0 %v15851_v51  ;;  %10521 = vmatprep.subr.bf16.mxu1 %v15853_v15 }
 0x969   :  { %10491 = vmatpush1.bf16.msra.mxu0 %v15875_v33  ;;  %10523 = vmatpush1.bf16.msra.mxu1 %v15877_v48  ;;  %v15925_v33 = vpack.c.bf16 %v5268_v56, %v5264_v61  ;;  %v15947_v61 = vpack.c.bf16 %v5265_v47, %v5261_v2  ;;  %v15949_v56 = vpack.c.bf16 %v5267_v57, %v5263_v45  ;;  %v5271_v2 = vld [vmem:[%s16906_s13 + $0x190] sm:$0xff]  ;;  %v5278_v45 = vld [vmem:[%s16906_s13 + $0x1c8] sm:$0xff] }
 0x96a   :  { %10493 = vmatprep.subr.bf16.mxu0 %v15887_v14  ;;  %10525 = vmatprep.subr.bf16.mxu1 %v15889_v22  ;;  %v5269_v22 = vld [vmem:[%s16906_s13 + $0x180] sm:$0xff]  ;;  %v15959_v48 = vpack.c.bf16 %v5274_v63, %v5270_v30  ;;  %v5275_v47 = vld [vmem:[%s16906_s13 + $0x1b0] sm:$0xff]  ;;  %v5282_v57 = vld [vmem:[%s16906_s13 + $0x1e8] sm:$0xff] }
 0x96b   :  { %17376 = vst [vmem:[#allocation36_spill] sm:$0xff] %v15925_v33  ;;  %17377 = vst [vmem:[#allocation34_spill] sm:$0xff] %v15949_v56  ;;  %v5273_v14 = vld [vmem:[%s16906_s13 + $0x1a0] sm:$0xff]  ;;  %v5280_v30 = vld [vmem:[%s16906_s13 + $0x1d8] sm:$0xff] }
 0x96c   :  { %v5284_v63 = vld [vmem:[%s16906_s13 + $0x1f8] sm:$0xff] }
 0x96d   :  { %10495 = vmatpush1.bf16.msra.mxu0 %v15911_v21  ;;  %10527 = vmatpush1.bf16.msra.mxu1 %v15913_v34  ;;  %v15961_v21 = vpack.c.bf16 %v5276_v28, %v5272_v37  ;;  %v15983_v37 = vpack.c.bf16 %v5273_v14, %v5269_v22  ;;  %v15985_v28 = vpack.c.bf16 %v5275_v47, %v5271_v2  ;;  %v5279_v14 = vld [vmem:[%s16906_s13 + $0x1d0] sm:$0xff] }
 0x96e   :  { %10497 = vmatprep.subr.bf16.mxu0 %v15923_v60  ;;  %10529 = vmatprep.subr.bf16.mxu1 %v15925_v33  ;;  %v5277_v33 = vld [vmem:[%s16906_s13 + $0x1c0] sm:$0xff]  ;;  %v15992_v60 = vpack.c.bf16 %v5282_v57, %v5278_v45  ;;  %v15994_v34 = vpack.c.bf16 %v5284_v63, %v5280_v30  ;;  %v5283_v22 = vld [vmem:[%s16906_s13 + $0x1f0] sm:$0xff] }
 0x96f   :  { %v16009_v47 = vpack.c.bf16 %v5283_v22, %v5279_v14  ;;  %v17380_v57 = vld [vmem:[#allocation42_spill] sm:$0xff] }
 0x971   :  { %10499 = vmatpush1.bf16.msra.mxu0 %v15947_v61  ;;  %10531 = vmatpush1.bf16.msra.mxu1 %v15949_v56  ;;  %v5281_v56 = vld [vmem:[%s16906_s13 + $0x1e0] sm:$0xff] }
 0x972   :  { %10501 = vmatprep.subr.bf16.mxu0 %v15959_v48  ;;  %10533 = vmatprep.subr.bf16.mxu1 %v15961_v21  ;;  %v16007_v2 = vpack.c.bf16 %v5281_v56, %v5277_v33  ;;  %v5285_v33 = vld [vmem:[%s16907_s10] sm:$0xf]  ;;  %v17378_v56 = vld [vmem:[#allocation41_spill] sm:$0xff] }
 0x973   :  { %v16057_v45 = vrot.slane %v5285_v33, %v17378_v56  ;;  %v16060_v30 = vrot.slane %v5285_v33, %v17380_v57 }
 0x975   :  { %10503 = vmatpush1.bf16.msra.mxu0 %v15983_v37  ;;  %10535 = vmatpush1.bf16.msra.mxu1 %v15985_v28  ;;  %17379 = vst [vmem:[#allocation51_spill] sm:$0xff] %v16057_v45 }
 0x976   :  { %10505 = vmatprep.subr.bf16.mxu0 %v15992_v60  ;;  %10537 = vmatprep.subr.bf16.mxu1 %v15994_v34 }
 0x979   :  { %10507 = vmatpush1.bf16.msra.mxu0 %v16007_v2  ;;  %10539 = vmatpush1.bf16.msra.mxu1 %v16009_v47 }
 0x97a   :  { %10541 = vmatprep.subr.bf16.mxu0 %v15423_v43  ;;  %10573 = vmatprep.subr.bf16.mxu1 %v15425_v9 }
 0x97c   :  { %5552 = vmatmul.mubr.f32.vlgmr.msra.gmra.mrb[62].mxu0 %v17151_v53  ;;  %5623 = vmatmul.mubr.f32.vlgmr.msra.gmra.mrb[62].mxu1 %v17151_v53 }
 0x97d   :  { %10543 = vmatpush1.bf16.msra.mxu0 %v15441_v4  ;;  %10575 = vmatpush1.bf16.msra.mxu1 %v15443_v32 }
 0x97e   :  { %10545 = vmatprep.subr.bf16.mxu0 %v15461_v12  ;;  %10577 = vmatprep.subr.bf16.mxu1 %v15463_v24 }
 0x97f   :  { %5756 = vmatprep.mubr.f32.mxu0 %v17151_v53  ;;  %5827 = vmatprep.mubr.f32.mxu1 %v17151_v53 }
 0x981   :  { %10547 = vmatpush1.bf16.msra.mxu0 %v15481_v25  ;;  %10579 = vmatpush1.bf16.msra.mxu1 %v15483_v36 }
 0x982   :  { %10549 = vmatprep.subr.bf16.mxu0 %v15501_v7  ;;  %10581 = vmatprep.subr.bf16.mxu1 %v15503_v58 }
 0x985   :  { %10551 = vmatpush1.bf16.msra.mxu0 %v15521_v29  ;;  %10583 = vmatpush1.bf16.msra.mxu1 %v15523_v5 }
 0x986   :  { %10553 = vmatprep.subr.bf16.mxu0 %v15541_v50  ;;  %10585 = vmatprep.subr.bf16.mxu1 %v15543_v44 }
 0x989   :  { %10555 = vmatpush1.bf16.msra.mxu0 %v15561_v23  ;;  %10587 = vmatpush1.bf16.msra.mxu1 %v15563_v46 }
 0x98a   :  { %10557 = vmatprep.subr.bf16.mxu0 %v15581_v6  ;;  %10589 = vmatprep.subr.bf16.mxu1 %v15583_v26 }
 0x98d   :  { %10559 = vmatpush1.bf16.msra.mxu0 %v15601_v35  ;;  %10591 = vmatpush1.bf16.msra.mxu1 %v15603_v38 }
 0x98e   :  { %10561 = vmatprep.subr.bf16.mxu0 %v15621_v52  ;;  %10593 = vmatprep.subr.bf16.mxu1 %v15623_v55 }
 0x991   :  { %10563 = vmatpush1.bf16.msra.mxu0 %v15641_v8  ;;  %10595 = vmatpush1.bf16.msra.mxu1 %v15643_v17 }
 0x992   :  { %10565 = vmatprep.subr.bf16.mxu0 %v15661_v0  ;;  %10597 = vmatprep.subr.bf16.mxu1 %v15663_v20  ;;  %v17383_v20 = vld [vmem:[#allocation47_spill] sm:$0xff] }
 0x993   :  { %v16069_v0 = vrot.slane %v5285_v33, %v17383_v20 }
 0x995   :  { %10567 = vmatpush1.bf16.msra.mxu0 %v15681_v41  ;;  %10599 = vmatpush1.bf16.msra.mxu1 %v15683_v18  ;;  %17384 = vst [vmem:[#allocation37_spill] sm:$0xff] %v16069_v0 }
 0x996   :  { %10569 = vmatprep.subr.bf16.mxu0 %v15701_v39  ;;  %10601 = vmatprep.subr.bf16.mxu1 %v15703_v13  ;;  %v17381_v39 = vld [vmem:[#allocation45_spill] sm:$0xff] }
 0x997   :  { %v16065_v18 = vrot.slane %v5285_v33, %v17381_v39 }
 0x999   :  { %10571 = vmatpush1.bf16.msra.mxu0 %v15721_v42  ;;  %10603 = vmatpush1.bf16.msra.mxu1 %v15723_v3  ;;  %17382 = vst [vmem:[#allocation35_spill] sm:$0xff] %v16065_v18 }
 0x99a   :  { %10605 = vmatprep.subr.bf16.mxu0 %v15744_v10  ;;  %10637 = vmatprep.subr.bf16.mxu1 %v15746_v16 }
 0xa2f   :  { %v5399_v63 = vpop.f32.mrb[32].mxu0  ;;  %v5470_v14 = vpop.f32.mrb[32].mxu1 }
 0xa30   :  { %v5479_v22 = vadd.f32 %v5399_v63, %v16057_v45  ;;  %v5401_v42 = vpop.f32.mrb[33].mxu0  ;;  %v5472_v3 = vpop.f32.mrb[33].mxu1  ;;  %v5481_v8 = vadd.f32 %v5470_v14, %v16069_v0 }
 0xa31   :  { %v5480_v10 = vadd.f32 %v5401_v42, %v16060_v30  ;;  %v5482_v41 = vadd.f32 %v5472_v3, %v16065_v18 }
 0xa32   :  { %v8619_v13 = vmul.f32 -1.442695, %v5479_v22 }
 0xa33   :  { %v8620_v16 = vmul.f32 -1.442695, %v5480_v10  ;;  %v8621_v17 = vmul.f32 -1.442695, %v5482_v41 }
 0xa34   :  { %11983 = vpow2.f32 %v8619_v13  ;;  %v5307_v13 = vld [vmem:[%s16908_s14] sm:$0xf] }
 0xa35   :  { %11985 = vpow2.f32 %v8620_v16  ;;  %v16076_v14 = vrot.slane %v5307_v13, %v17378_v56 }
 0xa36   :  { %11987 = vpow2.f32 %v8621_v17  ;;  %v16079_v17 = vrot.slane %v5307_v13, %v17380_v57  ;;  %v16091_v57 = vrot.slane %v5307_v13, %v17383_v20 }
 0xa37   :  { %11989 = vtanh.f32 %v5481_v8  ;;  %17385 = vst [vmem:[#allocation39_spill] sm:$0xff] %v16076_v14 }
 0xa3e   :  { %v11984_v63 = vpop.eup %11983 }
 0xa3f   :  { %v11986_v45 = vpop.eup %11985  ;;  %v5640_v55 = vadd.f32 1.0, %v11984_v63 }
 0xa40   :  { %v5646_v42 = vadd.f32 1.0, %v11986_v45  ;;  %v11988_v10 = vpop.eup %11987 }
 0xa41   :  { %11991 = vrcp.f32 %v5640_v55  ;;  %v11990_v3 = vpop.eup %11989  ;;  %v5653_v41 = vadd.f32 1.0, %v11988_v10 }
 0xa42   :  { %11993 = vrcp.f32 %v5646_v42 }
 0xa43   :  { %11995 = vrcp.f32 %v5653_v41 }
 0xa4b   :  { %v11992_v16 = vpop.eup %11991 }
 0xa4c   :  { %v11994_v33 = vpop.eup %11993  ;;  %v5657_v22 = vmul.f32 %v11992_v16, %v11990_v3  ;;  %v16087_v16 = vrot.slane %v5307_v13, %v17381_v39 }
 0xa4d   :  { %v5656_v0 = vmul.f32 0.0, %v11994_v33  ;;  %v11996_v33 = vpop.eup %11995 }
 0xa4f   :  { %v16081_v8 = vadd.f32 %v5657_v22, %v5656_v0  ;;  %v5553_v55 = vpop.f32.mrb[62].mxu0  ;;  %v5624_v45 = vpop.f32.mrb[62].mxu1 }
 0xa50   :  { %v5633_v63 = vadd.f32 %v5553_v55, %v16076_v14  ;;  %v5555_v42 = vpop.f32.mrb[63].mxu0  ;;  %v5626_v18 = vpop.f32.mrb[63].mxu1  ;;  %v5635_v55 = vadd.f32 %v5624_v45, %v16091_v57 }
 0xa51   :  { %11997 = vtanh.f32 %v16081_v8  ;;  %v5634_v10 = vadd.f32 %v5555_v42, %v16079_v17  ;;  %v5636_v0 = vadd.f32 %v5626_v18, %v16087_v16 }
 0xa52   :  { %v8622_v3 = vmul.f32 -1.442695, %v5633_v63 }
 0xa53   :  { %v8623_v56 = vmul.f32 -1.442695, %v5634_v10  ;;  %v8624_v41 = vmul.f32 -1.442695, %v5636_v0  ;;  %v17387_v10 = vld [vmem:[#allocation31_spill] sm:$0xff] }
 0xa54   :  { %11999 = vpow2.f32 %v8622_v3  ;;  %v17388_v3 = vld [vmem:[#allocation32_spill] sm:$0xff] }
 0xa55   :  { %12001 = vpow2.f32 %v8623_v56 }
 0xa56   :  { %12003 = vpow2.f32 %v8624_v41  ;;  %v17390_v41 = vld [vmem:[#allocation43_spill] sm:$0xff] }
 0xa57   :  { %12005 = vtanh.f32 %v5635_v55 }
 0xa5b   :  { %v11998_v22 = vpop.eup %11997 }
 0xa5c   :  { %v16094_v14 = vmul.f32 %v11998_v22, %v11996_v33  ;;  %v17389_v22 = vld [vmem:[#allocation33_spill] sm:$0xff] }
 0xa5e   :  { %17386 = vst [vmem:[#allocation44_spill] sm:$0xff] %v16094_v14  ;;  %v12000_v42 = vpop.eup %11999  ;;  %5757 = vmatmul.mubr.f32.vlgmr.msra.gmra.mrb[34].mxu0 %v16094_v14  ;;  %5828 = vmatmul.mubr.f32.vlgmr.msra.gmra.mrb[34].mxu1 %v16094_v14  ;;  %v17394_v14 = vld [vmem:[#allocation36_spill] sm:$0xff] }
 0xa5f   :  { %v12002_v39 = vpop.eup %12001  ;;  %v5664_v63 = vadd.f32 1.0, %v12000_v42  ;;  %10607 = vmatpush1.bf16.msra.mxu0 %v15761_v49  ;;  %10639 = vmatpush1.bf16.msra.mxu1 %v15763_v62 }
 0xa60   :  { %v5670_v20 = vadd.f32 1.0, %v12002_v39  ;;  %10609 = vmatprep.subr.bf16.mxu0 %v15773_v1  ;;  %10641 = vmatprep.subr.bf16.mxu1 %v15775_v59  ;;  %v12004_v18 = vpop.eup %12003  ;;  %v17391_v39 = vld [vmem:[#allocation49_spill] sm:$0xff] }
 0xa61   :  { %12007 = vrcp.f32 %v5664_v63  ;;  %5910 = vmatprep.mubr.f32.mxu0 %v17151_v53  ;;  %5981 = vmatprep.mubr.f32.mxu1 %v17151_v53  ;;  %v12006_v13 = vpop.eup %12005  ;;  %v5677_v33 = vadd.f32 1.0, %v12004_v18  ;;  %v17392_v63 = vld [vmem:[#allocation40_spill] sm:$0xff]  ;;  %v17395_v18 = vld [vmem:[#allocation34_spill] sm:$0xff] }
 0xa62   :  { %12009 = vrcp.f32 %v5670_v20  ;;  %v17393_v20 = vld [vmem:[#allocation38_spill] sm:$0xff] }
 0xa63   :  { %10611 = vmatpush1.bf16.msra.mxu0 %v15801_v27  ;;  %10643 = vmatpush1.bf16.msra.mxu1 %v15803_v54  ;;  %12011 = vrcp.f32 %v5677_v33  ;;  %v17398_v33 = vld [vmem:[#allocation19_spill] sm:$0xff] }
 0xa64   :  { %10613 = vmatprep.subr.bf16.mxu0 %v15813_v40  ;;  %10645 = vmatprep.subr.bf16.mxu1 %v15815_v31 }
 0xa67   :  { %10615 = vmatpush1.bf16.msra.mxu0 %v15839_v11  ;;  %10647 = vmatpush1.bf16.msra.mxu1 %v15841_v19 }
 0xa68   :  { %10617 = vmatprep.subr.bf16.mxu0 %v15851_v51  ;;  %10649 = vmatprep.subr.bf16.mxu1 %v15853_v15 }
 0xa6b   :  { %v12008_v45 = vpop.eup %12007  ;;  %10619 = vmatpush1.bf16.msra.mxu0 %v17387_v10  ;;  %10651 = vmatpush1.bf16.msra.mxu1 %v17388_v3 }
 0xa6c   :  { %v12010_v56 = vpop.eup %12009  ;;  %v5681_v0 = vmul.f32 %v12008_v45, %v12006_v13  ;;  %10621 = vmatprep.subr.bf16.mxu0 %v17389_v22  ;;  %10653 = vmatprep.subr.bf16.mxu1 %v17390_v41 }
 0xa6d   :  { %v5680_v55 = vmul.f32 0.0, %v12010_v56  ;;  %v12012_v13 = vpop.eup %12011 }
 0xa6f   :  { %v16116_v42 = vadd.f32 %v5681_v0, %v5680_v55  ;;  %10623 = vmatpush1.bf16.msra.mxu0 %v17391_v39  ;;  %10655 = vmatpush1.bf16.msra.mxu1 %v17392_v63  ;;  %v17397_v0 = vld [vmem:[#allocation18_spill] sm:$0xff]  ;;  %v17399_v55 = vld [vmem:[#allocation20_spill] sm:$0xff] }
 0xa70   :  { %10625 = vmatprep.subr.bf16.mxu0 %v17393_v20  ;;  %10657 = vmatprep.subr.bf16.mxu1 %v17394_v14 }
 0xa71   :  { %12013 = vtanh.f32 %v16116_v42 }
 0xa73   :  { %10627 = vmatpush1.bf16.msra.mxu0 %v15947_v61  ;;  %10659 = vmatpush1.bf16.msra.mxu1 %v17395_v18 }
 0xa74   :  { %10629 = vmatprep.subr.bf16.mxu0 %v15959_v48  ;;  %10661 = vmatprep.subr.bf16.mxu1 %v15961_v21 }
 0xa77   :  { %10631 = vmatpush1.bf16.msra.mxu0 %v15983_v37  ;;  %10663 = vmatpush1.bf16.msra.mxu1 %v15985_v28 }
 0xa78   :  { %10633 = vmatprep.subr.bf16.mxu0 %v15992_v60  ;;  %10665 = vmatprep.subr.bf16.mxu1 %v15994_v34 }
 0xa7b   :  { %v12014_v45 = vpop.eup %12013  ;;  %10635 = vmatpush1.bf16.msra.mxu0 %v16007_v2  ;;  %10667 = vmatpush1.bf16.msra.mxu1 %v16009_v47 }
 0xa7c   :  { %v16133_v56 = vmul.f32 %v12014_v45, %v12012_v13  ;;  %10669 = vmatprep.subr.bf16.mxu0 %v15423_v43  ;;  %10701 = vmatprep.subr.bf16.mxu1 %v15425_v9  ;;  %v17400_v13 = vld [vmem:[#allocation21_spill] sm:$0xff]  ;;  %v17401_v45 = vld [vmem:[#allocation22_spill] sm:$0xff] }
 0xa7e   :  { %17396 = vst [vmem:[#allocation41_spill] sm:$0xff] %v16133_v56  ;;  %5911 = vmatmul.mubr.f32.vlgmr.msra.gmra.mrb[60].mxu0 %v16133_v56  ;;  %5982 = vmatmul.mubr.f32.vlgmr.msra.gmra.mrb[60].mxu1 %v16133_v56  ;;  %v17402_v56 = vld [vmem:[#allocation23_spill] sm:$0xff] }
 0xa7f   :  { %10671 = vmatpush1.bf16.msra.mxu0 %v15441_v4  ;;  %10703 = vmatpush1.bf16.msra.mxu1 %v15443_v32 }
 0xa80   :  { %10673 = vmatprep.subr.bf16.mxu0 %v15461_v12  ;;  %10705 = vmatprep.subr.bf16.mxu1 %v15463_v24 }
 0xa81   :  { %6116 = vmatprep.mubr.f32.mxu0 %v17151_v53  ;;  %6187 = vmatprep.mubr.f32.mxu1 %v17151_v53 }
 0xa83   :  { %10675 = vmatpush1.bf16.msra.mxu0 %v15481_v25  ;;  %10707 = vmatpush1.bf16.msra.mxu1 %v15483_v36 }
 0xa84   :  { %10677 = vmatprep.subr.bf16.mxu0 %v15501_v7  ;;  %10709 = vmatprep.subr.bf16.mxu1 %v15503_v58 }
 0xa87   :  { %10679 = vmatpush1.bf16.msra.mxu0 %v15521_v29  ;;  %10711 = vmatpush1.bf16.msra.mxu1 %v15523_v5 }
 0xa88   :  { %10681 = vmatprep.subr.bf16.mxu0 %v15541_v50  ;;  %10713 = vmatprep.subr.bf16.mxu1 %v15543_v44 }
 0xa8b   :  { %10683 = vmatpush1.bf16.msra.mxu0 %v15561_v23  ;;  %10715 = vmatpush1.bf16.msra.mxu1 %v15563_v46  ;;  %v17410_v46 = vld [vmem:[#allocation51_spill] sm:$0xff] }
 0xa8c   :  { %10685 = vmatprep.subr.bf16.mxu0 %v15581_v6  ;;  %10717 = vmatprep.subr.bf16.mxu1 %v15583_v26  ;;  %v17403_v6 = vld [vmem:[#allocation24_spill] sm:$0xff]  ;;  %v17404_v26 = vld [vmem:[#allocation25_spill] sm:$0xff] }
 0xa8f   :  { %10687 = vmatpush1.bf16.msra.mxu0 %v15601_v35  ;;  %10719 = vmatpush1.bf16.msra.mxu1 %v15603_v38  ;;  %v17405_v35 = vld [vmem:[#allocation26_spill] sm:$0xff]  ;;  %v17406_v38 = vld [vmem:[#allocation27_spill] sm:$0xff] }
 0xa90   :  { %10689 = vmatprep.subr.bf16.mxu0 %v15621_v52  ;;  %10721 = vmatprep.subr.bf16.mxu1 %v17397_v0  ;;  %v17407_v52 = vld [vmem:[#allocation28_spill] sm:$0xff]  ;;  %v17408_v0 = vld [vmem:[#allocation29_spill] sm:$0xff] }
 0xa93   :  { %10691 = vmatpush1.bf16.msra.mxu0 %v17398_v33  ;;  %10723 = vmatpush1.bf16.msra.mxu1 %v17399_v55  ;;  %v17409_v33 = vld [vmem:[#allocation30_spill] sm:$0xff] }
 0xa94   :  { %10693 = vmatprep.subr.bf16.mxu0 %v17400_v13  ;;  %10725 = vmatprep.subr.bf16.mxu1 %v17401_v45 }
 0xa97   :  { %10695 = vmatpush1.bf16.msra.mxu0 %v17402_v56  ;;  %10727 = vmatpush1.bf16.msra.mxu1 %v17403_v6 }
 0xa98   :  { %10697 = vmatprep.subr.bf16.mxu0 %v17404_v26  ;;  %10729 = vmatprep.subr.bf16.mxu1 %v17405_v35  ;;  %v17411_v35 = vld [vmem:[#allocation35_spill] sm:$0xff] }
 0xa9b   :  { %10699 = vmatpush1.bf16.msra.mxu0 %v17406_v38  ;;  %10731 = vmatpush1.bf16.msra.mxu1 %v17407_v52  ;;  %v17412_v52 = vld [vmem:[#allocation37_spill] sm:$0xff] }
 0xa9c   :  { %10733 = vmatprep.subr.bf16.mxu0 %v17408_v0  ;;  %10765 = vmatprep.subr.bf16.mxu1 %v17409_v33 }
 0xb31   :  { %v5758_v55 = vpop.f32.mrb[34].mxu0  ;;  %v5829_v13 = vpop.f32.mrb[34].mxu1 }
 0xb32   :  { %v5838_v45 = vadd.f32 %v5758_v55, %v17410_v46  ;;  %v5760_v23 = vpop.f32.mrb[35].mxu0  ;;  %v5831_v56 = vpop.f32.mrb[35].mxu1  ;;  %v5840_v5 = vadd.f32 %v5829_v13, %v17412_v52  ;;  %v17413_v52 = vld [vmem:[#allocation39_spill] sm:$0xff] }
 0xb33   :  { %v5839_v6 = vadd.f32 %v5760_v23, %v16060_v30  ;;  %v5841_v38 = vadd.f32 %v5831_v56, %v17411_v35 }
 0xb34   :  { %v8625_v44 = vmul.f32 -1.442695, %v5838_v45 }
 0xb35   :  { %v8626_v26 = vmul.f32 -1.442695, %v5839_v6  ;;  %v8627_v50 = vmul.f32 -1.442695, %v5841_v38 }
 0xb36   :  { %12015 = vpow2.f32 %v8625_v44 }
 0xb37   :  { %12017 = vpow2.f32 %v8626_v26 }
 0xb38   :  { %12019 = vpow2.f32 %v8627_v50 }
 0xb39   :  { %12021 = vtanh.f32 %v5840_v5 }
 0xb40   :  { %v12016_v0 = vpop.eup %12015 }
 0xb41   :  { %v12018_v29 = vpop.eup %12017  ;;  %v5999_v33 = vadd.f32 1.0, %v12016_v0 }
 0xb42   :  { %v6005_v58 = vadd.f32 1.0, %v12018_v29  ;;  %v12020_v55 = vpop.eup %12019 }
 0xb43   :  { %12023 = vrcp.f32 %v5999_v33  ;;  %v12022_v46 = vpop.eup %12021  ;;  %v6012_v44 = vadd.f32 1.0, %v12020_v55 }
 0xb44   :  { %12025 = vrcp.f32 %v6005_v58 }
 0xb45   :  { %12027 = vrcp.f32 %v6012_v44 }
 0xb4d   :  { %v12024_v23 = vpop.eup %12023 }
 0xb4e   :  { %v12026_v45 = vpop.eup %12025  ;;  %v6016_v6 = vmul.f32 %v12024_v23, %v12022_v46 }
 0xb4f   :  { %v6015_v26 = vmul.f32 %v12026_v45, %v16081_v8  ;;  %v12028_v8 = vpop.eup %12027 }
 0xb51   :  { %v16178_v56 = vadd.f32 %v6016_v6, %v6015_v26  ;;  %v5912_v38 = vpop.f32.mrb[60].mxu0  ;;  %v5983_v13 = vpop.f32.mrb[60].mxu1 }
 0xb52   :  { %v5992_v0 = vadd.f32 %v5912_v38, %v17413_v52  ;;  %v5914_v50 = vpop.f32.mrb[61].mxu0  ;;  %v5985_v5 = vpop.f32.mrb[61].mxu1  ;;  %v5994_v45 = vadd.f32 %v5983_v13, %v16091_v57 }
 0xb53   :  { %v5993_v29 = vadd.f32 %v5914_v50, %v16079_v17  ;;  %12029 = vtanh.f32 %v16178_v56  ;;  %v5995_v46 = vadd.f32 %v5985_v5, %v16087_v16 }
 0xb54   :  { %v8628_v58 = vmul.f32 -1.442695, %v5992_v0 }
 0xb55   :  { %v8629_v33 = vmul.f32 -1.442695, %v5993_v29  ;;  %v8630_v23 = vmul.f32 -1.442695, %v5995_v46 }
 0xb56   :  { %12031 = vpow2.f32 %v8628_v58 }
 0xb57   :  { %12033 = vpow2.f32 %v8629_v33 }
 0xb58   :  { %12035 = vpow2.f32 %v8630_v23 }
 0xb59   :  { %12037 = vtanh.f32 %v5994_v45  ;;  %v17414_v45 = vld [vmem:[#allocation46_spill] sm:$0xff] }
 0xb5d   :  { %v12030_v55 = vpop.eup %12029 }
 0xb5e   :  { %v6019_v6 = vmul.f32 %v12030_v55, %v12028_v8 }
 0xb60   :  { %v12032_v44 = vpop.eup %12031  ;;  %6117 = vmatmul.mubr.f32.vlgmr.msra.gmra.mrb[36].mxu0 %v6019_v6  ;;  %6188 = vmatmul.mubr.f32.vlgmr.msra.gmra.mrb[36].mxu1 %v6019_v6  ;;  %v17415_v6 = vld [vmem:[#allocation48_spill] sm:$0xff] }
 0xb61   :  { %v12034_v26 = vpop.eup %12033  ;;  %v6023_v38 = vadd.f32 1.0, %v12032_v44  ;;  %10735 = vmatpush1.bf16.msra.mxu0 %v15761_v49  ;;  %10767 = vmatpush1.bf16.msra.mxu1 %v15763_v62  ;;  %v17416_v44 = vld [vmem:[#allocation8_spill] sm:$0xff] }
 0xb62   :  { %v6029_v0 = vadd.f32 1.0, %v12034_v26  ;;  %10737 = vmatprep.subr.bf16.mxu0 %v15773_v1  ;;  %10769 = vmatprep.subr.bf16.mxu1 %v15775_v59  ;;  %v12036_v13 = vpop.eup %12035  ;;  %v17417_v26 = vld [vmem:[#allocation9_spill] sm:$0xff] }
 0xb63   :  { %12039 = vrcp.f32 %v6023_v38  ;;  %6270 = vmatprep.mubr.f32.mxu0 %v17151_v53  ;;  %6341 = vmatprep.mubr.f32.mxu1 %v17151_v53  ;;  %v12038_v50 = vpop.eup %12037  ;;  %v6036_v33 = vadd.f32 1.0, %v12036_v13  ;;  %v17418_v38 = vld [vmem:[#allocation10_spill] sm:$0xff]  ;;  %v17420_v13 = vld [vmem:[#allocation12_spill] sm:$0xff] }
 0xb64   :  { %12041 = vrcp.f32 %v6029_v0  ;;  %v17419_v0 = vld [vmem:[#allocation11_spill] sm:$0xff] }
 0xb65   :  { %10739 = vmatpush1.bf16.msra.mxu0 %v15801_v27  ;;  %10771 = vmatpush1.bf16.msra.mxu1 %v15803_v54  ;;  %12043 = vrcp.f32 %v6036_v33  ;;  %v17425_v33 = vld [vmem:[#allocation17_spill] sm:$0xff] }
 0xb66   :  { %10741 = vmatprep.subr.bf16.mxu0 %v15813_v40  ;;  %10773 = vmatprep.subr.bf16.mxu1 %v15815_v31 }
 0xb69   :  { %10743 = vmatpush1.bf16.msra.mxu0 %v15839_v11  ;;  %10775 = vmatpush1.bf16.msra.mxu1 %v15841_v19 }
 0xb6a   :  { %10745 = vmatprep.subr.bf16.mxu0 %v15851_v51  ;;  %10777 = vmatprep.subr.bf16.mxu1 %v15853_v15 }
 0xb6d   :  { %v12040_v5 = vpop.eup %12039  ;;  %10747 = vmatpush1.bf16.msra.mxu0 %v17387_v10  ;;  %10779 = vmatpush1.bf16.msra.mxu1 %v17388_v3 }
 0xb6e   :  { %v12042_v29 = vpop.eup %12041  ;;  %v6040_v58 = vmul.f32 %v12040_v5, %v12038_v50  ;;  %10749 = vmatprep.subr.bf16.mxu0 %v17389_v22  ;;  %10781 = vmatprep.subr.bf16.mxu1 %v17390_v41  ;;  %v17421_v50 = vld [vmem:[#allocation13_spill] sm:$0xff]  ;;  %v17422_v5 = vld [vmem:[#allocation14_spill] sm:$0xff] }
 0xb6f   :  { %v6039_v46 = vmul.f32 %v12042_v29, %v16116_v42  ;;  %v12044_v42 = vpop.eup %12043  ;;  %v17423_v29 = vld [vmem:[#allocation15_spill] sm:$0xff] }
 0xb71   :  { %v16204_v8 = vadd.f32 %v6040_v58, %v6039_v46  ;;  %10751 = vmatpush1.bf16.msra.mxu0 %v17391_v39  ;;  %10783 = vmatpush1.bf16.msra.mxu1 %v17392_v63  ;;  %v17424_v58 = vld [vmem:[#allocation16_spill] sm:$0xff]  ;;  %v17426_v46 = vld [vmem:[#allocation18_spill] sm:$0xff] }
 0xb72   :  { %10753 = vmatprep.subr.bf16.mxu0 %v17393_v20  ;;  %10785 = vmatprep.subr.bf16.mxu1 %v17394_v14 }
 0xb73   :  { %12045 = vtanh.f32 %v16204_v8 }
 0xb75   :  { %10755 = vmatpush1.bf16.msra.mxu0 %v15947_v61  ;;  %10787 = vmatpush1.bf16.msra.mxu1 %v17395_v18 }
 0xb76   :  { %10757 = vmatprep.subr.bf16.mxu0 %v15959_v48  ;;  %10789 = vmatprep.subr.bf16.mxu1 %v15961_v21 }
 0xb79   :  { %10759 = vmatpush1.bf16.msra.mxu0 %v15983_v37  ;;  %10791 = vmatpush1.bf16.msra.mxu1 %v15985_v28 }
 0xb7a   :  { %10761 = vmatprep.subr.bf16.mxu0 %v15992_v60  ;;  %10793 = vmatprep.subr.bf16.mxu1 %v15994_v34 }
 0xb7d   :  { %v12046_v55 = vpop.eup %12045  ;;  %10763 = vmatpush1.bf16.msra.mxu0 %v16007_v2  ;;  %10795 = vmatpush1.bf16.msra.mxu1 %v16009_v47 }
 0xb7e   :  { %v6043_v23 = vmul.f32 %v12046_v55, %v12044_v42  ;;  %10797 = vmatprep.subr.bf16.mxu0 %v15423_v43  ;;  %10829 = vmatprep.subr.bf16.mxu1 %v15425_v9  ;;  %v17427_v42 = vld [vmem:[#allocation19_spill] sm:$0xff]  ;;  %v17428_v55 = vld [vmem:[#allocation20_spill] sm:$0xff] }
 0xb80   :  { %6271 = vmatmul.mubr.f32.vlgmr.msra.gmra.mrb[58].mxu0 %v6043_v23  ;;  %6342 = vmatmul.mubr.f32.vlgmr.msra.gmra.mrb[58].mxu1 %v6043_v23  ;;  %v17429_v23 = vld [vmem:[#allocation21_spill] sm:$0xff] }
 0xb81   :  { %10799 = vmatpush1.bf16.msra.mxu0 %v15441_v4  ;;  %10831 = vmatpush1.bf16.msra.mxu1 %v15443_v32 }
 0xb82   :  { %10801 = vmatprep.subr.bf16.mxu0 %v15461_v12  ;;  %10833 = vmatprep.subr.bf16.mxu1 %v15463_v24 }
 0xb83   :  { %6476 = vmatprep.mubr.f32.mxu0 %v17151_v53  ;;  %6547 = vmatprep.mubr.f32.mxu1 %v17151_v53 }
 0xb85   :  { %10803 = vmatpush1.bf16.msra.mxu0 %v15481_v25  ;;  %10835 = vmatpush1.bf16.msra.mxu1 %v15483_v36 }
 0xb86   :  { %10805 = vmatprep.subr.bf16.mxu0 %v15501_v7  ;;  %10837 = vmatprep.subr.bf16.mxu1 %v17414_v45 }
 0xb89   :  { %10807 = vmatpush1.bf16.msra.mxu0 %v17415_v6  ;;  %10839 = vmatpush1.bf16.msra.mxu1 %v17416_v44 }
 0xb8a   :  { %10809 = vmatprep.subr.bf16.mxu0 %v17417_v26  ;;  %10841 = vmatprep.subr.bf16.mxu1 %v17418_v38  ;;  %v17439_v38 = vld [vmem:[#allocation51_spill] sm:$0xff] }
 0xb8d   :  { %10811 = vmatpush1.bf16.msra.mxu0 %v17419_v0  ;;  %10843 = vmatpush1.bf16.msra.mxu1 %v17420_v13  ;;  %v17430_v0 = vld [vmem:[#allocation22_spill] sm:$0xff]  ;;  %v17431_v13 = vld [vmem:[#allocation23_spill] sm:$0xff] }
 0xb8e   :  { %10813 = vmatprep.subr.bf16.mxu0 %v17421_v50  ;;  %10845 = vmatprep.subr.bf16.mxu1 %v17422_v5  ;;  %v17432_v50 = vld [vmem:[#allocation24_spill] sm:$0xff]  ;;  %v17433_v5 = vld [vmem:[#allocation25_spill] sm:$0xff] }
 0xb91   :  { %10815 = vmatpush1.bf16.msra.mxu0 %v17423_v29  ;;  %10847 = vmatpush1.bf16.msra.mxu1 %v17424_v58  ;;  %v17434_v29 = vld [vmem:[#allocation26_spill] sm:$0xff]  ;;  %v17435_v58 = vld [vmem:[#allocation27_spill] sm:$0xff] }
 0xb92   :  { %10817 = vmatprep.subr.bf16.mxu0 %v17425_v33  ;;  %10849 = vmatprep.subr.bf16.mxu1 %v17426_v46  ;;  %v17436_v33 = vld [vmem:[#allocation28_spill] sm:$0xff]  ;;  %v17437_v46 = vld [vmem:[#allocation29_spill] sm:$0xff] }
 0xb95   :  { %10819 = vmatpush1.bf16.msra.mxu0 %v17427_v42  ;;  %10851 = vmatpush1.bf16.msra.mxu1 %v17428_v55  ;;  %v17438_v42 = vld [vmem:[#allocation30_spill] sm:$0xff] }
 0xb96   :  { %10821 = vmatprep.subr.bf16.mxu0 %v17429_v23  ;;  %10853 = vmatprep.subr.bf16.mxu1 %v17430_v0 }
 0xb99   :  { %10823 = vmatpush1.bf16.msra.mxu0 %v17431_v13  ;;  %10855 = vmatpush1.bf16.msra.mxu1 %v17432_v50 }
 0xb9a   :  { %10825 = vmatprep.subr.bf16.mxu0 %v17433_v5  ;;  %10857 = vmatprep.subr.bf16.mxu1 %v17434_v29 }
 0xb9d   :  { %10827 = vmatpush1.bf16.msra.mxu0 %v17435_v58  ;;  %10859 = vmatpush1.bf16.msra.mxu1 %v17436_v33  ;;  %v17440_v33 = vld [vmem:[#allocation37_spill] sm:$0xff] }
 0xb9e   :  { %10861 = vmatprep.subr.bf16.mxu0 %v17437_v46  ;;  %10893 = vmatprep.subr.bf16.mxu1 %v17438_v42 }
 0xc33   :  { %v6118_v55 = vpop.f32.mrb[36].mxu0  ;;  %v6189_v23 = vpop.f32.mrb[36].mxu1 }
 0xc34   :  { %v6198_v0 = vadd.f32 %v6118_v55, %v17439_v38  ;;  %v6120_v26 = vpop.f32.mrb[37].mxu0  ;;  %v6191_v13 = vpop.f32.mrb[37].mxu1  ;;  %v6200_v6 = vadd.f32 %v6189_v23, %v17440_v33 }
 0xc35   :  { %v6199_v50 = vadd.f32 %v6120_v26, %v16060_v30  ;;  %v6201_v58 = vadd.f32 %v6191_v13, %v17411_v35 }
 0xc36   :  { %v8631_v44 = vmul.f32 -1.442695, %v6198_v0 }
 0xc37   :  { %v8632_v5 = vmul.f32 -1.442695, %v6199_v50  ;;  %v8633_v29 = vmul.f32 -1.442695, %v6201_v58 }
 0xc38   :  { %12047 = vpow2.f32 %v8631_v44 }
 0xc39   :  { %12049 = vpow2.f32 %v8632_v5 }
 0xc3a   :  { %12051 = vpow2.f32 %v8633_v29 }
 0xc3b   :  { %12053 = vtanh.f32 %v6200_v6 }
 0xc42   :  { %v12048_v46 = vpop.eup %12047 }
 0xc43   :  { %v12050_v45 = vpop.eup %12049  ;;  %v6359_v42 = vadd.f32 1.0, %v12048_v46 }
 0xc44   :  { %v6365_v7 = vadd.f32 1.0, %v12050_v45  ;;  %v12052_v55 = vpop.eup %12051 }
 0xc45   :  { %12055 = vrcp.f32 %v6359_v42  ;;  %v12054_v38 = vpop.eup %12053  ;;  %v6372_v44 = vadd.f32 1.0, %v12052_v55 }
 0xc46   :  { %12057 = vrcp.f32 %v6365_v7 }
 0xc47   :  { %12059 = vrcp.f32 %v6372_v44 }
 0xc4f   :  { %v12056_v26 = vpop.eup %12055 }
 0xc50   :  { %v12058_v0 = vpop.eup %12057  ;;  %v6376_v50 = vmul.f32 %v12056_v26, %v12054_v38 }
 0xc51   :  { %v6375_v5 = vmul.f32 %v12058_v0, %v16178_v56  ;;  %v12060_v56 = vpop.eup %12059 }
 0xc53   :  { %v16262_v13 = vadd.f32 %v6376_v50, %v6375_v5  ;;  %v6272_v58 = vpop.f32.mrb[58].mxu0  ;;  %v6343_v23 = vpop.f32.mrb[58].mxu1 }
 0xc54   :  { %v6352_v46 = vadd.f32 %v6272_v58, %v17413_v52  ;;  %v6274_v29 = vpop.f32.mrb[59].mxu0  ;;  %v6345_v6 = vpop.f32.mrb[59].mxu1  ;;  %v6354_v0 = vadd.f32 %v6343_v23, %v16091_v57 }
 0xc55   :  { %v6353_v45 = vadd.f32 %v6274_v29, %v16079_v17  ;;  %12061 = vtanh.f32 %v16262_v13  ;;  %v6355_v38 = vadd.f32 %v6345_v6, %v16087_v16 }
 0xc56   :  { %v8634_v7 = vmul.f32 -1.442695, %v6352_v46 }
 0xc57   :  { %v8635_v42 = vmul.f32 -1.442695, %v6353_v45  ;;  %v8636_v26 = vmul.f32 -1.442695, %v6355_v38 }
 0xc58   :  { %12063 = vpow2.f32 %v8634_v7 }
 0xc59   :  { %12065 = vpow2.f32 %v8635_v42 }
 0xc5a   :  { %12067 = vpow2.f32 %v8636_v26 }
 0xc5b   :  { %12069 = vtanh.f32 %v6354_v0  ;;  %v17441_v0 = vld [vmem:[#allocation50_spill] sm:$0xff] }
 0xc5f   :  { %v12062_v55 = vpop.eup %12061 }
 0xc60   :  { %v6379_v50 = vmul.f32 %v12062_v55, %v12060_v56 }
 0xc62   :  { %v12064_v44 = vpop.eup %12063  ;;  %6477 = vmatmul.mubr.f32.vlgmr.msra.gmra.mrb[38].mxu0 %v6379_v50  ;;  %6548 = vmatmul.mubr.f32.vlgmr.msra.gmra.mrb[38].mxu1 %v6379_v50  ;;  %v17442_v50 = vld [vmem:[#allocation46_spill] sm:$0xff] }
 0xc63   :  { %v12066_v5 = vpop.eup %12065  ;;  %v6383_v58 = vadd.f32 1.0, %v12064_v44  ;;  %10863 = vmatpush1.bf16.msra.mxu0 %v15761_v49  ;;  %10895 = vmatpush1.bf16.msra.mxu1 %v15763_v62  ;;  %v17443_v44 = vld [vmem:[#allocation48_spill] sm:$0xff] }
 0xc64   :  { %v6389_v46 = vadd.f32 1.0, %v12066_v5  ;;  %10865 = vmatprep.subr.bf16.mxu0 %v15773_v1  ;;  %10897 = vmatprep.subr.bf16.mxu1 %v15775_v59  ;;  %v12068_v23 = vpop.eup %12067  ;;  %v17444_v5 = vld [vmem:[#allocation8_spill] sm:$0xff] }
 0xc65   :  { %12071 = vrcp.f32 %v6383_v58  ;;  %6630 = vmatprep.mubr.f32.mxu0 %v17151_v53  ;;  %6701 = vmatprep.mubr.f32.mxu1 %v17151_v53  ;;  %v12070_v29 = vpop.eup %12069  ;;  %v6396_v42 = vadd.f32 1.0, %v12068_v23  ;;  %v17445_v58 = vld [vmem:[#allocation9_spill] sm:$0xff]  ;;  %v17447_v23 = vld [vmem:[#allocation11_spill] sm:$0xff] }
 0xc66   :  { %12073 = vrcp.f32 %v6389_v46  ;;  %v17446_v46 = vld [vmem:[#allocation10_spill] sm:$0xff] }
 0xc67   :  { %10867 = vmatpush1.bf16.msra.mxu0 %v15801_v27  ;;  %10899 = vmatpush1.bf16.msra.mxu1 %v15803_v54  ;;  %12075 = vrcp.f32 %v6396_v42  ;;  %v17452_v42 = vld [vmem:[#allocation16_spill] sm:$0xff] }
 0xc68   :  { %10869 = vmatprep.subr.bf16.mxu0 %v15813_v40  ;;  %10901 = vmatprep.subr.bf16.mxu1 %v15815_v31 }
 0xc6b   :  { %10871 = vmatpush1.bf16.msra.mxu0 %v15839_v11  ;;  %10903 = vmatpush1.bf16.msra.mxu1 %v15841_v19 }
 0xc6c   :  { %10873 = vmatprep.subr.bf16.mxu0 %v15851_v51  ;;  %10905 = vmatprep.subr.bf16.mxu1 %v15853_v15 }
 0xc6f   :  { %v12072_v6 = vpop.eup %12071  ;;  %10875 = vmatpush1.bf16.msra.mxu0 %v17387_v10  ;;  %10907 = vmatpush1.bf16.msra.mxu1 %v17388_v3 }
 0xc70   :  { %v12074_v45 = vpop.eup %12073  ;;  %v6400_v7 = vmul.f32 %v12072_v6, %v12070_v29  ;;  %10877 = vmatprep.subr.bf16.mxu0 %v17389_v22  ;;  %10909 = vmatprep.subr.bf16.mxu1 %v17390_v41  ;;  %v17448_v29 = vld [vmem:[#allocation12_spill] sm:$0xff]  ;;  %v17449_v6 = vld [vmem:[#allocation13_spill] sm:$0xff] }
 0xc71   :  { %v6399_v38 = vmul.f32 %v12074_v45, %v16204_v8  ;;  %v12076_v8 = vpop.eup %12075  ;;  %v17450_v45 = vld [vmem:[#allocation14_spill] sm:$0xff] }
 0xc73   :  { %v16288_v56 = vadd.f32 %v6400_v7, %v6399_v38  ;;  %10879 = vmatpush1.bf16.msra.mxu0 %v17391_v39  ;;  %10911 = vmatpush1.bf16.msra.mxu1 %v17392_v63  ;;  %v17451_v7 = vld [vmem:[#allocation15_spill] sm:$0xff]  ;;  %v17453_v38 = vld [vmem:[#allocation17_spill] sm:$0xff] }
 0xc74   :  { %10881 = vmatprep.subr.bf16.mxu0 %v17393_v20  ;;  %10913 = vmatprep.subr.bf16.mxu1 %v17394_v14 }
 0xc75   :  { %12077 = vtanh.f32 %v16288_v56 }
 0xc77   :  { %10883 = vmatpush1.bf16.msra.mxu0 %v15947_v61  ;;  %10915 = vmatpush1.bf16.msra.mxu1 %v17395_v18 }
 0xc78   :  { %10885 = vmatprep.subr.bf16.mxu0 %v15959_v48  ;;  %10917 = vmatprep.subr.bf16.mxu1 %v15961_v21 }
 0xc7b   :  { %10887 = vmatpush1.bf16.msra.mxu0 %v15983_v37  ;;  %10919 = vmatpush1.bf16.msra.mxu1 %v15985_v28 }
 0xc7c   :  { %10889 = vmatprep.subr.bf16.mxu0 %v15992_v60  ;;  %10921 = vmatprep.subr.bf16.mxu1 %v15994_v34 }
 0xc7f   :  { %v12078_v55 = vpop.eup %12077  ;;  %10891 = vmatpush1.bf16.msra.mxu0 %v16007_v2  ;;  %10923 = vmatpush1.bf16.msra.mxu1 %v16009_v47 }
 0xc80   :  { %v6403_v26 = vmul.f32 %v12078_v55, %v12076_v8  ;;  %10925 = vmatprep.subr.bf16.mxu0 %v15423_v43  ;;  %10957 = vmatprep.subr.bf16.mxu1 %v15425_v9  ;;  %v17454_v8 = vld [vmem:[#allocation18_spill] sm:$0xff]  ;;  %v17455_v55 = vld [vmem:[#allocation19_spill] sm:$0xff] }
 0xc82   :  { %6631 = vmatmul.mubr.f32.vlgmr.msra.gmra.mrb[56].mxu0 %v6403_v26  ;;  %6702 = vmatmul.mubr.f32.vlgmr.msra.gmra.mrb[56].mxu1 %v6403_v26  ;;  %v17456_v26 = vld [vmem:[#allocation20_spill] sm:$0xff] }
 0xc83   :  { %10927 = vmatpush1.bf16.msra.mxu0 %v15441_v4  ;;  %10959 = vmatpush1.bf16.msra.mxu1 %v15443_v32 }
 0xc84   :  { %10929 = vmatprep.subr.bf16.mxu0 %v15461_v12  ;;  %10961 = vmatprep.subr.bf16.mxu1 %v15463_v24 }
 0xc85   :  { %6836 = vmatprep.mubr.f32.mxu0 %v17151_v53  ;;  %6907 = vmatprep.mubr.f32.mxu1 %v17151_v53 }
 0xc87   :  { %10931 = vmatpush1.bf16.msra.mxu0 %v15481_v25  ;;  %10963 = vmatpush1.bf16.msra.mxu1 %v15483_v36 }
 0xc88   :  { %10933 = vmatprep.subr.bf16.mxu0 %v17441_v0  ;;  %10965 = vmatprep.subr.bf16.mxu1 %v17442_v50 }
 0xc8b   :  { %10935 = vmatpush1.bf16.msra.mxu0 %v17443_v44  ;;  %10967 = vmatpush1.bf16.msra.mxu1 %v17444_v5 }
 0xc8c   :  { %10937 = vmatprep.subr.bf16.mxu0 %v17445_v58  ;;  %10969 = vmatprep.subr.bf16.mxu1 %v17446_v46  ;;  %v17457_v46 = vld [vmem:[#allocation21_spill] sm:$0xff]  ;;  %v17467_v58 = vld [vmem:[#allocation51_spill] sm:$0xff] }
 0xc8f   :  { %10939 = vmatpush1.bf16.msra.mxu0 %v17447_v23  ;;  %10971 = vmatpush1.bf16.msra.mxu1 %v17448_v29  ;;  %v17458_v23 = vld [vmem:[#allocation22_spill] sm:$0xff]  ;;  %v17459_v29 = vld [vmem:[#allocation23_spill] sm:$0xff] }
 0xc90   :  { %10941 = vmatprep.subr.bf16.mxu0 %v17449_v6  ;;  %10973 = vmatprep.subr.bf16.mxu1 %v17450_v45  ;;  %v17460_v6 = vld [vmem:[#allocation24_spill] sm:$0xff]  ;;  %v17461_v45 = vld [vmem:[#allocation25_spill] sm:$0xff] }
 0xc93   :  { %10943 = vmatpush1.bf16.msra.mxu0 %v17451_v7  ;;  %10975 = vmatpush1.bf16.msra.mxu1 %v17452_v42  ;;  %v17462_v7 = vld [vmem:[#allocation26_spill] sm:$0xff]  ;;  %v17463_v42 = vld [vmem:[#allocation27_spill] sm:$0xff] }
 0xc94   :  { %10945 = vmatprep.subr.bf16.mxu0 %v17453_v38  ;;  %10977 = vmatprep.subr.bf16.mxu1 %v17454_v8  ;;  %v17464_v38 = vld [vmem:[#allocation28_spill] sm:$0xff]  ;;  %v17465_v8 = vld [vmem:[#allocation29_spill] sm:$0xff] }
 0xc97   :  { %10947 = vmatpush1.bf16.msra.mxu0 %v17455_v55  ;;  %10979 = vmatpush1.bf16.msra.mxu1 %v17456_v26  ;;  %v17466_v55 = vld [vmem:[#allocation30_spill] sm:$0xff] }
 0xc98   :  { %10949 = vmatprep.subr.bf16.mxu0 %v17457_v46  ;;  %10981 = vmatprep.subr.bf16.mxu1 %v17458_v23 }
 0xc9b   :  { %10951 = vmatpush1.bf16.msra.mxu0 %v17459_v29  ;;  %10983 = vmatpush1.bf16.msra.mxu1 %v17460_v6 }
 0xc9c   :  { %10953 = vmatprep.subr.bf16.mxu0 %v17461_v45  ;;  %10985 = vmatprep.subr.bf16.mxu1 %v17462_v7 }
 0xc9f   :  { %10955 = vmatpush1.bf16.msra.mxu0 %v17463_v42  ;;  %10987 = vmatpush1.bf16.msra.mxu1 %v17464_v38 }
 0xca0   :  { %10989 = vmatprep.subr.bf16.mxu0 %v17465_v8  ;;  %11021 = vmatprep.subr.bf16.mxu1 %v17466_v55 }
 0xd35   :  { %v6478_v26 = vpop.f32.mrb[38].mxu0  ;;  %v6549_v46 = vpop.f32.mrb[38].mxu1 }
 0xd36   :  { %v6558_v23 = vadd.f32 %v6478_v26, %v17467_v58  ;;  %v6480_v5 = vpop.f32.mrb[39].mxu0  ;;  %v6551_v29 = vpop.f32.mrb[39].mxu1  ;;  %v6560_v38 = vadd.f32 %v6549_v46, %v17440_v33 }
 0xd37   :  { %v6559_v6 = vadd.f32 %v6480_v5, %v16060_v30  ;;  %v6561_v42 = vadd.f32 %v6551_v29, %v17411_v35 }
 0xd38   :  { %v8637_v44 = vmul.f32 -1.442695, %v6558_v23 }
 0xd39   :  { %v8638_v45 = vmul.f32 -1.442695, %v6559_v6  ;;  %v8639_v7 = vmul.f32 -1.442695, %v6561_v42 }
 0xd3a   :  { %12079 = vpow2.f32 %v8637_v44 }
 0xd3b   :  { %12081 = vpow2.f32 %v8638_v45 }
 0xd3c   :  { %12083 = vpow2.f32 %v8639_v7 }
 0xd3d   :  { %12085 = vtanh.f32 %v6560_v38 }
 0xd44   :  { %v12080_v8 = vpop.eup %12079 }
 0xd45   :  { %v12082_v50 = vpop.eup %12081  ;;  %v6719_v55 = vadd.f32 1.0, %v12080_v8 }
 0xd46   :  { %v6725_v0 = vadd.f32 1.0, %v12082_v50  ;;  %v12084_v26 = vpop.eup %12083 }
 0xd47   :  { %12087 = vrcp.f32 %v6719_v55  ;;  %v12086_v58 = vpop.eup %12085  ;;  %v6732_v44 = vadd.f32 1.0, %v12084_v26 }
 0xd48   :  { %12089 = vrcp.f32 %v6725_v0 }
 0xd49   :  { %12091 = vrcp.f32 %v6732_v44 }
 0xd51   :  { %v12088_v5 = vpop.eup %12087 }
 0xd52   :  { %v12090_v23 = vpop.eup %12089  ;;  %v6736_v6 = vmul.f32 %v12088_v5, %v12086_v58 }
 0xd53   :  { %v6735_v45 = vmul.f32 %v12090_v23, %v16262_v13  ;;  %v12092_v13 = vpop.eup %12091 }
 0xd55   :  { %v16346_v29 = vadd.f32 %v6736_v6, %v6735_v45  ;;  %v6632_v42 = vpop.f32.mrb[56].mxu0  ;;  %v6703_v46 = vpop.f32.mrb[56].mxu1 }
 0xd56   :  { %v6712_v8 = vadd.f32 %v6632_v42, %v17413_v52  ;;  %v6634_v7 = vpop.f32.mrb[57].mxu0  ;;  %v6705_v38 = vpop.f32.mrb[57].mxu1  ;;  %v6714_v23 = vadd.f32 %v6703_v46, %v16091_v57 }
 0xd57   :  { %v6713_v50 = vadd.f32 %v6634_v7, %v16079_v17  ;;  %12093 = vtanh.f32 %v16346_v29  ;;  %v6715_v58 = vadd.f32 %v6705_v38, %v16087_v16 }
 0xd58   :  { %v8640_v0 = vmul.f32 -1.442695, %v6712_v8 }
 0xd59   :  { %v8641_v55 = vmul.f32 -1.442695, %v6713_v50  ;;  %v8642_v5 = vmul.f32 -1.442695, %v6715_v58 }
 0xd5a   :  { %12095 = vpow2.f32 %v8640_v0 }
 0xd5b   :  { %12097 = vpow2.f32 %v8641_v55 }
 0xd5c   :  { %12099 = vpow2.f32 %v8642_v5 }
 0xd5d   :  { %12101 = vtanh.f32 %v6714_v23  ;;  %v17468_v23 = vld [vmem:[#allocation50_spill] sm:$0xff] }
 0xd61   :  { %v12094_v26 = vpop.eup %12093 }
 0xd62   :  { %v6739_v6 = vmul.f32 %v12094_v26, %v12092_v13 }
 0xd64   :  { %v12096_v44 = vpop.eup %12095  ;;  %6837 = vmatmul.mubr.f32.vlgmr.msra.gmra.mrb[40].mxu0 %v6739_v6  ;;  %6908 = vmatmul.mubr.f32.vlgmr.msra.gmra.mrb[40].mxu1 %v6739_v6  ;;  %v17469_v6 = vld [vmem:[#allocation46_spill] sm:$0xff] }
 0xd65   :  { %v12098_v45 = vpop.eup %12097  ;;  %v6743_v42 = vadd.f32 1.0, %v12096_v44  ;;  %10991 = vmatpush1.bf16.msra.mxu0 %v15761_v49  ;;  %11023 = vmatpush1.bf16.msra.mxu1 %v15763_v62  ;;  %v17470_v44 = vld [vmem:[#allocation48_spill] sm:$0xff] }
 0xd66   :  { %v6749_v8 = vadd.f32 1.0, %v12098_v45  ;;  %10993 = vmatprep.subr.bf16.mxu0 %v15773_v1  ;;  %11025 = vmatprep.subr.bf16.mxu1 %v15775_v59  ;;  %v12100_v46 = vpop.eup %12099  ;;  %v17471_v45 = vld [vmem:[#allocation8_spill] sm:$0xff] }
 0xd67   :  { %12103 = vrcp.f32 %v6743_v42  ;;  %6990 = vmatprep.mubr.f32.mxu0 %v17151_v53  ;;  %7061 = vmatprep.mubr.f32.mxu1 %v17151_v53  ;;  %v12102_v7 = vpop.eup %12101  ;;  %v6756_v55 = vadd.f32 1.0, %v12100_v46  ;;  %v17472_v42 = vld [vmem:[#allocation9_spill] sm:$0xff]  ;;  %v17474_v46 = vld [vmem:[#allocation11_spill] sm:$0xff] }
 0xd68   :  { %12105 = vrcp.f32 %v6749_v8  ;;  %v17473_v8 = vld [vmem:[#allocation10_spill] sm:$0xff] }
 0xd69   :  { %10995 = vmatpush1.bf16.msra.mxu0 %v15801_v27  ;;  %11027 = vmatpush1.bf16.msra.mxu1 %v15803_v54  ;;  %12107 = vrcp.f32 %v6756_v55  ;;  %v17479_v55 = vld [vmem:[#allocation16_spill] sm:$0xff] }
 0xd6a   :  { %10997 = vmatprep.subr.bf16.mxu0 %v15813_v40  ;;  %11029 = vmatprep.subr.bf16.mxu1 %v15815_v31 }
 0xd6d   :  { %10999 = vmatpush1.bf16.msra.mxu0 %v15839_v11  ;;  %11031 = vmatpush1.bf16.msra.mxu1 %v15841_v19 }
 0xd6e   :  { %11001 = vmatprep.subr.bf16.mxu0 %v15851_v51  ;;  %11033 = vmatprep.subr.bf16.mxu1 %v15853_v15 }
 0xd71   :  { %v12104_v38 = vpop.eup %12103  ;;  %11003 = vmatpush1.bf16.msra.mxu0 %v17387_v10  ;;  %11035 = vmatpush1.bf16.msra.mxu1 %v17388_v3 }
 0xd72   :  { %v12106_v50 = vpop.eup %12105  ;;  %v6760_v0 = vmul.f32 %v12104_v38, %v12102_v7  ;;  %11005 = vmatprep.subr.bf16.mxu0 %v17389_v22  ;;  %11037 = vmatprep.subr.bf16.mxu1 %v17390_v41  ;;  %v17475_v7 = vld [vmem:[#allocation12_spill] sm:$0xff]  ;;  %v17476_v38 = vld [vmem:[#allocation13_spill] sm:$0xff] }
 0xd73   :  { %v6759_v58 = vmul.f32 %v12106_v50, %v16288_v56  ;;  %v12108_v56 = vpop.eup %12107  ;;  %v17477_v50 = vld [vmem:[#allocation14_spill] sm:$0xff] }
 0xd75   :  { %v16372_v13 = vadd.f32 %v6760_v0, %v6759_v58  ;;  %11007 = vmatpush1.bf16.msra.mxu0 %v17391_v39  ;;  %11039 = vmatpush1.bf16.msra.mxu1 %v17392_v63  ;;  %v17478_v0 = vld [vmem:[#allocation15_spill] sm:$0xff]  ;;  %v17480_v58 = vld [vmem:[#allocation17_spill] sm:$0xff] }
 0xd76   :  { %11009 = vmatprep.subr.bf16.mxu0 %v17393_v20  ;;  %11041 = vmatprep.subr.bf16.mxu1 %v17394_v14 }
 0xd77   :  { %12109 = vtanh.f32 %v16372_v13 }
 0xd79   :  { %11011 = vmatpush1.bf16.msra.mxu0 %v15947_v61  ;;  %11043 = vmatpush1.bf16.msra.mxu1 %v17395_v18 }
 0xd7a   :  { %11013 = vmatprep.subr.bf16.mxu0 %v15959_v48  ;;  %11045 = vmatprep.subr.bf16.mxu1 %v15961_v21 }
 0xd7d   :  { %11015 = vmatpush1.bf16.msra.mxu0 %v15983_v37  ;;  %11047 = vmatpush1.bf16.msra.mxu1 %v15985_v28 }
 0xd7e   :  { %11017 = vmatprep.subr.bf16.mxu0 %v15992_v60  ;;  %11049 = vmatprep.subr.bf16.mxu1 %v15994_v34 }
 0xd81   :  { %v12110_v26 = vpop.eup %12109  ;;  %11019 = vmatpush1.bf16.msra.mxu0 %v16007_v2  ;;  %11051 = vmatpush1.bf16.msra.mxu1 %v16009_v47 }
 0xd82   :  { %v6763_v5 = vmul.f32 %v12110_v26, %v12108_v56  ;;  %11053 = vmatprep.subr.bf16.mxu0 %v15423_v43  ;;  %11085 = vmatprep.subr.bf16.mxu1 %v15425_v9  ;;  %v17481_v56 = vld [vmem:[#allocation18_spill] sm:$0xff]  ;;  %v17482_v26 = vld [vmem:[#allocation19_spill] sm:$0xff] }
 0xd84   :  { %6991 = vmatmul.mubr.f32.vlgmr.msra.gmra.mrb[54].mxu0 %v6763_v5  ;;  %7062 = vmatmul.mubr.f32.vlgmr.msra.gmra.mrb[54].mxu1 %v6763_v5  ;;  %v17483_v5 = vld [vmem:[#allocation20_spill] sm:$0xff] }
 0xd85   :  { %11055 = vmatpush1.bf16.msra.mxu0 %v15441_v4  ;;  %11087 = vmatpush1.bf16.msra.mxu1 %v15443_v32 }
 0xd86   :  { %11057 = vmatprep.subr.bf16.mxu0 %v15461_v12  ;;  %11089 = vmatprep.subr.bf16.mxu1 %v15463_v24 }
 0xd87   :  { %7196 = vmatprep.mubr.f32.mxu0 %v17151_v53  ;;  %7267 = vmatprep.mubr.f32.mxu1 %v17151_v53 }
 0xd89   :  { %11059 = vmatpush1.bf16.msra.mxu0 %v15481_v25  ;;  %11091 = vmatpush1.bf16.msra.mxu1 %v15483_v36 }
 0xd8a   :  { %11061 = vmatprep.subr.bf16.mxu0 %v17468_v23  ;;  %11093 = vmatprep.subr.bf16.mxu1 %v17469_v6 }
 0xd8d   :  { %11063 = vmatpush1.bf16.msra.mxu0 %v17470_v44  ;;  %11095 = vmatpush1.bf16.msra.mxu1 %v17471_v45 }
 0xd8e   :  { %11065 = vmatprep.subr.bf16.mxu0 %v17472_v42  ;;  %11097 = vmatprep.subr.bf16.mxu1 %v17473_v8  ;;  %v17484_v8 = vld [vmem:[#allocation21_spill] sm:$0xff]  ;;  %v17494_v42 = vld [vmem:[#allocation51_spill] sm:$0xff] }
 0xd91   :  { %11067 = vmatpush1.bf16.msra.mxu0 %v17474_v46  ;;  %11099 = vmatpush1.bf16.msra.mxu1 %v17475_v7  ;;  %v17485_v46 = vld [vmem:[#allocation22_spill] sm:$0xff]  ;;  %v17486_v7 = vld [vmem:[#allocation23_spill] sm:$0xff] }
 0xd92   :  { %11069 = vmatprep.subr.bf16.mxu0 %v17476_v38  ;;  %11101 = vmatprep.subr.bf16.mxu1 %v17477_v50  ;;  %v17487_v38 = vld [vmem:[#allocation24_spill] sm:$0xff]  ;;  %v17488_v50 = vld [vmem:[#allocation25_spill] sm:$0xff] }
 0xd95   :  { %11071 = vmatpush1.bf16.msra.mxu0 %v17478_v0  ;;  %11103 = vmatpush1.bf16.msra.mxu1 %v17479_v55  ;;  %v17489_v0 = vld [vmem:[#allocation26_spill] sm:$0xff]  ;;  %v17490_v55 = vld [vmem:[#allocation27_spill] sm:$0xff] }
 0xd96   :  { %11073 = vmatprep.subr.bf16.mxu0 %v17480_v58  ;;  %11105 = vmatprep.subr.bf16.mxu1 %v17481_v56  ;;  %v17491_v58 = vld [vmem:[#allocation28_spill] sm:$0xff]  ;;  %v17492_v56 = vld [vmem:[#allocation29_spill] sm:$0xff] }
 0xd99   :  { %11075 = vmatpush1.bf16.msra.mxu0 %v17482_v26  ;;  %11107 = vmatpush1.bf16.msra.mxu1 %v17483_v5  ;;  %v17493_v26 = vld [vmem:[#allocation30_spill] sm:$0xff] }
 0xd9a   :  { %11077 = vmatprep.subr.bf16.mxu0 %v17484_v8  ;;  %11109 = vmatprep.subr.bf16.mxu1 %v17485_v46 }
 0xd9d   :  { %11079 = vmatpush1.bf16.msra.mxu0 %v17486_v7  ;;  %11111 = vmatpush1.bf16.msra.mxu1 %v17487_v38 }
 0xd9e   :  { %11081 = vmatprep.subr.bf16.mxu0 %v17488_v50  ;;  %11113 = vmatprep.subr.bf16.mxu1 %v17489_v0 }
 0xda1   :  { %11083 = vmatpush1.bf16.msra.mxu0 %v17490_v55  ;;  %11115 = vmatpush1.bf16.msra.mxu1 %v17491_v58 }
 0xda2   :  { %11117 = vmatprep.subr.bf16.mxu0 %v17492_v56  ;;  %11149 = vmatprep.subr.bf16.mxu1 %v17493_v26 }
 0xe37   :  { %v6838_v5 = vpop.f32.mrb[40].mxu0  ;;  %v6909_v8 = vpop.f32.mrb[40].mxu1 }
 0xe38   :  { %v6918_v46 = vadd.f32 %v6838_v5, %v17494_v42  ;;  %v6840_v45 = vpop.f32.mrb[41].mxu0  ;;  %v6911_v7 = vpop.f32.mrb[41].mxu1  ;;  %v6920_v58 = vadd.f32 %v6909_v8, %v17440_v33 }
 0xe39   :  { %v6919_v38 = vadd.f32 %v6840_v45, %v16060_v30  ;;  %v6921_v55 = vadd.f32 %v6911_v7, %v17411_v35 }
 0xe3a   :  { %v8643_v44 = vmul.f32 -1.442695, %v6918_v46 }
 0xe3b   :  { %v8644_v50 = vmul.f32 -1.442695, %v6919_v38  ;;  %v8645_v0 = vmul.f32 -1.442695, %v6921_v55 }
 0xe3c   :  { %12111 = vpow2.f32 %v8643_v44 }
 0xe3d   :  { %12113 = vpow2.f32 %v8644_v50 }
 0xe3e   :  { %12115 = vpow2.f32 %v8645_v0 }
 0xe3f   :  { %12117 = vtanh.f32 %v6920_v58 }
 0xe46   :  { %v12112_v56 = vpop.eup %12111 }
 0xe47   :  { %v12114_v6 = vpop.eup %12113  ;;  %v7079_v26 = vadd.f32 1.0, %v12112_v56 }
 0xe48   :  { %v7085_v23 = vadd.f32 1.0, %v12114_v6  ;;  %v12116_v5 = vpop.eup %12115 }
 0xe49   :  { %12119 = vrcp.f32 %v7079_v26  ;;  %v12118_v42 = vpop.eup %12117  ;;  %v7092_v44 = vadd.f32 1.0, %v12116_v5 }
 0xe4a   :  { %12121 = vrcp.f32 %v7085_v23 }
 0xe4b   :  { %12123 = vrcp.f32 %v7092_v44 }
 0xe53   :  { %v12120_v45 = vpop.eup %12119 }
 0xe54   :  { %v12122_v46 = vpop.eup %12121  ;;  %v7096_v38 = vmul.f32 %v12120_v45, %v12118_v42 }
 0xe55   :  { %v7095_v50 = vmul.f32 %v12122_v46, %v16346_v29  ;;  %v12124_v29 = vpop.eup %12123 }
 0xe57   :  { %v16430_v7 = vadd.f32 %v7096_v38, %v7095_v50  ;;  %v6992_v55 = vpop.f32.mrb[54].mxu0  ;;  %v7063_v8 = vpop.f32.mrb[54].mxu1 }
 0xe58   :  { %v7072_v56 = vadd.f32 %v6992_v55, %v17413_v52  ;;  %v6994_v0 = vpop.f32.mrb[55].mxu0  ;;  %v7065_v58 = vpop.f32.mrb[55].mxu1  ;;  %v7074_v46 = vadd.f32 %v7063_v8, %v16091_v57 }
 0xe59   :  { %v7073_v6 = vadd.f32 %v6994_v0, %v16079_v17  ;;  %12125 = vtanh.f32 %v16430_v7  ;;  %v7075_v42 = vadd.f32 %v7065_v58, %v16087_v16 }
 0xe5a   :  { %v8646_v23 = vmul.f32 -1.442695, %v7072_v56 }
 0xe5b   :  { %v8647_v26 = vmul.f32 -1.442695, %v7073_v6  ;;  %v8648_v45 = vmul.f32 -1.442695, %v7075_v42 }
 0xe5c   :  { %12127 = vpow2.f32 %v8646_v23 }
 0xe5d   :  { %12129 = vpow2.f32 %v8647_v26 }
 0xe5e   :  { %12131 = vpow2.f32 %v8648_v45 }
 0xe5f   :  { %12133 = vtanh.f32 %v7074_v46  ;;  %v17495_v46 = vld [vmem:[#allocation50_spill] sm:$0xff] }
 0xe63   :  { %v12126_v5 = vpop.eup %12125 }
 0xe64   :  { %v7099_v38 = vmul.f32 %v12126_v5, %v12124_v29 }
 0xe66   :  { %v12128_v44 = vpop.eup %12127  ;;  %7197 = vmatmul.mubr.f32.vlgmr.msra.gmra.mrb[42].mxu0 %v7099_v38  ;;  %7268 = vmatmul.mubr.f32.vlgmr.msra.gmra.mrb[42].mxu1 %v7099_v38  ;;  %v17496_v38 = vld [vmem:[#allocation46_spill] sm:$0xff] }
 0xe67   :  { %v12130_v50 = vpop.eup %12129  ;;  %v7103_v55 = vadd.f32 1.0, %v12128_v44  ;;  %11119 = vmatpush1.bf16.msra.mxu0 %v15761_v49  ;;  %11151 = vmatpush1.bf16.msra.mxu1 %v15763_v62  ;;  %v17497_v44 = vld [vmem:[#allocation48_spill] sm:$0xff] }
 0xe68   :  { %v7109_v56 = vadd.f32 1.0, %v12130_v50  ;;  %11121 = vmatprep.subr.bf16.mxu0 %v15773_v1  ;;  %11153 = vmatprep.subr.bf16.mxu1 %v15775_v59  ;;  %v12132_v8 = vpop.eup %12131  ;;  %v17498_v50 = vld [vmem:[#allocation8_spill] sm:$0xff] }
 0xe69   :  { %12135 = vrcp.f32 %v7103_v55  ;;  %7350 = vmatprep.mubr.f32.mxu0 %v17151_v53  ;;  %7421 = vmatprep.mubr.f32.mxu1 %v17151_v53  ;;  %v12134_v0 = vpop.eup %12133  ;;  %v7116_v26 = vadd.f32 1.0, %v12132_v8  ;;  %v17499_v55 = vld [vmem:[#allocation9_spill] sm:$0xff]  ;;  %v17501_v8 = vld [vmem:[#allocation11_spill] sm:$0xff] }
 0xe6a   :  { %12137 = vrcp.f32 %v7109_v56  ;;  %v17500_v56 = vld [vmem:[#allocation10_spill] sm:$0xff] }
 0xe6b   :  { %11123 = vmatpush1.bf16.msra.mxu0 %v15801_v27  ;;  %11155 = vmatpush1.bf16.msra.mxu1 %v15803_v54  ;;  %12139 = vrcp.f32 %v7116_v26  ;;  %v17506_v26 = vld [vmem:[#allocation16_spill] sm:$0xff] }
 0xe6c   :  { %11125 = vmatprep.subr.bf16.mxu0 %v15813_v40  ;;  %11157 = vmatprep.subr.bf16.mxu1 %v15815_v31 }
 0xe6f   :  { %11127 = vmatpush1.bf16.msra.mxu0 %v15839_v11  ;;  %11159 = vmatpush1.bf16.msra.mxu1 %v15841_v19 }
 0xe70   :  { %11129 = vmatprep.subr.bf16.mxu0 %v15851_v51  ;;  %11161 = vmatprep.subr.bf16.mxu1 %v15853_v15 }
 0xe73   :  { %v12136_v58 = vpop.eup %12135  ;;  %11131 = vmatpush1.bf16.msra.mxu0 %v17387_v10  ;;  %11163 = vmatpush1.bf16.msra.mxu1 %v17388_v3 }
 0xe74   :  { %v12138_v6 = vpop.eup %12137  ;;  %v7120_v23 = vmul.f32 %v12136_v58, %v12134_v0  ;;  %11133 = vmatprep.subr.bf16.mxu0 %v17389_v22  ;;  %11165 = vmatprep.subr.bf16.mxu1 %v17390_v41  ;;  %v17502_v0 = vld [vmem:[#allocation12_spill] sm:$0xff]  ;;  %v17503_v58 = vld [vmem:[#allocation13_spill] sm:$0xff] }
 0xe75   :  { %v7119_v42 = vmul.f32 %v12138_v6, %v16372_v13  ;;  %v12140_v13 = vpop.eup %12139  ;;  %v17504_v6 = vld [vmem:[#allocation14_spill] sm:$0xff] }
 0xe77   :  { %v16456_v29 = vadd.f32 %v7120_v23, %v7119_v42  ;;  %11135 = vmatpush1.bf16.msra.mxu0 %v17391_v39  ;;  %11167 = vmatpush1.bf16.msra.mxu1 %v17392_v63  ;;  %v17505_v23 = vld [vmem:[#allocation15_spill] sm:$0xff]  ;;  %v17507_v42 = vld [vmem:[#allocation17_spill] sm:$0xff] }
 0xe78   :  { %11137 = vmatprep.subr.bf16.mxu0 %v17393_v20  ;;  %11169 = vmatprep.subr.bf16.mxu1 %v17394_v14 }
 0xe79   :  { %12141 = vtanh.f32 %v16456_v29 }
 0xe7b   :  { %11139 = vmatpush1.bf16.msra.mxu0 %v15947_v61  ;;  %11171 = vmatpush1.bf16.msra.mxu1 %v17395_v18 }
 0xe7c   :  { %11141 = vmatprep.subr.bf16.mxu0 %v15959_v48  ;;  %11173 = vmatprep.subr.bf16.mxu1 %v15961_v21 }
 0xe7f   :  { %11143 = vmatpush1.bf16.msra.mxu0 %v15983_v37  ;;  %11175 = vmatpush1.bf16.msra.mxu1 %v15985_v28 }
 0xe80   :  { %11145 = vmatprep.subr.bf16.mxu0 %v15992_v60  ;;  %11177 = vmatprep.subr.bf16.mxu1 %v15994_v34 }
 0xe83   :  { %v12142_v5 = vpop.eup %12141  ;;  %11147 = vmatpush1.bf16.msra.mxu0 %v16007_v2  ;;  %11179 = vmatpush1.bf16.msra.mxu1 %v16009_v47 }
 0xe84   :  { %v7123_v45 = vmul.f32 %v12142_v5, %v12140_v13  ;;  %11181 = vmatprep.subr.bf16.mxu0 %v15423_v43  ;;  %11213 = vmatprep.subr.bf16.mxu1 %v15425_v9  ;;  %v17508_v13 = vld [vmem:[#allocation18_spill] sm:$0xff]  ;;  %v17509_v5 = vld [vmem:[#allocation19_spill] sm:$0xff] }
 0xe86   :  { %7351 = vmatmul.mubr.f32.vlgmr.msra.gmra.mrb[52].mxu0 %v7123_v45  ;;  %7422 = vmatmul.mubr.f32.vlgmr.msra.gmra.mrb[52].mxu1 %v7123_v45  ;;  %v17510_v45 = vld [vmem:[#allocation20_spill] sm:$0xff] }
 0xe87   :  { %11183 = vmatpush1.bf16.msra.mxu0 %v15441_v4  ;;  %11215 = vmatpush1.bf16.msra.mxu1 %v15443_v32 }
 0xe88   :  { %11185 = vmatprep.subr.bf16.mxu0 %v15461_v12  ;;  %11217 = vmatprep.subr.bf16.mxu1 %v15463_v24 }
 0xe89   :  { %7556 = vmatprep.mubr.f32.mxu0 %v17151_v53  ;;  %7627 = vmatprep.mubr.f32.mxu1 %v17151_v53 }
 0xe8b   :  { %11187 = vmatpush1.bf16.msra.mxu0 %v15481_v25  ;;  %11219 = vmatpush1.bf16.msra.mxu1 %v15483_v36 }
 0xe8c   :  { %11189 = vmatprep.subr.bf16.mxu0 %v17495_v46  ;;  %11221 = vmatprep.subr.bf16.mxu1 %v17496_v38 }
 0xe8f   :  { %11191 = vmatpush1.bf16.msra.mxu0 %v17497_v44  ;;  %11223 = vmatpush1.bf16.msra.mxu1 %v17498_v50 }
 0xe90   :  { %11193 = vmatprep.subr.bf16.mxu0 %v17499_v55  ;;  %11225 = vmatprep.subr.bf16.mxu1 %v17500_v56  ;;  %v17511_v56 = vld [vmem:[#allocation21_spill] sm:$0xff]  ;;  %v17521_v55 = vld [vmem:[#allocation51_spill] sm:$0xff] }
 0xe93   :  { %11195 = vmatpush1.bf16.msra.mxu0 %v17501_v8  ;;  %11227 = vmatpush1.bf16.msra.mxu1 %v17502_v0  ;;  %v17512_v8 = vld [vmem:[#allocation22_spill] sm:$0xff]  ;;  %v17513_v0 = vld [vmem:[#allocation23_spill] sm:$0xff] }
 0xe94   :  { %11197 = vmatprep.subr.bf16.mxu0 %v17503_v58  ;;  %11229 = vmatprep.subr.bf16.mxu1 %v17504_v6  ;;  %v17514_v58 = vld [vmem:[#allocation24_spill] sm:$0xff]  ;;  %v17515_v6 = vld [vmem:[#allocation25_spill] sm:$0xff] }
 0xe97   :  { %11199 = vmatpush1.bf16.msra.mxu0 %v17505_v23  ;;  %11231 = vmatpush1.bf16.msra.mxu1 %v17506_v26  ;;  %v17516_v23 = vld [vmem:[#allocation26_spill] sm:$0xff]  ;;  %v17517_v26 = vld [vmem:[#allocation27_spill] sm:$0xff] }
 0xe98   :  { %11201 = vmatprep.subr.bf16.mxu0 %v17507_v42  ;;  %11233 = vmatprep.subr.bf16.mxu1 %v17508_v13  ;;  %v17518_v42 = vld [vmem:[#allocation28_spill] sm:$0xff]  ;;  %v17519_v13 = vld [vmem:[#allocation29_spill] sm:$0xff] }
 0xe9b   :  { %11203 = vmatpush1.bf16.msra.mxu0 %v17509_v5  ;;  %11235 = vmatpush1.bf16.msra.mxu1 %v17510_v45  ;;  %v17520_v5 = vld [vmem:[#allocation30_spill] sm:$0xff] }
 0xe9c   :  { %11205 = vmatprep.subr.bf16.mxu0 %v17511_v56  ;;  %11237 = vmatprep.subr.bf16.mxu1 %v17512_v8 }
 0xe9f   :  { %11207 = vmatpush1.bf16.msra.mxu0 %v17513_v0  ;;  %11239 = vmatpush1.bf16.msra.mxu1 %v17514_v58 }
 0xea0   :  { %11209 = vmatprep.subr.bf16.mxu0 %v17515_v6  ;;  %11241 = vmatprep.subr.bf16.mxu1 %v17516_v23 }
 0xea3   :  { %11211 = vmatpush1.bf16.msra.mxu0 %v17517_v26  ;;  %11243 = vmatpush1.bf16.msra.mxu1 %v17518_v42 }
 0xea4   :  { %11245 = vmatprep.subr.bf16.mxu0 %v17519_v13  ;;  %11277 = vmatprep.subr.bf16.mxu1 %v17520_v5 }
 0xf39   :  { %v7198_v45 = vpop.f32.mrb[42].mxu0  ;;  %v7269_v56 = vpop.f32.mrb[42].mxu1 }
 0xf3a   :  { %v7278_v8 = vadd.f32 %v7198_v45, %v17521_v55  ;;  %v7200_v50 = vpop.f32.mrb[43].mxu0  ;;  %v7271_v0 = vpop.f32.mrb[43].mxu1  ;;  %v7280_v42 = vadd.f32 %v7269_v56, %v17440_v33 }
 0xf3b   :  { %v7279_v58 = vadd.f32 %v7200_v50, %v16060_v30  ;;  %v7281_v26 = vadd.f32 %v7271_v0, %v17411_v35 }
 0xf3c   :  { %v8649_v44 = vmul.f32 -1.442695, %v7278_v8 }
 0xf3d   :  { %v8650_v6 = vmul.f32 -1.442695, %v7279_v58  ;;  %v8651_v23 = vmul.f32 -1.442695, %v7281_v26 }
 0xf3e   :  { %12143 = vpow2.f32 %v8649_v44 }
 0xf3f   :  { %12145 = vpow2.f32 %v8650_v6 }
 0xf40   :  { %12147 = vpow2.f32 %v8651_v23 }
 0xf41   :  { %12149 = vtanh.f32 %v7280_v42 }
 0xf48   :  { %v12144_v13 = vpop.eup %12143 }
 0xf49   :  { %v12146_v38 = vpop.eup %12145  ;;  %v7439_v5 = vadd.f32 1.0, %v12144_v13 }
 0xf4a   :  { %v7445_v46 = vadd.f32 1.0, %v12146_v38  ;;  %v12148_v45 = vpop.eup %12147 }
 0xf4b   :  { %12151 = vrcp.f32 %v7439_v5  ;;  %v12150_v55 = vpop.eup %12149  ;;  %v7452_v44 = vadd.f32 1.0, %v12148_v45 }
 0xf4c   :  { %12153 = vrcp.f32 %v7445_v46 }
 0xf4d   :  { %12155 = vrcp.f32 %v7452_v44 }
 0xf55   :  { %v12152_v50 = vpop.eup %12151 }
 0xf56   :  { %v12154_v8 = vpop.eup %12153  ;;  %v7456_v58 = vmul.f32 %v12152_v50, %v12150_v55 }
 0xf57   :  { %v7455_v6 = vmul.f32 %v12154_v8, %v16430_v7  ;;  %v12156_v7 = vpop.eup %12155 }
 0xf59   :  { %v16514_v0 = vadd.f32 %v7456_v58, %v7455_v6  ;;  %v7352_v26 = vpop.f32.mrb[52].mxu0  ;;  %v7423_v56 = vpop.f32.mrb[52].mxu1 }
 0xf5a   :  { %v7432_v13 = vadd.f32 %v7352_v26, %v17413_v52  ;;  %v7354_v23 = vpop.f32.mrb[53].mxu0  ;;  %v7425_v42 = vpop.f32.mrb[53].mxu1  ;;  %v7434_v8 = vadd.f32 %v7423_v56, %v16091_v57 }
 0xf5b   :  { %v7433_v38 = vadd.f32 %v7354_v23, %v16079_v17  ;;  %12157 = vtanh.f32 %v16514_v0  ;;  %v7435_v55 = vadd.f32 %v7425_v42, %v16087_v16 }
 0xf5c   :  { %v8652_v46 = vmul.f32 -1.442695, %v7432_v13 }
 0xf5d   :  { %v8653_v5 = vmul.f32 -1.442695, %v7433_v38  ;;  %v8654_v50 = vmul.f32 -1.442695, %v7435_v55 }
 0xf5e   :  { %12159 = vpow2.f32 %v8652_v46 }
 0xf5f   :  { %12161 = vpow2.f32 %v8653_v5 }
 0xf60   :  { %12163 = vpow2.f32 %v8654_v50 }
 0xf61   :  { %12165 = vtanh.f32 %v7434_v8  ;;  %v17524_v8 = vld [vmem:[#allocation48_spill] sm:$0xff] }
 0xf65   :  { %v12158_v45 = vpop.eup %12157 }
 0xf66   :  { %v7459_v58 = vmul.f32 %v12158_v45, %v12156_v7 }
 0xf68   :  { %v12160_v44 = vpop.eup %12159  ;;  %7557 = vmatmul.mubr.f32.vlgmr.msra.gmra.mrb[44].mxu0 %v7459_v58  ;;  %7628 = vmatmul.mubr.f32.vlgmr.msra.gmra.mrb[44].mxu1 %v7459_v58  ;;  %v17529_v58 = vld [vmem:[#allocation12_spill] sm:$0xff] }
 0xf69   :  { %v12162_v6 = vpop.eup %12161  ;;  %v7463_v26 = vadd.f32 1.0, %v12160_v44  ;;  %11247 = vmatpush1.bf16.msra.mxu0 %v15761_v49  ;;  %11279 = vmatpush1.bf16.msra.mxu1 %v15763_v62  ;;  %v17530_v44 = vld [vmem:[#allocation13_spill] sm:$0xff] }
 0xf6a   :  { %v7469_v13 = vadd.f32 1.0, %v12162_v6  ;;  %11249 = vmatprep.subr.bf16.mxu0 %v15773_v1  ;;  %11281 = vmatprep.subr.bf16.mxu1 %v15775_v59  ;;  %v12164_v56 = vpop.eup %12163  ;;  %v17533_v6 = vld [vmem:[#allocation16_spill] sm:$0xff] }
 0xf6b   :  { %12167 = vrcp.f32 %v7463_v26  ;;  %7710 = vmatprep.mubr.f32.mxu0 %v17151_v53  ;;  %7781 = vmatprep.mubr.f32.mxu1 %v17151_v53  ;;  %v12166_v23 = vpop.eup %12165  ;;  %v7476_v5 = vadd.f32 1.0, %v12164_v56  ;;  %v17534_v26 = vld [vmem:[#allocation17_spill] sm:$0xff]  ;;  %v17536_v56 = vld [vmem:[#allocation19_spill] sm:$0xff] }
 0xf6c   :  { %12169 = vrcp.f32 %v7469_v13  ;;  %v17535_v13 = vld [vmem:[#allocation18_spill] sm:$0xff] }
 0xf6d   :  { %11251 = vmatpush1.bf16.msra.mxu0 %v15801_v27  ;;  %11283 = vmatpush1.bf16.msra.mxu1 %v15803_v54  ;;  %12171 = vrcp.f32 %v7476_v5  ;;  %v17541_v5 = vld [vmem:[#allocation24_spill] sm:$0xff] }
 0xf6e   :  { %11253 = vmatprep.subr.bf16.mxu0 %v15813_v40  ;;  %11285 = vmatprep.subr.bf16.mxu1 %v15815_v31 }
 0xf71   :  { %11255 = vmatpush1.bf16.msra.mxu0 %v15839_v11  ;;  %11287 = vmatpush1.bf16.msra.mxu1 %v15841_v19 }
 0xf72   :  { %11257 = vmatprep.subr.bf16.mxu0 %v15851_v51  ;;  %11289 = vmatprep.subr.bf16.mxu1 %v15853_v15 }
 0xf75   :  { %v12168_v42 = vpop.eup %12167  ;;  %11259 = vmatpush1.bf16.msra.mxu0 %v17387_v10  ;;  %11291 = vmatpush1.bf16.msra.mxu1 %v17388_v3 }
 0xf76   :  { %v12170_v38 = vpop.eup %12169  ;;  %v7480_v46 = vmul.f32 %v12168_v42, %v12166_v23  ;;  %11261 = vmatprep.subr.bf16.mxu0 %v17389_v22  ;;  %11293 = vmatprep.subr.bf16.mxu1 %v17390_v41  ;;  %v17537_v23 = vld [vmem:[#allocation20_spill] sm:$0xff]  ;;  %v17538_v42 = vld [vmem:[#allocation21_spill] sm:$0xff] }
 0xf77   :  { %v7479_v55 = vmul.f32 %v12170_v38, %v16456_v29  ;;  %v12172_v29 = vpop.eup %12171  ;;  %v17539_v38 = vld [vmem:[#allocation22_spill] sm:$0xff] }
 0xf79   :  { %v16540_v7 = vadd.f32 %v7480_v46, %v7479_v55  ;;  %11263 = vmatpush1.bf16.msra.mxu0 %v17391_v39  ;;  %11295 = vmatpush1.bf16.msra.mxu1 %v17392_v63  ;;  %v17540_v46 = vld [vmem:[#allocation23_spill] sm:$0xff]  ;;  %v17542_v55 = vld [vmem:[#allocation25_spill] sm:$0xff] }
 0xf7a   :  { %11265 = vmatprep.subr.bf16.mxu0 %v17393_v20  ;;  %11297 = vmatprep.subr.bf16.mxu1 %v17394_v14 }
 0xf7b   :  { %12173 = vtanh.f32 %v16540_v7 }
 0xf7d   :  { %11267 = vmatpush1.bf16.msra.mxu0 %v15947_v61  ;;  %11299 = vmatpush1.bf16.msra.mxu1 %v17395_v18 }
 0xf7e   :  { %11269 = vmatprep.subr.bf16.mxu0 %v15959_v48  ;;  %11301 = vmatprep.subr.bf16.mxu1 %v15961_v21 }
 0xf81   :  { %11271 = vmatpush1.bf16.msra.mxu0 %v15983_v37  ;;  %11303 = vmatpush1.bf16.msra.mxu1 %v15985_v28 }
 0xf82   :  { %11273 = vmatprep.subr.bf16.mxu0 %v15992_v60  ;;  %11305 = vmatprep.subr.bf16.mxu1 %v15994_v34 }
 0xf85   :  { %v12174_v45 = vpop.eup %12173  ;;  %11275 = vmatpush1.bf16.msra.mxu0 %v16007_v2  ;;  %11307 = vmatpush1.bf16.msra.mxu1 %v16009_v47 }
 0xf86   :  { %v7483_v50 = vmul.f32 %v12174_v45, %v12172_v29  ;;  %11309 = vmatprep.subr.bf16.mxu0 %v15423_v43  ;;  %11341 = vmatprep.subr.bf16.mxu1 %v15425_v9  ;;  %v17522_v43 = vld [vmem:[#allocation50_spill] sm:$0xff]  ;;  %v17544_v45 = vld [vmem:[#allocation27_spill] sm:$0xff] }
 0xf87   :  { %v17523_v9 = vld [vmem:[#allocation46_spill] sm:$0xff] }
 0xf88   :  { %7711 = vmatmul.mubr.f32.vlgmr.msra.gmra.mrb[50].mxu0 %v7483_v50  ;;  %7782 = vmatmul.mubr.f32.vlgmr.msra.gmra.mrb[50].mxu1 %v7483_v50  ;;  %v17543_v29 = vld [vmem:[#allocation26_spill] sm:$0xff]  ;;  %v17545_v50 = vld [vmem:[#allocation28_spill] sm:$0xff] }
 0xf89   :  { %11311 = vmatpush1.bf16.msra.mxu0 %v15441_v4  ;;  %11343 = vmatpush1.bf16.msra.mxu1 %v15443_v32  ;;  %v17525_v4 = vld [vmem:[#allocation8_spill] sm:$0xff]  ;;  %v17526_v32 = vld [vmem:[#allocation9_spill] sm:$0xff] }
 0xf8a   :  { %11313 = vmatprep.subr.bf16.mxu0 %v15461_v12  ;;  %11345 = vmatprep.subr.bf16.mxu1 %v15463_v24  ;;  %v17527_v12 = vld [vmem:[#allocation10_spill] sm:$0xff]  ;;  %v17528_v24 = vld [vmem:[#allocation11_spill] sm:$0xff] }
 0xf8b   :  { %7916 = vmatprep.mubr.f32.mxu0 %v17151_v53  ;;  %7987 = vmatprep.mubr.f32.mxu1 %v17151_v53 }
 0xf8d   :  { %11315 = vmatpush1.bf16.msra.mxu0 %v15481_v25  ;;  %11347 = vmatpush1.bf16.msra.mxu1 %v15483_v36  ;;  %v17531_v25 = vld [vmem:[#allocation14_spill] sm:$0xff]  ;;  %v17532_v36 = vld [vmem:[#allocation15_spill] sm:$0xff] }
 0xf8e   :  { %11317 = vmatprep.subr.bf16.mxu0 %v17522_v43  ;;  %11349 = vmatprep.subr.bf16.mxu1 %v17523_v9  ;;  %v17546_v43 = vld [vmem:[#allocation29_spill] sm:$0xff]  ;;  %v17547_v9 = vld [vmem:[#allocation30_spill] sm:$0xff] }
 0xf91   :  { %11319 = vmatpush1.bf16.msra.mxu0 %v17524_v8  ;;  %11351 = vmatpush1.bf16.msra.mxu1 %v17525_v4 }
 0xf92   :  { %11321 = vmatprep.subr.bf16.mxu0 %v17526_v32  ;;  %11353 = vmatprep.subr.bf16.mxu1 %v17527_v12  ;;  %v17548_v32 = vld [vmem:[#allocation51_spill] sm:$0xff] }
 0xf95   :  { %11323 = vmatpush1.bf16.msra.mxu0 %v17528_v24  ;;  %11355 = vmatpush1.bf16.msra.mxu1 %v17529_v58 }
 0xf96   :  { %11325 = vmatprep.subr.bf16.mxu0 %v17530_v44  ;;  %11357 = vmatprep.subr.bf16.mxu1 %v17531_v25 }
 0xf99   :  { %11327 = vmatpush1.bf16.msra.mxu0 %v17532_v36  ;;  %11359 = vmatpush1.bf16.msra.mxu1 %v17533_v6 }
 0xf9a   :  { %11329 = vmatprep.subr.bf16.mxu0 %v17534_v26  ;;  %11361 = vmatprep.subr.bf16.mxu1 %v17535_v13 }
 0xf9d   :  { %11331 = vmatpush1.bf16.msra.mxu0 %v17536_v56  ;;  %11363 = vmatpush1.bf16.msra.mxu1 %v17537_v23 }
 0xf9e   :  { %11333 = vmatprep.subr.bf16.mxu0 %v17538_v42  ;;  %11365 = vmatprep.subr.bf16.mxu1 %v17539_v38 }
 0xfa1   :  { %11335 = vmatpush1.bf16.msra.mxu0 %v17540_v46  ;;  %11367 = vmatpush1.bf16.msra.mxu1 %v17541_v5 }
 0xfa2   :  { %11337 = vmatprep.subr.bf16.mxu0 %v17542_v55  ;;  %11369 = vmatprep.subr.bf16.mxu1 %v17543_v29 }
 0xfa5   :  { %11339 = vmatpush1.bf16.msra.mxu0 %v17544_v45  ;;  %11371 = vmatpush1.bf16.msra.mxu1 %v17545_v50 }
 0xfa6   :  { %11373 = vmatprep.subr.bf16.mxu0 %v17546_v43  ;;  %11405 = vmatprep.subr.bf16.mxu1 %v17547_v9 }
0x103b   :  { %v7558_v8 = vpop.f32.mrb[44].mxu0  ;;  %v7629_v4 = vpop.f32.mrb[44].mxu1 }
0x103c   :  { %v7638_v12 = vadd.f32 %v7558_v8, %v17548_v32  ;;  %v7560_v24 = vpop.f32.mrb[45].mxu0  ;;  %v7631_v58 = vpop.f32.mrb[45].mxu1  ;;  %v7640_v13 = vadd.f32 %v7629_v4, %v17440_v33 }
0x103d   :  { %v7639_v44 = vadd.f32 %v7560_v24, %v16060_v30  ;;  %v7641_v6 = vadd.f32 %v7631_v58, %v17411_v35 }
0x103e   :  { %v8655_v25 = vmul.f32 -1.442695, %v7638_v12 }
0x103f   :  { %v8656_v36 = vmul.f32 -1.442695, %v7639_v44  ;;  %v8657_v26 = vmul.f32 -1.442695, %v7641_v6 }
0x1040   :  { %12175 = vpow2.f32 %v8655_v25 }
0x1041   :  { %12177 = vpow2.f32 %v8656_v36 }
0x1042   :  { %12179 = vpow2.f32 %v8657_v26 }
0x1043   :  { %12181 = vtanh.f32 %v7640_v13 }
0x104a   :  { %v12176_v56 = vpop.eup %12175 }
0x104b   :  { %v12178_v23 = vpop.eup %12177  ;;  %v7799_v42 = vadd.f32 1.0, %v12176_v56 }
0x104c   :  { %v7805_v38 = vadd.f32 1.0, %v12178_v23  ;;  %v12180_v46 = vpop.eup %12179 }
0x104d   :  { %12183 = vrcp.f32 %v7799_v42  ;;  %v12182_v5 = vpop.eup %12181  ;;  %v7812_v50 = vadd.f32 1.0, %v12180_v46 }
0x104e   :  { %12185 = vrcp.f32 %v7805_v38 }
0x104f   :  { %12187 = vrcp.f32 %v7812_v50  ;;  %v8223_v50 = vld [vmem:[%s16909_s15 + $0x78] sm:$0xff] }
0x1057   :  { %v12184_v55 = vpop.eup %12183 }
0x1058   :  { %v12186_v29 = vpop.eup %12185  ;;  %v7816_v45 = vmul.f32 %v12184_v55, %v12182_v5  ;;  %v8221_v55 = vld [vmem:[%s16909_s15 + $0x68] sm:$0xff] }
0x1059   :  { %v7815_v43 = vmul.f32 %v12186_v29, %v16514_v0  ;;  %v12188_v0 = vpop.eup %12187 }
0x105b   :  { %v16598_v9 = vadd.f32 %v7816_v45, %v7815_v43  ;;  %v7712_v8 = vpop.f32.mrb[50].mxu0  ;;  %v7783_v4 = vpop.f32.mrb[50].mxu1  ;;  %v8222_v45 = vld [vmem:[%s16909_s15 + $0x70] sm:$0xff] }
0x105c   :  { %v7792_v12 = vadd.f32 %v7712_v8, %v17413_v52  ;;  %v7714_v24 = vpop.f32.mrb[51].mxu0  ;;  %v7785_v58 = vpop.f32.mrb[51].mxu1  ;;  %v7794_v56 = vadd.f32 %v7783_v4, %v16091_v57  ;;  %v11482_v43 = vpack.c.bf16 %v8223_v50, %v8222_v45  ;;  %v8470_v8 = vld [vmem:[%s16910_s18] sm:$0xff]  ;;  %v8471_v4 = vld [vmem:[%s16910_s18 + $0x8] sm:$0xff] }
0x105d   :  { %v7793_v44 = vadd.f32 %v7714_v24, %v16079_v17  ;;  %12189 = vtanh.f32 %v16598_v9  ;;  %v7795_v6 = vadd.f32 %v7785_v58, %v16087_v16  ;;  %v8472_v24 = vld [vmem:[%s16910_s18 + $0x10] sm:$0xff]  ;;  %v8473_v58 = vld [vmem:[%s16910_s18 + $0x18] sm:$0xff] }
0x105e   :  { %v8658_v25 = vmul.f32 -1.442695, %v7792_v12  ;;  %v11509_v12 = vpack.c.bf16 %v8471_v4, %v8470_v8 }
0x105f   :  { %v8659_v36 = vmul.f32 -1.442695, %v7793_v44  ;;  %v8660_v13 = vmul.f32 -1.442695, %v7795_v6  ;;  %v17549_v44 = vld [vmem:[#allocation44_spill] sm:$0xff]  ;;  %v8475_v6 = vld [vmem:[%s16910_s18 + $0x28] sm:$0xff] }
0x1060   :  { %12191 = vpow2.f32 %v8658_v25  ;;  %v11512_v25 = vpack.c.bf16 %v8473_v58, %v8472_v24 }
0x1061   :  { %12193 = vpow2.f32 %v8659_v36  ;;  %v8474_v36 = vld [vmem:[%s16910_s18 + $0x20] sm:$0xff] }
0x1062   :  { %12195 = vpow2.f32 %v8660_v13  ;;  %v8477_v13 = vld [vmem:[%s16910_s18 + $0x38] sm:$0xff] }
0x1063   :  { %12197 = vtanh.f32 %v7794_v56 }
0x1067   :  { %v12190_v26 = vpop.eup %12189 }
0x1068   :  { %v7819_v23 = vmul.f32 %v12190_v26, %v12188_v0  ;;  %v11515_v0 = vpack.c.bf16 %v8475_v6, %v8474_v36  ;;  %v8476_v26 = vld [vmem:[%s16910_s18 + $0x30] sm:$0xff] }
0x1069   :  { %v11518_v56 = vpack.c.bf16 %v8477_v13, %v8476_v26 }
0x106a   :  { %v12192_v42 = vpop.eup %12191  ;;  %7917 = vmatmul.mubr.f32.vlgmr.msra.gmra.mrb[46].mxu0 %v7819_v23  ;;  %7988 = vmatmul.mubr.f32.vlgmr.msra.gmra.mrb[46].mxu1 %v7819_v23  ;;  %v8478_v23 = vld [vmem:[%s16910_s18 + $0x40] sm:$0xff] }
0x106b   :  { %v12194_v38 = vpop.eup %12193  ;;  %v7823_v46 = vadd.f32 1.0, %v12192_v42  ;;  %11375 = vmatpush1.bf16.msra.mxu0 %v15761_v49  ;;  %11407 = vmatpush1.bf16.msra.mxu1 %v15763_v62  ;;  %v8479_v42 = vld [vmem:[%s16910_s18 + $0x48] sm:$0xff] }
0x106c   :  { %v7829_v5 = vadd.f32 1.0, %v12194_v38  ;;  %11377 = vmatprep.subr.bf16.mxu0 %v15773_v1  ;;  %11409 = vmatprep.subr.bf16.mxu1 %v15775_v59  ;;  %v12196_v49 = vpop.eup %12195  ;;  %v11521_v38 = vpack.c.bf16 %v8479_v42, %v8478_v23 }
0x106d   :  { %12199 = vrcp.f32 %v7823_v46  ;;  %8070 = vmatprep.mubr.f32.mxu0 %v17151_v53  ;;  %8141 = vmatprep.mubr.f32.mxu1 %v17151_v53  ;;  %v12198_v62 = vpop.eup %12197  ;;  %v8480_v46 = vld [vmem:[%s16910_s18 + $0x50] sm:$0xff] }
0x106e   :  { %12201 = vrcp.f32 %v7829_v5  ;;  %v8481_v5 = vld [vmem:[%s16910_s18 + $0x58] sm:$0xff] }
0x106f   :  { %11379 = vmatpush1.bf16.msra.mxu0 %v15801_v27  ;;  %11411 = vmatpush1.bf16.msra.mxu1 %v15803_v54  ;;  %v7836_v54 = vadd.f32 1.0, %v12196_v49  ;;  %v11524_v49 = vpack.c.bf16 %v8481_v5, %v8480_v46 }
0x1070   :  { %11381 = vmatprep.subr.bf16.mxu0 %v15813_v40  ;;  %11413 = vmatprep.subr.bf16.mxu1 %v15815_v31 }
0x1071   :  { %12203 = vrcp.f32 %v7836_v54  ;;  %v8485_v54 = vld [vmem:[%s16910_s18 + $0x78] sm:$0xff] }
0x1073   :  { %11383 = vmatpush1.bf16.msra.mxu0 %v15839_v11  ;;  %11415 = vmatpush1.bf16.msra.mxu1 %v15841_v19  ;;  %v8208_v11 = vld [vmem:[%s16909_s15] sm:$0xff]  ;;  %v8209_v19 = vld [vmem:[%s16909_s15 + $0x8] sm:$0xff] }
0x1074   :  { %11385 = vmatprep.subr.bf16.mxu0 %v15851_v51  ;;  %11417 = vmatprep.subr.bf16.mxu1 %v15853_v15 }
0x1077   :  { %v12200_v1 = vpop.eup %12199  ;;  %11387 = vmatpush1.bf16.msra.mxu0 %v17387_v10  ;;  %11419 = vmatpush1.bf16.msra.mxu1 %v17388_v3  ;;  %v8215_v10 = vld [vmem:[%s16909_s15 + $0x38] sm:$0xff] }
0x1078   :  { %v12202_v59 = vpop.eup %12201  ;;  %v7840_v27 = vmul.f32 %v12200_v1, %v12198_v62  ;;  %11389 = vmatprep.subr.bf16.mxu0 %v17389_v22  ;;  %11421 = vmatprep.subr.bf16.mxu1 %v17390_v41  ;;  %v8216_v22 = vld [vmem:[%s16909_s15 + $0x40] sm:$0xff]  ;;  %v8217_v41 = vld [vmem:[%s16909_s15 + $0x48] sm:$0xff] }
0x1079   :  { %v7839_v40 = vmul.f32 %v12202_v59, %v16540_v7  ;;  %v8220_v7 = vld [vmem:[%s16909_s15 + $0x60] sm:$0xff]  ;;  %v8483_v1 = vld [vmem:[%s16910_s18 + $0x68] sm:$0xff] }
0x107a   :  { %v11479_v29 = vpack.c.bf16 %v8221_v55, %v8220_v7  ;;  %v8482_v62 = vld [vmem:[%s16910_s18 + $0x60] sm:$0xff]  ;;  %v8239_v55 = vld [vmem:[%s16911_s16 + $0x70] sm:$0xff] }
0x107b   :  { %v16624_v31 = vadd.f32 %v7840_v27, %v7839_v40  ;;  %11391 = vmatpush1.bf16.msra.mxu0 %v17391_v39  ;;  %11423 = vmatpush1.bf16.msra.mxu1 %v17392_v63  ;;  %v12204_v51 = vpop.eup %12203  ;;  %v11473_v39 = vpack.c.bf16 %v8217_v41, %v8216_v22  ;;  %v8218_v63 = vld [vmem:[%s16909_s15 + $0x50] sm:$0xff]  ;;  %v11527_v59 = vpack.c.bf16 %v8483_v1, %v8482_v62 }
0x107c   :  { %11393 = vmatprep.subr.bf16.mxu0 %v17393_v20  ;;  %11425 = vmatprep.subr.bf16.mxu1 %v17394_v14  ;;  %v8214_v14 = vld [vmem:[%s16909_s15 + $0x30] sm:$0xff]  ;;  %v8219_v20 = vld [vmem:[%s16909_s15 + $0x58] sm:$0xff] }
0x107d   :  { %12205 = vtanh.f32 %v16624_v31  ;;  %v11470_v3 = vpack.c.bf16 %v8215_v10, %v8214_v14  ;;  %v8484_v27 = vld [vmem:[%s16910_s18 + $0x70] sm:$0xff]  ;;  %v8233_v10 = vld [vmem:[%s16911_s16 + $0x40] sm:$0xff] }
0x107e   :  { %v11530_v40 = vpack.c.bf16 %v8485_v54, %v8484_v27  ;;  %v8235_v41 = vld [vmem:[%s16911_s16 + $0x50] sm:$0xff] }
0x107f   :  { %11395 = vmatpush1.bf16.msra.mxu0 %v15947_v61  ;;  %11427 = vmatpush1.bf16.msra.mxu1 %v17395_v18  ;;  %v12240_v61 = vmov 0.0|0.0   ;;  %v11476_v18 = vpack.c.bf16 %v8219_v20, %v8218_v63  ;;  %v8237_v20 = vld [vmem:[%s16911_s16 + $0x60] sm:$0xff] }
0x1080   :  { %11397 = vmatprep.subr.bf16.mxu0 %v15959_v48  ;;  %11429 = vmatprep.subr.bf16.mxu1 %v15961_v21  ;;  %v11461_v48 = vpack.c.bf16 %v8209_v19, %v8208_v11  ;;  %v17550_v11 = vld [vmem:[#allocation41_spill] sm:$0xff]  ;;  %v8225_v19 = vld [vmem:[%s16911_s16] sm:$0xff] }
0x1083   :  { %11399 = vmatpush1.bf16.msra.mxu0 %v15983_v37  ;;  %11431 = vmatpush1.bf16.msra.mxu1 %v15985_v28  ;;  %v8212_v28 = vld [vmem:[%s16909_s15 + $0x20] sm:$0xff] }
0x1084   :  { %11401 = vmatprep.subr.bf16.mxu0 %v15992_v60  ;;  %11433 = vmatprep.subr.bf16.mxu1 %v15994_v34  ;;  %v8210_v34 = vld [vmem:[%s16909_s15 + $0x10] sm:$0xff]  ;;  %v8211_v60 = vld [vmem:[%s16909_s15 + $0x18] sm:$0xff] }
0x1085   :  { %v11464_v37 = vpack.c.bf16 %v8211_v60, %v8210_v34  ;;  %v8229_v60 = vld [vmem:[%s16911_s16 + $0x20] sm:$0xff] }
0x1087   :  { %v12206_v15 = vpop.eup %12205  ;;  %11403 = vmatpush1.bf16.msra.mxu0 %v16007_v2  ;;  %11435 = vmatpush1.bf16.msra.mxu1 %v16009_v47  ;;  %v8213_v2 = vld [vmem:[%s16909_s15 + $0x28] sm:$0xff] }
0x1088   :  { %v7843_v21 = vmul.f32 %v12206_v15, %v12204_v51  ;;  %11460 = vmatprep.subr.bf16.mxu1 %v12240_v61  ;;  %11436 = vmatprep.subr.bf16.mxu0 %v12240_v61  ;;  %v11467_v47 = vpack.c.bf16 %v8213_v2, %v8212_v28  ;;  %v8226_v51 = vld [vmem:[%s16911_s16 + $0x8] sm:$0xff]  ;;  %v8231_v2 = vld [vmem:[%s16911_s16 + $0x30] sm:$0xff] }
0x1089   :  { %v11437_v15 = vpack.c.bf16 %v8226_v51, %v8225_v19 }
0x108a   :  { %8071 = vmatmul.mubr.f32.vlgmr.msra.gmra.mrb[48].mxu0 %v7843_v21  ;;  %8142 = vmatmul.mubr.f32.vlgmr.msra.gmra.mrb[48].mxu1 %v7843_v21  ;;  %v8228_v21 = vld [vmem:[%s16911_s16 + $0x18] sm:$0xff] }
0x108b   :  { %11462 = vmatpush3.bf16.msra.mxu1 %v11461_v48  ;;  %8803 = vmatprep.mubr.msk.f32.mxu1 %vm12241_vm0, %v17151_v53  ;;  %v8227_v48 = vld [vmem:[%s16911_s16 + $0x10] sm:$0xff] }
0x108c   :  { %11463 = vmatprep.subr.bf16.mxu1 %v12240_v61  ;;  %8768 = vmatprep.mubr.msk.f32.mxu0 %vm12241_vm0, %v17151_v53  ;;  %v11440_v34 = vpack.c.bf16 %v8228_v21, %v8227_v48 }
0x108d   :  { %11438 = vmatpush3.bf16.msra.mxu0 %v11437_v15 }
0x108e   :  { %11439 = vmatprep.subr.bf16.mxu0 %v12240_v61 }
0x108f   :  { %11465 = vmatpush3.bf16.msra.mxu1 %v11464_v37  ;;  %v8230_v37 = vld [vmem:[%s16911_s16 + $0x28] sm:$0xff] }
0x1090   :  { %11466 = vmatprep.subr.bf16.mxu1 %v12240_v61  ;;  %v11443_v28 = vpack.c.bf16 %v8230_v37, %v8229_v60 }
0x1091   :  { %11441 = vmatpush3.bf16.msra.mxu0 %v11440_v34 }
0x1092   :  { %11442 = vmatprep.subr.bf16.mxu0 %v12240_v61 }
0x1093   :  { %11468 = vmatpush3.bf16.msra.mxu1 %v11467_v47  ;;  %v8232_v47 = vld [vmem:[%s16911_s16 + $0x38] sm:$0xff] }
0x1094   :  { %11469 = vmatprep.subr.bf16.mxu1 %v12240_v61  ;;  %v11446_v14 = vpack.c.bf16 %v8232_v47, %v8231_v2 }
0x1095   :  { %11444 = vmatpush3.bf16.msra.mxu0 %v11443_v28 }
0x1096   :  { %11445 = vmatprep.subr.bf16.mxu0 %v12240_v61 }
0x1097   :  { %11471 = vmatpush3.bf16.msra.mxu1 %v11470_v3  ;;  %v8234_v3 = vld [vmem:[%s16911_s16 + $0x48] sm:$0xff] }
0x1098   :  { %11472 = vmatprep.subr.bf16.mxu1 %v12240_v61  ;;  %v11449_v22 = vpack.c.bf16 %v8234_v3, %v8233_v10 }
0x1099   :  { %11447 = vmatpush3.bf16.msra.mxu0 %v11446_v14 }
0x109a   :  { %11448 = vmatprep.subr.bf16.mxu0 %v12240_v61 }
0x109b   :  { %11474 = vmatpush3.bf16.msra.mxu1 %v11473_v39  ;;  %v8236_v39 = vld [vmem:[%s16911_s16 + $0x58] sm:$0xff] }
0x109c   :  { %11475 = vmatprep.subr.bf16.mxu1 %v12240_v61  ;;  %v11452_v63 = vpack.c.bf16 %v8236_v39, %v8235_v41  ;;  %v8383_v41 = vld [vmem:[%s16912_s17 + $0x8] sm:$0xff] }
0x109d   :  { %11450 = vmatpush3.bf16.msra.mxu0 %v11449_v22  ;;  %v8382_v22 = vld [vmem:[%s16912_s17] sm:$0xff] }
0x109e   :  { %11451 = vmatprep.subr.bf16.mxu0 %v12240_v61 }
0x109f   :  { %11477 = vmatpush3.bf16.msra.mxu1 %v11476_v18  ;;  %v8238_v18 = vld [vmem:[%s16911_s16 + $0x68] sm:$0xff] }
0x10a0   :  { %11478 = vmatprep.subr.bf16.mxu1 %v12240_v61  ;;  %v11455_v7 = vpack.c.bf16 %v8238_v18, %v8237_v20  ;;  %v11485_v20 = vpack.c.bf16 %v8383_v41, %v8382_v22 }
0x10a1   :  { %11453 = vmatpush3.bf16.msra.mxu0 %v11452_v63 }
0x10a2   :  { %11454 = vmatprep.subr.bf16.mxu0 %v12240_v61 }
0x10a3   :  { %11480 = vmatpush3.bf16.msra.mxu1 %v11479_v29  ;;  %v8240_v29 = vld [vmem:[%s16911_s16 + $0x78] sm:$0xff] }
0x10a4   :  { %11481 = vmatprep.subr.bf16.mxu1 %v12240_v61  ;;  %v11458_v45 = vpack.c.bf16 %v8240_v29, %v8239_v55  ;;  %v8386_v29 = vld [vmem:[%s16912_s17 + $0x20] sm:$0xff] }
0x10a5   :  { %11456 = vmatpush3.bf16.msra.mxu0 %v11455_v7  ;;  %v8385_v7 = vld [vmem:[%s16912_s17 + $0x18] sm:$0xff] }
0x10a6   :  { %11457 = vmatprep.subr.bf16.mxu0 %v12240_v61 }
0x10a7   :  { %11483 = vmatpush3.bf16.msra.mxu1 %v11482_v43 }
0x10a8   :  { %11508 = vmatprep.subr.bf16.mxu1 %v12240_v61 }
0x10a9   :  { %11459 = vmatpush3.bf16.msra.mxu0 %v11458_v45  ;;  %v8387_v45 = vld [vmem:[%s16912_s17 + $0x28] sm:$0xff] }
0x10aa   :  { %8804 = vmatmul.mubr.f32.vlgmr.msra.gmra.mrb[64].mxu1 %v17549_v44  ;;  %11484 = vmatprep.subr.bf16.mxu0 %v12240_v61 }
0x10ab   :  { %11510 = vmatpush3.bf16.msra.mxu1 %v11509_v12  ;;  %8873 = vmatprep.mubr.msk.f32.mxu1 %vm12241_vm0, %v17151_v53 }
0x10ac   :  { %11511 = vmatprep.subr.bf16.mxu1 %v12240_v61 }
0x10af   :  { %11513 = vmatpush3.bf16.msra.mxu1 %v11512_v25 }
0x10b0   :  { %11514 = vmatprep.subr.bf16.mxu1 %v12240_v61 }
0x10b3   :  { %11516 = vmatpush3.bf16.msra.mxu1 %v11515_v0 }
0x10b4   :  { %11517 = vmatprep.subr.bf16.mxu1 %v12240_v61 }
0x10b7   :  { %11519 = vmatpush3.bf16.msra.mxu1 %v11518_v56 }
0x10b8   :  { %11520 = vmatprep.subr.bf16.mxu1 %v12240_v61 }
0x10bb   :  { %11522 = vmatpush3.bf16.msra.mxu1 %v11521_v38 }
0x10bc   :  { %11523 = vmatprep.subr.bf16.mxu1 %v12240_v61 }
0x10bf   :  { %11525 = vmatpush3.bf16.msra.mxu1 %v11524_v49 }
0x10c0   :  { %11526 = vmatprep.subr.bf16.mxu1 %v12240_v61 }
0x10c3   :  { %11528 = vmatpush3.bf16.msra.mxu1 %v11527_v59 }
0x10c4   :  { %11529 = vmatprep.subr.bf16.mxu1 %v12240_v61 }
0x10c7   :  { %11531 = vmatpush3.bf16.msra.mxu1 %v11530_v40 }
0x10ca   :  { %8874 = vmatmul.mubr.f32.vlgmr.msra.gmra.mrb[66].mxu1 %v17550_v11 }
0x113d   :  { %v7918_v50 = vpop.f32.mrb[46].mxu0  ;;  %v7989_v43 = vpop.f32.mrb[46].mxu1 }
0x113e   :  { %v7998_v8 = vadd.f32 %v7918_v50, %v17548_v32  ;;  %v7920_v4 = vpop.f32.mrb[47].mxu0  ;;  %v7991_v12 = vpop.f32.mrb[47].mxu1  ;;  %v8000_v6 = vadd.f32 %v7989_v43, %v17440_v33  ;;  %v11491_v50 = vpack.c.bf16 %v8387_v45, %v8386_v29  ;;  %v8388_v43 = vld [vmem:[%s16912_s17 + $0x30] sm:$0xff] }
0x113f   :  { %v7999_v24 = vadd.f32 %v7920_v4, %v16060_v30  ;;  %v8001_v25 = vadd.f32 %v7991_v12, %v17411_v35  ;;  %v8390_v4 = vld [vmem:[%s16912_s17 + $0x40] sm:$0xff]  ;;  %v8391_v12 = vld [vmem:[%s16912_s17 + $0x48] sm:$0xff] }
0x1140   :  { %v8661_v58 = vmul.f32 -1.442695, %v7998_v8 }
0x1141   :  { %v8662_v44 = vmul.f32 -1.442695, %v7999_v24  ;;  %v8663_v36 = vmul.f32 -1.442695, %v8001_v25  ;;  %v11497_v24 = vpack.c.bf16 %v8391_v12, %v8390_v4 }
0x1142   :  { %12207 = vpow2.f32 %v8661_v58  ;;  %v8392_v58 = vld [vmem:[%s16912_s17 + $0x50] sm:$0xff] }
0x1143   :  { %12209 = vpow2.f32 %v8662_v44  ;;  %v8393_v44 = vld [vmem:[%s16912_s17 + $0x58] sm:$0xff] }
0x1144   :  { %12211 = vpow2.f32 %v8663_v36  ;;  %v11500_v36 = vpack.c.bf16 %v8393_v44, %v8392_v58 }
0x1145   :  { %12213 = vtanh.f32 %v8000_v6 }
0x114c   :  { %v12208_v0 = vpop.eup %12207 }
0x114d   :  { %v12210_v26 = vpop.eup %12209  ;;  %v8159_v13 = vadd.f32 1.0, %v12208_v0  ;;  %v8394_v0 = vld [vmem:[%s16912_s17 + $0x60] sm:$0xff] }
0x114e   :  { %v8165_v56 = vadd.f32 1.0, %v12210_v26  ;;  %v12212_v32 = vpop.eup %12211  ;;  %v8395_v26 = vld [vmem:[%s16912_s17 + $0x68] sm:$0xff] }
0x114f   :  { %12215 = vrcp.f32 %v8159_v13  ;;  %v12214_v23 = vpop.eup %12213  ;;  %v8172_v46 = vadd.f32 1.0, %v12212_v32  ;;  %v11503_v13 = vpack.c.bf16 %v8395_v26, %v8394_v0  ;;  %v8397_v32 = vld [vmem:[%s16912_s17 + $0x78] sm:$0xff] }
0x1150   :  { %12217 = vrcp.f32 %v8165_v56  ;;  %v8396_v56 = vld [vmem:[%s16912_s17 + $0x70] sm:$0xff] }
0x1151   :  { %12219 = vrcp.f32 %v8172_v46 }
0x1159   :  { %v12216_v30 = vpop.eup %12215 }
0x115a   :  { %v12218_v42 = vpop.eup %12217  ;;  %v8176_v38 = vmul.f32 %v12216_v30, %v12214_v23  ;;  %v11506_v23 = vpack.c.bf16 %v8397_v32, %v8396_v56 }
0x115b   :  { %v8175_v5 = vmul.f32 %v12218_v42, %v16598_v9  ;;  %v12220_v19 = vpop.eup %12219 }
0x115d   :  { %v8177_v35 = vadd.f32 %v8176_v38, %v8175_v5  ;;  %v8072_v49 = vpop.f32.mrb[48].mxu0  ;;  %v8143_v62 = vpop.f32.mrb[48].mxu1 }
0x115e   :  { %v8152_v33 = vadd.f32 %v8072_v49, %v17413_v52  ;;  %v8074_v1 = vpop.f32.mrb[49].mxu0  ;;  %v8145_v59 = vpop.f32.mrb[49].mxu1  ;;  %v8154_v15 = vadd.f32 %v8143_v62, %v16091_v57  ;;  %v8667_v49 = vld [vmem:[%s16913_s19] ss:$0 sm:$0xff] }
0x115f   :  { %12221 = vtanh.f32 %v8177_v35  ;;  %v8153_v27 = vadd.f32 %v8074_v1, %v16079_v17  ;;  %v8155_v11 = vadd.f32 %v8145_v59, %v16087_v16 }
0x1160   :  { %v8664_v54 = vmul.f32 -1.442695, %v8152_v33 }
0x1161   :  { %v8665_v40 = vmul.f32 -1.442695, %v8153_v27  ;;  %v8666_v9 = vmul.f32 -1.442695, %v8155_v11 }
0x1162   :  { %12223 = vpow2.f32 %v8664_v54 }
0x1163   :  { %12225 = vpow2.f32 %v8665_v40 }
0x1164   :  { %12227 = vpow2.f32 %v8666_v9 }
0x1165   :  { %12229 = vtanh.f32 %v8154_v15 }
0x1169   :  { %v12222_v51 = vpop.eup %12221 }
0x116a   :  { %v16827_v48 = vmul.f32 %v12222_v51, %v12220_v19 }
0x116c   :  { %v12224_v21 = vpop.eup %12223 }
0x116d   :  { %v12226_v52 = vpop.eup %12225  ;;  %v8183_v34 = vadd.f32 1.0, %v12224_v21 }
0x116e   :  { %v8189_v60 = vadd.f32 1.0, %v12226_v52  ;;  %v12228_v17 = vpop.eup %12227 }
0x116f   :  { %12231 = vrcp.f32 %v8183_v34  ;;  %v12230_v37 = vpop.eup %12229  ;;  %v8196_v47 = vadd.f32 1.0, %v12228_v17 }
0x1170   :  { %12233 = vrcp.f32 %v8189_v60 }
0x1171   :  { %12235 = vrcp.f32 %v8196_v47 }
0x1179   :  { %v12232_v28 = vpop.eup %12231 }
0x117a   :  { %v12234_v2 = vpop.eup %12233  ;;  %v8200_v16 = vmul.f32 %v12232_v28, %v12230_v37 }
0x117b   :  { %v8199_v14 = vmul.f32 %v12234_v2, %v16624_v31  ;;  %v12236_v39 = vpop.eup %12235  ;;  %v8384_v31 = vld [vmem:[%s16912_s17 + $0x10] sm:$0xff] }
0x117c   :  { %v11488_v55 = vpack.c.bf16 %v8385_v7, %v8384_v31 }
0x117d   :  { %v8201_v10 = vadd.f32 %v8200_v16, %v8199_v14  ;;  %v8377_v57 = vpop.f32.mrb[64].mxu1 }
0x117e   :  { %v8805_v3 = vpop.f32.mrb[65].mxu1 }
0x117f   :  { %12237 = vtanh.f32 %v8201_v10 }
0x1189   :  { %v12238_v63 = vpop.eup %12237 }
0x118a   :  { %v8203_v18 = vmul.f32 %v12238_v63, %v12236_v39 }
0x118c   :  { %8769 = vmatmul.mubr.f32.vlgmr.msra.gmra.mrb[64].mxu0 %v8203_v18 }
0x118d   :  { %11486 = vmatpush3.bf16.msra.mxu0 %v11485_v20  ;;  %8838 = vmatprep.mubr.msk.f32.mxu0 %vm12241_vm0, %v17151_v53  ;;  %v8389_v53 = vld [vmem:[%s16912_s17 + $0x38] sm:$0xff] }
0x118e   :  { %11487 = vmatprep.subr.bf16.mxu0 %v12240_v61  ;;  %v11494_v8 = vpack.c.bf16 %v8389_v53, %v8388_v43 }
0x1191   :  { %11489 = vmatpush3.bf16.msra.mxu0 %v11488_v55 }
0x1192   :  { %11490 = vmatprep.subr.bf16.mxu0 %v12240_v61 }
0x1195   :  { %11492 = vmatpush3.bf16.msra.mxu0 %v11491_v50 }
0x1196   :  { %11493 = vmatprep.subr.bf16.mxu0 %v12240_v61 }
0x1199   :  { %11495 = vmatpush3.bf16.msra.mxu0 %v11494_v8 }
0x119a   :  { %11496 = vmatprep.subr.bf16.mxu0 %v12240_v61 }
0x119d   :  { %11498 = vmatpush3.bf16.msra.mxu0 %v11497_v24  ;;  %v8552_v25 = vpop.f32.mrb[66].mxu1 }
0x119e   :  { %v8875_v6 = vpop.f32.mrb[67].mxu1  ;;  %11499 = vmatprep.subr.bf16.mxu0 %v12240_v61 }
0x11a1   :  { %11501 = vmatpush3.bf16.msra.mxu0 %v11500_v36 }
0x11a2   :  { %11502 = vmatprep.subr.bf16.mxu0 %v12240_v61 }
0x11a5   :  { %11504 = vmatpush3.bf16.msra.mxu0 %v11503_v13 }
0x11a6   :  { %11505 = vmatprep.subr.bf16.mxu0 %v12240_v61 }
0x11a9   :  { %11507 = vmatpush3.bf16.msra.mxu0 %v11506_v23 }
0x11ac   :  { %8839 = vmatmul.mubr.f32.vlgmr.msra.gmra.mrb[66].mxu0 %v16827_v48 }
0x125f   :  { %v8307_v30 = vpop.f32.mrb[64].mxu0 }
0x1260   :  { %v8378_v42 = vadd.f32 %v8377_v57, %v8307_v30  ;;  %v8770_v38 = vpop.f32.mrb[65].mxu0 }
0x127f   :  { %v8464_v46 = vpop.f32.mrb[66].mxu0 }
0x1280   :  { %v8468_v5 = vadd.f32 %v8464_v46, %v8378_v42  ;;  %v8840_v35 = vpop.f32.mrb[67].mxu0 }
0x1282   :  { %v8556_v62 = vadd.f32 %v8552_v25, %v8468_v5 }
0x1284   :  { %v8564_v33 = vadd.f32 %v8667_v49, %v8556_v62 }
0x1286   :  { %8566 = vst.msk [vmem:[%s16914_s20] sm:$0xff] %vm8565_vm1, %v8564_v33 }

</bundles_post_ra>
